<compile_context>
chip_gen: v7x
topology: tpu7x:2x2x1
jax: 0.10.0
libtpu: 0.0.40
codegen_flags: <defaults>
</compile_context>

<pallas_src>
import functools

import jax
import jax.numpy as jnp
from jax import lax
from jax.experimental import pallas as pl
from jax.experimental.pallas import tpu as pltpu


def _attention_hk_kernel(x_ref, k_ref, wqv_ref, wout_ref, bout_ref, bias_ref,
                         o_ref, *, heads, dim_head):
    # x_ref    : (M, DIM)       VMEM, native dtype (M = Bt*N rows of this step)
    # k_ref    : (M, INNER)     VMEM, native dtype
    # wqv_ref  : (DIM, 2*INNER) VMEM  (fused query/value weight, pre-transposed)
    # wout_ref : (INNER, DIM)   VMEM  (output weight, pre-transposed)
    # bout_ref : (1, DIM)       VMEM  (output bias)
    # bias_ref : (M, M)         VMEM  (block-diag additive mask: 0 / -1e30)
    # o_ref    : (M, DIM)       VMEM
    m = x_ref.shape[0]
    d = dim_head
    inner = heads * d
    cdtype = x_ref.dtype
    scale = d ** -0.5

    x = x_ref[...]                      # (M, DIM)   native dtype for the MXU
    kin = k_ref[...]                    # (M, INNER) native dtype, never head-split

    # ---- Fused QV projection: one (M, DIM) @ (DIM, 2*INNER) matmul ----------
    qv = jnp.dot(x, wqv_ref[...], preferred_element_type=jnp.float32)   # (M, 2I) f32
    q = qv[:, :inner]                                                    # static lane slices
    v = qv[:, inner:].astype(cdtype)                                     # (M, INNER)

    # ---- Head-selection masks on the lane axis (built once per step; tiny) --
    # head_sel[h, c] = (column c belongs to head h); avoids integer division.
    h_ids = lax.broadcasted_iota(jnp.int32, (heads, inner), 0)
    c_ids = lax.broadcasted_iota(jnp.int32, (heads, inner), 1)
    rel = c_ids - h_ids * d
    head_sel = (rel >= 0) & (rel < d)                                    # (H, INNER) bool
    q_sel = jnp.where(head_sel, jnp.float32(scale), jnp.float32(0.0))   # {scale, 0}
    o_sel = head_sel.astype(jnp.float32)                                 # {1, 0}

    # ---- Block-diagonal packed queries: heads stay on the lane axis ---------
    # q_bd[(h, m), c] = scale * q[m, c] if c in head h else 0.
    q_bd = (q[None, :, :] * q_sel[:, None, :]).astype(cdtype)           # (H, M, INNER)
    q_bd = q_bd.reshape(heads * m, inner)                               # leading collapse (free)

    # ---- One fat QK^T matmul (contraction on INNER, unsplit keys) -----------
    dots = lax.dot_general(q_bd, kin, (((1,), (1,)), ((), ())),
                           preferred_element_type=jnp.float32)          # (H*M, M) f32
    dots = dots.reshape(heads, m, m) + bias_ref[...][None]              # mask cross-batch

    # ---- Lane-dense (M-wide) numerically-stable softmax, exact divide -------
    mx = jnp.max(dots, axis=-1, keepdims=True)
    e = jnp.exp(dots - mx)
    s = jnp.sum(e, axis=-1, keepdims=True)
    attn = (e / s).astype(cdtype)                                       # (H, M, M)

    # ---- One fat attn @ V matmul (V never head-split) ------------------------
    attn = attn.reshape(heads * m, m)
    pv = jnp.dot(attn, v, preferred_element_type=jnp.float32)           # (H*M, INNER) f32
    pv = pv.reshape(heads, m, inner)

    # Keep only each head's own columns, then combine heads (cheap VPU work,
    # no relayout): o_comb[m, (h, c)] = head-h attention output.
    o_comb = jnp.sum(pv * o_sel[:, None, :], axis=0).astype(cdtype)     # (M, INNER)

    # ---- Fused output projection --------------------------------------------
    out = jnp.dot(o_comb, wout_ref[...], preferred_element_type=jnp.float32)
    out = out + bout_ref[...].astype(jnp.float32)                       # (1, DIM) bcast
    o_ref[...] = out.astype(o_ref.dtype)


def _derived_vmem_limit(m, dim, inner, heads, itemsize):
    """Scoped-VMEM budget (bytes) for one grid step, with margin.

    Counts double-buffered pipeline blocks (x, k, out), resident weights/mask,
    and the dominant in-kernel f32 intermediates (packed dots/exp/attn of shape
    (H*M, M) plus (H, M, INNER) buffers); 3x margin, floor 16 MiB, cap 64 MiB
    (v7x physical VMEM).
    """
    lane = 128
    pad = lambda c: -(-c // lane) * lane
    io = 2 * m * (pad(dim) + pad(inner) + pad(dim)) * itemsize
    resident = 2 * (dim * pad(2 * inner) + inner * pad(dim)
                    + 8 * pad(dim) + m * pad(m)) * 4
    inter = (3 * heads * m * m
             + 2 * heads * m * pad(inner)
             + 3 * m * pad(2 * inner)) * 4
    budget = io + resident + inter
    return int(min(max(3 * budget, 16 * 1024 * 1024), 64 * 1024 * 1024))


def attention_hk(x, k, w_qkv, w_out, b_out, *, heads, dim_head, batch_tile=32):
    B, N, DIM = x.shape
    inner = heads * dim_head
    assert k.shape == (B, N, inner)
    assert w_qkv.shape == (DIM, 2 * inner)
    assert w_out.shape == (inner, DIM)
    assert b_out.shape == (1, DIM)

    # Largest divisor of B not exceeding batch_tile (so the grid always tiles
    # evenly).  With N=8 the default batch_tile=32 gives M = Bt*N = 256 rows
    # per step (>= one full MXU tile on v6e/v7x, two on v5e).
    bt = max(t for t in range(1, min(batch_tile, B) + 1) if B % t == 0)
    m = bt * N
    assert m % 8 == 0, "rows per grid step must be a multiple of the sublane count"
    grid = B // bt

    # Flatten (B, N, *) -> (B*N, *): free metadata reshape; gives clean 2-D
    # blocks and one contiguous slab read/written per grid step.
    x2 = x.reshape(B * N, DIM)
    k2 = k.reshape(B * N, inner)

    # Precomputed block-diagonal additive mask: 0 on the N x N same-batch
    # blocks, -1e30 (finite, not -inf) elsewhere.  DMA'd once (constant index
    # map) and resident across all grid steps.
    rid = jnp.arange(m, dtype=jnp.int32) // N
    bias = jnp.where(rid[:, None] == rid[None, :], 0.0, -1e30).astype(jnp.float32)

    kernel = functools.partial(_attention_hk_kernel,
                               heads=heads, dim_head=dim_head)

    vmem_limit = _derived_vmem_limit(m, DIM, inner, heads, x.dtype.itemsize)

    out2 = pl.pallas_call(
        kernel,
        out_shape=jax.ShapeDtypeStruct((B * N, DIM), x.dtype),
        grid_spec=pltpu.PrefetchScalarGridSpec(
            num_scalar_prefetch=0,
            grid=(grid,),
            in_specs=[
                pl.BlockSpec((m, DIM), lambda b: (b, 0)),
                pl.BlockSpec((m, inner), lambda b: (b, 0)),
                # Weights / bias / mask: constant block index -> fetched once,
                # stay resident across batch-tile steps.
                pl.BlockSpec((DIM, 2 * inner), lambda b: (0, 0)),
                pl.BlockSpec((inner, DIM), lambda b: (0, 0)),
                pl.BlockSpec((1, DIM), lambda b: (0, 0)),
                pl.BlockSpec((m, m), lambda b: (0, 0)),
            ],
            out_specs=pl.BlockSpec((m, DIM), lambda b: (b, 0)),
        ),
        compiler_params=pltpu.CompilerParams(
            dimension_semantics=("parallel",),
            vmem_limit_bytes=vmem_limit,
        ),
    )(x2, k2, w_qkv, w_out, b_out, bias)
    return out2.reshape(B, N, DIM)


def _reference(x, k, w_qkv, w_out, b_out, *, heads, dim_head):
    # Pure-JAX reference mirroring the PyTorch forward (scale applied to the
    # dots, exact softmax), evaluated at full f32 matmul precision.
    B, N, DIM = x.shape
    inner = heads * dim_head
    scale = dim_head ** (-0.5)
    with jax.default_matmul_precision("float32"):
        qv = jnp.einsum('bnd,de->bne', x, w_qkv)
        q, v = qv[..., :inner], qv[..., inner:]

        def split_heads(t):
            return t.reshape(B, N, heads, dim_head).transpose(0, 2, 1, 3)

        q, v, kk = split_heads(q), split_heads(v), split_heads(k)
        dots = jnp.einsum('bhqd,bhkd->bhqk', q, kk) * scale
        attn = jax.nn.softmax(dots, axis=-1)
        out = jnp.einsum('bhqk,bhkd->bhqd', attn, v)
        out = out.transpose(0, 2, 1, 3).reshape(B, N, inner)
        return jnp.einsum('bni,id->bnd', out, w_out) + b_out[0]


if __name__ == "__main__":
    # Small shapes consistent with the module (window length N=8, dim 32,
    # 4 heads x 8); B=64 exercises the batch tiling (grid of 2 steps).
    B, N, DIM = 64, 8, 32
    HEADS, DIM_HEAD = 4, 8
    INNER = HEADS * DIM_HEAD  # 32

    key = jax.random.PRNGKey(0)
    kx, kk_, kw1, kw2, kb = jax.random.split(key, 5)

    x = jax.random.normal(kx, (B, N, DIM), dtype=jnp.float32)
    k = jax.random.normal(kk_, (B, N, INNER), dtype=jnp.float32)

    # Deterministic parameter init (PyTorch-Linear-style bounds), stored
    # pre-transposed as (in, out) so the kernel computes y = x @ W + b.
    w_qkv = jax.random.uniform(kw1, (DIM, 2 * INNER), jnp.float32,
                               minval=-1.0, maxval=1.0) / jnp.sqrt(DIM)
    w_out = jax.random.uniform(kw2, (INNER, DIM), jnp.float32,
                               minval=-1.0, maxval=1.0) / jnp.sqrt(INNER)
    b_out = jax.random.uniform(kb, (1, DIM), jnp.float32,
                               minval=-1.0, maxval=1.0) / jnp.sqrt(INNER)

    out = attention_hk(x, k, w_qkv, w_out, b_out,
                       heads=HEADS, dim_head=DIM_HEAD, batch_tile=32)
    out = jax.block_until_ready(out)

    ref = _reference(x, k, w_qkv, w_out, b_out, heads=HEADS, dim_head=DIM_HEAD)
    assert out.shape == (B, N, DIM)
    # Tight tolerance restored: exact softmax divide, f32 accumulation, scale
    # applied in f32 (no approximate reciprocal, no scale folded into weights).
    assert jnp.allclose(out, ref, atol=1e-3, rtol=1e-3), "mismatch vs reference"

    print("KERNEL_OK")
</pallas_src>

<mosaic_0001>
module attributes {stable_mosaic.version = 11 : i64} {
  func.func @_attention_hk_kernel(%arg0: i32, %arg1: memref<256x32xf32, #tpu.memory_space<vmem>>, %arg2: memref<256x32xf32, #tpu.memory_space<vmem>>, %arg3: memref<32x64xf32, #tpu.memory_space<vmem>>, %arg4: memref<32x32xf32, #tpu.memory_space<vmem>>, %arg5: memref<1x32xf32, #tpu.memory_space<vmem>>, %arg6: memref<256x256xf32, #tpu.memory_space<vmem>>, %arg7: memref<256x32xf32, #tpu.memory_space<vmem>>) attributes {dimension_semantics = [#tpu.dimension_semantics<parallel>], iteration_bounds = array<i64: 2>, scalar_prefetch = 0 : i64, scratch_operands = 0 : i64, tpu.core_type = #tpu.core_type<tc>, window_params = [{transform_indices = @transform_0, window_bounds = array<i64: 256, 32>}, {transform_indices = @transform_1, window_bounds = array<i64: 256, 32>}, {pipeline_mode = #tpu.pipeline_mode<synchronous>, transform_indices = @transform_2, window_bounds = array<i64: 32, 64>}, {pipeline_mode = #tpu.pipeline_mode<synchronous>, transform_indices = @transform_3, window_bounds = array<i64: 32, 32>}, {pipeline_mode = #tpu.pipeline_mode<synchronous>, transform_indices = @transform_4, window_bounds = array<i64: 1, 32>}, {pipeline_mode = #tpu.pipeline_mode<synchronous>, transform_indices = @transform_5, window_bounds = array<i64: 256, 256>}, {transform_indices = @transform_6, window_bounds = array<i64: 256, 32>}]} {
    %c0 = arith.constant 0 : index
    %c0_0 = arith.constant 0 : index
    %0 = vector.load %arg1[%c0, %c0_0] : memref<256x32xf32, #tpu.memory_space<vmem>>, vector<256x32xf32>
    %c0_1 = arith.constant 0 : index
    %c0_2 = arith.constant 0 : index
    %1 = vector.load %arg2[%c0_1, %c0_2] : memref<256x32xf32, #tpu.memory_space<vmem>>, vector<256x32xf32>
    %c0_3 = arith.constant 0 : index
    %c0_4 = arith.constant 0 : index
    %2 = vector.load %arg3[%c0_3, %c0_4] : memref<32x64xf32, #tpu.memory_space<vmem>>, vector<32x64xf32>
    %cst = arith.constant dense<0.000000e+00> : vector<256x64xf32>
    %3 = tpu.matmul %0, %2, %cst {dimension_numbers = #tpu.dot_dimension_numbers<[1], [0], [0], [1], [0, 0, 1, 1], [], []>} : vector<256x32xf32>, vector<32x64xf32>, vector<256x64xf32> -> vector<256x64xf32>
    %4 = vector.extract_strided_slice %3 {offsets = [0, 0], sizes = [256, 32], strides = [1, 1]} : vector<256x64xf32> to vector<256x32xf32>
    %5 = vector.extract_strided_slice %3 {offsets = [0, 32], sizes = [256, 32], strides = [1, 1]} : vector<256x64xf32> to vector<256x32xf32>
    %6 = tpu.iota {dimensions = array<i32: 0>} : vector<4x32xi32>
    %7 = tpu.iota {dimensions = array<i32: 1>} : vector<4x32xi32>
    %c8_i32 = arith.constant 8 : i32
    %8 = vector.broadcast %c8_i32 : i32 to vector<4x32xi32>
    %9 = arith.muli %6, %8 : vector<4x32xi32>
    %10 = arith.subi %7, %9 : vector<4x32xi32>
    %c0_i32 = arith.constant 0 : i32
    %11 = vector.broadcast %c0_i32 : i32 to vector<4x32xi32>
    %12 = arith.cmpi sge, %10, %11 : vector<4x32xi32>
    %c8_i32_5 = arith.constant 8 : i32
    %13 = vector.broadcast %c8_i32_5 : i32 to vector<4x32xi32>
    %14 = arith.cmpi slt, %10, %13 : vector<4x32xi32>
    %15 = arith.andi %12, %14 : vector<4x32xi1>
    %cst_6 = arith.constant 0.353553385 : f32
    %cst_7 = arith.constant 0.000000e+00 : f32
    %16 = vector.broadcast %cst_6 : f32 to vector<4x32xf32>
    %17 = vector.broadcast %cst_7 : f32 to vector<4x32xf32>
    %18 = arith.select %15, %16, %17 : vector<4x32xi1>, vector<4x32xf32>
    %19 = arith.extui %15 : vector<4x32xi1> to vector<4x32xi32>
    %20 = arith.sitofp %19 : vector<4x32xi32> to vector<4x32xf32>
    %21 = vector.shape_cast %4 : vector<256x32xf32> to vector<1x256x32xf32>
    %22 = vector.shape_cast %18 : vector<4x32xf32> to vector<4x1x32xf32>
    %23 = vector.broadcast %21 : vector<1x256x32xf32> to vector<4x256x32xf32>
    %24 = vector.broadcast %22 : vector<4x1x32xf32> to vector<4x256x32xf32>
    %25 = arith.mulf %23, %24 : vector<4x256x32xf32>
    %26 = vector.shape_cast %25 : vector<4x256x32xf32> to vector<1024x32xf32>
    %cst_8 = arith.constant dense<0.000000e+00> : vector<1024x256xf32>
    %27 = tpu.matmul %26, %1, %cst_8 {dimension_numbers = #tpu.dot_dimension_numbers<[1], [1], [0], [0], [0, 0, 1, 0], [], []>} : vector<1024x32xf32>, vector<256x32xf32>, vector<1024x256xf32> -> vector<1024x256xf32>
    %28 = vector.shape_cast %27 : vector<1024x256xf32> to vector<4x256x256xf32>
    %c0_9 = arith.constant 0 : index
    %c0_10 = arith.constant 0 : index
    %29 = vector.load %arg6[%c0_9, %c0_10] : memref<256x256xf32, #tpu.memory_space<vmem>>, vector<256x256xf32>
    %30 = vector.shape_cast %29 : vector<256x256xf32> to vector<1x256x256xf32>
    %31 = vector.broadcast %30 : vector<1x256x256xf32> to vector<4x256x256xf32>
    %32 = arith.addf %28, %31 : vector<4x256x256xf32>
    %cst_11 = arith.constant dense<0xFF800000> : vector<4x256xf32>
    %33 = vector.multi_reduction <maximumf>, %32, %cst_11 [2] : vector<4x256x256xf32> to vector<4x256xf32>
    %34 = vector.shape_cast %33 : vector<4x256xf32> to vector<4x256x1xf32>
    %35 = vector.broadcast %34 : vector<4x256x1xf32> to vector<4x256x256xf32>
    %36 = arith.subf %32, %35 : vector<4x256x256xf32>
    %37 = math.exp %36 : vector<4x256x256xf32>
    %cst_12 = arith.constant dense<0.000000e+00> : vector<4x256xf32>
    %38 = vector.multi_reduction <add>, %37, %cst_12 [2] : vector<4x256x256xf32> to vector<4x256xf32>
    %39 = vector.shape_cast %38 : vector<4x256xf32> to vector<4x256x1xf32>
    %40 = vector.broadcast %39 : vector<4x256x1xf32> to vector<4x256x256xf32>
    %41 = arith.divf %37, %40 : vector<4x256x256xf32>
    %42 = vector.shape_cast %41 : vector<4x256x256xf32> to vector<1024x256xf32>
    %cst_13 = arith.constant dense<0.000000e+00> : vector<1024x32xf32>
    %43 = tpu.matmul %42, %5, %cst_13 {dimension_numbers = #tpu.dot_dimension_numbers<[1], [0], [0], [1], [0, 0, 1, 1], [], []>} : vector<1024x256xf32>, vector<256x32xf32>, vector<1024x32xf32> -> vector<1024x32xf32>
    %44 = vector.shape_cast %43 : vector<1024x32xf32> to vector<4x256x32xf32>
    %45 = vector.shape_cast %20 : vector<4x32xf32> to vector<4x1x32xf32>
    %46 = vector.broadcast %45 : vector<4x1x32xf32> to vector<4x256x32xf32>
    %47 = arith.mulf %44, %46 : vector<4x256x32xf32>
    %cst_14 = arith.constant dense<0.000000e+00> : vector<256x32xf32>
    %48 = vector.multi_reduction <add>, %47, %cst_14 [0] : vector<4x256x32xf32> to vector<256x32xf32>
    %c0_15 = arith.constant 0 : index
    %c0_16 = arith.constant 0 : index
    %49 = vector.load %arg4[%c0_15, %c0_16] : memref<32x32xf32, #tpu.memory_space<vmem>>, vector<32x32xf32>
    %cst_17 = arith.constant dense<0.000000e+00> : vector<256x32xf32>
    %50 = tpu.matmul %48, %49, %cst_17 {dimension_numbers = #tpu.dot_dimension_numbers<[1], [0], [0], [1], [0, 0, 1, 1], [], []>} : vector<256x32xf32>, vector<32x32xf32>, vector<256x32xf32> -> vector<256x32xf32>
    %c0_18 = arith.constant 0 : index
    %c0_19 = arith.constant 0 : index
    %51 = vector.load %arg5[%c0_18, %c0_19] : memref<1x32xf32, #tpu.memory_space<vmem>>, vector<1x32xf32>
    %52 = vector.broadcast %51 : vector<1x32xf32> to vector<256x32xf32>
    %53 = arith.addf %50, %52 : vector<256x32xf32>
    %c0_20 = arith.constant 0 : index
    %c0_21 = arith.constant 0 : index
    %54 = vector.load %arg7[%c0_20, %c0_21] : memref<256x32xf32, #tpu.memory_space<vmem>>, vector<256x32xf32>
    tpu.vector_store %arg7[%c0_20, %c0_21], %53 {strides = array<i32>} : memref<256x32xf32, #tpu.memory_space<vmem>>, vector<256x32xf32>,
    return
  }
  func.func @transform_0(%arg0: i32) -> (i32, i32) {
    %c0_i32 = arith.constant 0 : i32
    %c0_i32_0 = arith.constant 0 : i32
    return %arg0, %c0_i32 : i32, i32
  }
  func.func @transform_1(%arg0: i32) -> (i32, i32) {
    %c0_i32 = arith.constant 0 : i32
    %c0_i32_0 = arith.constant 0 : i32
    return %arg0, %c0_i32 : i32, i32
  }
  func.func @transform_2(%arg0: i32) -> (i32, i32) {
    %c0_i32 = arith.constant 0 : i32
    %c0_i32_0 = arith.constant 0 : i32
    %c0_i32_1 = arith.constant 0 : i32
    return %c0_i32, %c0_i32_0 : i32, i32
  }
  func.func @transform_3(%arg0: i32) -> (i32, i32) {
    %c0_i32 = arith.constant 0 : i32
    %c0_i32_0 = arith.constant 0 : i32
    %c0_i32_1 = arith.constant 0 : i32
    return %c0_i32, %c0_i32_0 : i32, i32
  }
  func.func @transform_4(%arg0: i32) -> (i32, i32) {
    %c0_i32 = arith.constant 0 : i32
    %c0_i32_0 = arith.constant 0 : i32
    %c0_i32_1 = arith.constant 0 : i32
    return %c0_i32, %c0_i32_0 : i32, i32
  }
  func.func @transform_5(%arg0: i32) -> (i32, i32) {
    %c0_i32 = arith.constant 0 : i32
    %c0_i32_0 = arith.constant 0 : i32
    %c0_i32_1 = arith.constant 0 : i32
    return %c0_i32, %c0_i32_0 : i32, i32
  }
  func.func @transform_6(%arg0: i32) -> (i32, i32) {
    %c0_i32 = arith.constant 0 : i32
    %c0_i32_0 = arith.constant 0 : i32
    return %arg0, %c0_i32 : i32, i32
  }
}

</mosaic_0001>

<bundles_post_ra>
// kernel: tpu_custom_call.1
= control target key start
LH: loop header
LB: loop body
LE: loop exit
PB: predicated region body
PF: predicated region fallthrough
CT: control target
= control target key end

     0   :  { %s7957_s21 = smov 0   ;;  %s13034_s0 = inlined_call_operand.vmem [shape: f32[512,32], index: 0, kind: input, shape index: {}]   ;;  %s13035_s1 = inlined_call_operand.vmem [shape: f32[512,32], index: 1, kind: input, shape index: {}]   ;;  %s13036_s2 = inlined_call_operand.vmem [shape: f32[32,64], index: 2, kind: input, shape index: {}]   ;;  %s13037_s3 = inlined_call_operand.vmem [shape: f32[32,32], index: 3, kind: input, shape index: {}]   ;;  %s13038_s4 = inlined_call_operand.vmem [shape: f32[1,32], index: 4, kind: input, shape index: {}]   ;;  %s13039_s5 = inlined_call_operand.vmem [shape: f32[256,256], index: 5, kind: input, shape index: {}]   ;;  %s13040_s6 = inlined_call_operand.vmem [shape: f32[512,32], index: 6, kind: output, shape index: {}]  }
   0x1 LB: > { %s6067_s22 = sadd.s32 4294967295, %s7916_s21   ;;  %p6071_p0 = scmp.ge.s32.totalorder %s7916_s21, 1  ;;  %s7916_s21 = sphi %s7957_s21, %s16_s21  }
   0x2   : > { %p224_p1 = scmp.lt.s32.totalorder %s7916_s21, 3 }
   0x4   : > { %p225_p2 = pnand %p6071_p0, %p224_p1 }
   0x6   : > { %228 = sbr.rel (%p225_p2) target bundleno = 1826 (0x722), region = 44 }
   0xd   : > { %v341_v0 = vld [vmem:[%s13036_s2] sm:$0xff]  ;;  %v342_v1 = vld [vmem:[%s13036_s2 + $0x8] sm:$0xff]  ;;  %v343_v2 = vld [vmem:[%s13036_s2 + $0x10] sm:$0xff]  ;;  %s6072_s29 = sshll.u32 %s6067_s22, 5  ;;  %vm345_vm0 = vcmask 261120   ;;  %s7921_s15 = smov 96  }
   0xe   : > { %v6778_v3 = vpack.c.bf16 %v342_v1, %v341_v0  ;;  %v344_v4 = vld [vmem:[%s13036_s2 + $0x18] sm:$0xff]  ;;  %p260_p3 = scmp.lt.s32.totalorder %s6072_s29, 63  ;;  %vm8006_vm1 = vmpackc.low %vm345_vm0, %vm345_vm0 }
   0xf   : > { %v6782_v5 = vpack.c.bf16 %v344_v4, %v343_v2 }
  0x10   : > { %6779 = vmatprep.subr.bf16.mxu0 %v6778_v3  ;;  %s14622_s29 = smov (!%p260_p3, %s6072_s29), 63 }
  0x11   : > { %6781 = vmatpush3.bf16.msra.mxu0 %v6778_v3  ;;  %s7977_s8 = sshll.u32 %s14622_s29, 3 }
  0x12   : > { %6783 = vmatprep.subr.bf16.mxu0 %v6782_v5  ;;  %s7983_s11 = scalar_lea.vmem %s13034_s0, %s7977_s8  ;;  %s7997_s14 = scalar_lea.vmem %s13035_s1, %s7977_s8 }
  0x13   : > { %v277_v6 = vld [vmem:[%s7983_s11] sm:$0xff]  ;;  %v278_v7 = vld [vmem:[%s7983_s11 + $0x8] sm:$0xff]  ;;  %v279_v8 = vld [vmem:[%s7983_s11 + $0x10] sm:$0xff] }
  0x14   : > { %6674 = vmatprep.mubr.msk.f32.mxu0 %vm345_vm0, %v277_v6  ;;  %v280_v9 = vld [vmem:[%s7983_s11 + $0x18] sm:$0xff]  ;;  %v281_v10 = vld [vmem:[%s7983_s11 + $0x20] sm:$0xff]  ;;  %v282_v11 = vld [vmem:[%s7983_s11 + $0x28] sm:$0xff] }
  0x15   : > { %6785 = vmatpush3.bf16.msra.mxu0 %v6782_v5  ;;  %v283_v12 = vld [vmem:[%s7983_s11 + $0x30] sm:$0xff]  ;;  %v325_v13 = vld [vmem:[%s7997_s14 + $0x80] sm:$0xff]  ;;  %v326_v15 = vld [vmem:[%s7997_s14 + $0x88] sm:$0xff] }
  0x16   : > { %v309_v16 = vld [vmem:[%s7997_s14] sm:$0xff]  ;;  %v310_v17 = vld [vmem:[%s7997_s14 + $0x8] sm:$0xff]  ;;  %v6786_v18 = vpack.c.bf16 %v326_v15, %v325_v13  ;;  %v327_v20 = vld [vmem:[%s7997_s14 + $0x90] sm:$0xff] }
  0x17   : > { %v6789_v19 = vpack.c.bf16 %v310_v17, %v309_v16  ;;  %v328_v21 = vld [vmem:[%s7997_s14 + $0x98] sm:$0xff]  ;;  %v285_v24 = vld [vmem:[%s7983_s11 + $0x40] sm:$0xff]  ;;  %v311_v25 = vld [vmem:[%s7997_s14 + $0x10] sm:$0xff] }
  0x18   : > { %6675 = vmatmul.mubr.msk.f32.vlgmr.msra.gmra.mrb[0].mxu0 %vm345_vm0, %v278_v7  ;;  %v284_v22 = vld [vmem:[%s7983_s11 + $0x38] sm:$0xff]  ;;  %v6792_v23 = vpack.c.bf16 %v328_v21, %v327_v20  ;;  %6788 = vmatprep.subr.msk.bf16.mxu1 %vm8006_vm1, %v6786_v18  ;;  %v286_v27 = vld [vmem:[%s7983_s11 + $0x48] sm:$0xff]  ;;  %v329_v28 = vld [vmem:[%s7997_s14 + $0xa0] sm:$0xff] }
  0x19   : > { %6677 = vmatprep.mubr.msk.f32.mxu0 %vm345_vm0, %v279_v8  ;;  %6791 = vmatpush3.bf16.xpose.msk.msra.mxu1 %vm8006_vm1, %v6789_v19  ;;  %v312_v26 = vld [vmem:[%s7997_s14 + $0x18] sm:$0xff]  ;;  %v330_v29 = vld [vmem:[%s7997_s14 + $0xa8] sm:$0xff]  ;;  %v287_v30 = vld [vmem:[%s7983_s11 + $0x50] sm:$0xff] }
  0x1a   : > { %6794 = vmatprep.subr.msk.bf16.mxu1 %vm8006_vm1, %v6792_v23  ;;  %v6795_v31 = vpack.c.bf16 %v312_v26, %v311_v25  ;;  %v6798_v32 = vpack.c.bf16 %v330_v29, %v329_v28  ;;  %v288_v33 = vld [vmem:[%s7983_s11 + $0x58] sm:$0xff]  ;;  %v289_v34 = vld [vmem:[%s7983_s11 + $0x60] sm:$0xff]  ;;  %v314_v36 = vld [vmem:[%s7997_s14 + $0x28] sm:$0xff]  ;;  %v7918_v28 = vmov 1966171168  }
  0x1b   : > { %v313_v35 = vld [vmem:[%s7997_s14 + $0x20] sm:$0xff]  ;;  %v290_v37 = vld [vmem:[%s7983_s11 + $0x68] sm:$0xff]  ;;  %v331_v38 = vld [vmem:[%s7997_s14 + $0xb0] sm:$0xff]  ;;  %v681_v29 = vunpack.c.l.s4 %v7918_v28 }
  0x1c   : > { %6678 = vmatmul.mubr.msk.f32.gmra.mrb[2].mxu0 %vm345_vm0, %v280_v9  ;;  %v332_v39 = vld [vmem:[%s7997_s14 + $0xb8] sm:$0xff]  ;;  %v291_v40 = vld [vmem:[%s7983_s11 + $0x70] sm:$0xff]  ;;  %v6801_v41 = vpack.c.bf16 %v314_v36, %v313_v35  ;;  %v293_v44 = vld [vmem:[%s7983_s11 + $0x80] sm:$0xff] }
  0x1d   : > { %6680 = vmatprep.mubr.msk.f32.mxu0 %vm345_vm0, %v281_v10  ;;  %v6804_v42 = vpack.c.bf16 %v332_v39, %v331_v38  ;;  %v292_v43 = vld [vmem:[%s7983_s11 + $0x78] sm:$0xff]  ;;  %v315_v45 = vld [vmem:[%s7997_s14 + $0x30] sm:$0xff]  ;;  %v294_v47 = vld [vmem:[%s7983_s11 + $0x88] sm:$0xff] }
  0x1e   : > { %v316_v46 = vld [vmem:[%s7997_s14 + $0x38] sm:$0xff]  ;;  %v333_v48 = vld [vmem:[%s7997_s14 + $0xc0] sm:$0xff]  ;;  %v334_v49 = vld [vmem:[%s7997_s14 + $0xc8] sm:$0xff] }
  0x1f   : > { %v295_v50 = vld [vmem:[%s7983_s11 + $0x90] sm:$0xff]  ;;  %v6807_v51 = vpack.c.bf16 %v316_v46, %v315_v45  ;;  %v6810_v52 = vpack.c.bf16 %v334_v49, %v333_v48  ;;  %v296_v53 = vld [vmem:[%s7983_s11 + $0x98] sm:$0xff]  ;;  %v297_v54 = vld [vmem:[%s7983_s11 + $0xa0] sm:$0xff] }
  0x20   : > { %6681 = vmatmul.mubr.msk.f32.gmra.mrb[4].mxu0 %vm345_vm0, %v282_v11  ;;  %v317_v55 = vld [vmem:[%s7997_s14 + $0x40] sm:$0xff]  ;;  %v318_v56 = vld [vmem:[%s7997_s14 + $0x48] sm:$0xff]  ;;  %v335_v58 = vld [vmem:[%s7997_s14 + $0xd0] sm:$0xff] }
  0x21   : > { %6683 = vmatprep.mubr.msk.f32.mxu0 %vm345_vm0, %v283_v12  ;;  %6797 = vmatpush3.bf16.xpose.msk.msra.mxu1 %vm8006_vm1, %v6795_v31  ;;  %v298_v57 = vld [vmem:[%s7983_s11 + $0xa8] sm:$0xff]  ;;  %v336_v59 = vld [vmem:[%s7997_s14 + $0xd8] sm:$0xff]  ;;  %v299_v60 = vld [vmem:[%s7983_s11 + $0xb0] sm:$0xff]  ;;  %v6813_v61 = vpack.c.bf16 %v318_v56, %v317_v55  ;;  %v682_v31 = vunpack.c.0.s8 %v681_v29 }
  0x22   : > { %6800 = vmatprep.subr.msk.bf16.mxu1 %vm8006_vm1, %v6798_v32  ;;  %v6816_v62 = vpack.c.bf16 %v336_v59, %v335_v58  ;;  %v300_v63 = vld [vmem:[%s7983_s11 + $0xb8] sm:$0xff]  ;;  %v301_v0 = vld [vmem:[%s7983_s11 + $0xc0] sm:$0xff]  ;;  %v319_v1 = vld [vmem:[%s7997_s14 + $0x50] sm:$0xff] }
  0x23   : > { %v320_v2 = vld [vmem:[%s7997_s14 + $0x58] sm:$0xff]  ;;  %v302_v3 = vld [vmem:[%s7983_s11 + $0xc8] sm:$0xff]  ;;  %v337_v4 = vld [vmem:[%s7997_s14 + $0xe0] sm:$0xff] }
  0x24   : > { %6684 = vmatmul.mubr.msk.f32.gmra.mrb[6].mxu0 %vm345_vm0, %v284_v22  ;;  %v338_v5 = vld [vmem:[%s7997_s14 + $0xe8] sm:$0xff]  ;;  %v303_v6 = vld [vmem:[%s7983_s11 + $0xd0] sm:$0xff]  ;;  %v6819_v7 = vpack.c.bf16 %v320_v2, %v319_v1  ;;  %v304_v9 = vld [vmem:[%s7983_s11 + $0xd8] sm:$0xff] }
  0x25   : > { %6686 = vmatprep.mubr.msk.f32.mxu0 %vm345_vm0, %v285_v24  ;;  %v6822_v8 = vpack.c.bf16 %v338_v5, %v337_v4  ;;  %v305_v10 = vld [vmem:[%s7983_s11 + $0xe0] sm:$0xff]  ;;  %v322_v12 = vld [vmem:[%s7997_s14 + $0x68] sm:$0xff]  ;;  %v339_v15 = vld [vmem:[%s7997_s14 + $0xf0] sm:$0xff]  ;;  %v667_v24 = vlaneseq }
  0x26   : > { %v321_v11 = vld [vmem:[%s7997_s14 + $0x60] sm:$0xff]  ;;  %v306_v13 = vld [vmem:[%s7983_s11 + $0xe8] sm:$0xff]  ;;  %v340_v16 = vld [vmem:[%s7997_s14 + $0xf8] sm:$0xff] }
  0x27   : > { %v307_v17 = vld [vmem:[%s7983_s11 + $0xf0] sm:$0xff]  ;;  %v6825_v18 = vpack.c.bf16 %v322_v12, %v321_v11  ;;  %v6828_v19 = vpack.c.bf16 %v340_v16, %v339_v15  ;;  %v308_v20 = vld [vmem:[%s7983_s11 + $0xf8] sm:$0xff]  ;;  %v668_v25 = vshrl.u32 %v667_v24, 7  ;;  %v670_v26 = vand.u32 127, %v667_v24  ;;  %s12933_s11 = scalar_lea.vmem %s13040_s6, %s7977_s8 }
  0x28   : > { %6687 = vmatmul.mubr.msk.f32.gmra.mrb[8].mxu0 %vm345_vm0, %v286_v27  ;;  %v323_v21 = vld [vmem:[%s7997_s14 + $0x70] sm:$0xff]  ;;  %v324_v22 = vld [vmem:[%s7997_s14 + $0x78] sm:$0xff] }
  0x29   : > { %6689 = vmatprep.mubr.msk.f32.mxu0 %vm345_vm0, %v287_v30  ;;  %6803 = vmatpush3.bf16.xpose.msk.msra.mxu1 %vm8006_vm1, %v6801_v41  ;;  %v6831_v23 = vpack.c.bf16 %v324_v22, %v323_v21  ;;  %v671_v27 = vmul.u32 8, %v668_v25  ;;  %v685_v32 = vsub.s32 %v682_v31, %v668_v25 }
  0x2a   : > { %6806 = vmatprep.subr.msk.bf16.mxu1 %vm8006_vm1, %v6804_v42  ;;  %v8131_v42 = vsub.s32 0, %v668_v25 }
  0x2b   : > { %v672_v30 = vsub.s32 %v670_v26, %v671_v27 }
  0x2c   : > { %6690 = vmatmul.mubr.msk.f32.gmra.mrb[10].mxu0 %vm345_vm0, %v288_v33  ;;  %v7919_v33 = vmov 0.0   ;;  %13509 = vst [vmem:[#allocation4_spill] sm:$0xff] %v8131_v42 }
  0x2d   : > { %6692 = vmatprep.mubr.msk.f32.mxu0 %vm345_vm0, %v289_v34  ;;  %vm673_vm2 = vcmp.ge.s32.totalorder %v672_v30, 0  ;;  %vm674_vm3 = vcmp.lt.s32.totalorder %v672_v30, 8 }
  0x2e   : > { %vm675_vm4 = vmand %vm673_vm2, %vm674_vm3 }
  0x2f   : > { %v676_v34 = vsel %vm675_vm4, 0.35355338, %v7919_v33  ;;  %v6110_v38 = vsel %vm675_vm4, 1.0, %v7919_v33 }
  0x30   : > { %6693 = vmatmul.mubr.msk.f32.gmra.mrb[12].mxu0 %vm345_vm0, %v290_v37  ;;  %v686_v35 = vrot.slane %v676_v34, %v685_v32  ;;  %v5245_v39 = vrot.slane %v6110_v38, %v685_v32 }
  0x31   : > { %6695 = vmatprep.mubr.msk.f32.mxu0 %vm345_vm0, %v291_v40  ;;  %6809 = vmatpush3.bf16.xpose.msk.msra.mxu1 %vm8006_vm1, %v6807_v51 }
  0x32   : > { %6812 = vmatprep.subr.msk.bf16.mxu1 %vm8006_vm1, %v6810_v52  ;;  %v687_v36 = vcombine.high %v686_v35, %v686_v35  ;;  %v5246_v14 = vcombine.high %v5245_v39, %v5245_v39  ;;  %v8127_v40 = vrot.slane %v5245_v39, %v685_v32 }
  0x34   : > { %6696 = vmatmul.mubr.msk.f32.gmra.mrb[14].mxu0 %vm345_vm0, %v292_v43  ;;  %v8125_v37 = vrot.slane %v687_v36, %v685_v32  ;;  %13507 = vst [vmem:[#allocation2_spill] sm:$0xff] %v8127_v40  ;;  %v8129_v41 = vrot.slane %v5246_v14, %v685_v32  ;;  %v13041_v43 = vmov 0.0|0.0  }
  0x35   : > { %6698 = vmatprep.mubr.msk.f32.mxu0 %vm345_vm0, %v293_v44  ;;  %6834 = vmatprep.subr.bf16.mxu0 %v13041_v43  ;;  %v8134_v44 = vrot.slane %v686_v35, %v685_v32 }
  0x36   : > { %13508 = vst [vmem:[#allocation3_spill] sm:$0xff] %v8129_v41 }
  0x37   : > { %v8138_v45 = vrot.slane %v8134_v44, %v8131_v42 }
  0x38   : > { %6699 = vmatmul.mubr.msk.f32.gmra.mrb[16].mxu0 %vm345_vm0, %v294_v47 }
  0x39   : > { %6701 = vmatprep.mubr.msk.f32.mxu0 %vm345_vm0, %v295_v50  ;;  %6815 = vmatpush3.bf16.xpose.msk.msra.mxu1 %vm8006_vm1, %v6813_v61 }
  0x3a   : > { %6818 = vmatprep.subr.msk.bf16.mxu1 %vm8006_vm1, %v6816_v62 }
  0x3c   : > { %6702 = vmatmul.mubr.msk.f32.gmra.mrb[18].mxu0 %vm345_vm0, %v296_v53 }
  0x3d   : > { %6704 = vmatprep.mubr.msk.f32.mxu0 %vm345_vm0, %v297_v54 }
  0x40   : > { %6705 = vmatmul.mubr.msk.f32.gmra.mrb[20].mxu0 %vm345_vm0, %v298_v57 }
  0x41   : > { %6707 = vmatprep.mubr.msk.f32.mxu0 %vm345_vm0, %v299_v60  ;;  %6821 = vmatpush3.bf16.xpose.msk.msra.mxu1 %vm8006_vm1, %v6819_v7 }
  0x42   : > { %6824 = vmatprep.subr.msk.bf16.mxu1 %vm8006_vm1, %v6822_v8 }
  0x44   : > { %6708 = vmatmul.mubr.msk.f32.gmra.mrb[22].mxu0 %vm345_vm0, %v300_v63 }
  0x45   : > { %6710 = vmatprep.mubr.msk.f32.mxu0 %vm345_vm0, %v301_v0 }
  0x48   : > { %6711 = vmatmul.mubr.msk.f32.gmra.mrb[24].mxu0 %vm345_vm0, %v302_v3 }
  0x49   : > { %6713 = vmatprep.mubr.msk.f32.mxu0 %vm345_vm0, %v303_v6  ;;  %6827 = vmatpush3.bf16.xpose.msk.msra.mxu1 %vm8006_vm1, %v6825_v18 }
  0x4a   : > { %6830 = vmatprep.subr.msk.bf16.mxu1 %vm8006_vm1, %v6828_v19 }
  0x4c   : > { %6714 = vmatmul.mubr.msk.f32.gmra.mrb[26].mxu0 %vm345_vm0, %v304_v9 }
  0x4d   : > { %6716 = vmatprep.mubr.msk.f32.mxu0 %vm345_vm0, %v305_v10 }
  0x50   : > { %6717 = vmatmul.mubr.msk.f32.gmra.mrb[28].mxu0 %vm345_vm0, %v306_v13 }
  0x51   : > { %6719 = vmatprep.mubr.msk.f32.mxu0 %vm345_vm0, %v307_v17  ;;  %6833 = vmatpush3.bf16.xpose.msk.msra.mxu1 %vm8006_vm1, %v6831_v23 }
  0x54   : > { %6720 = vmatmul.mubr.msk.f32.gmra.mrb[30].mxu0 %vm345_vm0, %v308_v20 }
  0xeb   : > { %v8140_v46 = vpop.f32.mrb[0].mxu0 }
  0xec   : > { %13510 = vst [vmem:[#allocation5_spill] sm:$0xff] %v8140_v46  ;;  %v8142_v47 = vpop.f32.mrb[1].mxu0  ;;  %v725_v50 = vmul.f32 %v8140_v46, %v8138_v45 }
  0xed   : > { %13511 = vst [vmem:[#allocation6_spill] sm:$0xff] %v8142_v47  ;;  %v6906_v48 = vpack.i.bf16 %v8140_v46, %v8142_v47  ;;  %v724_v49 = vmul.f32 %v8138_v45, %v8142_v47 }
  0xef   : > { %6907 = vrot.lane.b32.xlu0 %v6906_v48, %s7921_s15  ;;  %6374 = vmatprep.mubr.msk.f32.mxu1 %vm345_vm0, %v724_v49  ;;  %v8152_v51 = vpop.f32.mrb[2].mxu0 }
  0xf0   : > { %13512 = vst [vmem:[#allocation7_spill] sm:$0xff] %v8152_v51  ;;  %6375 = vmatmul.mubr.msk.f32.vlgmr.msra.gmra.mrb[0].mxu1 %vm345_vm0, %v724_v49  ;;  %v8155_v52 = vpop.f32.mrb[3].mxu0  ;;  %v727_v57 = vmul.f32 %v8152_v51, %v8138_v45 }
  0xf1   : > { %13513 = vst [vmem:[#allocation8_spill] sm:$0xff] %v8155_v52  ;;  %6376 = vmatprep.mubr.msk.f32.mxu1 %vm345_vm0, %v725_v50  ;;  %v726_v53 = vmul.f32 %v8138_v45, %v8155_v52  ;;  %v6911_v54 = vpack.i.bf16 %v8152_v51, %v8155_v52 }
  0xf3   : > { %v8162_v55 = vpop.f32.mrb[4].mxu0  ;;  %6912 = vrot.lane.b32.xlu1 %v6911_v54, %s7921_s15 }
  0xf4   : > { %6377 = vmatmul.mubr.msk.f32.gmra.mrb[2].mxu1 %vm345_vm0, %v725_v50  ;;  %v8166_v56 = vpop.f32.mrb[5].mxu0  ;;  %v729_v1 = vmul.f32 %v8162_v55, %v8138_v45 }
  0xf5   : > { %13514 = vst [vmem:[#allocation9_spill] sm:$0xff] %v8166_v56  ;;  %6378 = vmatprep.mubr.msk.f32.mxu1 %vm345_vm0, %v726_v53  ;;  %v6916_v58 = vpack.i.bf16 %v8162_v55, %v8166_v56  ;;  %v728_v61 = vmul.f32 %v8138_v45, %v8166_v56 }
  0xf7   : > { %v8173_v59 = vpop.f32.mrb[6].mxu0  ;;  %6917 = vrot.lane.b32.xlu0 %v6916_v58, %s7921_s15 }
  0xf8   : > { %6379 = vmatmul.mubr.msk.f32.gmra.mrb[4].mxu1 %vm345_vm0, %v726_v53  ;;  %v8177_v60 = vpop.f32.mrb[7].mxu0  ;;  %v731_v9 = vmul.f32 %v8173_v59, %v8138_v45 }
  0xf9   : > { %6380 = vmatprep.mubr.msk.f32.mxu1 %vm345_vm0, %v727_v57  ;;  %v6921_v62 = vpack.i.bf16 %v8173_v59, %v8177_v60  ;;  %v730_v5 = vmul.f32 %v8138_v45, %v8177_v60 }
  0xfb   : > { %v8184_v63 = vpop.f32.mrb[8].mxu0  ;;  %6922 = vrot.lane.b32.xlu0 %v6921_v62, %s7921_s15 }
  0xfc   : > { %6381 = vmatmul.mubr.msk.f32.gmra.mrb[6].mxu1 %vm345_vm0, %v727_v57  ;;  %v8188_v0 = vpop.f32.mrb[9].mxu0  ;;  %v733_v19 = vmul.f32 %v8184_v63, %v8138_v45 }
  0xfd   : > { %6382 = vmatprep.mubr.msk.f32.mxu1 %vm345_vm0, %v728_v61  ;;  %v6926_v2 = vpack.i.bf16 %v8184_v63, %v8188_v0  ;;  %v732_v13 = vmul.f32 %v8138_v45, %v8188_v0 }
  0xff   : > { %v8195_v3 = vpop.f32.mrb[10].mxu0  ;;  %6927 = vrot.lane.b32.xlu1 %v6926_v2, %s7921_s15 }
 0x100   : > { %6383 = vmatmul.mubr.msk.f32.gmra.mrb[8].mxu1 %vm345_vm0, %v728_v61  ;;  %v8199_v4 = vpop.f32.mrb[11].mxu0  ;;  %v735_v30 = vmul.f32 %v8195_v3, %v8138_v45 }
 0x101   : > { %6384 = vmatprep.mubr.msk.f32.mxu1 %vm345_vm0, %v729_v1  ;;  %v6931_v6 = vpack.i.bf16 %v8195_v3, %v8199_v4  ;;  %v734_v24 = vmul.f32 %v8138_v45, %v8199_v4 }
 0x103   : > { %v8206_v7 = vpop.f32.mrb[12].mxu0  ;;  %6932 = vrot.lane.b32.xlu0 %v6931_v6, %s7921_s15 }
 0x104   : > { %6385 = vmatmul.mubr.msk.f32.gmra.mrb[10].mxu1 %vm345_vm0, %v729_v1  ;;  %v8210_v8 = vpop.f32.mrb[13].mxu0  ;;  %v737_v50 = vmul.f32 %v8206_v7, %v8138_v45 }
 0x105   : > { %6386 = vmatprep.mubr.msk.f32.mxu1 %vm345_vm0, %v730_v5  ;;  %v6936_v10 = vpack.i.bf16 %v8206_v7, %v8210_v8  ;;  %v736_v36 = vmul.f32 %v8138_v45, %v8210_v8 }
 0x107   : > { %v8217_v11 = vpop.f32.mrb[14].mxu0  ;;  %6937 = vrot.lane.b32.xlu0 %v6936_v10, %s7921_s15 }
 0x108   : > { %6387 = vmatmul.mubr.msk.f32.gmra.mrb[12].mxu1 %vm345_vm0, %v730_v5  ;;  %v8221_v12 = vpop.f32.mrb[15].mxu0 }
 0x109   : > { %6388 = vmatprep.mubr.msk.f32.mxu1 %vm345_vm0, %v731_v9  ;;  %v6941_v15 = vpack.i.bf16 %v8217_v11, %v8221_v12  ;;  %v738_v61 = vmul.f32 %v8138_v45, %v8221_v12 }
 0x10b   : > { %v8228_v16 = vpop.f32.mrb[16].mxu0  ;;  %6942 = vrot.lane.b32.xlu1 %v6941_v15, %s7921_s15 }
 0x10c   : > { %6389 = vmatmul.mubr.msk.f32.gmra.mrb[14].mxu1 %vm345_vm0, %v731_v9  ;;  %v8232_v17 = vpop.f32.mrb[17].mxu0  ;;  %v8236_v18 = vmul.f32 %v8228_v16, %v8138_v45  ;;  %v739_v9 = vmul.f32 %v8217_v11, %v8138_v45 }
 0x10d   : > { %6390 = vmatprep.mubr.msk.f32.mxu1 %vm345_vm0, %v732_v13  ;;  %v6946_v20 = vpack.i.bf16 %v8228_v16, %v8232_v17 }
 0x10f   : > { %v8243_v21 = vpop.f32.mrb[18].mxu0  ;;  %6947 = vrot.lane.b32.xlu0 %v6946_v20, %s7921_s15  ;;  %v740_v20 = vmul.f32 %v8138_v45, %v8232_v17 }
 0x110   : > { %13515 = vst [vmem:[#allocation10_spill] sm:$0xff] %v8243_v21  ;;  %6391 = vmatmul.mubr.msk.f32.gmra.mrb[16].mxu1 %vm345_vm0, %v732_v13  ;;  %v8247_v22 = vpop.f32.mrb[19].mxu0  ;;  %v8251_v23 = vmul.f32 %v8243_v21, %v8138_v45 }
 0x111   : > { %13516 = vst [vmem:[#allocation11_spill] sm:$0xff] %v8247_v22  ;;  %6392 = vmatprep.mubr.msk.f32.mxu1 %vm345_vm0, %v733_v19  ;;  %v742_v25 = vmul.f32 %v8138_v45, %v8247_v22  ;;  %v6951_v26 = vpack.i.bf16 %v8243_v21, %v8247_v22 }
 0x113   : > { %v8260_v27 = vpop.f32.mrb[20].mxu0  ;;  %6952 = vrot.lane.b32.xlu0 %v6951_v26, %s7921_s15 }
 0x114   : > { %13517 = vst [vmem:[#allocation12_spill] sm:$0xff] %v8260_v27  ;;  %6393 = vmatmul.mubr.msk.f32.gmra.mrb[18].mxu1 %vm345_vm0, %v733_v19  ;;  %v8264_v28 = vpop.f32.mrb[21].mxu0  ;;  %v745_v29 = vmul.f32 %v8260_v27, %v8138_v45 }
 0x115   : > { %13518 = vst [vmem:[#allocation13_spill] sm:$0xff] %v8264_v28  ;;  %6394 = vmatprep.mubr.msk.f32.mxu1 %vm345_vm0, %v734_v24  ;;  %v744_v31 = vmul.f32 %v8138_v45, %v8264_v28  ;;  %v6956_v32 = vpack.i.bf16 %v8260_v27, %v8264_v28 }
 0x117   : > { %v8275_v33 = vpop.f32.mrb[22].mxu0  ;;  %6957 = vrot.lane.b32.xlu1 %v6956_v32, %s7921_s15 }
 0x118   : > { %13519 = vst [vmem:[#allocation14_spill] sm:$0xff] %v8275_v33  ;;  %6395 = vmatmul.mubr.msk.f32.gmra.mrb[20].mxu1 %vm345_vm0, %v734_v24  ;;  %v8279_v34 = vpop.f32.mrb[23].mxu0  ;;  %v747_v35 = vmul.f32 %v8275_v33, %v8138_v45 }
 0x119   : > { %13520 = vst [vmem:[#allocation15_spill] sm:$0xff] %v8279_v34  ;;  %6396 = vmatprep.mubr.msk.f32.mxu1 %vm345_vm0, %v735_v30  ;;  %v746_v38 = vmul.f32 %v8138_v45, %v8279_v34  ;;  %v6961_v49 = vpack.i.bf16 %v8275_v33, %v8279_v34 }
 0x11b   : > { %v8288_v39 = vpop.f32.mrb[24].mxu0  ;;  %6962 = vrot.lane.b32.xlu0 %v6961_v49, %s7921_s15 }
 0x11c   : > { %13521 = vst [vmem:[#allocation16_spill] sm:$0xff] %v8288_v39  ;;  %6397 = vmatmul.mubr.msk.f32.gmra.mrb[22].mxu1 %vm345_vm0, %v735_v30  ;;  %v8291_v14 = vpop.f32.mrb[25].mxu0  ;;  %v749_v48 = vmul.f32 %v8288_v39, %v8138_v45 }
 0x11d   : > { %13522 = vst [vmem:[#allocation17_spill] sm:$0xff] %v8291_v14  ;;  %6398 = vmatprep.mubr.msk.f32.mxu1 %vm345_vm0, %v736_v36  ;;  %v748_v53 = vmul.f32 %v8138_v45, %v8291_v14  ;;  %v6966_v6 = vpack.i.bf16 %v8288_v39, %v8291_v14 }
 0x11f   : > { %v8303_v54 = vpop.f32.mrb[26].mxu0  ;;  %6967 = vrot.lane.b32.xlu1 %v6966_v6, %s7921_s15 }
 0x120   : > { %13523 = vst [vmem:[#allocation18_spill] sm:$0xff] %v8303_v54  ;;  %6399 = vmatmul.mubr.msk.f32.gmra.mrb[24].mxu1 %vm345_vm0, %v736_v36  ;;  %v8306_v57 = vpop.f32.mrb[27].mxu0  ;;  %v751_v58 = vmul.f32 %v8303_v54, %v8138_v45  ;;  %v8384_v36 = vrot.slane %v8125_v37, %v8131_v42 }
 0x121   : > { %13524 = vst [vmem:[#allocation19_spill] sm:$0xff] %v8306_v57  ;;  %6400 = vmatprep.mubr.msk.f32.mxu1 %vm345_vm0, %v737_v50  ;;  %v750_v62 = vmul.f32 %v8138_v45, %v8306_v57  ;;  %v6971_v26 = vpack.i.bf16 %v8303_v54, %v8306_v57 }
 0x122   : > { %v757_v6 = vmul.f32 %v8140_v46, %v8384_v36 }
 0x123   : > { %v8315_v1 = vpop.f32.mrb[28].mxu0 }
 0x124   : > { %13525 = vst [vmem:[#allocation20_spill] sm:$0xff] %v8315_v1  ;;  %6401 = vmatmul.mubr.msk.f32.gmra.mrb[26].mxu1 %vm345_vm0, %v737_v50  ;;  %v8318_v2 = vpop.f32.mrb[29].mxu0  ;;  %v753_v5 = vmul.f32 %v8315_v1, %v8138_v45 }
 0x125   : > { %13526 = vst [vmem:[#allocation21_spill] sm:$0xff] %v8318_v2  ;;  %6402 = vmatprep.mubr.msk.f32.mxu1 %vm345_vm0, %v738_v61  ;;  %v752_v10 = vmul.f32 %v8138_v45, %v8318_v2 }
 0x127   : > { %v8330_v13 = vpop.f32.mrb[30].mxu0 }
 0x128   : > { %6403 = vmatmul.mubr.msk.f32.gmra.mrb[28].mxu1 %vm345_vm0, %v738_v61  ;;  %v8333_v15 = vpop.f32.mrb[31].mxu0  ;;  %v755_v19 = vmul.f32 %v8330_v13, %v8138_v45 }
 0x129   : > { %6404 = vmatprep.mubr.msk.f32.mxu1 %vm345_vm0, %v739_v9  ;;  %v754_v24 = vmul.f32 %v8138_v45, %v8333_v15  ;;  %v702_v45 = vcombine.high %v8134_v44, %v8134_v44  ;;  %v2183_v44 = vld [vmem:[%s13039_s5 + $0x90] sm:$0xff] }
 0x12c   : > { %6405 = vmatmul.mubr.msk.f32.gmra.mrb[30].mxu1 %vm345_vm0, %v739_v9 }
 0x12d   : > { %6406 = vmatprep.mubr.msk.f32.mxu1 %vm345_vm0, %v740_v20 }
 0x130   : > { %6407 = vmatmul.mubr.msk.f32.gmra.mrb[32].mxu1 %vm345_vm0, %v740_v20 }
 0x131   : > { %6408 = vmatprep.mubr.msk.f32.mxu1 %vm345_vm0, %v8236_v18 }
 0x134   : > { %6409 = vmatmul.mubr.msk.f32.gmra.mrb[34].mxu1 %vm345_vm0, %v8236_v18 }
 0x135   : > { %6410 = vmatprep.mubr.msk.f32.mxu1 %vm345_vm0, %v742_v25 }
 0x138   : > { %6411 = vmatmul.mubr.msk.f32.gmra.mrb[36].mxu1 %vm345_vm0, %v742_v25 }
 0x139   : > { %6412 = vmatprep.mubr.msk.f32.mxu1 %vm345_vm0, %v8251_v23 }
 0x13c   : > { %6413 = vmatmul.mubr.msk.f32.gmra.mrb[38].mxu1 %vm345_vm0, %v8251_v23 }
 0x13d   : > { %6414 = vmatprep.mubr.msk.f32.mxu1 %vm345_vm0, %v744_v31 }
 0x140   : > { %6415 = vmatmul.mubr.msk.f32.gmra.mrb[40].mxu1 %vm345_vm0, %v744_v31 }
 0x141   : > { %6416 = vmatprep.mubr.msk.f32.mxu1 %vm345_vm0, %v745_v29 }
 0x144   : > { %6417 = vmatmul.mubr.msk.f32.gmra.mrb[42].mxu1 %vm345_vm0, %v745_v29 }
 0x145   : > { %6418 = vmatprep.mubr.msk.f32.mxu1 %vm345_vm0, %v746_v38 }
 0x148   : > { %6419 = vmatmul.mubr.msk.f32.gmra.mrb[44].mxu1 %vm345_vm0, %v746_v38 }
 0x149   : > { %6420 = vmatprep.mubr.msk.f32.mxu1 %vm345_vm0, %v747_v35 }
 0x14c   : > { %6421 = vmatmul.mubr.msk.f32.gmra.mrb[46].mxu1 %vm345_vm0, %v747_v35 }
 0x14d   : > { %6422 = vmatprep.mubr.msk.f32.mxu1 %vm345_vm0, %v748_v53 }
 0x150   : > { %6423 = vmatmul.mubr.msk.f32.gmra.mrb[48].mxu1 %vm345_vm0, %v748_v53  ;;  %v756_v53 = vmul.f32 %v8384_v36, %v8142_v47 }
 0x151   : > { %6424 = vmatprep.mubr.msk.f32.mxu1 %vm345_vm0, %v749_v48 }
 0x154   : > { %6425 = vmatmul.mubr.msk.f32.gmra.mrb[50].mxu1 %vm345_vm0, %v749_v48 }
 0x155   : > { %6426 = vmatprep.mubr.msk.f32.mxu1 %vm345_vm0, %v750_v62 }
 0x158   : > { %6427 = vmatmul.mubr.msk.f32.gmra.mrb[52].mxu1 %vm345_vm0, %v750_v62 }
 0x159   : > { %6428 = vmatprep.mubr.msk.f32.mxu1 %vm345_vm0, %v751_v58 }
 0x15c   : > { %6429 = vmatmul.mubr.msk.f32.gmra.mrb[54].mxu1 %vm345_vm0, %v751_v58 }
 0x15d   : > { %6430 = vmatprep.mubr.msk.f32.mxu1 %vm345_vm0, %v752_v10 }
 0x160   : > { %6431 = vmatmul.mubr.msk.f32.gmra.mrb[56].mxu1 %vm345_vm0, %v752_v10 }
 0x161   : > { %v6908_v18 = vpop.permute.xlu0 %6907  ;;  %6432 = vmatprep.mubr.msk.f32.mxu1 %vm345_vm0, %v753_v5 }
 0x162   : > { %v6910_v23 = vunpack.i.h.bf16 %v6908_v18  ;;  %v6909_v25 = vunpack.i.l.bf16 %v6908_v18 }
 0x164   : > { %v6835_v29 = vpack.c.bf16 %v6910_v23, %v6909_v25  ;;  %6433 = vmatmul.mubr.msk.f32.gmra.mrb[58].mxu1 %vm345_vm0, %v753_v5 }
 0x165   : > { %6434 = vmatprep.mubr.msk.f32.mxu1 %vm345_vm0, %v754_v24  ;;  %v6913_v31 = vpop.permute.xlu1 %6912 }
 0x166   : > { %6836 = vmatpush1.bf16.msra.mxu0 %v6835_v29  ;;  %v6915_v32 = vunpack.i.h.bf16 %v6913_v31  ;;  %v6914_v35 = vunpack.i.l.bf16 %v6913_v31  ;;  %v759_v31 = vmul.f32 %v8152_v51, %v8384_v36 }
 0x167   : > { %6837 = vmatprep.subr.bf16.mxu0 %v13041_v43 }
 0x168   : > { %6435 = vmatmul.mubr.msk.f32.gmra.mrb[60].mxu1 %vm345_vm0, %v754_v24  ;;  %v6838_v38 = vpack.c.bf16 %v6915_v32, %v6914_v35  ;;  %v758_v24 = vmul.f32 %v8384_v36, %v8155_v52 }
 0x169   : > { %6436 = vmatprep.mubr.msk.f32.mxu1 %vm345_vm0, %v755_v19  ;;  %v6918_v48 = vpop.permute.xlu0 %6917 }
 0x16a   : > { %6839 = vmatpush1.bf16.msra.mxu0 %v6838_v38  ;;  %v6920_v49 = vunpack.i.h.bf16 %v6918_v48  ;;  %v6919_v50 = vunpack.i.l.bf16 %v6918_v48 }
 0x16b   : > { %6840 = vmatprep.subr.bf16.mxu0 %v13041_v43 }
 0x16c   : > { %6437 = vmatmul.mubr.msk.f32.gmra.mrb[62].mxu1 %vm345_vm0, %v755_v19  ;;  %v6841_v58 = vpack.c.bf16 %v6920_v49, %v6919_v50  ;;  %v760_v49 = vmul.f32 %v8384_v36, %v8166_v56 }
 0x16d   : > { %6438 = vmatprep.mubr.msk.f32.mxu1 %vm345_vm0, %v756_v53  ;;  %v6923_v61 = vpop.permute.xlu0 %6922 }
 0x16e   : > { %6842 = vmatpush1.bf16.msra.mxu0 %v6841_v58  ;;  %v6925_v62 = vunpack.i.h.bf16 %v6923_v61  ;;  %v6924_v5 = vunpack.i.l.bf16 %v6923_v61 }
 0x16f   : > { %6843 = vmatprep.subr.bf16.mxu0 %v13041_v43 }
 0x170   : > { %6439 = vmatmul.mubr.msk.f32.gmra.mrb[64].mxu1 %vm345_vm0, %v756_v53  ;;  %v6844_v9 = vpack.c.bf16 %v6925_v62, %v6924_v5  ;;  %v761_v62 = vmul.f32 %v8162_v55, %v8384_v36 }
 0x171   : > { %6440 = vmatprep.mubr.msk.f32.mxu1 %vm345_vm0, %v757_v6  ;;  %v6928_v10 = vpop.permute.xlu1 %6927 }
 0x172   : > { %6845 = vmatpush1.bf16.msra.mxu0 %v6844_v9  ;;  %v6930_v19 = vunpack.i.h.bf16 %v6928_v10  ;;  %v6929_v20 = vunpack.i.l.bf16 %v6928_v10 }
 0x173   : > { %6846 = vmatprep.subr.bf16.mxu0 %v13041_v43 }
 0x174   : > { %6441 = vmatmul.mubr.msk.f32.gmra.mrb[66].mxu1 %vm345_vm0, %v757_v6  ;;  %v6847_v18 = vpack.c.bf16 %v6930_v19, %v6929_v20  ;;  %v762_v19 = vmul.f32 %v8384_v36, %v8177_v60 }
 0x175   : > { %6442 = vmatprep.mubr.msk.f32.mxu1 %vm345_vm0, %v758_v24  ;;  %v6933_v23 = vpop.permute.xlu0 %6932 }
 0x176   : > { %6848 = vmatpush1.bf16.msra.mxu0 %v6847_v18  ;;  %v6935_v25 = vunpack.i.h.bf16 %v6933_v23  ;;  %v6934_v29 = vunpack.i.l.bf16 %v6933_v23 }
 0x177   : > { %6849 = vmatprep.subr.bf16.mxu0 %v13041_v43 }
 0x178   : > { %6443 = vmatmul.mubr.msk.f32.gmra.mrb[68].mxu1 %vm345_vm0, %v758_v24  ;;  %v6850_v32 = vpack.c.bf16 %v6935_v25, %v6934_v29  ;;  %v763_v25 = vmul.f32 %v8173_v59, %v8384_v36 }
 0x179   : > { %6444 = vmatprep.mubr.msk.f32.mxu1 %vm345_vm0, %v759_v31  ;;  %v6938_v35 = vpop.permute.xlu0 %6937 }
 0x17a   : > { %6851 = vmatpush1.bf16.msra.mxu0 %v6850_v32  ;;  %v6940_v38 = vunpack.i.h.bf16 %v6938_v35  ;;  %v6939_v48 = vunpack.i.l.bf16 %v6938_v35 }
 0x17b   : > { %6852 = vmatprep.subr.bf16.mxu0 %v13041_v43 }
 0x17c   : > { %6445 = vmatmul.mubr.msk.f32.gmra.mrb[70].mxu1 %vm345_vm0, %v759_v31  ;;  %v6853_v50 = vpack.c.bf16 %v6940_v38, %v6939_v48  ;;  %v764_v38 = vmul.f32 %v8384_v36, %v8188_v0 }
 0x17d   : > { %6446 = vmatprep.mubr.msk.f32.mxu1 %vm345_vm0, %v760_v49  ;;  %v6943_v53 = vpop.permute.xlu1 %6942 }
 0x17e   : > { %6854 = vmatpush1.bf16.msra.mxu0 %v6853_v50  ;;  %v6945_v58 = vunpack.i.h.bf16 %v6943_v53  ;;  %v6944_v61 = vunpack.i.l.bf16 %v6943_v53 }
 0x17f   : > { %6855 = vmatprep.subr.bf16.mxu0 %v13041_v43 }
 0x180   : > { %6447 = vmatmul.mubr.msk.f32.gmra.mrb[72].mxu1 %vm345_vm0, %v760_v49  ;;  %v6856_v5 = vpack.c.bf16 %v6945_v58, %v6944_v61  ;;  %v765_v49 = vmul.f32 %v8184_v63, %v8384_v36  ;;  %v766_v61 = vmul.f32 %v8384_v36, %v8199_v4 }
 0x181   : > { %6448 = vmatprep.mubr.msk.f32.mxu1 %vm345_vm0, %v761_v62  ;;  %v6948_v6 = vpop.permute.xlu0 %6947 }
 0x182   : > { %6857 = vmatpush1.bf16.msra.mxu0 %v6856_v5  ;;  %v6950_v9 = vunpack.i.h.bf16 %v6948_v6  ;;  %v6949_v10 = vunpack.i.l.bf16 %v6948_v6  ;;  %v767_v5 = vmul.f32 %v8195_v3, %v8384_v36 }
 0x183   : > { %6858 = vmatprep.subr.bf16.mxu0 %v13041_v43 }
 0x184   : > { %6449 = vmatmul.mubr.msk.f32.gmra.mrb[74].mxu1 %vm345_vm0, %v761_v62  ;;  %v6859_v20 = vpack.c.bf16 %v6950_v9, %v6949_v10 }
 0x185   : > { %6450 = vmatprep.mubr.msk.f32.mxu1 %vm345_vm0, %v762_v19  ;;  %v6953_v24 = vpop.permute.xlu0 %6952 }
 0x186   : > { %6860 = vmatpush1.bf16.msra.mxu0 %v6859_v20  ;;  %v6955_v18 = vunpack.i.h.bf16 %v6953_v24  ;;  %v6954_v23 = vunpack.i.l.bf16 %v6953_v24  ;;  %v769_v24 = vmul.f32 %v8206_v7, %v8384_v36 }
 0x187   : > { %6861 = vmatprep.subr.bf16.mxu0 %v13041_v43 }
 0x188   : > { %6451 = vmatmul.mubr.msk.f32.gmra.mrb[76].mxu1 %vm345_vm0, %v762_v19  ;;  %v6862_v29 = vpack.c.bf16 %v6955_v18, %v6954_v23  ;;  %v768_v19 = vmul.f32 %v8384_v36, %v8210_v8  ;;  %v770_v18 = vmul.f32 %v8384_v36, %v8221_v12  ;;  %v771_v23 = vmul.f32 %v8217_v11, %v8384_v36 }
 0x189   : > { %6452 = vmatprep.mubr.msk.f32.mxu1 %vm345_vm0, %v763_v25  ;;  %v6958_v31 = vpop.permute.xlu1 %6957 }
 0x18a   : > { %6863 = vmatpush1.bf16.msra.mxu0 %v6862_v29  ;;  %v6960_v32 = vunpack.i.h.bf16 %v6958_v31  ;;  %v6959_v35 = vunpack.i.l.bf16 %v6958_v31  ;;  %v773_v29 = vmul.f32 %v8228_v16, %v8384_v36  ;;  %v774_v31 = vmul.f32 %v8384_v36, %v8247_v22 }
 0x18b   : > { %6864 = vmatprep.subr.bf16.mxu0 %v13041_v43 }
 0x18c   : > { %6453 = vmatmul.mubr.msk.f32.gmra.mrb[78].mxu1 %vm345_vm0, %v763_v25  ;;  %v6865_v48 = vpack.c.bf16 %v6960_v32, %v6959_v35  ;;  %v772_v25 = vmul.f32 %v8384_v36, %v8232_v17  ;;  %v775_v32 = vmul.f32 %v8243_v21, %v8384_v36  ;;  %v776_v35 = vmul.f32 %v8384_v36, %v8264_v28 }
 0x18d   : > { %6454 = vmatprep.mubr.msk.f32.mxu1 %vm345_vm0, %v764_v38  ;;  %v6963_v50 = vpop.permute.xlu0 %6962 }
 0x18e   : > { %6866 = vmatpush1.bf16.msra.mxu0 %v6865_v48  ;;  %v6965_v53 = vunpack.i.h.bf16 %v6963_v50  ;;  %v6964_v58 = vunpack.i.l.bf16 %v6963_v50  ;;  %v2165_v48 = vld [vmem:[%s13039_s5] sm:$0xff] }
 0x18f   : > { %6867 = vmatprep.subr.bf16.mxu0 %v13041_v43 }
 0x190   : > { %6455 = vmatmul.mubr.msk.f32.gmra.mrb[80].mxu1 %vm345_vm0, %v764_v38  ;;  %v6868_v62 = vpack.c.bf16 %v6965_v53, %v6964_v58  ;;  %v777_v38 = vmul.f32 %v8260_v27, %v8384_v36  ;;  %v778_v53 = vmul.f32 %v8384_v36, %v8279_v34 }
 0x191   : > { %6456 = vmatprep.mubr.msk.f32.mxu1 %vm345_vm0, %v765_v49  ;;  %v6968_v6 = vpop.permute.xlu1 %6967 }
 0x192   : > { %6869 = vmatpush1.bf16.msra.mxu0 %v6868_v62  ;;  %v6970_v9 = vunpack.i.h.bf16 %v6968_v6  ;;  %v6969_v10 = vunpack.i.l.bf16 %v6968_v6  ;;  %v2168_v6 = vld [vmem:[%s13039_s5 + $0x18] sm:$0xff] }
 0x193   : > { %6870 = vmatprep.subr.bf16.mxu0 %v13041_v43 }
 0x194   : > { %6457 = vmatmul.mubr.msk.f32.gmra.mrb[82].mxu1 %vm345_vm0, %v765_v49  ;;  %v6871_v20 = vpack.c.bf16 %v6970_v9, %v6969_v10  ;;  %v2166_v49 = vld [vmem:[%s13039_s5 + $0x8] sm:$0xff] }
 0x195   : > { %6458 = vmatprep.mubr.msk.f32.mxu1 %vm345_vm0, %v766_v61 }
 0x196   : > { %6872 = vmatpush1.bf16.msra.mxu0 %v6871_v20 }
 0x197   : > { %6873 = vmatprep.subr.bf16.mxu0 %v13041_v43 }
 0x198   : > { %6459 = vmatmul.mubr.msk.f32.gmra.mrb[84].mxu1 %vm345_vm0, %v766_v61 }
 0x199   : > { %6460 = vmatprep.mubr.msk.f32.mxu1 %vm345_vm0, %v767_v5 }
 0x19c   : > { %6461 = vmatmul.mubr.msk.f32.gmra.mrb[86].mxu1 %vm345_vm0, %v767_v5  ;;  %v2167_v5 = vld [vmem:[%s13039_s5 + $0x10] sm:$0xff] }
 0x19d   : > { %6462 = vmatprep.mubr.msk.f32.mxu1 %vm345_vm0, %v768_v19 }
 0x1a0   : > { %6463 = vmatmul.mubr.msk.f32.gmra.mrb[88].mxu1 %vm345_vm0, %v768_v19  ;;  %v779_v19 = vmul.f32 %v8275_v33, %v8384_v36 }
 0x1a1   : > { %6464 = vmatprep.mubr.msk.f32.mxu1 %vm345_vm0, %v769_v24 }
 0x1a4   : > { %6465 = vmatmul.mubr.msk.f32.gmra.mrb[90].mxu1 %vm345_vm0, %v769_v24 }
 0x1a5   : > { %6466 = vmatprep.mubr.msk.f32.mxu1 %vm345_vm0, %v770_v18 }
 0x1a8   : > { %6467 = vmatmul.mubr.msk.f32.gmra.mrb[92].mxu1 %vm345_vm0, %v770_v18 }
 0x1a9   : > { %6468 = vmatprep.mubr.msk.f32.mxu1 %vm345_vm0, %v771_v23 }
 0x1ac   : > { %6469 = vmatmul.mubr.msk.f32.gmra.mrb[94].mxu1 %vm345_vm0, %v771_v23  ;;  %v2169_v23 = vld [vmem:[%s13039_s5 + $0x20] sm:$0xff] }
 0x1ad   : > { %6470 = vmatprep.mubr.msk.f32.mxu1 %vm345_vm0, %v772_v25 }
 0x1b0   : > { %6471 = vmatmul.mubr.msk.f32.gmra.mrb[96].mxu1 %vm345_vm0, %v772_v25  ;;  %v2170_v25 = vld [vmem:[%s13039_s5 + $0x28] sm:$0xff] }
 0x1b1   : > { %6472 = vmatprep.mubr.msk.f32.mxu1 %vm345_vm0, %v773_v29 }
 0x1b4   : > { %6473 = vmatmul.mubr.msk.f32.gmra.mrb[98].mxu1 %vm345_vm0, %v773_v29 }
 0x1b5   : > { %6474 = vmatprep.mubr.msk.f32.mxu1 %vm345_vm0, %v774_v31 }
 0x1b8   : > { %6475 = vmatmul.mubr.msk.f32.gmra.mrb[100].mxu1 %vm345_vm0, %v774_v31 }
 0x1b9   : > { %6476 = vmatprep.mubr.msk.f32.mxu1 %vm345_vm0, %v775_v32 }
 0x1bc   : > { %6477 = vmatmul.mubr.msk.f32.gmra.mrb[102].mxu1 %vm345_vm0, %v775_v32  ;;  %v780_v32 = vmul.f32 %v8384_v36, %v8291_v14 }
 0x1bd   : > { %6478 = vmatprep.mubr.msk.f32.mxu1 %vm345_vm0, %v776_v35 }
 0x1c0   : > { %6479 = vmatmul.mubr.msk.f32.gmra.mrb[104].mxu1 %vm345_vm0, %v776_v35 }
 0x1c1   : > { %6480 = vmatprep.mubr.msk.f32.mxu1 %vm345_vm0, %v777_v38 }
 0x1c3   : > { %v1398_v50 = vpop.f32.mrb[0].mxu1 }
 0x1c4   : > { %v1400_v58 = vpop.f32.mrb[1].mxu1  ;;  %6481 = vmatmul.mubr.msk.f32.gmra.mrb[106].mxu1 %vm345_vm0, %v777_v38  ;;  %v8498_v61 = vadd.f32 %v2165_v48, %v1398_v50  ;;  %v2172_v50 = vld [vmem:[%s13039_s5 + $0x38] sm:$0xff] }
 0x1c5   : > { %6482 = vmatprep.mubr.msk.f32.mxu1 %vm345_vm0, %v778_v53  ;;  %v8501_v62 = vadd.f32 %v2166_v49, %v1400_v58  ;;  %v2171_v49 = vld [vmem:[%s13039_s5 + $0x30] sm:$0xff] }
 0x1c7   : > { %v1404_v9 = vpop.f32.mrb[2].mxu1  ;;  %v2485_v10 = vmax.f32 %v8498_v61, %v8501_v62 }
 0x1c8   : > { %v1406_v20 = vpop.f32.mrb[3].mxu1  ;;  %6483 = vmatmul.mubr.msk.f32.gmra.mrb[108].mxu1 %vm345_vm0, %v778_v53  ;;  %v8514_v24 = vadd.f32 %v2167_v5, %v1404_v9  ;;  %v781_v5 = vmul.f32 %v8288_v39, %v8384_v36 }
 0x1c9   : > { %2486 = vmax.xlane.f32.xlu0 %v2485_v10  ;;  %6484 = vmatprep.mubr.msk.f32.mxu1 %vm345_vm0, %v779_v19  ;;  %v8517_v18 = vadd.f32 %v2168_v6, %v1406_v20 }
 0x1cb   : > { %v1410_v29 = vpop.f32.mrb[4].mxu1  ;;  %v2488_v31 = vmax.f32 %v8514_v24, %v8517_v18 }
 0x1cc   : > { %v1412_v35 = vpop.f32.mrb[5].mxu1  ;;  %6485 = vmatmul.mubr.msk.f32.gmra.mrb[110].mxu1 %vm345_vm0, %v779_v19  ;;  %v8530_v38 = vadd.f32 %v2169_v23, %v1410_v29  ;;  %v782_v23 = vmul.f32 %v8384_v36, %v8306_v57  ;;  %v2175_v29 = vld [vmem:[%s13039_s5 + $0x50] sm:$0xff] }
 0x1cd   : > { %2489 = vmax.xlane.f32.xlu0 %v2488_v31  ;;  %6486 = vmatprep.mubr.msk.f32.mxu1 %vm345_vm0, %v780_v32  ;;  %v8533_v48 = vadd.f32 %v2170_v25, %v1412_v35  ;;  %v2176_v31 = vld [vmem:[%s13039_s5 + $0x58] sm:$0xff]  ;;  %v783_v35 = vmul.f32 %v8303_v54, %v8384_v36 }
 0x1cf   : > { %v1416_v53 = vpop.f32.mrb[6].mxu1  ;;  %v2491_v58 = vmax.f32 %v8530_v38, %v8533_v48 }
 0x1d0   : > { %v1418_v6 = vpop.f32.mrb[7].mxu1  ;;  %6487 = vmatmul.mubr.msk.f32.gmra.mrb[112].mxu1 %vm345_vm0, %v780_v32  ;;  %v8546_v9 = vadd.f32 %v2171_v49, %v1416_v53 }
 0x1d1   : > { %2492 = vmax.xlane.f32.xlu1 %v2491_v58  ;;  %6488 = vmatprep.mubr.msk.f32.mxu1 %vm345_vm0, %v781_v5  ;;  %v8549_v10 = vadd.f32 %v2172_v50, %v1418_v6  ;;  %v784_v6 = vmul.f32 %v8384_v36, %v8318_v2 }
 0x1d3   : > { %v8551_v19 = vpop.f32.mrb[8].mxu1  ;;  %v2494_v20 = vmax.f32 %v8546_v9, %v8549_v10 }
 0x1d4   : > { %6489 = vmatmul.mubr.msk.f32.gmra.mrb[114].mxu1 %vm345_vm0, %v781_v5  ;;  %v8558_v25 = vpop.f32.mrb[9].mxu1 }
 0x1d5   : > { %2495 = vmax.xlane.f32.xlu1 %v2494_v20  ;;  %6490 = vmatprep.mubr.msk.f32.mxu1 %vm345_vm0, %v782_v23 }
 0x1d7   : > { %v1428_v32 = vpop.f32.mrb[10].mxu1 }
 0x1d8   : > { %v1430_v49 = vpop.f32.mrb[11].mxu1  ;;  %6491 = vmatmul.mubr.msk.f32.gmra.mrb[116].mxu1 %vm345_vm0, %v782_v23  ;;  %v8570_v50 = vadd.f32 %v2175_v29, %v1428_v32  ;;  %v2179_v23 = vld [vmem:[%s13039_s5 + $0x70] sm:$0xff]  ;;  %v2180_v29 = vld [vmem:[%s13039_s5 + $0x78] sm:$0xff]  ;;  %v785_v32 = vmul.f32 %v8315_v1, %v8384_v36 }
 0x1d9   : > { %6492 = vmatprep.mubr.msk.f32.mxu1 %vm345_vm0, %v783_v35  ;;  %v8573_v53 = vadd.f32 %v2176_v31, %v1430_v49 }
 0x1da   : > { %13527 = vst [vmem:[#allocation22_spill] sm:$0xff] %v8570_v50 }
 0x1db   : > { %13528 = vst [vmem:[#allocation23_spill] sm:$0xff] %v8573_v53  ;;  %v8575_v58 = vpop.f32.mrb[12].mxu1  ;;  %v2500_v5 = vmax.f32 %v8570_v50, %v8573_v53 }
 0x1dc   : > { %6493 = vmatmul.mubr.msk.f32.gmra.mrb[118].mxu1 %vm345_vm0, %v783_v35  ;;  %v8582_v20 = vpop.f32.mrb[13].mxu1 }
 0x1dd   : > { %2501 = vmax.xlane.f32.xlu1 %v2500_v5  ;;  %6494 = vmatprep.mubr.msk.f32.mxu1 %vm345_vm0, %v784_v6 }
 0x1df   : > { %v1440_v31 = vpop.f32.mrb[14].mxu1 }
 0x1e0   : > { %v1442_v49 = vpop.f32.mrb[15].mxu1  ;;  %6495 = vmatmul.mubr.msk.f32.gmra.mrb[120].mxu1 %vm345_vm0, %v784_v6  ;;  %v8594_v35 = vadd.f32 %v2179_v23, %v1440_v31  ;;  %v786_v6 = vmul.f32 %v8384_v36, %v8333_v15  ;;  %v787_v31 = vmul.f32 %v8330_v13, %v8384_v36 }
 0x1e1   : > { %6496 = vmatprep.mubr.msk.f32.mxu1 %vm345_vm0, %v785_v32  ;;  %v8597_v5 = vadd.f32 %v2180_v29, %v1442_v49  ;;  %v8624_v49 = vrot.slane %v702_v45, %v8131_v42 }
 0x1e2   : > { %13529 = vst [vmem:[#allocation24_spill] sm:$0xff] %v8594_v35 }
 0x1e3   : > { %13530 = vst [vmem:[#allocation25_spill] sm:$0xff] %v8597_v5  ;;  %6972 = vrot.lane.b32.xlu0 %v6971_v26, %s7921_s15  ;;  %v8605_v43 = vpop.f32.mrb[16].mxu1  ;;  %v2506_v30 = vmax.f32 %v8594_v35, %v8597_v5  ;;  %v2184_v26 = vld [vmem:[%s13039_s5 + $0x98] sm:$0xff]  ;;  %v788_v36 = vmul.f32 %v8624_v49, %v8142_v47  ;;  %v790_v50 = vmul.f32 %v8624_v49, %v8155_v52 }
 0x1e4   : > { %6497 = vmatmul.mubr.msk.f32.gmra.mrb[122].mxu1 %vm345_vm0, %v785_v32  ;;  %v8612_v23 = vpop.f32.mrb[17].mxu1 }
 0x1e5   : > { %2507 = vmax.xlane.f32.xlu1 %v2506_v30  ;;  %6498 = vmatprep.mubr.msk.f32.mxu1 %vm345_vm0, %v786_v6 }
 0x1e7   : > { %v1452_v29 = vpop.f32.mrb[18].mxu1 }
 0x1e8   : > { %v8626_v32 = vadd.f32 %v2183_v44, %v1452_v29  ;;  %v1454_v30 = vpop.f32.mrb[19].mxu1  ;;  %6499 = vmatmul.mubr.msk.f32.gmra.mrb[124].mxu1 %vm345_vm0, %v786_v6  ;;  %v2187_v6 = vld [vmem:[%s13039_s5 + $0xb0] sm:$0xff]  ;;  %v2188_v44 = vld [vmem:[%s13039_s5 + $0xb8] sm:$0xff]  ;;  %v789_v29 = vmul.f32 %v8140_v46, %v8624_v49 }
 0x1e9   : > { %v8629_v41 = vadd.f32 %v2184_v26, %v1454_v30  ;;  %6500 = vmatprep.mubr.msk.f32.mxu1 %vm345_vm0, %v787_v31 }
 0x1ea   : > { %13531 = vst [vmem:[#allocation26_spill] sm:$0xff] %v8626_v32 }
 0x1eb   : > { %13532 = vst [vmem:[#allocation27_spill] sm:$0xff] %v8629_v41  ;;  %v8632_v40 = vpop.f32.mrb[20].mxu1  ;;  %v2512_v53 = vmax.f32 %v8626_v32, %v8629_v41 }
 0x1ec   : > { %6501 = vmatmul.mubr.msk.f32.gmra.mrb[126].mxu1 %vm345_vm0, %v787_v31  ;;  %v8639_v45 = vpop.f32.mrb[21].mxu1 }
 0x1ed   : > { %2513 = vmax.xlane.f32.xlu1 %v2512_v53  ;;  %6502 = vmatprep.mubr.msk.f32.mxu1 %vm345_vm0, %v788_v36 }
 0x1ef   : > { %v1464_v26 = vpop.f32.mrb[22].mxu1 }
 0x1f0   : > { %v8650_v30 = vadd.f32 %v2187_v6, %v1464_v26  ;;  %v1466_v31 = vpop.f32.mrb[23].mxu1  ;;  %6503 = vmatmul.mubr.msk.f32.gmra.mrb[128].mxu1 %vm345_vm0, %v788_v36  ;;  %v2191_v36 = vld [vmem:[%s13039_s5 + $0xd0] sm:$0xff]  ;;  %v2192_v6 = vld [vmem:[%s13039_s5 + $0xd8] sm:$0xff]  ;;  %v791_v26 = vmul.f32 %v8152_v51, %v8624_v49 }
 0x1f1   : > { %v8653_v53 = vadd.f32 %v2188_v44, %v1466_v31  ;;  %6504 = vmatprep.mubr.msk.f32.mxu1 %vm345_vm0, %v789_v29 }
 0x1f2   : > { %13533 = vst [vmem:[#allocation28_spill] sm:$0xff] %v8650_v30 }
 0x1f3   : > { %13534 = vst [vmem:[#allocation29_spill] sm:$0xff] %v8653_v53  ;;  %v8656_v41 = vpop.f32.mrb[24].mxu1  ;;  %v2518_v32 = vmax.f32 %v8650_v30, %v8653_v53  ;;  %v2193_v53 = vld [vmem:[%s13039_s5 + $0xe0] sm:$0xff] }
 0x1f4   : > { %6505 = vmatmul.mubr.msk.f32.gmra.mrb[130].mxu1 %vm345_vm0, %v789_v29  ;;  %v8663_v5 = vpop.f32.mrb[25].mxu1  ;;  %v2173_v30 = vld [vmem:[%s13039_s5 + $0x40] sm:$0xff] }
 0x1f5   : > { %2519 = vmax.xlane.f32.xlu1 %v2518_v32  ;;  %6506 = vmatprep.mubr.msk.f32.mxu1 %vm345_vm0, %v790_v50  ;;  %v8700_v35 = vadd.f32 %v2173_v30, %v8551_v19  ;;  %v2178_v19 = vld [vmem:[%s13039_s5 + $0x68] sm:$0xff] }
 0x1f7   : > { %v1476_v44 = vpop.f32.mrb[26].mxu1 }
 0x1f8   : > { %v8674_v31 = vadd.f32 %v2191_v36, %v1476_v44  ;;  %v1478_v29 = vpop.f32.mrb[27].mxu1  ;;  %6507 = vmatmul.mubr.msk.f32.gmra.mrb[132].mxu1 %vm345_vm0, %v790_v50  ;;  %v2174_v36 = vld [vmem:[%s13039_s5 + $0x48] sm:$0xff] }
 0x1f9   : > { %v8677_v32 = vadd.f32 %v2192_v6, %v1478_v29  ;;  %6508 = vmatprep.mubr.msk.f32.mxu1 %vm345_vm0, %v791_v26  ;;  %v2194_v50 = vld [vmem:[%s13039_s5 + $0xe8] sm:$0xff]  ;;  %v792_v29 = vmul.f32 %v8624_v49, %v8166_v56  ;;  %v8703_v46 = vadd.f32 %v2174_v36, %v8558_v25 }
 0x1fa   : > { %13535 = vst [vmem:[#allocation30_spill] sm:$0xff] %v8674_v31 }
 0x1fb   : > { %13536 = vst [vmem:[#allocation31_spill] sm:$0xff] %v8677_v32  ;;  %v1482_v6 = vpop.f32.mrb[28].mxu1  ;;  %v2524_v44 = vmax.f32 %v8674_v31, %v8677_v32  ;;  %v2195_v32 = vld [vmem:[%s13039_s5 + $0xf0] sm:$0xff]  ;;  %v8733_v31 = vadd.f32 %v2178_v19, %v8582_v20  ;;  %v2186_v20 = vld [vmem:[%s13039_s5 + $0xa8] sm:$0xff] }
 0x1fc   : > { %v8696_v51 = vadd.f32 %v2193_v53, %v1482_v6  ;;  %v1484_v52 = vpop.f32.mrb[29].mxu1  ;;  %6509 = vmatmul.mubr.msk.f32.gmra.mrb[134].mxu1 %vm345_vm0, %v791_v26  ;;  %v2177_v53 = vld [vmem:[%s13039_s5 + $0x60] sm:$0xff]  ;;  %v793_v26 = vmul.f32 %v8162_v55, %v8624_v49  ;;  %v2497_v6 = vmax.f32 %v8700_v35, %v8703_v46 }
 0x1fd   : > { %v8705_v47 = vadd.f32 %v2194_v50, %v1484_v52  ;;  %2525 = vmax.xlane.f32.xlu1 %v2524_v44  ;;  %6510 = vmatprep.mubr.msk.f32.mxu1 %vm345_vm0, %v792_v29  ;;  %v2196_v52 = vld [vmem:[%s13039_s5 + $0xf8] sm:$0xff]  ;;  %v8730_v44 = vadd.f32 %v2177_v53, %v8575_v58  ;;  %v2185_v58 = vld [vmem:[%s13039_s5 + $0xa0] sm:$0xff] }
 0x1fe   : > { %13537 = vst [vmem:[#allocation32_spill] sm:$0xff] %v8696_v51 }
 0x1ff   : > { %13538 = vst [vmem:[#allocation33_spill] sm:$0xff] %v8705_v47  ;;  %v1488_v25 = vpop.f32.mrb[30].mxu1  ;;  %v2527_v30 = vmax.f32 %v8696_v51, %v8705_v47 }
 0x200   : > { %v8724_v36 = vadd.f32 %v2195_v32, %v1488_v25  ;;  %v1490_v50 = vpop.f32.mrb[31].mxu1  ;;  %6511 = vmatmul.mubr.msk.f32.gmra.mrb[136].mxu1 %vm345_vm0, %v792_v29  ;;  %v2181_v32 = vld [vmem:[%s13039_s5 + $0x80] sm:$0xff]  ;;  %v2182_v29 = vld [vmem:[%s13039_s5 + $0x88] sm:$0xff] }
 0x201   : > { %v8735_v56 = vadd.f32 %v2196_v52, %v1490_v50  ;;  %2528 = vmax.xlane.f32.xlu1 %v2527_v30  ;;  %6512 = vmatprep.mubr.msk.f32.mxu1 %vm345_vm0, %v793_v26  ;;  %v794_v52 = vmul.f32 %v8624_v49, %v8177_v60  ;;  %v2503_v30 = vmax.f32 %v8730_v44, %v8733_v31 }
 0x202   : > { %13539 = vst [vmem:[#allocation34_spill] sm:$0xff] %v8724_v36  ;;  %2498 = vmax.xlane.f32.xlu0 %v2497_v6  ;;  %v8758_v50 = vadd.f32 %v2181_v32, %v8605_v43  ;;  %v8761_v6 = vadd.f32 %v2182_v29, %v8612_v23  ;;  %v2200_v43 = vld [vmem:[%s13039_s5 + $0x118] sm:$0xff]  ;;  %v2189_v23 = vld [vmem:[%s13039_s5 + $0xc0] sm:$0xff]  ;;  %v2190_v32 = vld [vmem:[%s13039_s5 + $0xc8] sm:$0xff] }
 0x203   : > { %13540 = vst [vmem:[#allocation35_spill] sm:$0xff] %v8735_v56  ;;  %v1494_v53 = vpop.f32.mrb[32].mxu1  ;;  %v2530_v19 = vmax.f32 %v8724_v36, %v8735_v56  ;;  %v2199_v56 = vld [vmem:[%s13039_s5 + $0x110] sm:$0xff]  ;;  %v8768_v36 = vadd.f32 %v2185_v58, %v8632_v40  ;;  %v795_v40 = vmul.f32 %v8173_v59, %v8624_v49  ;;  %v8796_v47 = vadd.f32 %v2189_v23, %v8656_v41  ;;  %v2198_v41 = vld [vmem:[%s13039_s5 + $0x108] sm:$0xff] }
 0x204   : > { %6513 = vmatmul.mubr.msk.f32.gmra.mrb[138].mxu1 %vm345_vm0, %v793_v26  ;;  %v1496_v25 = vpop.f32.mrb[33].mxu1  ;;  %v8771_v26 = vadd.f32 %v2186_v20, %v8639_v45  ;;  %v2509_v20 = vmax.f32 %v8758_v50, %v8761_v6 }
 0x205   : > { %2531 = vmax.xlane.f32.xlu1 %v2530_v19  ;;  %6514 = vmatprep.mubr.msk.f32.mxu1 %vm345_vm0, %v794_v52  ;;  %13541 = vst [vmem:[#allocation36_spill] sm:$0xff] %v8768_v36 }
 0x206   : > { %13542 = vst [vmem:[#allocation37_spill] sm:$0xff] %v8771_v26  ;;  %2504 = vmax.xlane.f32.xlu0 %v2503_v30  ;;  %v2201_v30 = vld [vmem:[%s13039_s5 + $0x120] sm:$0xff] }
 0x207   : > { %v1500_v29 = vpop.f32.mrb[34].mxu1 }
 0x208   : > { %v8784_v58 = vadd.f32 %v2199_v56, %v1500_v29  ;;  %v1502_v45 = vpop.f32.mrb[35].mxu1  ;;  %6515 = vmatmul.mubr.msk.f32.gmra.mrb[140].mxu1 %vm345_vm0, %v794_v52  ;;  %v8799_v56 = vadd.f32 %v2190_v32, %v8663_v5  ;;  %v2202_v52 = vld [vmem:[%s13039_s5 + $0x128] sm:$0xff]  ;;  %v2197_v29 = vld [vmem:[%s13039_s5 + $0x100] sm:$0xff]  ;;  %v796_v32 = vmul.f32 %v8624_v49, %v8188_v0 }
 0x209   : > { %v8789_v19 = vadd.f32 %v2200_v43, %v1502_v45  ;;  %6516 = vmatprep.mubr.msk.f32.mxu1 %vm345_vm0, %v795_v40  ;;  %v2515_v43 = vmax.f32 %v8768_v36, %v8771_v26  ;;  %v8822_v26 = vadd.f32 %v2197_v29, %v1494_v53  ;;  %v8824_v36 = vadd.f32 %v2198_v41, %v1496_v25  ;;  %v2204_v53 = vld [vmem:[%s13039_s5 + $0x138] sm:$0xff] }
 0x20a   : > { %13543 = vst [vmem:[#allocation38_spill] sm:$0xff] %v8784_v58  ;;  %2510 = vmax.xlane.f32.xlu0 %v2509_v20 }
 0x20b   : > { %13544 = vst [vmem:[#allocation39_spill] sm:$0xff] %v8789_v19  ;;  %v1506_v23 = vpop.f32.mrb[36].mxu1  ;;  %v2536_v5 = vmax.f32 %v8784_v58, %v8789_v19  ;;  %v2521_v19 = vmax.f32 %v8796_v47, %v8799_v56 }
 0x20c   : > { %v8816_v45 = vadd.f32 %v2201_v30, %v1506_v23  ;;  %v1508_v20 = vpop.f32.mrb[37].mxu1  ;;  %6517 = vmatmul.mubr.msk.f32.gmra.mrb[142].mxu1 %vm345_vm0, %v795_v40  ;;  %v2203_v30 = vld [vmem:[%s13039_s5 + $0x130] sm:$0xff]  ;;  %v2206_v23 = vld [vmem:[%s13039_s5 + $0x148] sm:$0xff] }
 0x20d   : > { %v8819_v51 = vadd.f32 %v2202_v52, %v1508_v20  ;;  %2537 = vmax.xlane.f32.xlu1 %v2536_v5  ;;  %6518 = vmatprep.mubr.msk.f32.mxu1 %vm345_vm0, %v796_v32  ;;  %v797_v52 = vmul.f32 %v8184_v63, %v8624_v49  ;;  %v2533_v5 = vmax.f32 %v8822_v26, %v8824_v36 }
 0x20e   : > { %13545 = vst [vmem:[#allocation40_spill] sm:$0xff] %v8816_v45  ;;  %2516 = vmax.xlane.f32.xlu0 %v2515_v43  ;;  %v2205_v43 = vld [vmem:[%s13039_s5 + $0x140] sm:$0xff]  ;;  %v798_v20 = vmul.f32 %v8624_v49, %v8199_v4 }
 0x20f   : > { %13546 = vst [vmem:[#allocation41_spill] sm:$0xff] %v8819_v51  ;;  %v1512_v58 = vpop.f32.mrb[38].mxu1  ;;  %v2539_v40 = vmax.f32 %v8816_v45, %v8819_v51 }
 0x210   : > { %6519 = vmatmul.mubr.msk.f32.gmra.mrb[144].mxu1 %vm345_vm0, %v796_v32  ;;  %v1514_v25 = vpop.f32.mrb[39].mxu1  ;;  %v8843_v29 = vadd.f32 %v2203_v30, %v1512_v58  ;;  %v2208_v30 = vld [vmem:[%s13039_s5 + $0x158] sm:$0xff] }
 0x211   : > { %2540 = vmax.xlane.f32.xlu1 %v2539_v40  ;;  %6520 = vmatprep.mubr.msk.f32.mxu1 %vm345_vm0, %v797_v52  ;;  %v8845_v41 = vadd.f32 %v2204_v53, %v1514_v25 }
 0x212   : > { %13547 = vst [vmem:[#allocation42_spill] sm:$0xff] %v8843_v29  ;;  %2522 = vmax.xlane.f32.xlu0 %v2521_v19  ;;  %v2207_v19 = vld [vmem:[%s13039_s5 + $0x150] sm:$0xff] }
 0x213   : > { %13548 = vst [vmem:[#allocation43_spill] sm:$0xff] %v8845_v41  ;;  %v1518_v32 = vpop.f32.mrb[40].mxu1  ;;  %v2542_v53 = vmax.f32 %v8843_v29, %v8845_v41  ;;  %v2209_v29 = vld [vmem:[%s13039_s5 + $0x160] sm:$0xff] }
 0x214   : > { %v8854_v40 = vadd.f32 %v2205_v43, %v1518_v32  ;;  %v1520_v51 = vpop.f32.mrb[41].mxu1  ;;  %6521 = vmatmul.mubr.msk.f32.gmra.mrb[146].mxu1 %vm345_vm0, %v797_v52 }
 0x215   : > { %v8857_v58 = vadd.f32 %v2206_v23, %v1520_v51  ;;  %6522 = vmatprep.mubr.msk.f32.mxu1 %vm345_vm0, %v798_v20  ;;  %v799_v51 = vmul.f32 %v8195_v3, %v8624_v49 }
 0x216   : > { %13549 = vst [vmem:[#allocation44_spill] sm:$0xff] %v8854_v40  ;;  %2534 = vmax.xlane.f32.xlu0 %v2533_v5 }
 0x217   : > { %13550 = vst [vmem:[#allocation45_spill] sm:$0xff] %v8857_v58  ;;  %v1524_v25 = vpop.f32.mrb[42].mxu1  ;;  %v2545_v52 = vmax.f32 %v8854_v40, %v8857_v58  ;;  %v800_v58 = vmul.f32 %v8624_v49, %v8210_v8  ;;  %v2215_v40 = vld [vmem:[%s13039_s5 + $0x190] sm:$0xff] }
 0x218   : > { %v8872_v43 = vadd.f32 %v2207_v19, %v1524_v25  ;;  %v1526_v23 = vpop.f32.mrb[43].mxu1  ;;  %6523 = vmatmul.mubr.msk.f32.gmra.mrb[148].mxu1 %vm345_vm0, %v798_v20  ;;  %v2211_v20 = vld [vmem:[%s13039_s5 + $0x170] sm:$0xff]  ;;  %v801_v25 = vmul.f32 %v8206_v7, %v8624_v49 }
 0x219   : > { %v8875_v5 = vadd.f32 %v2208_v30, %v1526_v23  ;;  %2546 = vmax.xlane.f32.xlu1 %v2545_v52  ;;  %6524 = vmatprep.mubr.msk.f32.mxu1 %vm345_vm0, %v799_v51  ;;  %v2212_v30 = vld [vmem:[%s13039_s5 + $0x178] sm:$0xff]  ;;  %v2213_v23 = vld [vmem:[%s13039_s5 + $0x180] sm:$0xff] }
 0x21a   : > { %13551 = vst [vmem:[#allocation46_spill] sm:$0xff] %v8872_v43  ;;  %2543 = vmax.xlane.f32.xlu0 %v2542_v53 }
 0x21b   : > { %13552 = vst [vmem:[#allocation47_spill] sm:$0xff] %v8875_v5  ;;  %v8878_v32 = vpop.f32.mrb[44].mxu1  ;;  %v2548_v41 = vmax.f32 %v8872_v43, %v8875_v5  ;;  %v2214_v5 = vld [vmem:[%s13039_s5 + $0x188] sm:$0xff] }
 0x21c   : > { %6525 = vmatmul.mubr.msk.f32.gmra.mrb[150].mxu1 %vm345_vm0, %v799_v51  ;;  %v8885_v19 = vpop.f32.mrb[45].mxu1 }
 0x21d   : > { %2549 = vmax.xlane.f32.xlu1 %v2548_v41  ;;  %6526 = vmatprep.mubr.msk.f32.mxu1 %vm345_vm0, %v800_v58 }
 0x21f   : > { %v1536_v53 = vpop.f32.mrb[46].mxu1 }
 0x220   : > { %v8896_v52 = vadd.f32 %v2211_v20, %v1536_v53  ;;  %v1538_v51 = vpop.f32.mrb[47].mxu1  ;;  %6527 = vmatmul.mubr.msk.f32.gmra.mrb[152].mxu1 %vm345_vm0, %v800_v58  ;;  %v802_v53 = vmul.f32 %v8624_v49, %v8221_v12 }
 0x221   : > { %v8899_v41 = vadd.f32 %v2212_v30, %v1538_v51  ;;  %6528 = vmatprep.mubr.msk.f32.mxu1 %vm345_vm0, %v801_v25 }
 0x222   : > { %13553 = vst [vmem:[#allocation48_spill] sm:$0xff] %v8896_v52 }
 0x223   : > { %13554 = vst [vmem:[#allocation49_spill] sm:$0xff] %v8899_v41  ;;  %v1542_v43 = vpop.f32.mrb[48].mxu1  ;;  %v2554_v20 = vmax.f32 %v8896_v52, %v8899_v41  ;;  %v2216_v41 = vld [vmem:[%s13039_s5 + $0x198] sm:$0xff] }
 0x224   : > { %v8912_v58 = vadd.f32 %v2213_v23, %v1542_v43  ;;  %v1544_v30 = vpop.f32.mrb[49].mxu1  ;;  %6529 = vmatmul.mubr.msk.f32.gmra.mrb[154].mxu1 %vm345_vm0, %v801_v25  ;;  %v803_v25 = vmul.f32 %v8217_v11, %v8624_v49 }
 0x225   : > { %v8915_v51 = vadd.f32 %v2214_v5, %v1544_v30  ;;  %2555 = vmax.xlane.f32.xlu1 %v2554_v20  ;;  %6530 = vmatprep.mubr.msk.f32.mxu1 %vm345_vm0, %v802_v53  ;;  %v2217_v30 = vld [vmem:[%s13039_s5 + $0x1a0] sm:$0xff] }
 0x226   : > { %13555 = vst [vmem:[#allocation50_spill] sm:$0xff] %v8912_v58 }
 0x227   : > { %13556 = vst [vmem:[#allocation51_spill] sm:$0xff] %v8915_v51  ;;  %v1548_v52 = vpop.f32.mrb[50].mxu1  ;;  %v2557_v43 = vmax.f32 %v8912_v58, %v8915_v51  ;;  %v2218_v51 = vld [vmem:[%s13039_s5 + $0x1a8] sm:$0xff] }
 0x228   : > { %v8928_v5 = vadd.f32 %v2215_v40, %v1548_v52  ;;  %v1550_v23 = vpop.f32.mrb[51].mxu1  ;;  %6531 = vmatmul.mubr.msk.f32.gmra.mrb[156].mxu1 %vm345_vm0, %v802_v53  ;;  %v804_v52 = vmul.f32 %v8624_v49, %v8232_v17 }
 0x229   : > { %v8931_v20 = vadd.f32 %v2216_v41, %v1550_v23  ;;  %2558 = vmax.xlane.f32.xlu1 %v2557_v43  ;;  %6532 = vmatprep.mubr.msk.f32.mxu1 %vm345_vm0, %v803_v25  ;;  %v2219_v23 = vld [vmem:[%s13039_s5 + $0x1b0] sm:$0xff] }
 0x22a   : > { %13557 = vst [vmem:[#allocation52_spill] sm:$0xff] %v8928_v5 }
 0x22b   : > { %13558 = vst [vmem:[#allocation53_spill] sm:$0xff] %v8931_v20  ;;  %v1554_v58 = vpop.f32.mrb[52].mxu1  ;;  %v2560_v40 = vmax.f32 %v8928_v5, %v8931_v20  ;;  %v2220_v20 = vld [vmem:[%s13039_s5 + $0x1b8] sm:$0xff] }
 0x22c   : > { %v8944_v41 = vadd.f32 %v2217_v30, %v1554_v58  ;;  %v1556_v53 = vpop.f32.mrb[53].mxu1  ;;  %6533 = vmatmul.mubr.msk.f32.gmra.mrb[158].mxu1 %vm345_vm0, %v803_v25  ;;  %v805_v25 = vmul.f32 %v8228_v16, %v8624_v49 }
 0x22d   : > { %v8947_v43 = vadd.f32 %v2218_v51, %v1556_v53  ;;  %2561 = vmax.xlane.f32.xlu1 %v2560_v40  ;;  %6534 = vmatprep.mubr.msk.f32.mxu1 %vm345_vm0, %v804_v52  ;;  %v13562_v40 = vpack.i.bf16 %v8315_v1, %v8318_v2 }
 0x22e   : > { %13559 = vst [vmem:[#allocation54_spill] sm:$0xff] %v8944_v41 }
 0x22f   : > { %13560 = vst [vmem:[#allocation55_spill] sm:$0xff] %v8947_v43  ;;  %v1560_v5 = vpop.f32.mrb[54].mxu1  ;;  %v2563_v58 = vmax.f32 %v8944_v41, %v8947_v43 }
 0x230   : > { %v8960_v51 = vadd.f32 %v2219_v23, %v1560_v5  ;;  %v1562_v30 = vpop.f32.mrb[55].mxu1  ;;  %6977 = vrot.lane.b32.xlu0 %v13562_v40, %s7921_s15  ;;  %6535 = vmatmul.mubr.msk.f32.gmra.mrb[160].mxu1 %vm345_vm0, %v804_v52  ;;  %v806_v5 = vmul.f32 %v8624_v49, %v8247_v22 }
 0x231   : > { %v8967_v53 = vadd.f32 %v2220_v20, %v1562_v30  ;;  %2564 = vmax.xlane.f32.xlu1 %v2563_v58  ;;  %6536 = vmatprep.mubr.msk.f32.mxu1 %vm345_vm0, %v805_v25  ;;  %v807_v20 = vmul.f32 %v8243_v21, %v8624_v49  ;;  %v808_v30 = vmul.f32 %v8624_v49, %v8264_v28  ;;  %v2210_v28 = vld [vmem:[%s13039_s5 + $0x168] sm:$0xff] }
 0x232   : > { %13561 = vst [vmem:[#allocation56_spill] sm:$0xff] %v8960_v51  ;;  %v9022_v45 = vadd.f32 %v2210_v28, %v8885_v19  ;;  %v811_v21 = vmul.f32 %v8275_v33, %v8624_v49 }
 0x233   : > { %13563 = vst [vmem:[#allocation57_spill] sm:$0xff] %v8967_v53  ;;  %v2566_v43 = vmax.f32 %v8960_v51, %v8967_v53  ;;  %v8974_v23 = vpop.f32.mrb[56].mxu1 }
 0x234   : > { %6537 = vmatmul.mubr.msk.f32.gmra.mrb[162].mxu1 %vm345_vm0, %v805_v25  ;;  %v8977_v41 = vpop.f32.mrb[57].mxu1  ;;  %13565 = vst [vmem:[#allocation59_spill] sm:$0xff] %v9022_v45 }
 0x235   : > { %2567 = vmax.xlane.f32.xlu1 %v2566_v43  ;;  %6538 = vmatprep.mubr.msk.f32.mxu1 %vm345_vm0, %v806_v5 }
 0x237   : > { %v8982_v52 = vpop.f32.mrb[58].mxu1 }
 0x238   : > { %6539 = vmatmul.mubr.msk.f32.gmra.mrb[164].mxu1 %vm345_vm0, %v806_v5  ;;  %v8985_v58 = vpop.f32.mrb[59].mxu1  ;;  %v809_v5 = vmul.f32 %v8260_v27, %v8624_v49 }
 0x239   : > { %6540 = vmatprep.mubr.msk.f32.mxu1 %vm345_vm0, %v807_v20 }
 0x23b   : > { %v8990_v25 = vpop.f32.mrb[60].mxu1 }
 0x23c   : > { %6541 = vmatmul.mubr.msk.f32.gmra.mrb[166].mxu1 %vm345_vm0, %v807_v20  ;;  %v8993_v43 = vpop.f32.mrb[61].mxu1  ;;  %v810_v20 = vmul.f32 %v8624_v49, %v8279_v34 }
 0x23d   : > { %6542 = vmatprep.mubr.msk.f32.mxu1 %vm345_vm0, %v808_v30 }
 0x23f   : > { %v8996_v40 = vpop.f32.mrb[62].mxu1 }
 0x240   : > { %6543 = vmatmul.mubr.msk.f32.gmra.mrb[168].mxu1 %vm345_vm0, %v808_v30  ;;  %v9001_v53 = vpop.f32.mrb[63].mxu1  ;;  %v9019_v30 = vadd.f32 %v2209_v29, %v8878_v32  ;;  %v812_v29 = vmul.f32 %v8624_v49, %v8291_v14 }
 0x241   : > { %6544 = vmatprep.mubr.msk.f32.mxu1 %vm345_vm0, %v809_v5 }
 0x242   : > { %13564 = vst [vmem:[#allocation58_spill] sm:$0xff] %v9019_v30  ;;  %v2551_v28 = vmax.f32 %v9019_v30, %v9022_v45  ;;  %v814_v45 = vmul.f32 %v8624_v49, %v8306_v57 }
 0x243   : > { %v9004_v51 = vpop.f32.mrb[64].mxu1 }
 0x244   : > { %v9014_v27 = vpop.f32.mrb[65].mxu1  ;;  %6545 = vmatmul.mubr.msk.f32.gmra.mrb[170].mxu1 %vm345_vm0, %v809_v5 }
 0x245   : > { %6546 = vmatprep.mubr.msk.f32.mxu1 %vm345_vm0, %v810_v20 }
 0x247   : > { %v9024_v34 = vpop.f32.mrb[66].mxu1 }
 0x248   : > { %v9028_v22 = vpop.f32.mrb[67].mxu1  ;;  %6547 = vmatmul.mubr.msk.f32.gmra.mrb[172].mxu1 %vm345_vm0, %v810_v20  ;;  %v813_v20 = vmul.f32 %v8288_v39, %v8624_v49 }
 0x249   : > { %6548 = vmatprep.mubr.msk.f32.mxu1 %vm345_vm0, %v811_v21 }
 0x24b   : > { %v9032_v5 = vpop.f32.mrb[68].mxu1 }
 0x24c   : > { %v9038_v32 = vpop.f32.mrb[69].mxu1  ;;  %6549 = vmatmul.mubr.msk.f32.gmra.mrb[174].mxu1 %vm345_vm0, %v811_v21 }
 0x24d   : > { %6550 = vmatprep.mubr.msk.f32.mxu1 %vm345_vm0, %v812_v29 }
 0x24f   : > { %2552 = vmax.xlane.f32.xlu0 %v2551_v28  ;;  %v9042_v19 = vpop.f32.mrb[70].mxu1 }
 0x250   : > { %13566 = vst [vmem:[#allocation60_spill] sm:$0xff] %v9042_v19  ;;  %v9046_v33 = vpop.f32.mrb[71].mxu1  ;;  %6551 = vmatmul.mubr.msk.f32.gmra.mrb[176].mxu1 %vm345_vm0, %v812_v29  ;;  %v815_v29 = vmul.f32 %v8303_v54, %v8624_v49 }
 0x251   : > { %13567 = vst [vmem:[#allocation61_spill] sm:$0xff] %v9046_v33  ;;  %6552 = vmatprep.mubr.msk.f32.mxu1 %vm345_vm0, %v813_v20 }
 0x253   : > { %v9050_v14 = vpop.f32.mrb[72].mxu1 }
 0x254   : > { %13568 = vst [vmem:[#allocation62_spill] sm:$0xff] %v9050_v14  ;;  %v9054_v21 = vpop.f32.mrb[73].mxu1  ;;  %6553 = vmatmul.mubr.msk.f32.gmra.mrb[178].mxu1 %vm345_vm0, %v813_v20 }
 0x255   : > { %13569 = vst [vmem:[#allocation63_spill] sm:$0xff] %v9054_v21  ;;  %6554 = vmatprep.mubr.msk.f32.mxu1 %vm345_vm0, %v814_v45 }
 0x256   : > { %v2487_v28 = vpop.xlane.xlu0 %2486 }
 0x257   : > { %v2869_v30 = vsub.f32 %v8498_v61, %v2487_v28  ;;  %v2870_v39 = vsub.f32 %v8501_v62, %v2487_v28  ;;  %v9060_v33 = vpop.f32.mrb[74].mxu1  ;;  %v816_v28 = vmul.f32 %v8624_v49, %v8318_v2 }
 0x258   : > { %v9064_v14 = vpop.f32.mrb[75].mxu1  ;;  %6555 = vmatmul.mubr.msk.f32.gmra.mrb[180].mxu1 %vm345_vm0, %v814_v45 }
 0x259   : > { %v3125_v57 = vmul.f32 1.442695, %v2869_v30  ;;  %v3127_v21 = vmul.f32 1.442695, %v2870_v39  ;;  %6556 = vmatprep.mubr.msk.f32.mxu1 %vm345_vm0, %v815_v29 }
 0x25a   : > { %v2490_v20 = vpop.xlane.xlu0 %2489 }
 0x25b   : > { %6986 = vpow2.f32 %v3125_v57  ;;  %v2871_v19 = vsub.f32 %v8514_v24, %v2490_v20  ;;  %v2872_v61 = vsub.f32 %v8517_v18, %v2490_v20  ;;  %v9070_v62 = vpop.f32.mrb[76].mxu1  ;;  %v817_v24 = vmul.f32 %v8315_v1, %v8624_v49 }
 0x25c   : > { %13570 = vst [vmem:[#allocation64_spill] sm:$0xff] %v9070_v62  ;;  %6988 = vpow2.f32 %v3127_v21  ;;  %v9074_v54 = vpop.f32.mrb[77].mxu1  ;;  %6557 = vmatmul.mubr.msk.f32.gmra.mrb[182].mxu1 %vm345_vm0, %v815_v29 }
 0x25d   : > { %13571 = vst [vmem:[#allocation65_spill] sm:$0xff] %v9074_v54  ;;  %v3129_v45 = vmul.f32 1.442695, %v2871_v19  ;;  %v3131_v39 = vmul.f32 1.442695, %v2872_v61  ;;  %6558 = vmatprep.mubr.msk.f32.mxu1 %vm345_vm0, %v816_v28 }
 0x25e   : > { %v2493_v30 = vpop.xlane.xlu1 %2492  ;;  %v6973_v57 = vpop.permute.xlu0 %6972 }
 0x25f   : > { %6990 = vpow2.f32 %v3129_v45  ;;  %v2873_v18 = vsub.f32 %v8530_v38, %v2493_v30  ;;  %v2874_v20 = vsub.f32 %v8533_v48, %v2493_v30  ;;  %v6975_v2 = vunpack.i.h.bf16 %v6973_v57  ;;  %v9082_v21 = vpop.f32.mrb[78].mxu1 }
 0x260   : > { %6992 = vpow2.f32 %v3131_v39  ;;  %v6974_v54 = vunpack.i.l.bf16 %v6973_v57  ;;  %v9084_v29 = vpop.f32.mrb[79].mxu1  ;;  %6559 = vmatmul.mubr.msk.f32.gmra.mrb[184].mxu1 %vm345_vm0, %v816_v28  ;;  %v703_v38 = vcombine.high %v8125_v37, %v8125_v37  ;;  %v818_v30 = vmul.f32 %v8624_v49, %v8333_v15 }
 0x261   : > { %v3133_v19 = vmul.f32 1.442695, %v2873_v18  ;;  %v3135_v61 = vmul.f32 1.442695, %v2874_v20  ;;  %6560 = vmatprep.mubr.msk.f32.mxu1 %vm345_vm0, %v817_v24  ;;  %v819_v18 = vmul.f32 %v8330_v13, %v8624_v49 }
 0x262   : > { %v6874_v62 = vpack.c.bf16 %v6975_v2, %v6974_v54  ;;  %v2496_v1 = vpop.xlane.xlu1 %2495  ;;  %v9118_v20 = vrot.slane %v703_v38, %v8131_v42 }
 0x263   : > { %6994 = vpow2.f32 %v3133_v19  ;;  %v2875_v48 = vsub.f32 %v8546_v9, %v2496_v1  ;;  %v2876_v45 = vsub.f32 %v8549_v10, %v2496_v1  ;;  %v9092_v39 = vpop.f32.mrb[80].mxu1  ;;  %v13573_v9 = vmov 0.0|0.0   ;;  %v2221_v10 = vld [vmem:[%s13039_s5 + $0x1c0] sm:$0xff] }
 0x264   : > { %6996 = vpow2.f32 %v3135_v61  ;;  %6875 = vmatpush1.bf16.msra.mxu0 %v6874_v62  ;;  %v9096_v28 = vpop.f32.mrb[81].mxu1  ;;  %6561 = vmatmul.mubr.msk.f32.gmra.mrb[186].mxu1 %vm345_vm0, %v817_v24  ;;  %v2222_v62 = vld [vmem:[%s13039_s5 + $0x1c8] sm:$0xff] }
 0x265   : > { %v9099_v54 = vpop.eup %6986  ;;  %v3137_v2 = vmul.f32 1.442695, %v2875_v48  ;;  %v3139_v37 = vmul.f32 1.442695, %v2876_v45  ;;  %6562 = vmatprep.mubr.msk.f32.mxu1 %vm345_vm0, %v818_v30  ;;  %6876 = vmatprep.subr.bf16.mxu0 %v13573_v9  ;;  %v9126_v48 = vadd.f32 %v2221_v10, %v8974_v23  ;;  %v9129_v45 = vadd.f32 %v2222_v62, %v8977_v41  ;;  %v2223_v41 = vld [vmem:[%s13039_s5 + $0x1d0] sm:$0xff]  ;;  %v2224_v10 = vld [vmem:[%s13039_s5 + $0x1d8] sm:$0xff] }
 0x266   : > { %13572 = vst [vmem:[#allocation66_spill] sm:$0xff] %v9099_v54  ;;  %v9103_v1 = vpop.eup %6988 }
 0x267   : > { %13574 = vst [vmem:[#allocation67_spill] sm:$0xff] %v9103_v1  ;;  %6998 = vpow2.f32 %v3137_v2  ;;  %v9111_v57 = vpop.f32.mrb[82].mxu1  ;;  %v3637_v24 = vadd.f32 %v9103_v1, %v9099_v54  ;;  %13577 = vst [vmem:[#allocation70_spill] sm:$0xff] %v9126_v48  ;;  %v2569_v62 = vmax.f32 %v9126_v48, %v9129_v45  ;;  %v9166_v54 = vadd.f32 %v2224_v10, %v8985_v58  ;;  %v13589_v1 = vld [vmem:[#allocation5_spill] sm:$0xff]  ;;  %v2226_v58 = vld [vmem:[%s13039_s5 + $0x1e8] sm:$0xff] }
 0x268   : > { %7000 = vpow2.f32 %v3139_v37  ;;  %v9120_v19 = vpop.f32.mrb[83].mxu1  ;;  %6563 = vmatmul.mubr.msk.f32.gmra.mrb[188].mxu1 %vm345_vm0, %v818_v30  ;;  %13578 = vst [vmem:[#allocation71_spill] sm:$0xff] %v9129_v45  ;;  %v13581_v37 = vld [vmem:[#allocation6_spill] sm:$0xff]  ;;  %v821_v45 = vmul.f32 %v13589_v1, %v9118_v20  ;;  %v13593_v1 = vld [vmem:[#allocation25_spill] sm:$0xff] }
 0x269   : > { %13575 = vst [vmem:[#allocation68_spill] sm:$0xff] %v9120_v19  ;;  %v9123_v61 = vpop.eup %6990  ;;  %3638 = vadd.xlane.f32.xlu1 %v3637_v24  ;;  %6564 = vmatprep.mubr.msk.f32.mxu1 %vm345_vm0, %v819_v18  ;;  %v820_v30 = vmul.f32 %v9118_v20, %v13581_v37  ;;  %13587 = vst [vmem:[#allocation78_spill] sm:$0xff] %v9166_v54 }
 0x26a   : > { %13576 = vst [vmem:[#allocation69_spill] sm:$0xff] %v9123_v61  ;;  %v9132_v49 = vpop.eup %6992  ;;  %v9156_v37 = vpop.xlane.xlu1 %2501 }
 0x26b   : > { %13579 = vst [vmem:[#allocation72_spill] sm:$0xff] %v9132_v49  ;;  %v9134_v38 = vpop.f32.mrb[84].mxu1  ;;  %v3640_v2 = vadd.f32 %v9132_v49, %v9123_v61  ;;  %v9163_v49 = vadd.f32 %v2223_v41, %v8982_v52  ;;  %v2225_v52 = vld [vmem:[%s13039_s5 + $0x1e0] sm:$0xff]  ;;  %v13592_v41 = vld [vmem:[#allocation24_spill] sm:$0xff] }
 0x26c   : > { %13580 = vst [vmem:[#allocation73_spill] sm:$0xff] %v9134_v38  ;;  %v9140_v42 = vpop.f32.mrb[85].mxu1  ;;  %6565 = vmatmul.mubr.msk.f32.gmra.mrb[190].mxu1 %vm345_vm0, %v819_v18  ;;  %v9198_v19 = vadd.f32 %v2225_v52, %v8990_v25  ;;  %v13597_v25 = vld [vmem:[#allocation7_spill] sm:$0xff] }
 0x26d   : > { %13582 = vst [vmem:[#allocation6_spill] sm:$0xff] %v9140_v42  ;;  %v9143_v23 = vpop.eup %6994  ;;  %3641 = vadd.xlane.f32.xlu0 %v3640_v2  ;;  %6566 = vmatprep.mubr.msk.f32.mxu1 %vm345_vm0, %v820_v30  ;;  %13586 = vst [vmem:[#allocation77_spill] sm:$0xff] %v9163_v49  ;;  %v2572_v38 = vmax.f32 %v9163_v49, %v9166_v54 }
 0x26e   : > { %13583 = vst [vmem:[#allocation74_spill] sm:$0xff] %v9143_v23  ;;  %v9154_v24 = vpop.eup %6996  ;;  %13595 = vst [vmem:[#allocation24_spill] sm:$0xff] %v9198_v19 }
 0x26f   : > { %13584 = vst [vmem:[#allocation75_spill] sm:$0xff] %v9154_v24  ;;  %v9158_v18 = vpop.f32.mrb[86].mxu1  ;;  %v3643_v61 = vadd.f32 %v9154_v24, %v9143_v23 }
 0x270   : > { %13585 = vst [vmem:[#allocation76_spill] sm:$0xff] %v9158_v18  ;;  %v9168_v2 = vpop.f32.mrb[87].mxu1  ;;  %6567 = vmatmul.mubr.msk.f32.gmra.mrb[192].mxu1 %vm345_vm0, %v820_v30 }
 0x271   : > { %13588 = vst [vmem:[#allocation79_spill] sm:$0xff] %v9168_v2  ;;  %v9173_v48 = vpop.eup %6998  ;;  %3644 = vadd.xlane.f32.xlu1 %v3643_v61  ;;  %2570 = vmax.xlane.f32.xlu0 %v2569_v62  ;;  %v13594_v62 = vld [vmem:[#allocation8_spill] sm:$0xff] }
 0x272   : > { %13590 = vst [vmem:[#allocation5_spill] sm:$0xff] %v9173_v48  ;;  %v9175_v18 = vpop.eup %7000  ;;  %6568 = vmatprep.mubr.msk.f32.mxu1 %vm345_vm0, %v821_v45  ;;  %v2508_v30 = vpop.xlane.xlu1 %2507  ;;  %v822_v2 = vmul.f32 %v9118_v20, %v13594_v62  ;;  %v2227_v62 = vld [vmem:[%s13039_s5 + $0x1f0] sm:$0xff] }
 0x273   : > { %13591 = vst [vmem:[#allocation80_spill] sm:$0xff] %v9175_v18  ;;  %v2883_v10 = vsub.f32 %v13592_v41, %v2508_v30  ;;  %v2884_v23 = vsub.f32 %v13593_v1, %v2508_v30  ;;  %v9186_v24 = vpop.f32.mrb[88].mxu1  ;;  %v3646_v61 = vadd.f32 %v9175_v18, %v9173_v48  ;;  %v9201_v30 = vadd.f32 %v2226_v58, %v8993_v43 }
 0x274   : > { %v9192_v42 = vpop.f32.mrb[89].mxu1  ;;  %6569 = vmatmul.mubr.msk.f32.gmra.mrb[194].mxu1 %vm345_vm0, %v821_v45  ;;  %v2228_v45 = vld [vmem:[%s13039_s5 + $0x1f8] sm:$0xff]  ;;  %v823_v43 = vmul.f32 %v13597_v25, %v9118_v20 }
 0x275   : > { %13596 = vst [vmem:[#allocation25_spill] sm:$0xff] %v9201_v30  ;;  %v3153_v41 = vmul.f32 1.442695, %v2883_v10  ;;  %v3155_v1 = vmul.f32 1.442695, %v2884_v23  ;;  %3647 = vadd.xlane.f32.xlu0 %v3646_v61  ;;  %6570 = vmatprep.mubr.msk.f32.mxu1 %vm345_vm0, %v822_v2  ;;  %v9218_v23 = vadd.f32 %v2227_v62, %v8996_v40  ;;  %v9221_v58 = vadd.f32 %v2228_v45, %v9001_v53 }
 0x276   : > { %v2575_v10 = vmax.f32 %v9198_v19, %v9201_v30  ;;  %v13608_v19 = vld [vmem:[#allocation23_spill] sm:$0xff] }
 0x277   : > { %7002 = vpow2.f32 %v3153_v41  ;;  %v9210_v48 = vpop.f32.mrb[90].mxu1  ;;  %13598 = vst [vmem:[#allocation8_spill] sm:$0xff] %v9218_v23  ;;  %13599 = vst [vmem:[#allocation7_spill] sm:$0xff] %v9221_v58  ;;  %v13600_v41 = vld [vmem:[#allocation9_spill] sm:$0xff]  ;;  %v2578_v53 = vmax.f32 %v9218_v23, %v9221_v58  ;;  %v2880_v54 = vsub.f32 %v13608_v19, %v9156_v37 }
 0x278   : > { %7004 = vpow2.f32 %v3155_v1  ;;  %v9214_v52 = vpop.f32.mrb[91].mxu1  ;;  %6571 = vmatmul.mubr.msk.f32.gmra.mrb[196].mxu1 %vm345_vm0, %v822_v2  ;;  %v824_v1 = vmul.f32 %v9118_v20, %v13600_v41  ;;  %v826_v41 = vmul.f32 %v9118_v20, %v8177_v60  ;;  %v828_v60 = vmul.f32 %v9118_v20, %v8188_v0  ;;  %v13607_v0 = vld [vmem:[#allocation22_spill] sm:$0xff] }
 0x279   : > { %2573 = vmax.xlane.f32.xlu0 %v2572_v38  ;;  %6572 = vmatprep.mubr.msk.f32.mxu1 %vm345_vm0, %v823_v43  ;;  %v825_v38 = vmul.f32 %v8162_v55, %v9118_v20 }
 0x27b   : > { %v9226_v61 = vpop.f32.mrb[92].mxu1 }
 0x27c   : > { %6573 = vmatmul.mubr.msk.f32.gmra.mrb[198].mxu1 %vm345_vm0, %v823_v43  ;;  %v9231_v2 = vpop.f32.mrb[93].mxu1  ;;  %v13603_v43 = vpack.i.bf16 %v8330_v13, %v8333_v15 }
 0x27d   : > { %2576 = vmax.xlane.f32.xlu0 %v2575_v10  ;;  %6574 = vmatprep.mubr.msk.f32.mxu1 %vm345_vm0, %v824_v1 }
 0x27f   : > { %v9236_v40 = vpop.f32.mrb[94].mxu1 }
 0x280   : > { %6575 = vmatmul.mubr.msk.f32.gmra.mrb[200].mxu1 %vm345_vm0, %v824_v1  ;;  %v9241_v62 = vpop.f32.mrb[95].mxu1 }
 0x281   : > { %v9243_v45 = vpop.eup %7002  ;;  %2579 = vmax.xlane.f32.xlu0 %v2578_v53  ;;  %6576 = vmatprep.mubr.msk.f32.mxu1 %vm345_vm0, %v825_v38 }
 0x282   : > { %13601 = vst [vmem:[#allocation9_spill] sm:$0xff] %v9243_v45  ;;  %v9246_v25 = vpop.eup %7004  ;;  %6982 = vrot.lane.b32.xlu1 %v13603_v43, %s7921_s15  ;;  %v827_v43 = vmul.f32 %v8173_v59, %v9118_v20  ;;  %v829_v59 = vmul.f32 %v8184_v63, %v9118_v20 }
 0x283   : > { %13602 = vst [vmem:[#allocation81_spill] sm:$0xff] %v9246_v25  ;;  %v9252_v10 = vpop.f32.mrb[96].mxu1  ;;  %v3658_v55 = vadd.f32 %v9246_v25, %v9243_v45 }
 0x284   : > { %6577 = vmatmul.mubr.msk.f32.gmra.mrb[202].mxu1 %vm345_vm0, %v825_v38  ;;  %v9259_v1 = vpop.f32.mrb[97].mxu1 }
 0x285   : > { %3659 = vadd.xlane.f32.xlu0 %v3658_v55  ;;  %6578 = vmatprep.mubr.msk.f32.mxu1 %vm345_vm0, %v826_v41 }
 0x287   : > { %v9262_v53 = vpop.f32.mrb[98].mxu1 }
 0x288   : > { %v9266_v18 = vpop.f32.mrb[99].mxu1  ;;  %6579 = vmatmul.mubr.msk.f32.gmra.mrb[204].mxu1 %vm345_vm0, %v826_v41  ;;  %v2514_v41 = vpop.xlane.xlu1 %2513 }
 0x289   : > { %6580 = vmatprep.mubr.msk.f32.mxu1 %vm345_vm0, %v827_v43 }
 0x28b   : > { %v9270_v45 = vpop.f32.mrb[100].mxu1 }
 0x28c   : > { %13604 = vst [vmem:[#allocation82_spill] sm:$0xff] %v9270_v45  ;;  %v9274_v38 = vpop.f32.mrb[101].mxu1  ;;  %6581 = vmatmul.mubr.msk.f32.gmra.mrb[206].mxu1 %vm345_vm0, %v827_v43  ;;  %v2879_v43 = vsub.f32 %v13607_v0, %v9156_v37  ;;  %v3147_v0 = vmul.f32 1.442695, %v2880_v54 }
 0x28d   : > { %13605 = vst [vmem:[#allocation83_spill] sm:$0xff] %v9274_v38  ;;  %6582 = vmatprep.mubr.msk.f32.mxu1 %vm345_vm0, %v828_v60 }
 0x28f   : > { %v2499_v55 = vpop.xlane.xlu0 %2498  ;;  %v9278_v25 = vpop.f32.mrb[102].mxu1 }
 0x290   : > { %13606 = vst [vmem:[#allocation84_spill] sm:$0xff] %v9278_v25  ;;  %v2877_v58 = vsub.f32 %v8700_v35, %v2499_v55  ;;  %v2878_v23 = vsub.f32 %v8703_v46, %v2499_v55  ;;  %v9284_v30 = vpop.f32.mrb[103].mxu1  ;;  %6583 = vmatmul.mubr.msk.f32.gmra.mrb[208].mxu1 %vm345_vm0, %v828_v60  ;;  %v13609_v25 = vld [vmem:[#allocation26_spill] sm:$0xff]  ;;  %v830_v46 = vmul.f32 %v9118_v20, %v8199_v4  ;;  %v3145_v60 = vmul.f32 1.442695, %v2879_v43 }
 0x291   : > { %6584 = vmatprep.mubr.msk.f32.mxu1 %vm345_vm0, %v829_v59  ;;  %v2887_v63 = vsub.f32 %v13609_v25, %v2514_v41  ;;  %v831_v4 = vmul.f32 %v8195_v3, %v9118_v20 }
 0x292   : > { %v3141_v49 = vmul.f32 1.442695, %v2877_v58  ;;  %v3143_v38 = vmul.f32 1.442695, %v2878_v23 }
 0x293   : > { %v2505_v45 = vpop.xlane.xlu0 %2504  ;;  %v9293_v35 = vpop.f32.mrb[104].mxu1  ;;  %v3161_v37 = vmul.f32 1.442695, %v2887_v63  ;;  %v13613_v63 = vld [vmem:[#allocation36_spill] sm:$0xff] }
 0x294   : > { %13610 = vst [vmem:[#allocation22_spill] sm:$0xff] %v9293_v35  ;;  %v9297_v55 = vpop.f32.mrb[105].mxu1  ;;  %6585 = vmatmul.mubr.msk.f32.gmra.mrb[210].mxu1 %vm345_vm0, %v829_v59  ;;  %7006 = vpow2.f32 %v3141_v49  ;;  %v2881_v19 = vsub.f32 %v8730_v44, %v2505_v45  ;;  %v2882_v23 = vsub.f32 %v8733_v31, %v2505_v45  ;;  %v2520_v31 = vpop.xlane.xlu1 %2519 }
 0x295   : > { %13611 = vst [vmem:[#allocation23_spill] sm:$0xff] %v9297_v55  ;;  %6586 = vmatprep.mubr.msk.f32.mxu1 %vm345_vm0, %v830_v46  ;;  %7008 = vpow2.f32 %v3143_v38  ;;  %v13612_v55 = vld [vmem:[#allocation27_spill] sm:$0xff] }
 0x296   : > { %v2888_v35 = vsub.f32 %v13612_v55, %v2514_v41  ;;  %7010 = vpow2.f32 %v3145_v60  ;;  %v3149_v44 = vmul.f32 1.442695, %v2881_v19  ;;  %v3151_v3 = vmul.f32 1.442695, %v2882_v23  ;;  %v13614_v55 = vld [vmem:[#allocation37_spill] sm:$0xff] }
 0x297   : > { %v2511_v58 = vpop.xlane.xlu0 %2510  ;;  %v9303_v25 = vpop.f32.mrb[106].mxu1  ;;  %7012 = vpow2.f32 %v3147_v0  ;;  %v13616_v0 = vld [vmem:[#allocation28_spill] sm:$0xff] }
 0x298   : > { %v2885_v59 = vsub.f32 %v8758_v50, %v2511_v58  ;;  %v2886_v43 = vsub.f32 %v8761_v6, %v2511_v58  ;;  %v9310_v54 = vpop.f32.mrb[107].mxu1  ;;  %6587 = vmatmul.mubr.msk.f32.gmra.mrb[212].mxu1 %vm345_vm0, %v830_v46  ;;  %7014 = vpow2.f32 %v3161_v37  ;;  %v832_v50 = vmul.f32 %v9118_v20, %v8210_v8  ;;  %v2526_v37 = vpop.xlane.xlu1 %2525 }
 0x299   : > { %6588 = vmatprep.mubr.msk.f32.mxu1 %vm345_vm0, %v831_v4  ;;  %v3163_v6 = vmul.f32 1.442695, %v2888_v35  ;;  %v2891_v19 = vsub.f32 %v13616_v0, %v2520_v31 }
 0x29a   : > { %v3157_v49 = vmul.f32 1.442695, %v2885_v59  ;;  %v3159_v45 = vmul.f32 1.442695, %v2886_v43  ;;  %v13617_v59 = vld [vmem:[#allocation29_spill] sm:$0xff] }
 0x29b   : > { %v2517_v38 = vpop.xlane.xlu0 %2516  ;;  %v9314_v41 = vpop.f32.mrb[108].mxu1  ;;  %v2892_v8 = vsub.f32 %v13617_v59, %v2520_v31  ;;  %v3169_v31 = vmul.f32 1.442695, %v2891_v19  ;;  %v13628_v59 = vld [vmem:[#allocation30_spill] sm:$0xff] }
 0x29c   : > { %7016 = vpow2.f32 %v3157_v49  ;;  %v2889_v46 = vsub.f32 %v13613_v63, %v2517_v38  ;;  %v2890_v60 = vsub.f32 %v13614_v55, %v2517_v38  ;;  %v9320_v58 = vpop.f32.mrb[109].mxu1  ;;  %6589 = vmatmul.mubr.msk.f32.gmra.mrb[214].mxu1 %vm345_vm0, %v831_v4  ;;  %v833_v38 = vmul.f32 %v8206_v7, %v9118_v20  ;;  %v2529_v0 = vpop.xlane.xlu1 %2528 }
 0x29d   : > { %13615 = vst [vmem:[#allocation26_spill] sm:$0xff] %v9320_v58  ;;  %7018 = vpow2.f32 %v3159_v45  ;;  %6590 = vmatprep.mubr.msk.f32.mxu1 %vm345_vm0, %v832_v50 }
 0x29e   : > { %7020 = vpow2.f32 %v3149_v44  ;;  %v3165_v23 = vmul.f32 1.442695, %v2889_v46  ;;  %v3167_v35 = vmul.f32 1.442695, %v2890_v60  ;;  %v9330_v63 = vpop.eup %7006  ;;  %v3171_v46 = vmul.f32 1.442695, %v2892_v8 }
 0x29f   : > { %7022 = vpow2.f32 %v3151_v3  ;;  %v2523_v43 = vpop.xlane.xlu0 %2522  ;;  %v9326_v49 = vpop.f32.mrb[110].mxu1  ;;  %13619 = vst [vmem:[#allocation36_spill] sm:$0xff] %v9330_v63  ;;  %v2895_v8 = vsub.f32 %v13628_v59, %v2526_v37 }
 0x2a0   : > { %13618 = vst [vmem:[#allocation27_spill] sm:$0xff] %v9326_v49  ;;  %7024 = vpow2.f32 %v3163_v6  ;;  %v9332_v4 = vpop.f32.mrb[111].mxu1  ;;  %6591 = vmatmul.mubr.msk.f32.gmra.mrb[216].mxu1 %vm345_vm0, %v832_v50  ;;  %v9335_v45 = vpop.eup %7008  ;;  %v2893_v44 = vsub.f32 %v8796_v47, %v2523_v43  ;;  %v2894_v7 = vsub.f32 %v8799_v56, %v2523_v43  ;;  %v834_v50 = vmul.f32 %v9118_v20, %v8221_v12  ;;  %v13630_v43 = vld [vmem:[#allocation31_spill] sm:$0xff] }
 0x2a1   : > { %13620 = vst [vmem:[#allocation37_spill] sm:$0xff] %v9332_v4  ;;  %13621 = vst [vmem:[#allocation28_spill] sm:$0xff] %v9335_v45  ;;  %6592 = vmatprep.mubr.msk.f32.mxu1 %vm345_vm0, %v833_v38  ;;  %7026 = vpow2.f32 %v3165_v23  ;;  %v9339_v3 = vpop.eup %7010  ;;  %v3649_v47 = vadd.f32 %v9335_v45, %v9330_v63  ;;  %v835_v45 = vmul.f32 %v8217_v11, %v9118_v20 }
 0x2a2   : > { %13622 = vst [vmem:[#allocation29_spill] sm:$0xff] %v9339_v3  ;;  %7028 = vpow2.f32 %v3167_v35  ;;  %v9348_v60 = vpop.eup %7012  ;;  %v3173_v12 = vmul.f32 1.442695, %v2893_v44  ;;  %v836_v49 = vmul.f32 %v9118_v20, %v8232_v17 }
 0x2a3   : > { %v9342_v55 = vpop.xlane.xlu0 %2534  ;;  %v9344_v6 = vpop.f32.mrb[112].mxu1  ;;  %13624 = vst [vmem:[#allocation86_spill] sm:$0xff] %v9348_v60  ;;  %7030 = vpow2.f32 %v3169_v31  ;;  %v3652_v44 = vadd.f32 %v9348_v60, %v9339_v3 }
 0x2a4   : > { %13623 = vst [vmem:[#allocation85_spill] sm:$0xff] %v9344_v6  ;;  %v9350_v19 = vpop.f32.mrb[113].mxu1  ;;  %6593 = vmatmul.mubr.msk.f32.gmra.mrb[218].mxu1 %vm345_vm0, %v833_v38  ;;  %v9355_v23 = vpop.eup %7014  ;;  %7032 = vpow2.f32 %v3171_v46  ;;  %v3175_v38 = vmul.f32 1.442695, %v2894_v7  ;;  %v3177_v7 = vmul.f32 1.442695, %v2895_v8 }
 0x2a5   : > { %13625 = vst [vmem:[#allocation87_spill] sm:$0xff] %v9350_v19  ;;  %13626 = vst [vmem:[#allocation88_spill] sm:$0xff] %v9355_v23  ;;  %6594 = vmatprep.mubr.msk.f32.mxu1 %vm345_vm0, %v834_v50  ;;  %v2896_v19 = vsub.f32 %v13630_v43, %v2526_v37  ;;  %v2532_v43 = vpop.xlane.xlu1 %2531  ;;  %7034 = vpow2.f32 %v3173_v12 }
 0x2a6   : > { %v9358_v56 = vpop.eup %7016  ;;  %3650 = vadd.xlane.f32.xlu1 %v3649_v47  ;;  %v13636_v47 = vld [vmem:[#allocation32_spill] sm:$0xff]  ;;  %7036 = vpow2.f32 %v3175_v38  ;;  %v9402_v38 = vld [vmem:[%s13039_s5] sm:$0xff] }
 0x2a7   : > { %13627 = vst [vmem:[#allocation89_spill] sm:$0xff] %v9358_v56  ;;  %v9361_v35 = vpop.eup %7018  ;;  %v9364_v6 = vpop.xlane.xlu0 %2543  ;;  %v2897_v59 = vsub.f32 %v13636_v47, %v2529_v0  ;;  %13641 = vst [vmem:[#allocation95_spill] sm:$0xff] %v9402_v38  ;;  %v9406_v17 = vadd.f32 %v9402_v38, %v9004_v51  ;;  %7038 = vpow2.f32 %v3177_v7 }
 0x2a8   : > { %13629 = vst [vmem:[#allocation30_spill] sm:$0xff] %v9361_v35  ;;  %v9366_v63 = vpop.f32.mrb[114].mxu1  ;;  %v9370_v4 = vpop.eup %7020  ;;  %6595 = vmatmul.mubr.msk.f32.gmra.mrb[220].mxu1 %vm345_vm0, %v834_v50  ;;  %v3661_v11 = vadd.f32 %v9361_v35, %v9358_v56  ;;  %v13637_v50 = vld [vmem:[#allocation33_spill] sm:$0xff] }
 0x2a9   : > { %13631 = vst [vmem:[#allocation31_spill] sm:$0xff] %v9366_v63  ;;  %13632 = vst [vmem:[#allocation90_spill] sm:$0xff] %v9370_v4  ;;  %v9372_v31 = vpop.f32.mrb[115].mxu1  ;;  %v9377_v46 = vpop.eup %7022  ;;  %6596 = vmatprep.mubr.msk.f32.mxu1 %vm345_vm0, %v835_v45  ;;  %v2898_v63 = vsub.f32 %v13637_v50, %v2529_v0  ;;  %v13645_v50 = vld [vmem:[#allocation34_spill] sm:$0xff] }
 0x2aa   : > { %13633 = vst [vmem:[#allocation91_spill] sm:$0xff] %v9372_v31  ;;  %13634 = vst [vmem:[#allocation92_spill] sm:$0xff] %v9377_v46  ;;  %v9380_v37 = vpop.eup %7024  ;;  %3653 = vadd.xlane.f32.xlu1 %v3652_v44  ;;  %v3179_v31 = vmul.f32 1.442695, %v2896_v19  ;;  %3662 = vadd.xlane.f32.xlu0 %v3661_v11  ;;  %v3655_v19 = vadd.f32 %v9377_v46, %v9370_v4  ;;  %v3181_v11 = vmul.f32 1.442695, %v2897_v59 }
 0x2ab   : > { %13635 = vst [vmem:[#allocation93_spill] sm:$0xff] %v9380_v37  ;;  %v6978_v3 = vpop.permute.xlu0 %6977  ;;  %v9386_v60 = vpop.f32.mrb[116].mxu1  ;;  %13642 = vst [vmem:[#allocation96_spill] sm:$0xff] %v9406_v17  ;;  %v3664_v44 = vadd.f32 %v9380_v37, %v9355_v23  ;;  %v2899_v56 = vsub.f32 %v13645_v50, %v2532_v43  ;;  %v3183_v35 = vmul.f32 1.442695, %v2898_v63  ;;  %v13646_v4 = vld [vmem:[#allocation35_spill] sm:$0xff] }
 0x2ac   : > { %v9390_v58 = vpop.eup %7026  ;;  %v6980_v8 = vunpack.i.h.bf16 %v6978_v3  ;;  %v6979_v47 = vunpack.i.l.bf16 %v6978_v3  ;;  %v9392_v12 = vpop.f32.mrb[117].mxu1  ;;  %6597 = vmatmul.mubr.msk.f32.gmra.mrb[222].mxu1 %vm345_vm0, %v835_v45  ;;  %v9411_v3 = vld [vmem:[%s13039_s5 + $0x8] sm:$0xff]  ;;  %7040 = vpow2.f32 %v3179_v31  ;;  %v2900_v46 = vsub.f32 %v13646_v4, %v2532_v43  ;;  %v9438_v63 = vld [vmem:[%s13039_s5 + $0x10] sm:$0xff]  ;;  %v9447_v4 = vld [vmem:[%s13039_s5 + $0x18] sm:$0xff] }
 0x2ad   : > { %13638 = vst [vmem:[#allocation32_spill] sm:$0xff] %v9390_v58  ;;  %13639 = vst [vmem:[#allocation33_spill] sm:$0xff] %v9392_v12  ;;  %v9397_v0 = vpop.eup %7028  ;;  %v9415_v45 = vadd.f32 %v9411_v3, %v9014_v27  ;;  %6598 = vmatprep.mubr.msk.f32.mxu1 %vm345_vm0, %v836_v49  ;;  %v837_v27 = vmul.f32 %v8228_v16, %v9118_v20  ;;  %v9442_v16 = vadd.f32 %v9438_v63, %v9024_v34  ;;  %v2538_v31 = vpop.xlane.xlu1 %2537  ;;  %v9489_v50 = vld [vmem:[%s13039_s5 + $0x28] sm:$0xff] }
 0x2ae   : > { %13640 = vst [vmem:[#allocation94_spill] sm:$0xff] %v9397_v0  ;;  %13643 = vst [vmem:[#allocation97_spill] sm:$0xff] %v9411_v3  ;;  %v6877_v51 = vpack.c.bf16 %v6980_v8, %v6979_v47  ;;  %3656 = vadd.xlane.f32.xlu1 %v3655_v19  ;;  %v9426_v3 = vpop.eup %7030  ;;  %3665 = vadd.xlane.f32.xlu0 %v3664_v44  ;;  %v3667_v7 = vadd.f32 %v9397_v0, %v9390_v58  ;;  %7042 = vpow2.f32 %v3181_v11  ;;  %v13651_v44 = vld [vmem:[#allocation11_spill] sm:$0xff]  ;;  %v13660_v0 = vld [vmem:[#allocation10_spill] sm:$0xff] }
 0x2af   : > { %13644 = vst [vmem:[#allocation98_spill] sm:$0xff] %v9415_v45  ;;  %v9422_v38 = vpop.f32.mrb[118].mxu1  ;;  %13647 = vst [vmem:[#allocation34_spill] sm:$0xff] %v9426_v3  ;;  %v9433_v59 = vpop.eup %7032  ;;  %v3185_v43 = vmul.f32 1.442695, %v2899_v56  ;;  %v2901_v8 = vsub.f32 %v8822_v26, %v9342_v55  ;;  %v2581_v34 = vmax.f32 %v9406_v17, %v9415_v45  ;;  %7044 = vpow2.f32 %v3183_v35  ;;  %v13671_v45 = vld [vmem:[#allocation13_spill] sm:$0xff] }
 0x2b0   : > { %v9428_v12 = vpop.f32.mrb[119].mxu1  ;;  %6599 = vmatmul.mubr.msk.f32.gmra.mrb[224].mxu1 %vm345_vm0, %v836_v49  ;;  %13648 = vst [vmem:[#allocation35_spill] sm:$0xff] %v9433_v59  ;;  %13649 = vst [vmem:[#allocation99_spill] sm:$0xff] %v9442_v16  ;;  %v9451_v49 = vadd.f32 %v9447_v4, %v9028_v22  ;;  %6878 = vmatpush1.bf16.msra.mxu0 %v6877_v51  ;;  %v3187_v47 = vmul.f32 1.442695, %v2900_v46  ;;  %v2902_v22 = vsub.f32 %v8824_v36, %v9342_v55  ;;  %v9465_v56 = vpop.eup %7034  ;;  %v9477_v36 = vld [vmem:[%s13039_s5 + $0x20] sm:$0xff] }
 0x2b1   : > { %6600 = vmatprep.mubr.msk.f32.mxu1 %vm345_vm0, %v837_v27  ;;  %6879 = vmatprep.subr.bf16.mxu0 %v13573_v9  ;;  %v838_v11 = vmul.f32 %v9118_v20, %v13651_v44  ;;  %13652 = vst [vmem:[#allocation11_spill] sm:$0xff] %v9465_v56  ;;  %v3670_v9 = vadd.f32 %v9433_v59, %v9426_v3  ;;  %v9472_v35 = vpop.eup %7036  ;;  %13654 = vst [vmem:[#allocation102_spill] sm:$0xff] %v9477_v36  ;;  %7046 = vpow2.f32 %v3185_v43  ;;  %v2541_v3 = vpop.xlane.xlu1 %2540 }
 0x2b2   : > { %13650 = vst [vmem:[#allocation100_spill] sm:$0xff] %v9451_v49  ;;  %3668 = vadd.xlane.f32.xlu1 %v3667_v7  ;;  %2582 = vmax.xlane.f32.xlu0 %v2581_v34  ;;  %13653 = vst [vmem:[#allocation101_spill] sm:$0xff] %v9472_v35  ;;  %v9481_v55 = vadd.f32 %v9477_v36, %v9032_v5  ;;  %v2584_v46 = vmax.f32 %v9442_v16, %v9451_v49  ;;  %v3189_v34 = vmul.f32 1.442695, %v2901_v8  ;;  %v13659_v5 = vld [vmem:[#allocation39_spill] sm:$0xff]  ;;  %v9501_v37 = vpop.eup %7038 }
 0x2b3   : > { %v9461_v19 = vpop.f32.mrb[120].mxu1  ;;  %13656 = vst [vmem:[#allocation104_spill] sm:$0xff] %v9489_v50  ;;  %v9493_v51 = vadd.f32 %v9489_v50, %v9038_v32  ;;  %7048 = vpow2.f32 %v3187_v47  ;;  %v2904_v44 = vsub.f32 %v13659_v5, %v2538_v31  ;;  %v3191_v59 = vmul.f32 1.442695, %v2902_v22  ;;  %v13664_v47 = vld [vmem:[#allocation60_spill] sm:$0xff]  ;;  %v9522_v22 = vld [vmem:[%s13039_s5 + $0x38] sm:$0xff] }
 0x2b4   : > { %v9467_v26 = vpop.f32.mrb[121].mxu1  ;;  %6601 = vmatmul.mubr.msk.f32.gmra.mrb[226].mxu1 %vm345_vm0, %v837_v27  ;;  %13655 = vst [vmem:[#allocation103_spill] sm:$0xff] %v9481_v55  ;;  %v13658_v27 = vld [vmem:[#allocation38_spill] sm:$0xff]  ;;  %v839_v23 = vmul.f32 %v13660_v0, %v9118_v20  ;;  %v3673_v43 = vadd.f32 %v9472_v35, %v9465_v56  ;;  %13666 = vst [vmem:[#allocation106_spill] sm:$0xff] %v9522_v22  ;;  %7050 = vpow2.f32 %v3189_v34  ;;  %v13670_v35 = vld [vmem:[#allocation41_spill] sm:$0xff] }
 0x2b5   : > { %6602 = vmatprep.mubr.msk.f32.mxu1 %vm345_vm0, %v838_v11  ;;  %13657 = vst [vmem:[#allocation105_spill] sm:$0xff] %v9493_v51  ;;  %v2903_v7 = vsub.f32 %v13658_v27, %v2538_v31  ;;  %13661 = vst [vmem:[#allocation38_spill] sm:$0xff] %v9501_v37  ;;  %v9513_v31 = vld [vmem:[%s13039_s5 + $0x30] sm:$0xff]  ;;  %v3195_v56 = vmul.f32 1.442695, %v2904_v44  ;;  %v2906_v49 = vsub.f32 %v13670_v35, %v2541_v3  ;;  %7052 = vpow2.f32 %v3191_v59  ;;  %v13675_v59 = vld [vmem:[#allocation62_spill] sm:$0xff]  ;;  %v2547_v35 = vpop.xlane.xlu1 %2546 }
 0x2b6   : > { %3671 = vadd.xlane.f32.xlu1 %v3670_v9  ;;  %2585 = vmax.xlane.f32.xlu0 %v2584_v46  ;;  %v9508_v8 = vpop.eup %7040  ;;  %13663 = vst [vmem:[#allocation10_spill] sm:$0xff] %v9513_v31  ;;  %v9517_v0 = vadd.f32 %v9513_v31, %v13664_v47  ;;  %v13669_v27 = vld [vmem:[#allocation40_spill] sm:$0xff]  ;;  %v2587_v47 = vmax.f32 %v9481_v55, %v9493_v51  ;;  %v9561_v44 = vld [vmem:[%s13039_s5 + $0x48] sm:$0xff] }
 0x2b7   : > { %v9497_v58 = vpop.f32.mrb[122].mxu1  ;;  %13662 = vst [vmem:[#allocation39_spill] sm:$0xff] %v9508_v8  ;;  %v3193_v46 = vmul.f32 1.442695, %v2903_v7  ;;  %v2905_v5 = vsub.f32 %v13669_v27, %v2541_v3  ;;  %v3676_v34 = vadd.f32 %v9508_v8, %v9501_v37  ;;  %v9549_v3 = vld [vmem:[%s13039_s5 + $0x40] sm:$0xff]  ;;  %13677 = vst [vmem:[#allocation107_spill] sm:$0xff] %v9561_v44 }
 0x2b8   : > { %v9503_v32 = vpop.f32.mrb[123].mxu1  ;;  %6603 = vmatmul.mubr.msk.f32.gmra.mrb[228].mxu1 %vm345_vm0, %v838_v11  ;;  %13665 = vst [vmem:[#allocation60_spill] sm:$0xff] %v9517_v0  ;;  %v13667_v11 = vld [vmem:[#allocation61_spill] sm:$0xff]  ;;  %v9537_v17 = vpop.eup %7042  ;;  %13674 = vst [vmem:[#allocation13_spill] sm:$0xff] %v9549_v3  ;;  %v13678_v27 = vld [vmem:[#allocation63_spill] sm:$0xff] }
 0x2b9   : > { %v9526_v9 = vadd.f32 %v9522_v22, %v13667_v11  ;;  %6604 = vmatprep.mubr.msk.f32.mxu1 %vm345_vm0, %v839_v23  ;;  %v840_v11 = vmul.f32 %v9118_v20, %v13671_v45  ;;  %13672 = vst [vmem:[#allocation40_spill] sm:$0xff] %v9537_v17  ;;  %v9553_v45 = vadd.f32 %v9549_v3, %v13675_v59  ;;  %7054 = vpow2.f32 %v3193_v46  ;;  %v13680_v59 = vld [vmem:[#allocation42_spill] sm:$0xff]  ;;  %v13681_v55 = vld [vmem:[#allocation43_spill] sm:$0xff]  ;;  %v13682_v3 = vld [vmem:[#allocation12_spill] sm:$0xff] }
 0x2ba   : > { %3674 = vadd.xlane.f32.xlu1 %v3673_v43  ;;  %2588 = vmax.xlane.f32.xlu0 %v2587_v47  ;;  %v9544_v43 = vpop.eup %7044  ;;  %v9565_v47 = vadd.f32 %v9561_v44, %v13678_v27  ;;  %v3197_v37 = vmul.f32 1.442695, %v2905_v5  ;;  %v2907_v8 = vsub.f32 %v13680_v59, %v9364_v6  ;;  %7056 = vpow2.f32 %v3195_v56  ;;  %v13691_v44 = vld [vmem:[#allocation15_spill] sm:$0xff] }
 0x2bb   : > { %13668 = vst [vmem:[#allocation61_spill] sm:$0xff] %v9526_v9  ;;  %v9533_v16 = vpop.f32.mrb[124].mxu1  ;;  %13673 = vst [vmem:[#allocation41_spill] sm:$0xff] %v9544_v43  ;;  %v3199_v51 = vmul.f32 1.442695, %v2906_v49  ;;  %v841_v22 = vmul.f32 %v13682_v3, %v9118_v20  ;;  %v9575_v31 = vpop.eup %7046  ;;  %v3679_v46 = vadd.f32 %v9544_v43, %v9537_v17 }
 0x2bc   : > { %v9539_v7 = vpop.f32.mrb[125].mxu1  ;;  %6605 = vmatmul.mubr.msk.f32.gmra.mrb[230].mxu1 %vm345_vm0, %v839_v23  ;;  %13676 = vst [vmem:[#allocation62_spill] sm:$0xff] %v9553_v45  ;;  %v2590_v23 = vmax.f32 %v9517_v0, %v9526_v9  ;;  %13679 = vst [vmem:[#allocation63_spill] sm:$0xff] %v9565_v47  ;;  %v2908_v9 = vsub.f32 %v13681_v55, %v9364_v6  ;;  %v9587_v6 = vld [vmem:[%s13039_s5 + $0x50] sm:$0xff]  ;;  %v9596_v55 = vld [vmem:[%s13039_s5 + $0x58] sm:$0xff]  ;;  %7058 = vpow2.f32 %v3197_v37  ;;  %v2550_v43 = vpop.xlane.xlu1 %2549 }
 0x2bd   : > { %6606 = vmatprep.mubr.msk.f32.mxu1 %vm345_vm0, %v840_v11  ;;  %13683 = vst [vmem:[#allocation42_spill] sm:$0xff] %v9575_v31  ;;  %v9582_v56 = vpop.eup %7048  ;;  %13685 = vst [vmem:[#allocation12_spill] sm:$0xff] %v9587_v6  ;;  %v9591_v49 = vadd.f32 %v9587_v6, %v9060_v33  ;;  %v9600_v5 = vadd.f32 %v9596_v55, %v9064_v14  ;;  %v3201_v3 = vmul.f32 1.442695, %v2907_v8  ;;  %7060 = vpow2.f32 %v3199_v51 }
 0x2be   : > { %3677 = vadd.xlane.f32.xlu1 %v3676_v34  ;;  %2591 = vmax.xlane.f32.xlu0 %v2590_v23  ;;  %13684 = vst [vmem:[#allocation43_spill] sm:$0xff] %v9582_v56  ;;  %13687 = vst [vmem:[#allocation109_spill] sm:$0xff] %v9596_v55  ;;  %v2593_v33 = vmax.f32 %v9553_v45, %v9565_v47  ;;  %v13690_v23 = vld [vmem:[#allocation45_spill] sm:$0xff]  ;;  %v3203_v17 = vmul.f32 1.442695, %v2908_v9  ;;  %v842_v14 = vmul.f32 %v9118_v20, %v13691_v44  ;;  %v9611_v55 = vpop.eup %7050  ;;  %v9623_v9 = vld [vmem:[%s13039_s5 + $0x60] sm:$0xff] }
 0x2bf   : > { %v9571_v0 = vpop.f32.mrb[126].mxu1  ;;  %13686 = vst [vmem:[#allocation108_spill] sm:$0xff] %v9591_v49  ;;  %13688 = vst [vmem:[#allocation110_spill] sm:$0xff] %v9600_v5  ;;  %v2910_v59 = vsub.f32 %v13690_v23, %v2547_v35  ;;  %v3682_v8 = vadd.f32 %v9582_v56, %v9575_v31  ;;  %v9618_v51 = vpop.eup %7052  ;;  %7062 = vpow2.f32 %v3201_v3  ;;  %v13700_v31 = vld [vmem:[#allocation46_spill] sm:$0xff]  ;;  %v13701_v47 = vld [vmem:[#allocation47_spill] sm:$0xff] }
 0x2c0   : > { %v9577_v27 = vpop.f32.mrb[127].mxu1  ;;  %6607 = vmatmul.mubr.msk.f32.gmra.mrb[232].mxu1 %vm345_vm0, %v840_v11  ;;  %v13689_v11 = vld [vmem:[#allocation44_spill] sm:$0xff]  ;;  %13693 = vst [vmem:[#allocation45_spill] sm:$0xff] %v9618_v51  ;;  %13694 = vst [vmem:[#allocation15_spill] sm:$0xff] %v9623_v9  ;;  %v2911_v56 = vsub.f32 %v13700_v31, %v2550_v43  ;;  %7064 = vpow2.f32 %v3203_v17  ;;  %v2912_v45 = vsub.f32 %v13701_v47, %v2550_v43  ;;  %v9669_v47 = vld [vmem:[%s13039_s5 + $0x78] sm:$0xff] }
 0x2c1   : > { %6608 = vmatprep.mubr.msk.f32.mxu1 %vm345_vm0, %v841_v22  ;;  %v2909_v34 = vsub.f32 %v13689_v11, %v2547_v35  ;;  %13692 = vst [vmem:[#allocation44_spill] sm:$0xff] %v9611_v55  ;;  %v13695_v35 = vld [vmem:[#allocation64_spill] sm:$0xff]  ;;  %v13698_v11 = vld [vmem:[#allocation65_spill] sm:$0xff]  ;;  %v3685_v31 = vadd.f32 %v9618_v51, %v9611_v55  ;;  %13707 = vst [vmem:[#allocation113_spill] sm:$0xff] %v9669_v47 }
 0x2c2   : > { %3680 = vadd.xlane.f32.xlu1 %v3679_v46  ;;  %2594 = vmax.xlane.f32.xlu0 %v2593_v33  ;;  %v9627_v44 = vadd.f32 %v9623_v9, %v13695_v35  ;;  %v2596_v46 = vmax.f32 %v9591_v49, %v9600_v5  ;;  %v3207_v35 = vmul.f32 1.442695, %v2910_v59  ;;  %v13702_v5 = vld [vmem:[#allocation14_spill] sm:$0xff]  ;;  %v9659_v17 = vld [vmem:[%s13039_s5 + $0x70] sm:$0xff]  ;;  %v3209_v3 = vmul.f32 1.442695, %v2911_v56 }
 0x2c3   : > { %v9607_v6 = vpop.f32.mrb[128].mxu1  ;;  %v3205_v23 = vmul.f32 1.442695, %v2909_v34  ;;  %v843_v49 = vmul.f32 %v13702_v5, %v9118_v20  ;;  %v9647_v50 = vpop.eup %7054  ;;  %13705 = vst [vmem:[#allocation14_spill] sm:$0xff] %v9659_v17  ;;  %v9663_v43 = vadd.f32 %v9659_v17, %v9082_v21  ;;  %v9673_v5 = vadd.f32 %v9669_v47, %v9084_v29 }
 0x2c4   : > { %v9613_v37 = vpop.f32.mrb[129].mxu1  ;;  %6609 = vmatmul.mubr.msk.f32.gmra.mrb[234].mxu1 %vm345_vm0, %v841_v22  ;;  %13696 = vst [vmem:[#allocation64_spill] sm:$0xff] %v9627_v44  ;;  %v9635_v22 = vld [vmem:[%s13039_s5 + $0x68] sm:$0xff]  ;;  %13703 = vst [vmem:[#allocation46_spill] sm:$0xff] %v9647_v50  ;;  %v9654_v34 = vpop.eup %7056  ;;  %v3211_v21 = vmul.f32 1.442695, %v2912_v45 }
 0x2c5   : > { %6610 = vmatprep.mubr.msk.f32.mxu1 %vm345_vm0, %v842_v14  ;;  %13697 = vst [vmem:[#allocation111_spill] sm:$0xff] %v9635_v22  ;;  %v9639_v33 = vadd.f32 %v9635_v22, %v13698_v11  ;;  %13704 = vst [vmem:[#allocation47_spill] sm:$0xff] %v9654_v34  ;;  %7066 = vpow2.f32 %v3205_v23  ;;  %v3688_v29 = vadd.f32 %v9654_v34, %v9647_v50  ;;  %v9694_v45 = vld [vmem:[%s13039_s5 + $0x80] sm:$0xff]  ;;  %v13748_v22 = vld [vmem:[#allocation49_spill] sm:$0xff] }
 0x2c6   : > { %3683 = vadd.xlane.f32.xlu1 %v3682_v8  ;;  %2597 = vmax.xlane.f32.xlu0 %v2596_v46  ;;  %13706 = vst [vmem:[#allocation112_spill] sm:$0xff] %v9663_v43  ;;  %13708 = vst [vmem:[#allocation114_spill] sm:$0xff] %v9673_v5  ;;  %7068 = vpow2.f32 %v3207_v35  ;;  %v13709_v8 = vld [vmem:[#allocation17_spill] sm:$0xff]  ;;  %v9681_v11 = vpop.eup %7058  ;;  %v9698_v23 = vadd.f32 %v9694_v45, %v9092_v39  ;;  %v13716_v39 = vld [vmem:[#allocation16_spill] sm:$0xff] }
 0x2c7   : > { %13699 = vst [vmem:[#allocation65_spill] sm:$0xff] %v9639_v33  ;;  %v9643_v9 = vpop.f32.mrb[130].mxu1  ;;  %v2599_v59 = vmax.f32 %v9627_v44, %v9639_v33  ;;  %v844_v46 = vmul.f32 %v9118_v20, %v13709_v8  ;;  %13710 = vst [vmem:[#allocation17_spill] sm:$0xff] %v9681_v11  ;;  %v9688_v56 = vpop.eup %7060  ;;  %7070 = vpow2.f32 %v3209_v3  ;;  %v845_v50 = vmul.f32 %v13716_v39, %v9118_v20 }
 0x2c8   : > { %v9649_v36 = vpop.f32.mrb[131].mxu1  ;;  %6611 = vmatmul.mubr.msk.f32.gmra.mrb[236].mxu1 %vm345_vm0, %v842_v14  ;;  %13711 = vst [vmem:[#allocation115_spill] sm:$0xff] %v9688_v56  ;;  %13712 = vst [vmem:[#allocation116_spill] sm:$0xff] %v9694_v45  ;;  %7072 = vpow2.f32 %v3211_v21  ;;  %v9730_v21 = vld [vmem:[%s13039_s5 + $0x90] sm:$0xff] }
 0x2c9   : > { %6612 = vmatprep.mubr.msk.f32.mxu1 %vm345_vm0, %v843_v49  ;;  %13713 = vst [vmem:[#allocation117_spill] sm:$0xff] %v9698_v23  ;;  %v9717_v34 = vpop.eup %7062  ;;  %13719 = vst [vmem:[#allocation121_spill] sm:$0xff] %v9730_v21 }
 0x2ca   : > { %3686 = vadd.xlane.f32.xlu1 %v3685_v31  ;;  %2600 = vmax.xlane.f32.xlu0 %v2599_v59  ;;  %v2602_v31 = vmax.f32 %v9663_v43, %v9673_v5  ;;  %v9711_v59 = vpop.xlane.xlu1 %2555  ;;  %13717 = vst [vmem:[#allocation16_spill] sm:$0xff] %v9717_v34  ;;  %v9724_v3 = vpop.eup %7064  ;;  %v13724_v5 = vld [vmem:[#allocation19_spill] sm:$0xff] }
 0x2cb   : > { %v9677_v14 = vpop.f32.mrb[132].mxu1  ;;  %13718 = vst [vmem:[#allocation120_spill] sm:$0xff] %v9724_v3  ;;  %v846_v43 = vmul.f32 %v9118_v20, %v13724_v5  ;;  %v9766_v5 = vld [vmem:[%s13039_s5 + $0xa0] sm:$0xff] }
 0x2cc   : > { %v9683_v55 = vpop.f32.mrb[133].mxu1  ;;  %6613 = vmatmul.mubr.msk.f32.gmra.mrb[238].mxu1 %vm345_vm0, %v843_v49  ;;  %v9703_v49 = vld [vmem:[%s13039_s5 + $0x88] sm:$0xff]  ;;  %13728 = vst [vmem:[#allocation126_spill] sm:$0xff] %v9766_v5 }
 0x2cd   : > { %6614 = vmatprep.mubr.msk.f32.mxu1 %vm345_vm0, %v844_v46  ;;  %13714 = vst [vmem:[#allocation118_spill] sm:$0xff] %v9703_v49  ;;  %v9707_v35 = vadd.f32 %v9703_v49, %v9096_v28  ;;  %v3691_v28 = vadd.f32 %v9688_v56, %v9681_v11 }
 0x2ce   : > { %3689 = vadd.xlane.f32.xlu1 %v3688_v29  ;;  %2603 = vmax.xlane.f32.xlu0 %v2602_v31  ;;  %v9734_v29 = vadd.f32 %v9730_v21, %v9111_v57  ;;  %v13722_v31 = vld [vmem:[#allocation68_spill] sm:$0xff]  ;;  %v13735_v21 = vld [vmem:[#allocation18_spill] sm:$0xff] }
 0x2cf   : > { %13715 = vst [vmem:[#allocation119_spill] sm:$0xff] %v9707_v35  ;;  %v9713_v8 = vpop.f32.mrb[134].mxu1  ;;  %v2605_v11 = vmax.f32 %v9698_v23, %v9707_v35  ;;  %v9751_v57 = vpop.eup %7066  ;;  %v13729_v35 = vld [vmem:[#allocation73_spill] sm:$0xff]  ;;  %v847_v49 = vmul.f32 %v13735_v21, %v9118_v20  ;;  %v13740_v21 = vld [vmem:[#allocation76_spill] sm:$0xff] }
 0x2d0   : > { %v9719_v51 = vpop.f32.mrb[135].mxu1  ;;  %6615 = vmatmul.mubr.msk.f32.gmra.mrb[240].mxu1 %vm345_vm0, %v844_v46  ;;  %13720 = vst [vmem:[#allocation122_spill] sm:$0xff] %v9734_v29  ;;  %v9739_v46 = vld [vmem:[%s13039_s5 + $0x98] sm:$0xff]  ;;  %13725 = vst [vmem:[#allocation19_spill] sm:$0xff] %v9751_v57  ;;  %v9758_v44 = vpop.eup %7068 }
 0x2d1   : > { %6616 = vmatprep.mubr.msk.f32.mxu1 %vm345_vm0, %v845_v50  ;;  %13721 = vst [vmem:[#allocation123_spill] sm:$0xff] %v9739_v46  ;;  %v9743_v39 = vadd.f32 %v9739_v46, %v13722_v31  ;;  %v3694_v31 = vadd.f32 %v9724_v3, %v9717_v34  ;;  %13727 = vst [vmem:[#allocation125_spill] sm:$0xff] %v9758_v44  ;;  %v13732_v34 = vld [vmem:[#allocation6_spill] sm:$0xff] }
 0x2d2   : > { %3692 = vadd.xlane.f32.xlu1 %v3691_v28  ;;  %2606 = vmax.xlane.f32.xlu0 %v2605_v11  ;;  %v9760_v28 = vpop.xlane.xlu1 %2558  ;;  %v9770_v11 = vadd.f32 %v9766_v5, %v13729_v35  ;;  %v9787_v35 = vpop.eup %7070 }
 0x2d3   : > { %13723 = vst [vmem:[#allocation68_spill] sm:$0xff] %v9743_v39  ;;  %v9747_v56 = vpop.f32.mrb[136].mxu1  ;;  %v2608_v23 = vmax.f32 %v9734_v29, %v9743_v39  ;;  %13736 = vst [vmem:[#allocation18_spill] sm:$0xff] %v9787_v35 }
 0x2d4   : > { %v9753_v33 = vpop.f32.mrb[137].mxu1  ;;  %6617 = vmatmul.mubr.msk.f32.gmra.mrb[242].mxu1 %vm345_vm0, %v845_v50  ;;  %13730 = vst [vmem:[#allocation73_spill] sm:$0xff] %v9770_v11  ;;  %v9775_v50 = vld [vmem:[%s13039_s5 + $0xa8] sm:$0xff] }
 0x2d5   : > { %13726 = vst [vmem:[#allocation124_spill] sm:$0xff] %v9753_v33  ;;  %6618 = vmatprep.mubr.msk.f32.mxu1 %vm345_vm0, %v846_v43  ;;  %13731 = vst [vmem:[#allocation127_spill] sm:$0xff] %v9775_v50  ;;  %v9779_v3 = vadd.f32 %v9775_v50, %v13732_v34  ;;  %v3697_v34 = vadd.f32 %v9758_v44, %v9751_v57  ;;  %v9794_v50 = vpop.eup %7072  ;;  %v13745_v44 = vld [vmem:[#allocation48_spill] sm:$0xff]  ;;  %v13757_v33 = vld [vmem:[#allocation51_spill] sm:$0xff] }
 0x2d6   : > { %3695 = vadd.xlane.f32.xlu1 %v3694_v31  ;;  %2609 = vmax.xlane.f32.xlu0 %v2608_v23  ;;  %13738 = vst [vmem:[#allocation130_spill] sm:$0xff] %v9794_v50  ;;  %v9800_v31 = vld [vmem:[%s13039_s5 + $0xb0] sm:$0xff]  ;;  %v13743_v23 = vld [vmem:[#allocation79_spill] sm:$0xff]  ;;  %v2915_v29 = vsub.f32 %v13745_v44, %v9711_v59  ;;  %v2562_v47 = vpop.xlane.xlu1 %2561  ;;  %v3700_v44 = vadd.f32 %v9794_v50, %v9787_v35 }
 0x2d7   : > { %13733 = vst [vmem:[#allocation6_spill] sm:$0xff] %v9779_v3  ;;  %v9783_v46 = vpop.f32.mrb[138].mxu1  ;;  %13739 = vst [vmem:[#allocation131_spill] sm:$0xff] %v9800_v31  ;;  %v9804_v39 = vadd.f32 %v9800_v31, %v13740_v21  ;;  %v2611_v45 = vmax.f32 %v9770_v11, %v9779_v3  ;;  %v13747_v21 = vld [vmem:[#allocation21_spill] sm:$0xff]  ;;  %v13751_v11 = vld [vmem:[#allocation59_spill] sm:$0xff] }
 0x2d8   : > { %13734 = vst [vmem:[#allocation128_spill] sm:$0xff] %v9783_v46  ;;  %v9789_v5 = vpop.f32.mrb[139].mxu1  ;;  %6619 = vmatmul.mubr.msk.f32.gmra.mrb[244].mxu1 %vm345_vm0, %v846_v43  ;;  %v9809_v43 = vld [vmem:[%s13039_s5 + $0xb8] sm:$0xff]  ;;  %v848_v31 = vmul.f32 %v9118_v20, %v13747_v21  ;;  %v9836_v21 = vld [vmem:[%s13039_s5 + $0xc0] sm:$0xff] }
 0x2d9   : > { %13737 = vst [vmem:[#allocation129_spill] sm:$0xff] %v9789_v5  ;;  %6620 = vmatprep.mubr.msk.f32.mxu1 %vm345_vm0, %v847_v49  ;;  %13741 = vst [vmem:[#allocation76_spill] sm:$0xff] %v9804_v39  ;;  %v9813_v57 = vadd.f32 %v9809_v43, %v13743_v23  ;;  %v2916_v5 = vsub.f32 %v13748_v22, %v9711_v59  ;;  %v9840_v22 = vadd.f32 %v9836_v21, %v9186_v24 }
 0x2da   : > { %13742 = vst [vmem:[#allocation132_spill] sm:$0xff] %v9809_v43  ;;  %3698 = vadd.xlane.f32.xlu1 %v3697_v34  ;;  %2612 = vmax.xlane.f32.xlu0 %v2611_v45  ;;  %v13750_v34 = vld [vmem:[#allocation58_spill] sm:$0xff]  ;;  %13752 = vst [vmem:[#allocation49_spill] sm:$0xff] %v9836_v21  ;;  %v9845_v45 = vld [vmem:[%s13039_s5 + $0xc8] sm:$0xff]  ;;  %v3217_v59 = vmul.f32 1.442695, %v2915_v29 }
 0x2db   : > { %13744 = vst [vmem:[#allocation79_spill] sm:$0xff] %v9813_v57  ;;  %v9819_v17 = vpop.f32.mrb[140].mxu1  ;;  %13753 = vst [vmem:[#allocation58_spill] sm:$0xff] %v9840_v22  ;;  %v13756_v21 = vld [vmem:[#allocation20_spill] sm:$0xff] }
 0x2dc   : > { %13746 = vst [vmem:[#allocation48_spill] sm:$0xff] %v9819_v17  ;;  %v2553_v46 = vpop.xlane.xlu0 %2552  ;;  %v9825_v23 = vpop.f32.mrb[141].mxu1  ;;  %6621 = vmatmul.mubr.msk.f32.gmra.mrb[246].mxu1 %vm345_vm0, %v847_v49  ;;  %v9849_v49 = vadd.f32 %v9845_v45, %v9192_v42  ;;  %v3219_v17 = vmul.f32 1.442695, %v2916_v5  ;;  %v2918_v42 = vsub.f32 %v13757_v33, %v9760_v28  ;;  %v9877_v33 = vld [vmem:[%s13039_s5 + $0xd8] sm:$0xff] }
 0x2dd   : > { %13749 = vst [vmem:[#allocation21_spill] sm:$0xff] %v9825_v23  ;;  %v2913_v3 = vsub.f32 %v13750_v34, %v2553_v46  ;;  %v2914_v43 = vsub.f32 %v13751_v11, %v2553_v46  ;;  %6622 = vmatprep.mubr.msk.f32.mxu1 %vm345_vm0, %v848_v31  ;;  %v2614_v46 = vmax.f32 %v9804_v39, %v9813_v57  ;;  %v13755_v11 = vld [vmem:[#allocation50_spill] sm:$0xff]  ;;  %v2565_v5 = vpop.xlane.xlu1 %2564  ;;  %v13761_v57 = vld [vmem:[#allocation53_spill] sm:$0xff] }
 0x2de   : > { %13754 = vst [vmem:[#allocation59_spill] sm:$0xff] %v9849_v49  ;;  %3701 = vadd.xlane.f32.xlu1 %v3700_v44  ;;  %v2917_v34 = vsub.f32 %v13755_v11, %v9760_v28  ;;  %v849_v23 = vmul.f32 %v13756_v21, %v9118_v20  ;;  %v9881_v28 = vadd.f32 %v9877_v33, %v9214_v52  ;;  %v13760_v44 = vld [vmem:[#allocation52_spill] sm:$0xff]  ;;  %v3223_v11 = vmul.f32 1.442695, %v2918_v42 }
 0x2df   : > { %v3213_v35 = vmul.f32 1.442695, %v2913_v3  ;;  %v3215_v24 = vmul.f32 1.442695, %v2914_v43  ;;  %v9855_v50 = vpop.f32.mrb[142].mxu1  ;;  %2615 = vmax.xlane.f32.xlu0 %v2614_v46  ;;  %v9868_v3 = vld [vmem:[%s13039_s5 + $0xd0] sm:$0xff]  ;;  %v2919_v21 = vsub.f32 %v13760_v44, %v2562_v47  ;;  %v850_v46 = vmul.f32 %v9118_v20, %v8333_v15 }
 0x2e0   : > { %v9861_v29 = vpop.f32.mrb[143].mxu1  ;;  %6623 = vmatmul.mubr.msk.f32.gmra.mrb[248].mxu1 %vm345_vm0, %v848_v31  ;;  %v9872_v43 = vadd.f32 %v9868_v3, %v9210_v48  ;;  %13759 = vst [vmem:[#allocation20_spill] sm:$0xff] %v9881_v28  ;;  %v3221_v31 = vmul.f32 1.442695, %v2917_v34  ;;  %v2920_v39 = vsub.f32 %v13761_v57, %v2562_v47  ;;  %v9907_v15 = vld [vmem:[%s13039_s5 + $0xe8] sm:$0xff] }
 0x2e1   : > { %7074 = vpow2.f32 %v3213_v35  ;;  %6624 = vmatprep.mubr.msk.f32.mxu1 %vm345_vm0, %v849_v23  ;;  %v2617_v35 = vmax.f32 %v9840_v22, %v9849_v49  ;;  %13763 = vst [vmem:[#allocation52_spill] sm:$0xff] %v9907_v15  ;;  %v3225_v57 = vmul.f32 1.442695, %v2919_v21  ;;  %v13766_v44 = vld [vmem:[#allocation55_spill] sm:$0xff]  ;;  %v2568_v22 = vpop.xlane.xlu1 %2567 }
 0x2e2   : > { %13758 = vst [vmem:[#allocation50_spill] sm:$0xff] %v9872_v43  ;;  %7076 = vpow2.f32 %v3215_v24  ;;  %v2620_v47 = vmax.f32 %v9872_v43, %v9881_v28  ;;  %v2922_v49 = vsub.f32 %v13766_v44, %v2565_v5  ;;  %v13774_v28 = vld [vmem:[#allocation57_spill] sm:$0xff] }
 0x2e3   : > { %7078 = vpow2.f32 %v3217_v59  ;;  %v9886_v48 = vpop.f32.mrb[144].mxu1  ;;  %2618 = vmax.xlane.f32.xlu0 %v2617_v35  ;;  %v9898_v59 = vld [vmem:[%s13039_s5 + $0xe0] sm:$0xff]  ;;  %v3227_v35 = vmul.f32 1.442695, %v2920_v39  ;;  %v2924_v43 = vsub.f32 %v13774_v28, %v2568_v22 }
 0x2e4   : > { %7080 = vpow2.f32 %v3219_v17  ;;  %v9891_v52 = vpop.f32.mrb[145].mxu1  ;;  %6625 = vmatmul.mubr.msk.f32.gmra.mrb[250].mxu1 %vm345_vm0, %v849_v23  ;;  %v9902_v34 = vadd.f32 %v9898_v59, %v9226_v61  ;;  %v9911_v17 = vadd.f32 %v9907_v15, %v9231_v2  ;;  %v13765_v23 = vld [vmem:[#allocation54_spill] sm:$0xff]  ;;  %v851_v61 = vmul.f32 %v8330_v13, %v9118_v20  ;;  %v9937_v20 = vld [vmem:[%s13039_s5 + $0xf8] sm:$0xff] }
 0x2e5   : > { %6626 = vmatprep.mubr.msk.f32.mxu1 %vm345_vm0, %v850_v46  ;;  %7082 = vpow2.f32 %v3221_v31  ;;  %v2921_v24 = vsub.f32 %v13765_v23, %v2565_v5  ;;  %v9928_v31 = vld [vmem:[%s13039_s5 + $0xf0] sm:$0xff]  ;;  %13769 = vst [vmem:[#allocation133_spill] sm:$0xff] %v9937_v20  ;;  %v9941_v39 = vadd.f32 %v9937_v20, %v9241_v62  ;;  %v3231_v44 = vmul.f32 1.442695, %v2922_v49  ;;  %v9974_v49 = vld [vmem:[%s13039_s5 + $0x108] sm:$0xff] }
 0x2e6   : > { %13762 = vst [vmem:[#allocation51_spill] sm:$0xff] %v9902_v34  ;;  %13764 = vst [vmem:[#allocation53_spill] sm:$0xff] %v9911_v17  ;;  %7084 = vpow2.f32 %v3223_v11  ;;  %v9932_v13 = vadd.f32 %v9928_v31, %v9236_v40  ;;  %v2623_v5 = vmax.f32 %v9902_v34, %v9911_v17  ;;  %v13772_v11 = vld [vmem:[#allocation56_spill] sm:$0xff]  ;;  %v9978_v28 = vadd.f32 %v9974_v49, %v9259_v1  ;;  %v13806_v20 = vld [vmem:[#allocation71_spill] sm:$0xff] }
 0x2e7   : > { %v9916_v42 = vpop.f32.mrb[146].mxu1  ;;  %2621 = vmax.xlane.f32.xlu0 %v2620_v47  ;;  %13767 = vst [vmem:[#allocation54_spill] sm:$0xff] %v9928_v31  ;;  %13770 = vst [vmem:[#allocation134_spill] sm:$0xff] %v9941_v39  ;;  %7086 = vpow2.f32 %v3225_v57  ;;  %v2923_v47 = vsub.f32 %v13772_v11, %v2568_v22  ;;  %v9965_v11 = vld [vmem:[%s13039_s5 + $0x100] sm:$0xff] }
 0x2e8   : > { %v9921_v2 = vpop.f32.mrb[147].mxu1  ;;  %6627 = vmatmul.mubr.msk.f32.gmra.mrb[252].mxu1 %vm345_vm0, %v850_v46  ;;  %13768 = vst [vmem:[#allocation55_spill] sm:$0xff] %v9932_v13  ;;  %v3229_v46 = vmul.f32 1.442695, %v2921_v24  ;;  %7088 = vpow2.f32 %v3227_v35  ;;  %13777 = vst [vmem:[#allocation137_spill] sm:$0xff] %v9965_v11  ;;  %v9969_v22 = vadd.f32 %v9965_v11, %v9252_v10 }
 0x2e9   : > { %6628 = vmatprep.mubr.msk.f32.mxu1 %vm345_vm0, %v851_v61  ;;  %13779 = vst [vmem:[#allocation139_spill] sm:$0xff] %v9974_v49  ;;  %13780 = vst [vmem:[#allocation140_spill] sm:$0xff] %v9978_v28  ;;  %v3233_v35 = vmul.f32 1.442695, %v2923_v47  ;;  %v3235_v10 = vmul.f32 1.442695, %v2924_v43 }
 0x2ea   : > { %13778 = vst [vmem:[#allocation138_spill] sm:$0xff] %v9969_v22  ;;  %7090 = vpow2.f32 %v3229_v46  ;;  %v9995_v46 = vld [vmem:[%s13039_s5 + $0x110] sm:$0xff]  ;;  %v10004_v43 = vld [vmem:[%s13039_s5 + $0x118] sm:$0xff] }
 0x2eb   : > { %v9945_v21 = vpop.eup %7074  ;;  %v9948_v40 = vpop.f32.mrb[148].mxu1  ;;  %2624 = vmax.xlane.f32.xlu0 %v2623_v5  ;;  %7092 = vpow2.f32 %v3231_v44  ;;  %13783 = vst [vmem:[#allocation143_spill] sm:$0xff] %v9995_v46  ;;  %v9999_v47 = vadd.f32 %v9995_v46, %v9262_v53  ;;  %13785 = vst [vmem:[#allocation145_spill] sm:$0xff] %v10004_v43  ;;  %v10008_v44 = vadd.f32 %v10004_v43, %v9266_v18  ;;  %v7790_v18 = vld [vmem:[%s13039_s5 + $0x120] sm:$0xff] }
 0x2ec   : > { %13771 = vst [vmem:[#allocation135_spill] sm:$0xff] %v9945_v21  ;;  %v9950_v23 = vpop.eup %7076  ;;  %v9953_v62 = vpop.f32.mrb[149].mxu1  ;;  %6629 = vmatmul.mubr.msk.f32.gmra.mrb[254].mxu1 %vm345_vm0, %v851_v61  ;;  %v2626_v61 = vmax.f32 %v9932_v13, %v9941_v39  ;;  %7094 = vpow2.f32 %v3233_v35 }
 0x2ed   : > { %13773 = vst [vmem:[#allocation56_spill] sm:$0xff] %v9950_v23  ;;  %v9956_v17 = vpop.eup %7078  ;;  %v3703_v57 = vadd.f32 %v9950_v23, %v9945_v21  ;;  %13784 = vst [vmem:[#allocation144_spill] sm:$0xff] %v9999_v47  ;;  %7096 = vpow2.f32 %v3235_v10  ;;  %v13791_v10 = vld [vmem:[#allocation83_spill] sm:$0xff] }
 0x2ee   : > { %13775 = vst [vmem:[#allocation57_spill] sm:$0xff] %v9956_v17  ;;  %v9960_v24 = vpop.eup %7080  ;;  %13786 = vst [vmem:[#allocation146_spill] sm:$0xff] %v10008_v44 }
 0x2ef   : > { %13776 = vst [vmem:[#allocation136_spill] sm:$0xff] %v9960_v24  ;;  %3704 = vadd.xlane.f32.xlu1 %v3703_v57  ;;  %v9982_v5 = vpop.f32.mrb[150].mxu1  ;;  %2627 = vmax.xlane.f32.xlu0 %v2626_v61  ;;  %v9986_v23 = vpop.eup %7082  ;;  %v3706_v34 = vadd.f32 %v9960_v24, %v9956_v17  ;;  %v2629_v57 = vmax.f32 %v9969_v22, %v9978_v28  ;;  %v13789_v28 = vld [vmem:[#allocation82_spill] sm:$0xff] }
 0x2f0   : > { %v9984_v21 = vpop.f32.mrb[151].mxu1  ;;  %13781 = vst [vmem:[#allocation141_spill] sm:$0xff] %v9986_v23  ;;  %v9990_v1 = vpop.eup %7084  ;;  %v10026_v35 = vadd.f32 %v7790_v18, %v13789_v28 }
 0x2f1   : > { %13782 = vst [vmem:[#allocation142_spill] sm:$0xff] %v9990_v1  ;;  %v10016_v17 = vpop.eup %7086  ;;  %v3709_v24 = vadd.f32 %v9990_v1, %v9986_v23  ;;  %v2632_v23 = vmax.f32 %v9999_v47, %v10008_v44 }
 0x2f2   : > { %13787 = vst [vmem:[#allocation147_spill] sm:$0xff] %v10016_v17  ;;  %v10020_v39 = vpop.eup %7088  ;;  %13790 = vst [vmem:[#allocation82_spill] sm:$0xff] %v10026_v35 }
 0x2f3   : > { %3707 = vadd.xlane.f32.xlu1 %v3706_v34  ;;  %v10012_v61 = vpop.f32.mrb[152].mxu1  ;;  %2630 = vmax.xlane.f32.xlu0 %v2629_v57  ;;  %13788 = vst [vmem:[#allocation148_spill] sm:$0xff] %v10020_v39  ;;  %v7791_v34 = vld [vmem:[%s13039_s5 + $0x128] sm:$0xff]  ;;  %v3712_v18 = vadd.f32 %v10020_v39, %v10016_v17 }
 0x2f4   : > { %v10014_v53 = vpop.f32.mrb[153].mxu1  ;;  %v10032_v57 = vadd.f32 %v7791_v34, %v13791_v10  ;;  %v10040_v28 = vpop.eup %7090  ;;  %v7792_v34 = vld [vmem:[%s13039_s5 + $0x130] sm:$0xff] }
 0x2f5   : > { %13793 = vst [vmem:[#allocation149_spill] sm:$0xff] %v10040_v28  ;;  %v10044_v43 = vpop.eup %7092  ;;  %v13795_v10 = vld [vmem:[#allocation84_spill] sm:$0xff] }
 0x2f6   : > { %13792 = vst [vmem:[#allocation83_spill] sm:$0xff] %v10032_v57  ;;  %v3639_v22 = vpop.xlane.xlu1 %3638  ;;  %13794 = vst [vmem:[#allocation150_spill] sm:$0xff] %v10044_v43  ;;  %v10050_v44 = vadd.f32 %v7792_v34, %v13795_v10  ;;  %v2635_v17 = vmax.f32 %v10026_v35, %v10032_v57  ;;  %v10064_v34 = vpop.eup %7094  ;;  %v3715_v10 = vadd.f32 %v10044_v43, %v10040_v28  ;;  %v13805_v43 = vld [vmem:[#allocation70_spill] sm:$0xff] }
 0x2f7   : > { %7098 = vrcp.f32 %v3639_v22  ;;  %3710 = vadd.xlane.f32.xlu1 %v3709_v24  ;;  %v10036_v1 = vpop.f32.mrb[154].mxu1  ;;  %2633 = vmax.xlane.f32.xlu0 %v2632_v23  ;;  %v7793_v23 = vld [vmem:[%s13039_s5 + $0x138] sm:$0xff]  ;;  %13799 = vst [vmem:[#allocation153_spill] sm:$0xff] %v10064_v34  ;;  %v10068_v46 = vpop.eup %7096 }
 0x2f8   : > { %v10038_v13 = vpop.f32.mrb[155].mxu1  ;;  %13796 = vst [vmem:[#allocation84_spill] sm:$0xff] %v10050_v44  ;;  %v10056_v24 = vadd.f32 %v7793_v23, %v9284_v30  ;;  %13800 = vst [vmem:[#allocation154_spill] sm:$0xff] %v10068_v46  ;;  %v7794_v30 = vld [vmem:[%s13039_s5 + $0x140] sm:$0xff] }
 0x2f9   : > { %v13801_v23 = vld [vmem:[#allocation22_spill] sm:$0xff] }
 0x2fa   : > { %13797 = vst [vmem:[#allocation151_spill] sm:$0xff] %v10056_v24  ;;  %v3642_v22 = vpop.xlane.xlu0 %3641  ;;  %v10074_v57 = vadd.f32 %v7794_v30, %v13801_v23  ;;  %v2638_v28 = vmax.f32 %v10050_v44, %v10056_v24 }
 0x2fb   : > { %3713 = vadd.xlane.f32.xlu1 %v3712_v18  ;;  %v10060_v39 = vpop.f32.mrb[156].mxu1  ;;  %7100 = vrcp.f32 %v3642_v22  ;;  %2636 = vmax.xlane.f32.xlu0 %v2635_v17  ;;  %v7795_v17 = vld [vmem:[%s13039_s5 + $0x148] sm:$0xff] }
 0x2fc   : > { %v10062_v47 = vpop.f32.mrb[157].mxu1  ;;  %13802 = vst [vmem:[#allocation22_spill] sm:$0xff] %v10074_v57  ;;  %v13803_v18 = vld [vmem:[#allocation23_spill] sm:$0xff] }
 0x2fd   : > { %13798 = vst [vmem:[#allocation152_spill] sm:$0xff] %v10062_v47  ;;  %v10080_v22 = vadd.f32 %v7795_v17, %v13803_v18  ;;  %v3718_v18 = vadd.f32 %v10068_v46, %v10064_v34 }
 0x2fe   : > { %v3645_v35 = vpop.xlane.xlu1 %3644  ;;  %v2571_v49 = vpop.xlane.xlu0 %2570 }
 0x2ff   : > { %13804 = vst [vmem:[#allocation23_spill] sm:$0xff] %v10080_v22  ;;  %v2925_v11 = vsub.f32 %v13805_v43, %v2571_v49  ;;  %v2926_v31 = vsub.f32 %v13806_v20, %v2571_v49  ;;  %3716 = vadd.xlane.f32.xlu1 %v3715_v10  ;;  %v10086_v15 = vpop.f32.mrb[158].mxu1  ;;  %7102 = vrcp.f32 %v3645_v35  ;;  %2639 = vmax.xlane.f32.xlu0 %v2638_v28  ;;  %v7796_v20 = vld [vmem:[%s13039_s5 + $0x150] sm:$0xff]  ;;  %v7797_v43 = vld [vmem:[%s13039_s5 + $0x158] sm:$0xff]  ;;  %v13811_v28 = vld [vmem:[#allocation67_spill] sm:$0xff] }
 0x300   : > { %13807 = vst [vmem:[#allocation70_spill] sm:$0xff] %v10086_v15  ;;  %v10088_v30 = vpop.f32.mrb[159].mxu1  ;;  %v2641_v24 = vmax.f32 %v10074_v57, %v10080_v22  ;;  %v10098_v49 = vadd.f32 %v7796_v20, %v9303_v25  ;;  %v13842_v15 = vld [vmem:[#allocation80_spill] sm:$0xff] }
 0x301   : > { %13808 = vst [vmem:[#allocation71_spill] sm:$0xff] %v10088_v30  ;;  %v7099_v23 = vpop.eup %7098  ;;  %v3237_v47 = vmul.f32 1.442695, %v2925_v11  ;;  %v3239_v17 = vmul.f32 1.442695, %v2926_v31  ;;  %v10104_v11 = vadd.f32 %v7797_v43, %v9310_v54 }
 0x302   : > { %13809 = vst [vmem:[#allocation155_spill] sm:$0xff] %v10098_v49  ;;  %v3648_v31 = vpop.xlane.xlu0 %3647  ;;  %v6983_v35 = vpop.permute.xlu1 %6982  ;;  %v4023_v10 = vmul.f32 %v7099_v23, %v13811_v28 }
 0x303   : > { %13810 = vst [vmem:[#allocation156_spill] sm:$0xff] %v10104_v11  ;;  %7104 = vpow2.f32 %v3237_v47  ;;  %v6985_v34 = vunpack.i.h.bf16 %v6983_v35  ;;  %v6984_v46 = vunpack.i.l.bf16 %v6983_v35  ;;  %3719 = vadd.xlane.f32.xlu1 %v3718_v18  ;;  %v10107_v22 = vpop.f32.mrb[160].mxu1  ;;  %2642 = vmax.xlane.f32.xlu0 %v2641_v24  ;;  %v2644_v54 = vmax.f32 %v10098_v49, %v10104_v11  ;;  %v7798_v47 = vld [vmem:[%s13039_s5 + $0x160] sm:$0xff]  ;;  %v7799_v24 = vld [vmem:[%s13039_s5 + $0x168] sm:$0xff] }
 0x304   : > { %13812 = vst [vmem:[#allocation67_spill] sm:$0xff] %v10107_v22  ;;  %7106 = vpow2.f32 %v3239_v17  ;;  %4597 = vmatprep.mubr.f32.mxu0 %v4023_v10  ;;  %v10109_v25 = vpop.f32.mrb[161].mxu1  ;;  %v10117_v43 = vadd.f32 %v7798_v47, %v9314_v41  ;;  %v13815_v17 = vld [vmem:[#allocation26_spill] sm:$0xff] }
 0x305   : > { %13813 = vst [vmem:[#allocation157_spill] sm:$0xff] %v10109_v25  ;;  %7108 = vrcp.f32 %v3648_v31  ;;  %v6880_v20 = vpack.c.bf16 %v6985_v34, %v6984_v46  ;;  %v7101_v57 = vpop.eup %7100  ;;  %v10123_v18 = vadd.f32 %v7799_v24, %v13815_v17  ;;  %v13817_v46 = vld [vmem:[#allocation77_spill] sm:$0xff]  ;;  %v13818_v35 = vld [vmem:[#allocation78_spill] sm:$0xff]  ;;  %v13822_v25 = vld [vmem:[#allocation72_spill] sm:$0xff] }
 0x306   : > { %13814 = vst [vmem:[#allocation158_spill] sm:$0xff] %v10117_v43  ;;  %v2574_v31 = vpop.xlane.xlu0 %2573  ;;  %v13821_v41 = vld [vmem:[#allocation66_spill] sm:$0xff]  ;;  %v4026_v22 = vmul.f32 %v7101_v57, %v13822_v25  ;;  %v7800_v17 = vld [vmem:[%s13039_s5 + $0x170] sm:$0xff] }
 0x307   : > { %13816 = vst [vmem:[#allocation26_spill] sm:$0xff] %v10123_v18  ;;  %v2927_v34 = vsub.f32 %v13817_v46, %v2574_v31  ;;  %v2928_v28 = vsub.f32 %v13818_v35, %v2574_v31  ;;  %6881 = vmatpush1.bf16.msra.mxu0 %v6880_v20  ;;  %v10127_v10 = vpop.f32.mrb[162].mxu1  ;;  %2645 = vmax.xlane.f32.xlu0 %v2644_v54  ;;  %v13823_v20 = vld [vmem:[#allocation27_spill] sm:$0xff]  ;;  %v7801_v54 = vld [vmem:[%s13039_s5 + $0x178] sm:$0xff] }
 0x308   : > { %13819 = vst [vmem:[#allocation77_spill] sm:$0xff] %v10127_v10  ;;  %v10129_v11 = vpop.f32.mrb[163].mxu1  ;;  %v4022_v47 = vmul.f32 %v7099_v23, %v13821_v41  ;;  %v2647_v24 = vmax.f32 %v10117_v43, %v10123_v18  ;;  %v10139_v31 = vadd.f32 %v7800_v17, %v13823_v20  ;;  %v13825_v23 = vld [vmem:[#allocation37_spill] sm:$0xff] }
 0x309   : > { %13820 = vst [vmem:[#allocation78_spill] sm:$0xff] %v10129_v11  ;;  %v3241_v49 = vmul.f32 1.442695, %v2927_v34  ;;  %v3243_v44 = vmul.f32 1.442695, %v2928_v28  ;;  %v7103_v30 = vpop.eup %7102  ;;  %v10145_v46 = vadd.f32 %v7801_v54, %v13825_v23  ;;  %v13827_v34 = vld [vmem:[#allocation24_spill] sm:$0xff] }
 0x30a   : > { %13824 = vst [vmem:[#allocation66_spill] sm:$0xff] %v10139_v31  ;;  %4598 = vmatmul.mubr.f32.vlgmr.msra.gmra.mrb[32].mxu0 %v4022_v47  ;;  %v2577_v25 = vpop.xlane.xlu0 %2576  ;;  %v13828_v28 = vld [vmem:[#allocation25_spill] sm:$0xff]  ;;  %v13833_v47 = vld [vmem:[#allocation75_spill] sm:$0xff] }
 0x30b   : > { %13826 = vst [vmem:[#allocation72_spill] sm:$0xff] %v10145_v46  ;;  %7110 = vpow2.f32 %v3241_v49  ;;  %v2929_v35 = vsub.f32 %v13827_v34, %v2577_v25  ;;  %v2930_v41 = vsub.f32 %v13828_v28, %v2577_v25  ;;  %4602 = vmatprep.mubr.f32.mxu0 %v4026_v22  ;;  %v10149_v18 = vpop.f32.mrb[164].mxu1  ;;  %2648 = vmax.xlane.f32.xlu0 %v2647_v24  ;;  %v13831_v20 = vld [vmem:[#allocation69_spill] sm:$0xff]  ;;  %v13837_v34 = vld [vmem:[#allocation87_spill] sm:$0xff] }
 0x30c   : > { %13829 = vst [vmem:[#allocation27_spill] sm:$0xff] %v10149_v18  ;;  %7112 = vpow2.f32 %v3243_v44  ;;  %v10151_v17 = vpop.f32.mrb[165].mxu1  ;;  %v4025_v43 = vmul.f32 %v7101_v57, %v13831_v20  ;;  %v4029_v10 = vmul.f32 %v7103_v30, %v13833_v47  ;;  %v2650_v25 = vmax.f32 %v10139_v31, %v10145_v46  ;;  %v7802_v44 = vld [vmem:[%s13039_s5 + $0x180] sm:$0xff]  ;;  %v13835_v22 = vld [vmem:[#allocation85_spill] sm:$0xff]  ;;  %v7803_v57 = vld [vmem:[%s13039_s5 + $0x188] sm:$0xff] }
 0x30d   : > { %13830 = vst [vmem:[#allocation37_spill] sm:$0xff] %v10151_v17  ;;  %v10154_v11 = vpop.eup %7104  ;;  %v3245_v54 = vmul.f32 1.442695, %v2929_v35  ;;  %v3247_v23 = vmul.f32 1.442695, %v2930_v41  ;;  %v10165_v24 = vadd.f32 %v7802_v44, %v13835_v22  ;;  %v10171_v35 = vadd.f32 %v7803_v57, %v13837_v34  ;;  %v13839_v20 = vld [vmem:[#allocation8_spill] sm:$0xff] }
 0x30e   : > { %13832 = vst [vmem:[#allocation24_spill] sm:$0xff] %v10154_v11  ;;  %v10157_v49 = vpop.eup %7106  ;;  %4603 = vmatmul.mubr.f32.gmra.mrb[34].mxu0 %v4025_v43  ;;  %v2580_v28 = vpop.xlane.xlu0 %2579  ;;  %v13840_v46 = vld [vmem:[#allocation7_spill] sm:$0xff]  ;;  %v13841_v57 = vld [vmem:[#allocation74_spill] sm:$0xff] }
 0x30f   : > { %13834 = vst [vmem:[#allocation25_spill] sm:$0xff] %v10157_v49  ;;  %13836 = vst [vmem:[#allocation69_spill] sm:$0xff] %v10165_v24  ;;  %v7109_v41 = vpop.eup %7108  ;;  %7114 = vpow2.f32 %v3245_v54  ;;  %v2931_v47 = vsub.f32 %v13839_v20, %v2580_v28  ;;  %v2932_v31 = vsub.f32 %v13840_v46, %v2580_v28  ;;  %4607 = vmatprep.mubr.f32.mxu0 %v4029_v10  ;;  %v10175_v17 = vpop.f32.mrb[166].mxu1  ;;  %2651 = vmax.xlane.f32.xlu0 %v2650_v25  ;;  %v7804_v10 = vld [vmem:[%s13039_s5 + $0x190] sm:$0xff]  ;;  %v13843_v46 = vld [vmem:[#allocation31_spill] sm:$0xff] }
 0x310   : > { %13838 = vst [vmem:[#allocation75_spill] sm:$0xff] %v10171_v35  ;;  %7116 = vpow2.f32 %v3247_v23  ;;  %v3721_v44 = vadd.f32 %v10157_v49, %v10154_v11  ;;  %v10179_v22 = vpop.f32.mrb[167].mxu1  ;;  %v4028_v34 = vmul.f32 %v7103_v30, %v13841_v57  ;;  %v4032_v54 = vmul.f32 %v7109_v41, %v13842_v15  ;;  %v7805_v25 = vld [vmem:[%s13039_s5 + $0x198] sm:$0xff]  ;;  %v13845_v28 = vld [vmem:[#allocation91_spill] sm:$0xff] }
 0x311   : > { %v3249_v43 = vmul.f32 1.442695, %v2931_v47  ;;  %v3251_v18 = vmul.f32 1.442695, %v2932_v31  ;;  %v2653_v20 = vmax.f32 %v10165_v24, %v10171_v35  ;;  %v10189_v23 = vadd.f32 %v7804_v10, %v13843_v46  ;;  %v13847_v47 = vld [vmem:[#allocation5_spill] sm:$0xff] }
 0x312   : > { %v10195_v30 = vadd.f32 %v7805_v25, %v13845_v28  ;;  %3722 = vadd.xlane.f32.xlu1 %v3721_v44  ;;  %4608 = vmatmul.mubr.f32.gmra.mrb[36].mxu0 %v4028_v34  ;;  %v4031_v57 = vmul.f32 %v7109_v41, %v13847_v47  ;;  %v7806_v44 = vld [vmem:[%s13039_s5 + $0x1a0] sm:$0xff] }
 0x313   : > { %13844 = vst [vmem:[#allocation85_spill] sm:$0xff] %v10189_v23  ;;  %7118 = vpow2.f32 %v3249_v43  ;;  %4612 = vmatprep.mubr.f32.mxu0 %v4032_v54  ;;  %v10197_v15 = vpop.f32.mrb[168].mxu1  ;;  %2654 = vmax.xlane.f32.xlu0 %v2653_v20  ;;  %v10212_v34 = vadd.f32 %v7806_v44, %v9386_v60  ;;  %v13851_v43 = vld [vmem:[#allocation33_spill] sm:$0xff] }
 0x314   : > { %13846 = vst [vmem:[#allocation87_spill] sm:$0xff] %v10195_v30  ;;  %7120 = vpow2.f32 %v3251_v18  ;;  %v10199_v31 = vpop.f32.mrb[169].mxu1  ;;  %v2656_v25 = vmax.f32 %v10189_v23, %v10195_v30  ;;  %v7807_v18 = vld [vmem:[%s13039_s5 + $0x1a8] sm:$0xff]  ;;  %v13895_v23 = vld [vmem:[#allocation128_spill] sm:$0xff] }
 0x315   : > { %v10202_v10 = vpop.eup %7110  ;;  %13850 = vst [vmem:[#allocation74_spill] sm:$0xff] %v10212_v34  ;;  %v10218_v41 = vadd.f32 %v7807_v18, %v13851_v43 }
 0x316   : > { %13848 = vst [vmem:[#allocation8_spill] sm:$0xff] %v10202_v10  ;;  %v10204_v46 = vpop.eup %7112  ;;  %4613 = vmatmul.mubr.f32.gmra.mrb[38].mxu0 %v4031_v57  ;;  %v7808_v57 = vld [vmem:[%s13039_s5 + $0x1b0] sm:$0xff] }
 0x317   : > { %13849 = vst [vmem:[#allocation7_spill] sm:$0xff] %v10204_v46  ;;  %13852 = vst [vmem:[#allocation80_spill] sm:$0xff] %v10218_v41  ;;  %v3724_v54 = vadd.f32 %v10204_v46, %v10202_v10  ;;  %v10222_v20 = vpop.f32.mrb[170].mxu1  ;;  %2657 = vmax.xlane.f32.xlu0 %v2656_v25  ;;  %v2659_v44 = vmax.f32 %v10212_v34, %v10218_v41  ;;  %v10236_v18 = vadd.f32 %v7808_v57, %v9422_v38  ;;  %v7809_v25 = vld [vmem:[%s13039_s5 + $0x1b8] sm:$0xff]  ;;  %v13893_v34 = vld [vmem:[#allocation36_spill] sm:$0xff] }
 0x318   : > { %v10224_v28 = vpop.f32.mrb[171].mxu1  ;;  %v10242_v43 = vadd.f32 %v7809_v25, %v9428_v12  ;;  %v7810_v12 = vld [vmem:[%s13039_s5 + $0x1c0] sm:$0xff] }
 0x319   : > { %v10226_v47 = vpop.eup %7114  ;;  %3725 = vadd.xlane.f32.xlu1 %v3724_v54  ;;  %13855 = vst [vmem:[#allocation5_spill] sm:$0xff] %v10236_v18  ;;  %v10260_v25 = vadd.f32 %v7810_v12, %v9461_v19  ;;  %v7812_v12 = vld [vmem:[%s13039_s5 + $0x1d0] sm:$0xff] }
 0x31a   : > { %13853 = vst [vmem:[#allocation31_spill] sm:$0xff] %v10226_v47  ;;  %v10228_v60 = vpop.eup %7116  ;;  %13856 = vst [vmem:[#allocation33_spill] sm:$0xff] %v10242_v43  ;;  %v2662_v57 = vmax.f32 %v10236_v18, %v10242_v43  ;;  %v10280_v18 = vadd.f32 %v7812_v12, %v9497_v58  ;;  %v7814_v58 = vld [vmem:[%s13039_s5 + $0x1e0] sm:$0xff] }
 0x31b   : > { %13854 = vst [vmem:[#allocation91_spill] sm:$0xff] %v10228_v60  ;;  %v3727_v54 = vadd.f32 %v10228_v60, %v10226_v47  ;;  %v10246_v10 = vpop.f32.mrb[172].mxu1  ;;  %2660 = vmax.xlane.f32.xlu0 %v2659_v44  ;;  %13859 = vst [vmem:[#allocation161_spill] sm:$0xff] %v10260_v25  ;;  %v7811_v44 = vld [vmem:[%s13039_s5 + $0x1c8] sm:$0xff]  ;;  %v10298_v12 = vadd.f32 %v7814_v58, %v9533_v16  ;;  %v7816_v16 = vld [vmem:[%s13039_s5 + $0x1f0] sm:$0xff] }
 0x31c   : > { %v10248_v46 = vpop.f32.mrb[173].mxu1  ;;  %v10266_v47 = vadd.f32 %v7811_v44, %v9467_v26  ;;  %13861 = vst [vmem:[#allocation163_spill] sm:$0xff] %v10280_v18  ;;  %v7813_v26 = vld [vmem:[%s13039_s5 + $0x1d8] sm:$0xff]  ;;  %v10316_v58 = vadd.f32 %v7816_v16, %v9571_v0 }
 0x31d   : > { %v10250_v11 = vpop.eup %7118  ;;  %3728 = vadd.xlane.f32.xlu1 %v3727_v54  ;;  %v10286_v44 = vadd.f32 %v7813_v26, %v9503_v32  ;;  %13863 = vst [vmem:[#allocation165_spill] sm:$0xff] %v10298_v12  ;;  %v7815_v32 = vld [vmem:[%s13039_s5 + $0x1e8] sm:$0xff]  ;;  %v13869_v0 = vld [vmem:[#allocation97_spill] sm:$0xff] }
 0x31e   : > { %13857 = vst [vmem:[#allocation159_spill] sm:$0xff] %v10250_v11  ;;  %v10252_v38 = vpop.eup %7120  ;;  %13860 = vst [vmem:[#allocation162_spill] sm:$0xff] %v10266_v47  ;;  %v2665_v19 = vmax.f32 %v10260_v25, %v10266_v47  ;;  %v10304_v26 = vadd.f32 %v7815_v32, %v9539_v7  ;;  %v7817_v7 = vld [vmem:[%s13039_s5 + $0x1f8] sm:$0xff]  ;;  %v10336_v16 = vadd.f32 %v13869_v0, %v9613_v37 }
 0x31f   : > { %13858 = vst [vmem:[#allocation160_spill] sm:$0xff] %v10252_v38  ;;  %v3730_v54 = vadd.f32 %v10252_v38, %v10250_v11  ;;  %v10270_v60 = vpop.f32.mrb[174].mxu1  ;;  %2663 = vmax.xlane.f32.xlu0 %v2662_v57  ;;  %13862 = vst [vmem:[#allocation164_spill] sm:$0xff] %v10286_v44  ;;  %v2668_v11 = vmax.f32 %v10280_v18, %v10286_v44  ;;  %v10322_v32 = vadd.f32 %v7817_v7, %v9577_v27 }
 0x320   : > { %v10272_v43 = vpop.f32.mrb[175].mxu1  ;;  %13864 = vst [vmem:[#allocation166_spill] sm:$0xff] %v10304_v26  ;;  %v2671_v44 = vmax.f32 %v10298_v12, %v10304_v26  ;;  %13865 = vst [vmem:[#allocation167_spill] sm:$0xff] %v10316_v58  ;;  %v13867_v12 = vld [vmem:[#allocation95_spill] sm:$0xff]  ;;  %v10346_v7 = vadd.f32 %v9438_v63, %v9643_v9  ;;  %v13876_v63 = vld [vmem:[#allocation104_spill] sm:$0xff] }
 0x321   : > { %3731 = vadd.xlane.f32.xlu1 %v3730_v54  ;;  %13866 = vst [vmem:[#allocation168_spill] sm:$0xff] %v10322_v32  ;;  %v2674_v26 = vmax.f32 %v10316_v58, %v10322_v32  ;;  %v10332_v47 = vadd.f32 %v13867_v12, %v9607_v6  ;;  %13870 = vst [vmem:[#allocation97_spill] sm:$0xff] %v10336_v16  ;;  %v10350_v6 = vadd.f32 %v9447_v4, %v9649_v36 }
 0x322   : > { %13871 = vst [vmem:[#allocation169_spill] sm:$0xff] %v10346_v7  ;;  %v10364_v9 = vadd.f32 %v13876_v63, %v9683_v55 }
 0x323   : > { %v10288_v57 = vpop.f32.mrb[176].mxu1  ;;  %2666 = vmax.xlane.f32.xlu0 %v2665_v19  ;;  %13868 = vst [vmem:[#allocation95_spill] sm:$0xff] %v10332_v47  ;;  %13872 = vst [vmem:[#allocation170_spill] sm:$0xff] %v10350_v6  ;;  %v2680_v0 = vmax.f32 %v10346_v7, %v10350_v6  ;;  %v13880_v6 = vld [vmem:[#allocation10_spill] sm:$0xff] }
 0x324   : > { %v10290_v54 = vpop.f32.mrb[177].mxu1  ;;  %13877 = vst [vmem:[#allocation104_spill] sm:$0xff] %v10364_v9  ;;  %v10374_v7 = vadd.f32 %v13880_v6, %v9713_v8 }
 0x326   : > { %13881 = vst [vmem:[#allocation10_spill] sm:$0xff] %v10374_v7 }
 0x327   : > { %v10306_v19 = vpop.f32.mrb[178].mxu1  ;;  %2669 = vmax.xlane.f32.xlu0 %v2668_v11 }
 0x328   : > { %v10308_v38 = vpop.f32.mrb[179].mxu1 }
 0x32b   : > { %v10324_v11 = vpop.f32.mrb[180].mxu1  ;;  %2672 = vmax.xlane.f32.xlu0 %v2671_v44  ;;  %v2677_v44 = vmax.f32 %v10332_v47, %v10336_v16  ;;  %v13874_v16 = vld [vmem:[#allocation102_spill] sm:$0xff] }
 0x32c   : > { %v10326_v18 = vpop.f32.mrb[181].mxu1  ;;  %v10360_v47 = vadd.f32 %v13874_v16, %v9677_v14  ;;  %v13882_v14 = vld [vmem:[#allocation106_spill] sm:$0xff] }
 0x32d   : > { %v10378_v16 = vadd.f32 %v13882_v14, %v9719_v51 }
 0x32e   : > { %13875 = vst [vmem:[#allocation102_spill] sm:$0xff] %v10360_v47  ;;  %v2683_v58 = vmax.f32 %v10360_v47, %v10364_v9  ;;  %v13888_v9 = vld [vmem:[#allocation124_spill] sm:$0xff]  ;;  %v13889_v47 = vld [vmem:[#allocation107_spill] sm:$0xff] }
 0x32f   : > { %v10338_v25 = vpop.f32.mrb[182].mxu1  ;;  %2675 = vmax.xlane.f32.xlu0 %v2674_v26  ;;  %v3660_v26 = vpop.xlane.xlu0 %3659  ;;  %13883 = vst [vmem:[#allocation106_spill] sm:$0xff] %v10378_v16  ;;  %v10390_v8 = vadd.f32 %v13889_v47, %v13888_v9  ;;  %v2686_v51 = vmax.f32 %v10374_v7, %v10378_v16  ;;  %v13897_v7 = vld [vmem:[#allocation129_spill] sm:$0xff] }
 0x330   : > { %v10340_v27 = vpop.f32.mrb[183].mxu1 }
 0x331   : > { %13890 = vst [vmem:[#allocation124_spill] sm:$0xff] %v10390_v8 }
 0x333   : > { %v3651_v12 = vpop.xlane.xlu1 %3650  ;;  %v10352_v32 = vpop.f32.mrb[184].mxu1  ;;  %2678 = vmax.xlane.f32.xlu0 %v2677_v44 }
 0x334   : > { %7122 = vrcp.f32 %v3651_v12  ;;  %v10354_v37 = vpop.f32.mrb[185].mxu1 }
 0x335   : > { %13873 = vst [vmem:[#allocation171_spill] sm:$0xff] %v10354_v37 }
 0x337   : > { %v3654_v4 = vpop.xlane.xlu1 %3653  ;;  %v10366_v36 = vpop.f32.mrb[186].mxu1  ;;  %2681 = vmax.xlane.f32.xlu0 %v2680_v0 }
 0x338   : > { %13878 = vst [vmem:[#allocation172_spill] sm:$0xff] %v10366_v36  ;;  %7124 = vrcp.f32 %v3654_v4  ;;  %v10368_v44 = vpop.f32.mrb[187].mxu1  ;;  %v3663_v12 = vpop.xlane.xlu0 %3662  ;;  %v13886_v4 = vld [vmem:[#allocation13_spill] sm:$0xff] }
 0x339   : > { %13879 = vst [vmem:[#allocation173_spill] sm:$0xff] %v10368_v44  ;;  %7126 = vrcp.f32 %v3660_v26  ;;  %v10386_v49 = vadd.f32 %v13886_v4, %v9747_v56  ;;  %v13907_v44 = vld [vmem:[#allocation15_spill] sm:$0xff] }
 0x33b   : > { %v3657_v55 = vpop.xlane.xlu1 %3656  ;;  %v10380_v63 = vpop.f32.mrb[188].mxu1  ;;  %2684 = vmax.xlane.f32.xlu0 %v2683_v58  ;;  %13887 = vst [vmem:[#allocation13_spill] sm:$0xff] %v10386_v49  ;;  %v13892_v58 = vld [vmem:[#allocation28_spill] sm:$0xff]  ;;  %v2689_v47 = vmax.f32 %v10386_v49, %v10390_v8  ;;  %v13903_v8 = vld [vmem:[#allocation86_spill] sm:$0xff] }
 0x33c   : > { %13884 = vst [vmem:[#allocation174_spill] sm:$0xff] %v10380_v63  ;;  %7128 = vrcp.f32 %v3657_v55  ;;  %v10382_v0 = vpop.f32.mrb[189].mxu1  ;;  %v3666_v6 = vpop.xlane.xlu0 %3665 }
 0x33d   : > { %13885 = vst [vmem:[#allocation175_spill] sm:$0xff] %v10382_v0  ;;  %7130 = vrcp.f32 %v3663_v12  ;;  %v13896_v0 = vld [vmem:[#allocation12_spill] sm:$0xff] }
 0x33e   : > { %v7123_v41 = vpop.eup %7122  ;;  %v10404_v16 = vadd.f32 %v13896_v0, %v13895_v23  ;;  %7132 = vrcp.f32 %v3666_v6 }
 0x33f   : > { %v3669_v26 = vpop.xlane.xlu1 %3668  ;;  %v10394_v14 = vpop.f32.mrb[190].mxu1  ;;  %v4035_v55 = vmul.f32 %v7123_v41, %v13892_v58  ;;  %v4034_v30 = vmul.f32 %v7123_v41, %v13893_v34  ;;  %2687 = vmax.xlane.f32.xlu0 %v2686_v51  ;;  %v13900_v58 = vld [vmem:[#allocation96_spill] sm:$0xff]  ;;  %v13901_v41 = vld [vmem:[#allocation98_spill] sm:$0xff] }
 0x340   : > { %13891 = vst [vmem:[#allocation107_spill] sm:$0xff] %v10394_v14  ;;  %v10398_v56 = vpop.f32.mrb[191].mxu1  ;;  %v2583_v9 = vpop.xlane.xlu0 %2582  ;;  %v13898_v14 = vld [vmem:[#allocation109_spill] sm:$0xff] }
 0x341   : > { %13894 = vst [vmem:[#allocation28_spill] sm:$0xff] %v10398_v56  ;;  %4617 = vmatprep.mubr.f32.mxu0 %v4035_v55  ;;  %v10408_v63 = vadd.f32 %v13898_v14, %v13897_v7  ;;  %v2933_v34 = vsub.f32 %v13900_v58, %v2583_v9  ;;  %v2934_v12 = vsub.f32 %v13901_v41, %v2583_v9  ;;  %v13904_v55 = vld [vmem:[#allocation29_spill] sm:$0xff]  ;;  %v13906_v14 = vld [vmem:[#allocation48_spill] sm:$0xff] }
 0x342   : > { %v7125_v4 = vpop.eup %7124  ;;  %4618 = vmatmul.mubr.f32.gmra.mrb[40].mxu0 %v4034_v30  ;;  %v10420_v58 = vadd.f32 %v13907_v44, %v13906_v14  ;;  %v13909_v9 = vld [vmem:[#allocation21_spill] sm:$0xff]  ;;  %v13910_v30 = vld [vmem:[#allocation111_spill] sm:$0xff]  ;;  %v13914_v14 = vld [vmem:[#allocation92_spill] sm:$0xff] }
 0x343   : > { %13899 = vst [vmem:[#allocation36_spill] sm:$0xff] %v10408_v63  ;;  %v3672_v51 = vpop.xlane.xlu1 %3671  ;;  %v10412_v56 = vpop.f32.mrb[192].mxu1  ;;  %v4038_v49 = vmul.f32 %v7125_v4, %v13903_v8  ;;  %v4037_v35 = vmul.f32 %v7125_v4, %v13904_v55  ;;  %v3253_v24 = vmul.f32 1.442695, %v2933_v34  ;;  %v3255_v23 = vmul.f32 1.442695, %v2934_v12  ;;  %2690 = vmax.xlane.f32.xlu0 %v2689_v47 }
 0x344   : > { %13902 = vst [vmem:[#allocation128_spill] sm:$0xff] %v10412_v56  ;;  %v10416_v0 = vpop.f32.mrb[193].mxu1  ;;  %v7127_v7 = vpop.eup %7126  ;;  %13908 = vst [vmem:[#allocation129_spill] sm:$0xff] %v10420_v58  ;;  %v10424_v41 = vadd.f32 %v13910_v30, %v13909_v9  ;;  %v2692_v6 = vmax.f32 %v10404_v16, %v10408_v63  ;;  %v13912_v4 = vld [vmem:[#allocation99_spill] sm:$0xff]  ;;  %v13913_v34 = vld [vmem:[#allocation100_spill] sm:$0xff] }
 0x345   : > { %13905 = vst [vmem:[#allocation12_spill] sm:$0xff] %v10416_v0  ;;  %v2586_v56 = vpop.xlane.xlu0 %2585  ;;  %4622 = vmatprep.mubr.f32.mxu0 %v4038_v49  ;;  %7134 = vpow2.f32 %v3253_v24  ;;  %v13915_v9 = vld [vmem:[#allocation90_spill] sm:$0xff] }
 0x346   : > { %13911 = vst [vmem:[#allocation109_spill] sm:$0xff] %v10424_v41  ;;  %v7129_v8 = vpop.eup %7128  ;;  %v2935_v47 = vsub.f32 %v13912_v4, %v2586_v56  ;;  %v2936_v12 = vsub.f32 %v13913_v34, %v2586_v56  ;;  %4623 = vmatmul.mubr.f32.gmra.mrb[42].mxu0 %v4037_v35  ;;  %7136 = vpow2.f32 %v3255_v23  ;;  %v2695_v24 = vmax.f32 %v10420_v58, %v10424_v41  ;;  %v13916_v56 = vld [vmem:[#allocation14_spill] sm:$0xff]  ;;  %v13918_v4 = vld [vmem:[#allocation81_spill] sm:$0xff] }
 0x347   : > { %v3675_v55 = vpop.xlane.xlu1 %3674  ;;  %v10430_v44 = vpop.f32.mrb[194].mxu1  ;;  %v4041_v0 = vmul.f32 %v7129_v8, %v13914_v14  ;;  %v4040_v30 = vmul.f32 %v7129_v8, %v13915_v9  ;;  %7138 = vrcp.f32 %v3669_v26  ;;  %2693 = vmax.xlane.f32.xlu0 %v2692_v6  ;;  %v10440_v35 = vadd.f32 %v13916_v56, %v9855_v50  ;;  %v13919_v8 = vld [vmem:[#allocation113_spill] sm:$0xff]  ;;  %v13921_v6 = vld [vmem:[#allocation103_spill] sm:$0xff] }
 0x348   : > { %v3257_v49 = vmul.f32 1.442695, %v2935_v47  ;;  %v3259_v36 = vmul.f32 1.442695, %v2936_v12  ;;  %v10434_v37 = vpop.f32.mrb[195].mxu1  ;;  %v4044_v34 = vmul.f32 %v7127_v7, %v13918_v4  ;;  %v7131_v14 = vpop.eup %7130  ;;  %v10445_v26 = vadd.f32 %v13919_v8, %v9861_v29  ;;  %v13922_v12 = vld [vmem:[#allocation105_spill] sm:$0xff] }
 0x349   : > { %13917 = vst [vmem:[#allocation96_spill] sm:$0xff] %v10440_v35  ;;  %v2589_v23 = vpop.xlane.xlu0 %2588  ;;  %4627 = vmatprep.mubr.f32.mxu0 %v4041_v0  ;;  %v13923_v58 = vld [vmem:[#allocation9_spill] sm:$0xff] }
 0x34a   : > { %13920 = vst [vmem:[#allocation98_spill] sm:$0xff] %v10445_v26  ;;  %7140 = vpow2.f32 %v3257_v49  ;;  %v2937_v47 = vsub.f32 %v13921_v6, %v2589_v23  ;;  %v2938_v9 = vsub.f32 %v13922_v12, %v2589_v23  ;;  %4628 = vmatmul.mubr.f32.gmra.mrb[44].mxu0 %v4040_v30  ;;  %v4043_v29 = vmul.f32 %v7127_v7, %v13923_v58  ;;  %v13924_v49 = vld [vmem:[#allocation116_spill] sm:$0xff]  ;;  %v13926_v23 = vld [vmem:[#allocation118_spill] sm:$0xff]  ;;  %v7133_v12 = vpop.eup %7132 }
 0x34b   : > { %7142 = vpow2.f32 %v3259_v36  ;;  %v3678_v41 = vpop.xlane.xlu1 %3677  ;;  %4632 = vmatprep.mubr.f32.mxu0 %v4044_v34  ;;  %v10449_v50 = vpop.f32.mrb[196].mxu1  ;;  %2696 = vmax.xlane.f32.xlu0 %v2695_v24  ;;  %v10456_v8 = vadd.f32 %v13924_v49, %v9886_v48  ;;  %v10460_v30 = vadd.f32 %v13926_v23, %v9891_v52  ;;  %v13928_v34 = vld [vmem:[#allocation30_spill] sm:$0xff]  ;;  %v13929_v24 = vld [vmem:[#allocation60_spill] sm:$0xff] }
 0x34c   : > { %7144 = vrcp.f32 %v3672_v51  ;;  %v3261_v0 = vmul.f32 1.442695, %v2937_v47  ;;  %v3263_v56 = vmul.f32 1.442695, %v2938_v9  ;;  %v10451_v4 = vpop.f32.mrb[197].mxu1  ;;  %v4047_v6 = vmul.f32 %v7131_v14, %v13928_v34  ;;  %v13930_v9 = vld [vmem:[#allocation61_spill] sm:$0xff] }
 0x34d   : > { %13925 = vst [vmem:[#allocation86_spill] sm:$0xff] %v10456_v8  ;;  %13927 = vst [vmem:[#allocation29_spill] sm:$0xff] %v10460_v30  ;;  %v2592_v36 = vpop.xlane.xlu0 %2591  ;;  %v2698_v51 = vmax.f32 %v10440_v35, %v10445_v26  ;;  %v13932_v26 = vld [vmem:[#allocation89_spill] sm:$0xff] }
 0x34e   : > { %7146 = vpow2.f32 %v3261_v0  ;;  %v2939_v47 = vsub.f32 %v13929_v24, %v2592_v36  ;;  %v2940_v7 = vsub.f32 %v13930_v9, %v2592_v36  ;;  %4633 = vmatmul.mubr.f32.gmra.mrb[46].mxu0 %v4043_v29  ;;  %v4046_v0 = vmul.f32 %v7131_v14, %v13932_v26  ;;  %v13940_v26 = vld [vmem:[#allocation63_spill] sm:$0xff] }
 0x34f   : > { %7148 = vpow2.f32 %v3263_v56  ;;  %v3681_v48 = vpop.xlane.xlu1 %3680  ;;  %4637 = vmatprep.mubr.f32.mxu0 %v4047_v6  ;;  %v10467_v58 = vpop.f32.mrb[198].mxu1  ;;  %2699 = vmax.xlane.f32.xlu0 %v2698_v51  ;;  %v2701_v29 = vmax.f32 %v10456_v8, %v10460_v30  ;;  %v13934_v56 = vld [vmem:[#allocation121_spill] sm:$0xff]  ;;  %v13936_v6 = vld [vmem:[#allocation123_spill] sm:$0xff] }
 0x350   : > { %v10469_v52 = vpop.eup %7134  ;;  %7150 = vrcp.f32 %v3675_v55  ;;  %v3265_v49 = vmul.f32 1.442695, %v2939_v47  ;;  %v3267_v23 = vmul.f32 1.442695, %v2940_v7  ;;  %v10471_v34 = vpop.f32.mrb[199].mxu1  ;;  %v10480_v36 = vadd.f32 %v13934_v56, %v9916_v42  ;;  %v13938_v47 = vld [vmem:[#allocation93_spill] sm:$0xff] }
 0x351   : > { %13931 = vst [vmem:[#allocation48_spill] sm:$0xff] %v10469_v52  ;;  %v10474_v35 = vpop.eup %7136  ;;  %v10484_v24 = vadd.f32 %v13936_v6, %v9921_v2  ;;  %v2595_v55 = vpop.xlane.xlu0 %2594  ;;  %v4050_v51 = vmul.f32 %v7133_v12, %v13938_v47  ;;  %v13939_v7 = vld [vmem:[#allocation62_spill] sm:$0xff] }
 0x352   : > { %13933 = vst [vmem:[#allocation15_spill] sm:$0xff] %v10474_v35  ;;  %13935 = vst [vmem:[#allocation21_spill] sm:$0xff] %v10480_v36  ;;  %v7139_v9 = vpop.eup %7138  ;;  %7152 = vpow2.f32 %v3265_v49  ;;  %v2941_v14 = vsub.f32 %v13939_v7, %v2595_v55  ;;  %v2942_v63 = vsub.f32 %v13940_v26, %v2595_v55  ;;  %v3733_v30 = vadd.f32 %v10474_v35, %v10469_v52  ;;  %v13942_v7 = vld [vmem:[#allocation88_spill] sm:$0xff]  ;;  %v13946_v52 = vld [vmem:[#allocation127_spill] sm:$0xff] }
 0x353   : > { %13937 = vst [vmem:[#allocation111_spill] sm:$0xff] %v10484_v24  ;;  %4638 = vmatmul.mubr.f32.gmra.mrb[48].mxu0 %v4046_v0  ;;  %7154 = vpow2.f32 %v3267_v23  ;;  %v3684_v42 = vpop.xlane.xlu1 %3683  ;;  %v10491_v56 = vpop.f32.mrb[200].mxu1  ;;  %2702 = vmax.xlane.f32.xlu0 %v2701_v29  ;;  %v4049_v55 = vmul.f32 %v7133_v12, %v13942_v7  ;;  %v2704_v23 = vmax.f32 %v10480_v36, %v10484_v24  ;;  %v13944_v0 = vld [vmem:[#allocation126_spill] sm:$0xff]  ;;  %v13949_v35 = vld [vmem:[#allocation108_spill] sm:$0xff] }
 0x354   : > { %4642 = vmatprep.mubr.f32.mxu0 %v4050_v51  ;;  %v10493_v2 = vpop.eup %7140  ;;  %7156 = vrcp.f32 %v3678_v41  ;;  %v3269_v6 = vmul.f32 1.442695, %v2941_v14  ;;  %v3271_v47 = vmul.f32 1.442695, %v2942_v63  ;;  %3734 = vadd.xlane.f32.xlu1 %v3733_v30  ;;  %v10495_v49 = vpop.f32.mrb[201].mxu1  ;;  %v10504_v51 = vadd.f32 %v13944_v0, %v9948_v40  ;;  %v13948_v30 = vld [vmem:[#allocation94_spill] sm:$0xff] }
 0x355   : > { %13941 = vst [vmem:[#allocation99_spill] sm:$0xff] %v10493_v2  ;;  %v10498_v26 = vpop.eup %7142  ;;  %v10508_v41 = vadd.f32 %v13946_v52, %v9953_v62  ;;  %v2598_v63 = vpop.xlane.xlu0 %2597  ;;  %v4053_v29 = vmul.f32 %v7139_v9, %v13948_v30  ;;  %v13950_v7 = vld [vmem:[#allocation110_spill] sm:$0xff] }
 0x356   : > { %13943 = vst [vmem:[#allocation100_spill] sm:$0xff] %v10498_v26  ;;  %13945 = vst [vmem:[#allocation92_spill] sm:$0xff] %v10504_v51  ;;  %v7145_v14 = vpop.eup %7144  ;;  %7158 = vpow2.f32 %v3269_v6  ;;  %v2943_v12 = vsub.f32 %v13949_v35, %v2598_v63  ;;  %v2944_v8 = vsub.f32 %v13950_v7, %v2598_v63  ;;  %v3736_v24 = vadd.f32 %v10498_v26, %v10493_v2  ;;  %v13952_v35 = vld [vmem:[#allocation32_spill] sm:$0xff] }
 0x357   : > { %13947 = vst [vmem:[#allocation90_spill] sm:$0xff] %v10508_v41  ;;  %4643 = vmatmul.mubr.f32.gmra.mrb[50].mxu0 %v4049_v55  ;;  %7160 = vpow2.f32 %v3271_v47  ;;  %v3687_v40 = vpop.xlane.xlu1 %3686  ;;  %v10515_v0 = vpop.f32.mrb[202].mxu1  ;;  %2705 = vmax.xlane.f32.xlu0 %v2704_v23  ;;  %v4052_v63 = vmul.f32 %v7139_v9, %v13952_v35  ;;  %v2707_v47 = vmax.f32 %v10504_v51, %v10508_v41  ;;  %v13954_v55 = vld [vmem:[#allocation131_spill] sm:$0xff]  ;;  %v13956_v2 = vld [vmem:[#allocation132_spill] sm:$0xff]  ;;  %v13960_v35 = vld [vmem:[#allocation65_spill] sm:$0xff] }
 0x358   : > { %4647 = vmatprep.mubr.f32.mxu0 %v4053_v29  ;;  %v10517_v62 = vpop.eup %7146  ;;  %7162 = vrcp.f32 %v3681_v48  ;;  %v3273_v52 = vmul.f32 1.442695, %v2943_v12  ;;  %v3275_v30 = vmul.f32 1.442695, %v2944_v8  ;;  %3737 = vadd.xlane.f32.xlu1 %v3736_v24  ;;  %v10519_v6 = vpop.f32.mrb[203].mxu1  ;;  %v10528_v29 = vadd.f32 %v13954_v55, %v9982_v5  ;;  %v13958_v24 = vld [vmem:[#allocation35_spill] sm:$0xff] }
 0x359   : > { %13951 = vst [vmem:[#allocation14_spill] sm:$0xff] %v10517_v62  ;;  %v10522_v7 = vpop.eup %7148  ;;  %v10532_v48 = vadd.f32 %v13956_v2, %v9984_v21  ;;  %v2601_v8 = vpop.xlane.xlu0 %2600  ;;  %v4056_v23 = vmul.f32 %v7145_v14, %v13958_v24  ;;  %v13959_v26 = vld [vmem:[#allocation64_spill] sm:$0xff] }
 0x35a   : > { %13953 = vst [vmem:[#allocation81_spill] sm:$0xff] %v10522_v7  ;;  %13955 = vst [vmem:[#allocation113_spill] sm:$0xff] %v10528_v29  ;;  %v7151_v12 = vpop.eup %7150  ;;  %7164 = vpow2.f32 %v3273_v52  ;;  %v2945_v9 = vsub.f32 %v13959_v26, %v2601_v8  ;;  %v2946_v36 = vsub.f32 %v13960_v35, %v2601_v8  ;;  %v3739_v41 = vadd.f32 %v10522_v7, %v10517_v62  ;;  %v13962_v26 = vld [vmem:[#allocation34_spill] sm:$0xff]  ;;  %v13968_v62 = vld [vmem:[#allocation112_spill] sm:$0xff] }
 0x35b   : > { %13957 = vst [vmem:[#allocation103_spill] sm:$0xff] %v10532_v48  ;;  %4648 = vmatmul.mubr.f32.gmra.mrb[52].mxu0 %v4052_v63  ;;  %7166 = vpow2.f32 %v3275_v30  ;;  %v3690_v5 = vpop.xlane.xlu1 %3689  ;;  %v10539_v55 = vpop.f32.mrb[204].mxu1  ;;  %2708 = vmax.xlane.f32.xlu0 %v2707_v47  ;;  %v4055_v8 = vmul.f32 %v7145_v14, %v13962_v26  ;;  %v2710_v30 = vmax.f32 %v10528_v29, %v10532_v48  ;;  %v13964_v63 = vld [vmem:[#allocation49_spill] sm:$0xff]  ;;  %v13969_v26 = vld [vmem:[#allocation114_spill] sm:$0xff]  ;;  %v14010_v29 = vld [vmem:[#allocation76_spill] sm:$0xff] }
 0x35c   : > { %4652 = vmatprep.mubr.f32.mxu0 %v4056_v23  ;;  %v10541_v21 = vpop.eup %7152  ;;  %7168 = vrcp.f32 %v3684_v42  ;;  %v3277_v2 = vmul.f32 1.442695, %v2945_v9  ;;  %v3279_v24 = vmul.f32 1.442695, %v2946_v36  ;;  %3740 = vadd.xlane.f32.xlu1 %v3739_v41  ;;  %v10543_v52 = vpop.f32.mrb[205].mxu1  ;;  %v10552_v23 = vadd.f32 %v13964_v63, %v10012_v61  ;;  %v13967_v41 = vld [vmem:[#allocation101_spill] sm:$0xff] }
 0x35d   : > { %13961 = vst [vmem:[#allocation105_spill] sm:$0xff] %v10541_v21  ;;  %v10546_v35 = vpop.eup %7154  ;;  %v10556_v42 = vadd.f32 %v9845_v45, %v10014_v53  ;;  %v2604_v36 = vpop.xlane.xlu0 %2603  ;;  %v4059_v47 = vmul.f32 %v7151_v12, %v13967_v41 }
 0x35e   : > { %13963 = vst [vmem:[#allocation9_spill] sm:$0xff] %v10546_v35  ;;  %13965 = vst [vmem:[#allocation116_spill] sm:$0xff] %v10552_v23  ;;  %v7157_v9 = vpop.eup %7156  ;;  %7170 = vpow2.f32 %v3277_v2  ;;  %v2947_v14 = vsub.f32 %v13968_v62, %v2604_v36  ;;  %v2948_v7 = vsub.f32 %v13969_v26, %v2604_v36  ;;  %v3742_v48 = vadd.f32 %v10546_v35, %v10541_v21  ;;  %v13971_v62 = vld [vmem:[#allocation11_spill] sm:$0xff] }
 0x35f   : > { %13966 = vst [vmem:[#allocation118_spill] sm:$0xff] %v10556_v42  ;;  %4653 = vmatmul.mubr.f32.gmra.mrb[54].mxu0 %v4055_v8  ;;  %7172 = vpow2.f32 %v3279_v24  ;;  %v3693_v61 = vpop.xlane.xlu1 %3692  ;;  %v10563_v63 = vpop.f32.mrb[206].mxu1  ;;  %2711 = vmax.xlane.f32.xlu0 %v2710_v30  ;;  %v4058_v36 = vmul.f32 %v7151_v12, %v13971_v62  ;;  %v2713_v24 = vmax.f32 %v10552_v23, %v10556_v42  ;;  %v13977_v62 = vld [vmem:[#allocation119_spill] sm:$0xff] }
 0x360   : > { %4657 = vmatprep.mubr.f32.mxu0 %v4059_v47  ;;  %v10565_v45 = vpop.eup %7158  ;;  %7174 = vrcp.f32 %v3687_v40  ;;  %v3281_v53 = vmul.f32 1.442695, %v2947_v14  ;;  %v3283_v41 = vmul.f32 1.442695, %v2948_v7  ;;  %3743 = vadd.xlane.f32.xlu1 %v3742_v48  ;;  %v10567_v2 = vpop.f32.mrb[207].mxu1  ;;  %v10576_v8 = vadd.f32 %v9868_v3, %v10036_v1  ;;  %v13975_v48 = vld [vmem:[#allocation39_spill] sm:$0xff] }
 0x361   : > { %13970 = vst [vmem:[#allocation30_spill] sm:$0xff] %v10565_v45  ;;  %v10570_v26 = vpop.eup %7160  ;;  %v10580_v40 = vadd.f32 %v9877_v33, %v10038_v13  ;;  %v2607_v7 = vpop.xlane.xlu0 %2606  ;;  %v4062_v30 = vmul.f32 %v7157_v9, %v13975_v48  ;;  %v13976_v14 = vld [vmem:[#allocation117_spill] sm:$0xff]  ;;  %v13979_v48 = vld [vmem:[#allocation38_spill] sm:$0xff] }
 0x362   : > { %13972 = vst [vmem:[#allocation60_spill] sm:$0xff] %v10570_v26  ;;  %13973 = vst [vmem:[#allocation61_spill] sm:$0xff] %v10576_v8  ;;  %v7163_v47 = vpop.eup %7162  ;;  %7176 = vpow2.f32 %v3281_v53  ;;  %v2949_v12 = vsub.f32 %v13976_v14, %v2607_v7  ;;  %v2950_v21 = vsub.f32 %v13977_v62, %v2607_v7  ;;  %v3745_v35 = vadd.f32 %v10570_v26, %v10565_v45  ;;  %v13983_v62 = vld [vmem:[#allocation52_spill] sm:$0xff] }
 0x363   : > { %13974 = vst [vmem:[#allocation89_spill] sm:$0xff] %v10580_v40  ;;  %4658 = vmatmul.mubr.f32.gmra.mrb[56].mxu0 %v4058_v36  ;;  %7178 = vpow2.f32 %v3283_v41  ;;  %v10587_v3 = vpop.f32.mrb[208].mxu1  ;;  %2714 = vmax.xlane.f32.xlu0 %v2713_v24  ;;  %v4061_v14 = vmul.f32 %v7157_v9, %v13979_v48  ;;  %v2716_v36 = vmax.f32 %v10576_v8, %v10580_v40  ;;  %v13985_v24 = vld [vmem:[#allocation41_spill] sm:$0xff]  ;;  %v13986_v9 = vld [vmem:[#allocation122_spill] sm:$0xff]  ;;  %v13987_v26 = vld [vmem:[#allocation68_spill] sm:$0xff] }
 0x364   : > { %4662 = vmatprep.mubr.f32.mxu0 %v4062_v30  ;;  %v10589_v1 = vpop.eup %7164  ;;  %7180 = vrcp.f32 %v3690_v5  ;;  %v3285_v33 = vmul.f32 1.442695, %v2949_v12  ;;  %v3287_v13 = vmul.f32 1.442695, %v2950_v21  ;;  %3746 = vadd.xlane.f32.xlu1 %v3745_v35  ;;  %v10591_v53 = vpop.f32.mrb[209].mxu1  ;;  %v10600_v41 = vadd.f32 %v9898_v59, %v10060_v39  ;;  %v13982_v30 = vld [vmem:[#allocation152_spill] sm:$0xff] }
 0x365   : > { %13978 = vst [vmem:[#allocation121_spill] sm:$0xff] %v10589_v1  ;;  %v10594_v7 = vpop.eup %7166  ;;  %v10604_v5 = vadd.f32 %v13983_v62, %v13982_v30  ;;  %v3696_v21 = vpop.xlane.xlu1 %3695  ;;  %v4065_v12 = vmul.f32 %v7163_v47, %v13985_v24  ;;  %v13989_v24 = vld [vmem:[#allocation40_spill] sm:$0xff]  ;;  %v13998_v8 = vld [vmem:[#allocation73_spill] sm:$0xff] }
 0x366   : > { %13980 = vst [vmem:[#allocation123_spill] sm:$0xff] %v10594_v7  ;;  %13981 = vst [vmem:[#allocation93_spill] sm:$0xff] %v10600_v41  ;;  %v2610_v35 = vpop.xlane.xlu0 %2609  ;;  %v7169_v45 = vpop.eup %7168  ;;  %7182 = vpow2.f32 %v3285_v33  ;;  %v3748_v40 = vadd.f32 %v10594_v7, %v10589_v1  ;;  %v13994_v1 = vld [vmem:[#allocation71_spill] sm:$0xff]  ;;  %v13995_v7 = vld [vmem:[#allocation133_spill] sm:$0xff] }
 0x367   : > { %13984 = vst [vmem:[#allocation62_spill] sm:$0xff] %v10604_v5  ;;  %v2951_v48 = vsub.f32 %v13986_v9, %v2610_v35  ;;  %v2952_v42 = vsub.f32 %v13987_v26, %v2610_v35  ;;  %4663 = vmatmul.mubr.f32.gmra.mrb[58].mxu0 %v4061_v14  ;;  %7184 = vpow2.f32 %v3287_v13  ;;  %v10611_v59 = vpop.f32.mrb[210].mxu1  ;;  %2717 = vmax.xlane.f32.xlu0 %v2716_v36  ;;  %v13991_v13 = vld [vmem:[#allocation70_spill] sm:$0xff] }
 0x368   : > { %4667 = vmatprep.mubr.f32.mxu0 %v4065_v12  ;;  %v10613_v39 = vpop.eup %7170  ;;  %7186 = vrcp.f32 %v3693_v61  ;;  %3749 = vadd.xlane.f32.xlu1 %v3748_v40  ;;  %v10615_v33 = vpop.f32.mrb[211].mxu1  ;;  %v4064_v9 = vmul.f32 %v7163_v47, %v13989_v24  ;;  %v2719_v14 = vmax.f32 %v10600_v41, %v10604_v5  ;;  %v13992_v35 = vld [vmem:[#allocation54_spill] sm:$0xff]  ;;  %v10628_v61 = vadd.f32 %v13995_v7, %v13994_v1  ;;  %v13997_v40 = vld [vmem:[#allocation43_spill] sm:$0xff] }
 0x369   : > { %13988 = vst [vmem:[#allocation63_spill] sm:$0xff] %v10613_v39  ;;  %v3289_v30 = vmul.f32 1.442695, %v2951_v48  ;;  %v3291_v62 = vmul.f32 1.442695, %v2952_v42  ;;  %v10618_v26 = vpop.eup %7172  ;;  %v10624_v12 = vadd.f32 %v13992_v35, %v13991_v13  ;;  %v4068_v36 = vmul.f32 %v7169_v45, %v13997_v40  ;;  %v13999_v24 = vld [vmem:[#allocation6_spill] sm:$0xff]  ;;  %v3699_v13 = vpop.xlane.xlu1 %3698 }
 0x36a   : > { %13990 = vst [vmem:[#allocation88_spill] sm:$0xff] %v10618_v26  ;;  %13996 = vst [vmem:[#allocation127_spill] sm:$0xff] %v10628_v61  ;;  %v2613_v42 = vpop.xlane.xlu0 %2612  ;;  %v7175_v48 = vpop.eup %7174  ;;  %v3751_v5 = vadd.f32 %v10618_v26, %v10613_v39  ;;  %v14006_v26 = vld [vmem:[#allocation157_spill] sm:$0xff]  ;;  %v14007_v41 = vld [vmem:[#allocation139_spill] sm:$0xff] }
 0x36b   : > { %13993 = vst [vmem:[#allocation126_spill] sm:$0xff] %v10624_v12  ;;  %7188 = vpow2.f32 %v3289_v30  ;;  %v2953_v47 = vsub.f32 %v13998_v8, %v2613_v42  ;;  %v2954_v23 = vsub.f32 %v13999_v24, %v2613_v42  ;;  %4668 = vmatmul.mubr.f32.gmra.mrb[60].mxu0 %v4064_v9  ;;  %v10635_v35 = vpop.f32.mrb[212].mxu1  ;;  %2720 = vmax.xlane.f32.xlu0 %v2719_v14  ;;  %v14001_v8 = vld [vmem:[#allocation42_spill] sm:$0xff]  ;;  %v14003_v9 = vld [vmem:[#allocation67_spill] sm:$0xff] }
 0x36c   : > { %7190 = vpow2.f32 %v3291_v62  ;;  %4672 = vmatprep.mubr.f32.mxu0 %v4068_v36  ;;  %v10637_v1 = vpop.eup %7176  ;;  %3752 = vadd.xlane.f32.xlu1 %v3751_v5  ;;  %v10639_v30 = vpop.f32.mrb[213].mxu1  ;;  %v4067_v42 = vmul.f32 %v7169_v45, %v14001_v8  ;;  %v2722_v62 = vmax.f32 %v10624_v12, %v10628_v61  ;;  %v14004_v36 = vld [vmem:[#allocation137_spill] sm:$0xff]  ;;  %v14011_v8 = vld [vmem:[#allocation79_spill] sm:$0xff] }
 0x36d   : > { %14000 = vst [vmem:[#allocation94_spill] sm:$0xff] %v10637_v1  ;;  %7192 = vrcp.f32 %v3696_v21  ;;  %v3293_v7 = vmul.f32 1.442695, %v2953_v47  ;;  %v3295_v40 = vmul.f32 1.442695, %v2954_v23  ;;  %v10642_v24 = vpop.eup %7178  ;;  %v10648_v39 = vadd.f32 %v14004_v36, %v14003_v9  ;;  %v14009_v5 = vld [vmem:[#allocation45_spill] sm:$0xff] }
 0x36e   : > { %14002 = vst [vmem:[#allocation108_spill] sm:$0xff] %v10642_v24  ;;  %v10652_v21 = vadd.f32 %v14007_v41, %v14006_v26  ;;  %v2616_v23 = vpop.xlane.xlu0 %2615  ;;  %v4071_v14 = vmul.f32 %v7175_v48, %v14009_v5  ;;  %v7181_v47 = vpop.eup %7180  ;;  %v3754_v61 = vadd.f32 %v10642_v24, %v10637_v1  ;;  %v14020_v1 = vld [vmem:[#allocation78_spill] sm:$0xff]  ;;  %v14021_v24 = vld [vmem:[#allocation145_spill] sm:$0xff] }
 0x36f   : > { %14005 = vst [vmem:[#allocation110_spill] sm:$0xff] %v10648_v39  ;;  %7194 = vpow2.f32 %v3293_v7  ;;  %v2955_v45 = vsub.f32 %v14010_v29, %v2616_v23  ;;  %v2956_v51 = vsub.f32 %v14011_v8, %v2616_v23  ;;  %4673 = vmatmul.mubr.f32.gmra.mrb[62].mxu0 %v4067_v42  ;;  %v10659_v9 = vpop.f32.mrb[214].mxu1  ;;  %2723 = vmax.xlane.f32.xlu0 %v2722_v62  ;;  %v14015_v29 = vld [vmem:[#allocation44_spill] sm:$0xff]  ;;  %v14023_v62 = vld [vmem:[#allocation47_spill] sm:$0xff] }
 0x370   : > { %14008 = vst [vmem:[#allocation32_spill] sm:$0xff] %v10652_v21  ;;  %7196 = vpow2.f32 %v3295_v40  ;;  %4677 = vmatprep.mubr.f32.mxu0 %v4071_v14  ;;  %14012 = vst [vmem:[#allocation131_spill] sm:$0xff] %v10659_v9  ;;  %v10661_v36 = vpop.eup %7182  ;;  %3755 = vadd.xlane.f32.xlu1 %v3754_v61  ;;  %v10663_v7 = vpop.f32.mrb[215].mxu1  ;;  %v4070_v5 = vmul.f32 %v7175_v48, %v14015_v29  ;;  %v2725_v42 = vmax.f32 %v10648_v39, %v10652_v21  ;;  %v14017_v40 = vld [vmem:[#allocation77_spill] sm:$0xff]  ;;  %v14018_v14 = vld [vmem:[#allocation143_spill] sm:$0xff] }
 0x371   : > { %14013 = vst [vmem:[#allocation132_spill] sm:$0xff] %v10661_v36  ;;  %7198 = vrcp.f32 %v3699_v13  ;;  %v3297_v41 = vmul.f32 1.442695, %v2955_v45  ;;  %v3299_v26 = vmul.f32 1.442695, %v2956_v51  ;;  %14014 = vst [vmem:[#allocation35_spill] sm:$0xff] %v10663_v7  ;;  %v10666_v23 = vpop.eup %7184  ;;  %v10672_v8 = vadd.f32 %v14018_v14, %v14017_v40  ;;  %v3702_v51 = vpop.xlane.xlu1 %3701 }
 0x372   : > { %14016 = vst [vmem:[#allocation64_spill] sm:$0xff] %v10666_v23  ;;  %v10676_v13 = vadd.f32 %v14021_v24, %v14020_v1  ;;  %v2619_v61 = vpop.xlane.xlu0 %2618  ;;  %v4074_v45 = vmul.f32 %v7181_v47, %v14023_v62  ;;  %v7187_v12 = vpop.eup %7186  ;;  %v14024_v48 = vld [vmem:[#allocation58_spill] sm:$0xff]  ;;  %v14025_v7 = vld [vmem:[#allocation59_spill] sm:$0xff]  ;;  %v3757_v21 = vadd.f32 %v10666_v23, %v10661_v36 }
 0x373   : > { %14019 = vst [vmem:[#allocation65_spill] sm:$0xff] %v10672_v8  ;;  %7200 = vpow2.f32 %v3297_v41  ;;  %v2957_v29 = vsub.f32 %v14024_v48, %v2619_v61  ;;  %v2958_v9 = vsub.f32 %v14025_v7, %v2619_v61  ;;  %4678 = vmatmul.mubr.f32.gmra.mrb[64].mxu0 %v4070_v5  ;;  %v10683_v40 = vpop.f32.mrb[216].mxu1  ;;  %2726 = vmax.xlane.f32.xlu0 %v2725_v42  ;;  %v14028_v62 = vld [vmem:[#allocation46_spill] sm:$0xff]  ;;  %v14030_v61 = vld [vmem:[#allocation27_spill] sm:$0xff] }
 0x374   : > { %14022 = vst [vmem:[#allocation34_spill] sm:$0xff] %v10676_v13  ;;  %7202 = vpow2.f32 %v3299_v26  ;;  %4682 = vmatprep.mubr.f32.mxu0 %v4074_v45  ;;  %3758 = vadd.xlane.f32.xlu1 %v3757_v21  ;;  %v10687_v41 = vpop.f32.mrb[217].mxu1  ;;  %v4073_v48 = vmul.f32 %v7181_v47, %v14028_v62  ;;  %v2728_v5 = vmax.f32 %v10672_v8, %v10676_v13  ;;  %v7818_v26 = vld [vmem:[%s13039_s5 + $0x120] sm:$0xff]  ;;  %v7819_v21 = vld [vmem:[%s13039_s5 + $0x128] sm:$0xff]  ;;  %v14036_v13 = vld [vmem:[#allocation20_spill] sm:$0xff] }
 0x375   : > { %v10685_v1 = vpop.eup %7188  ;;  %7204 = vrcp.f32 %v3702_v51  ;;  %v3301_v24 = vmul.f32 1.442695, %v2957_v29  ;;  %v3303_v14 = vmul.f32 1.442695, %v2958_v9  ;;  %14027 = vst [vmem:[#allocation101_spill] sm:$0xff] %v10687_v41  ;;  %v10698_v45 = vadd.f32 %v7818_v26, %v14030_v61  ;;  %v14032_v9 = vld [vmem:[#allocation37_spill] sm:$0xff] }
 0x376   : > { %14026 = vst [vmem:[#allocation49_spill] sm:$0xff] %v10685_v1  ;;  %v10690_v7 = vpop.eup %7190  ;;  %v10704_v42 = vadd.f32 %v7819_v21, %v14032_v9  ;;  %v2622_v47 = vpop.xlane.xlu0 %2621  ;;  %v14034_v51 = vld [vmem:[#allocation115_spill] sm:$0xff]  ;;  %v14035_v36 = vld [vmem:[#allocation50_spill] sm:$0xff] }
 0x377   : > { %14029 = vst [vmem:[#allocation112_spill] sm:$0xff] %v10690_v7  ;;  %14031 = vst [vmem:[#allocation114_spill] sm:$0xff] %v10698_v45  ;;  %v4077_v29 = vmul.f32 %v7187_v12, %v14034_v51  ;;  %v7193_v62 = vpop.eup %7192  ;;  %7206 = vpow2.f32 %v3301_v24  ;;  %v2959_v23 = vsub.f32 %v14035_v36, %v2622_v47  ;;  %v2960_v8 = vsub.f32 %v14036_v13, %v2622_v47  ;;  %v10711_v61 = vpop.f32.mrb[218].mxu1  ;;  %v14038_v24 = vld [vmem:[#allocation17_spill] sm:$0xff] }
 0x378   : > { %14033 = vst [vmem:[#allocation11_spill] sm:$0xff] %v10704_v42  ;;  %v3760_v26 = vadd.f32 %v10690_v7, %v10685_v1  ;;  %4683 = vmatmul.mubr.f32.gmra.mrb[66].mxu0 %v4073_v48  ;;  %7208 = vpow2.f32 %v3303_v14  ;;  %2729 = vmax.xlane.f32.xlu0 %v2728_v5  ;;  %v10715_v51 = vpop.f32.mrb[219].mxu1  ;;  %v4076_v36 = vmul.f32 %v7187_v12, %v14038_v24  ;;  %v7820_v14 = vld [vmem:[%s13039_s5 + $0x130] sm:$0xff]  ;;  %v14044_v1 = vld [vmem:[#allocation53_spill] sm:$0xff] }
 0x379   : > { %4687 = vmatprep.mubr.f32.mxu0 %v4077_v29  ;;  %v10713_v39 = vpop.eup %7194  ;;  %v3305_v21 = vmul.f32 1.442695, %v2959_v23  ;;  %v3307_v9 = vmul.f32 1.442695, %v2960_v8  ;;  %v2731_v13 = vmax.f32 %v10698_v45, %v10704_v42  ;;  %v10726_v48 = vadd.f32 %v7820_v14, %v10175_v17  ;;  %v7821_v23 = vld [vmem:[%s13039_s5 + $0x138] sm:$0xff]  ;;  %v14042_v5 = vld [vmem:[#allocation120_spill] sm:$0xff] }
 0x37a   : > { %14037 = vst [vmem:[#allocation39_spill] sm:$0xff] %v10713_v39  ;;  %3761 = vadd.xlane.f32.xlu1 %v3760_v26  ;;  %v10718_v41 = vpop.eup %7196  ;;  %v10732_v8 = vadd.f32 %v7821_v23, %v10179_v22  ;;  %v2625_v12 = vpop.xlane.xlu0 %2624  ;;  %v4080_v47 = vmul.f32 %v7193_v62, %v14042_v5  ;;  %v14043_v26 = vld [vmem:[#allocation51_spill] sm:$0xff]  ;;  %v7822_v14 = vld [vmem:[%s13039_s5 + $0x140] sm:$0xff]  ;;  %v14050_v42 = vld [vmem:[#allocation125_spill] sm:$0xff] }
 0x37b   : > { %14039 = vst [vmem:[#allocation117_spill] sm:$0xff] %v10718_v41  ;;  %14040 = vst [vmem:[#allocation119_spill] sm:$0xff] %v10726_v48  ;;  %v7199_v29 = vpop.eup %7198  ;;  %7210 = vpow2.f32 %v3305_v21  ;;  %v2961_v24 = vsub.f32 %v14043_v26, %v2625_v12  ;;  %v2962_v7 = vsub.f32 %v14044_v1, %v2625_v12  ;;  %v3763_v17 = vadd.f32 %v10718_v41, %v10713_v39  ;;  %v10745_v23 = vpop.f32.mrb[220].mxu1  ;;  %v7823_v1 = vld [vmem:[%s13039_s5 + $0x148] sm:$0xff] }
 0x37c   : > { %14041 = vst [vmem:[#allocation38_spill] sm:$0xff] %v10732_v8  ;;  %4688 = vmatmul.mubr.f32.gmra.mrb[68].mxu0 %v4076_v36  ;;  %v10743_v22 = vadd.f32 %v7822_v14, %v10197_v15  ;;  %7212 = vpow2.f32 %v3307_v9  ;;  %v10753_v12 = vadd.f32 %v7823_v1, %v10199_v31  ;;  %2732 = vmax.xlane.f32.xlu0 %v2731_v13  ;;  %v3705_v26 = vpop.xlane.xlu1 %3704  ;;  %v10755_v15 = vpop.f32.mrb[221].mxu1  ;;  %v14048_v9 = vld [vmem:[#allocation16_spill] sm:$0xff] }
 0x37d   : > { %4692 = vmatprep.mubr.f32.mxu0 %v4080_v47  ;;  %v10747_v21 = vpop.eup %7200  ;;  %v3309_v36 = vmul.f32 1.442695, %v2961_v24  ;;  %v3311_v5 = vmul.f32 1.442695, %v2962_v7  ;;  %v4079_v47 = vmul.f32 %v7193_v62, %v14048_v9  ;;  %v2734_v39 = vmax.f32 %v10726_v48, %v10732_v8  ;;  %v14051_v24 = vld [vmem:[#allocation55_spill] sm:$0xff] }
 0x37e   : > { %14045 = vst [vmem:[#allocation152_spill] sm:$0xff] %v10743_v22  ;;  %14046 = vst [vmem:[#allocation52_spill] sm:$0xff] %v10747_v21  ;;  %3764 = vadd.xlane.f32.xlu1 %v3763_v17  ;;  %v10758_v14 = vpop.eup %7202  ;;  %v2628_v41 = vpop.xlane.xlu0 %2627  ;;  %7214 = vrcp.f32 %v3705_v26  ;;  %v4083_v45 = vmul.f32 %v7199_v29, %v14050_v42  ;;  %v14052_v17 = vld [vmem:[#allocation134_spill] sm:$0xff]  ;;  %v2737_v26 = vmax.f32 %v10743_v22, %v10753_v12 }
 0x37f   : > { %14047 = vst [vmem:[#allocation41_spill] sm:$0xff] %v10753_v12  ;;  %14049 = vst [vmem:[#allocation122_spill] sm:$0xff] %v10758_v14  ;;  %v7205_v31 = vpop.eup %7204  ;;  %7216 = vpow2.f32 %v3309_v36  ;;  %v2963_v7 = vsub.f32 %v14051_v24, %v2628_v41  ;;  %v2964_v13 = vsub.f32 %v14052_v17, %v2628_v41  ;;  %v3766_v1 = vadd.f32 %v10758_v14, %v10747_v21  ;;  %v10767_v62 = vpop.f32.mrb[222].mxu1  ;;  %v14054_v41 = vld [vmem:[#allocation19_spill] sm:$0xff]  ;;  %v14060_v14 = vld [vmem:[#allocation140_spill] sm:$0xff] }
 0x380   : > { %4693 = vmatmul.mubr.f32.gmra.mrb[70].mxu0 %v4079_v47  ;;  %7218 = vpow2.f32 %v3311_v5  ;;  %2735 = vmax.xlane.f32.xlu0 %v2734_v39  ;;  %v3708_v36 = vpop.xlane.xlu1 %3707  ;;  %v10773_v24 = vpop.f32.mrb[223].mxu1  ;;  %v4082_v17 = vmul.f32 %v7199_v29, %v14054_v41  ;;  %v7825_v47 = vld [vmem:[%s13039_s5 + $0x158] sm:$0xff]  ;;  %v7830_v22 = vld [vmem:[%s13039_s5 + $0x180] sm:$0xff] }
 0x381   : > { %4697 = vmatprep.mubr.f32.mxu0 %v4083_v45  ;;  %v10769_v9 = vpop.eup %7206  ;;  %v3313_v42 = vmul.f32 1.442695, %v2963_v7  ;;  %v3315_v8 = vmul.f32 1.442695, %v2964_v13  ;;  %v7824_v45 = vld [vmem:[%s13039_s5 + $0x150] sm:$0xff]  ;;  %v10788_v39 = vadd.f32 %v7825_v47, %v10224_v28  ;;  %7220 = vrcp.f32 %v3708_v36  ;;  %v14058_v13 = vld [vmem:[#allocation130_spill] sm:$0xff] }
 0x382   : > { %14053 = vst [vmem:[#allocation68_spill] sm:$0xff] %v10769_v9  ;;  %3767 = vadd.xlane.f32.xlu1 %v3766_v1  ;;  %v10776_v21 = vpop.eup %7208  ;;  %v10782_v5 = vadd.f32 %v7824_v45, %v10222_v20  ;;  %v2631_v7 = vpop.xlane.xlu0 %2630  ;;  %v4086_v29 = vmul.f32 %v7205_v31, %v14058_v13  ;;  %v14059_v1 = vld [vmem:[#allocation138_spill] sm:$0xff] }
 0x383   : > { %14055 = vst [vmem:[#allocation40_spill] sm:$0xff] %v10776_v21  ;;  %14057 = vst [vmem:[#allocation54_spill] sm:$0xff] %v10788_v39  ;;  %7222 = vpow2.f32 %v3313_v42  ;;  %v2965_v41 = vsub.f32 %v14059_v1, %v2631_v7  ;;  %v2966_v12 = vsub.f32 %v14060_v14, %v2631_v7  ;;  %v3769_v20 = vadd.f32 %v10776_v21, %v10769_v9  ;;  %v7826_v45 = vld [vmem:[%s13039_s5 + $0x160] sm:$0xff]  ;;  %v10801_v36 = vpop.f32.mrb[224].mxu1  ;;  %v7827_v14 = vld [vmem:[%s13039_s5 + $0x168] sm:$0xff] }
 0x384   : > { %14056 = vst [vmem:[#allocation70_spill] sm:$0xff] %v10782_v5  ;;  %4698 = vmatmul.mubr.f32.gmra.mrb[72].mxu0 %v4082_v17  ;;  %v10799_v28 = vadd.f32 %v7826_v45, %v10246_v10  ;;  %7224 = vpow2.f32 %v3315_v8  ;;  %v10809_v47 = vadd.f32 %v7827_v14, %v10248_v46  ;;  %2738 = vmax.xlane.f32.xlu0 %v2737_v26  ;;  %v3711_v13 = vpop.xlane.xlu1 %3710  ;;  %v10811_v10 = vpop.f32.mrb[225].mxu1  ;;  %v14064_v8 = vld [vmem:[#allocation18_spill] sm:$0xff]  ;;  %v14066_v21 = vld [vmem:[#allocation144_spill] sm:$0xff] }
 0x385   : > { %4702 = vmatprep.mubr.f32.mxu0 %v4086_v29  ;;  %v10803_v42 = vpop.eup %7210  ;;  %v3317_v17 = vmul.f32 1.442695, %v2965_v41  ;;  %v3319_v7 = vmul.f32 1.442695, %v2966_v12  ;;  %v4085_v29 = vmul.f32 %v7205_v31, %v14064_v8  ;;  %v2740_v45 = vmax.f32 %v10782_v5, %v10788_v39  ;;  %v14067_v14 = vld [vmem:[#allocation146_spill] sm:$0xff] }
 0x386   : > { %14061 = vst [vmem:[#allocation71_spill] sm:$0xff] %v10799_v28  ;;  %14062 = vst [vmem:[#allocation133_spill] sm:$0xff] %v10803_v42  ;;  %3770 = vadd.xlane.f32.xlu1 %v3769_v20  ;;  %v10814_v1 = vpop.eup %7212  ;;  %v2634_v9 = vpop.xlane.xlu0 %2633  ;;  %7226 = vrcp.f32 %v3711_v13  ;;  %v2743_v8 = vmax.f32 %v10799_v28, %v10809_v47  ;;  %v14075_v28 = vld [vmem:[#allocation83_spill] sm:$0xff] }
 0x387   : > { %14063 = vst [vmem:[#allocation43_spill] sm:$0xff] %v10809_v47  ;;  %14065 = vst [vmem:[#allocation73_spill] sm:$0xff] %v10814_v1  ;;  %7228 = vpow2.f32 %v3317_v17  ;;  %v2967_v46 = vsub.f32 %v14066_v21, %v2634_v9  ;;  %v2968_v41 = vsub.f32 %v14067_v14, %v2634_v9  ;;  %v3772_v12 = vadd.f32 %v10814_v1, %v10803_v42  ;;  %v10822_v20 = vpop.f32.mrb[226].mxu1  ;;  %v14069_v9 = vld [vmem:[#allocation56_spill] sm:$0xff]  ;;  %v14074_v1 = vld [vmem:[#allocation82_spill] sm:$0xff] }
 0x388   : > { %4703 = vmatmul.mubr.f32.gmra.mrb[74].mxu0 %v4085_v29  ;;  %v7215_v26 = vpop.eup %7214  ;;  %7230 = vpow2.f32 %v3319_v7  ;;  %2741 = vmax.xlane.f32.xlu0 %v2740_v45  ;;  %v3714_v21 = vpop.xlane.xlu1 %3713  ;;  %v7828_v7 = vld [vmem:[%s13039_s5 + $0x170] sm:$0xff] }
 0x389   : > { %v10824_v31 = vpop.eup %7216  ;;  %v3321_v39 = vmul.f32 1.442695, %v2967_v46  ;;  %v3323_v13 = vmul.f32 1.442695, %v2968_v41  ;;  %v10828_v17 = vpop.f32.mrb[227].mxu1  ;;  %v4089_v14 = vmul.f32 %v7215_v26, %v14069_v9  ;;  %v10837_v29 = vadd.f32 %v7828_v7, %v10270_v60  ;;  %v7829_v46 = vld [vmem:[%s13039_s5 + $0x178] sm:$0xff] }
 0x38a   : > { %14068 = vst [vmem:[#allocation6_spill] sm:$0xff] %v10824_v31  ;;  %3773 = vadd.xlane.f32.xlu1 %v3772_v12  ;;  %v10831_v42 = vpop.eup %7218  ;;  %v10843_v45 = vadd.f32 %v7829_v46, %v10272_v43  ;;  %v2637_v41 = vpop.xlane.xlu0 %2636  ;;  %7232 = vrcp.f32 %v3714_v21  ;;  %v14073_v12 = vld [vmem:[#allocation135_spill] sm:$0xff]  ;;  %v10854_v43 = vadd.f32 %v7830_v22, %v10288_v57  ;;  %v14079_v22 = vld [vmem:[#allocation136_spill] sm:$0xff] }
 0x38b   : > { %14070 = vst [vmem:[#allocation42_spill] sm:$0xff] %v10831_v42  ;;  %14071 = vst [vmem:[#allocation67_spill] sm:$0xff] %v10837_v29  ;;  %v4088_v9 = vmul.f32 %v7215_v26, %v14073_v12  ;;  %7234 = vpow2.f32 %v3321_v39  ;;  %v2969_v47 = vsub.f32 %v14074_v1, %v2637_v41  ;;  %v2970_v5 = vsub.f32 %v14075_v28, %v2637_v41  ;;  %v7221_v7 = vpop.eup %7220  ;;  %v10856_v26 = vpop.f32.mrb[228].mxu1  ;;  %v7831_v28 = vld [vmem:[%s13039_s5 + $0x188] sm:$0xff] }
 0x38c   : > { %14072 = vst [vmem:[#allocation137_spill] sm:$0xff] %v10843_v45  ;;  %v3775_v60 = vadd.f32 %v10831_v42, %v10824_v31  ;;  %4707 = vmatprep.mubr.f32.mxu0 %v4089_v14  ;;  %14076 = vst [vmem:[#allocation157_spill] sm:$0xff] %v10854_v43  ;;  %7236 = vpow2.f32 %v3323_v13  ;;  %v10864_v1 = vadd.f32 %v7831_v28, %v10290_v54  ;;  %2744 = vmax.xlane.f32.xlu0 %v2743_v8  ;;  %v3717_v46 = vpop.xlane.xlu1 %3716  ;;  %v10866_v57 = vpop.f32.mrb[229].mxu1  ;;  %v14081_v31 = vld [vmem:[#allocation57_spill] sm:$0xff]  ;;  %v14082_v54 = vld [vmem:[#allocation84_spill] sm:$0xff] }
 0x38d   : > { %4708 = vmatmul.mubr.f32.gmra.mrb[76].mxu0 %v4088_v9  ;;  %v10858_v39 = vpop.eup %7222  ;;  %v3325_v21 = vmul.f32 1.442695, %v2969_v47  ;;  %v3327_v14 = vmul.f32 1.442695, %v2970_v5  ;;  %v4092_v13 = vmul.f32 %v7221_v7, %v14079_v22  ;;  %v2746_v12 = vmax.f32 %v10837_v29, %v10843_v45  ;;  %v14083_v5 = vld [vmem:[#allocation151_spill] sm:$0xff] }
 0x38e   : > { %14077 = vst [vmem:[#allocation139_spill] sm:$0xff] %v10858_v39  ;;  %14078 = vst [vmem:[#allocation45_spill] sm:$0xff] %v10864_v1  ;;  %3776 = vadd.xlane.f32.xlu1 %v3775_v60  ;;  %v10869_v41 = vpop.eup %7224  ;;  %v2640_v9 = vpop.xlane.xlu0 %2639  ;;  %7238 = vrcp.f32 %v3717_v46  ;;  %v4091_v42 = vmul.f32 %v7221_v7, %v14081_v31  ;;  %v2749_v46 = vmax.f32 %v10854_v43, %v10864_v1  ;;  %v14091_v1 = vld [vmem:[#allocation23_spill] sm:$0xff] }
 0x38f   : > { %14080 = vst [vmem:[#allocation76_spill] sm:$0xff] %v10869_v41  ;;  %7240 = vpow2.f32 %v3325_v21  ;;  %v2971_v47 = vsub.f32 %v14082_v54, %v2640_v9  ;;  %v2972_v60 = vsub.f32 %v14083_v5, %v2640_v9  ;;  %v3778_v8 = vadd.f32 %v10869_v41, %v10858_v39  ;;  %4712 = vmatprep.mubr.f32.mxu0 %v4092_v13  ;;  %v10878_v22 = vpop.f32.mrb[230].mxu1  ;;  %v14085_v54 = vld [vmem:[#allocation142_spill] sm:$0xff] }
 0x390   : > { %v7227_v28 = vpop.eup %7226  ;;  %7242 = vpow2.f32 %v3327_v14  ;;  %2747 = vmax.xlane.f32.xlu0 %v2746_v12  ;;  %v3720_v21 = vpop.xlane.xlu1 %3719  ;;  %v14090_v39 = vld [vmem:[#allocation22_spill] sm:$0xff] }
 0x391   : > { %4713 = vmatmul.mubr.f32.gmra.mrb[78].mxu0 %v4091_v42  ;;  %v10880_v48 = vpop.eup %7228  ;;  %v3329_v31 = vmul.f32 1.442695, %v2971_v47  ;;  %v3331_v7 = vmul.f32 1.442695, %v2972_v60  ;;  %v10884_v9 = vpop.f32.mrb[231].mxu1  ;;  %v4095_v5 = vmul.f32 %v7227_v28, %v14085_v54  ;;  %v7832_v42 = vld [vmem:[%s13039_s5 + $0x190] sm:$0xff]  ;;  %7244 = vrcp.f32 %v3720_v21 }
 0x392   : > { %14084 = vst [vmem:[#allocation79_spill] sm:$0xff] %v10880_v48  ;;  %3779 = vadd.xlane.f32.xlu1 %v3778_v8  ;;  %v10887_v13 = vpop.eup %7230  ;;  %v10893_v14 = vadd.f32 %v7832_v42, %v10306_v19  ;;  %v7833_v47 = vld [vmem:[%s13039_s5 + $0x198] sm:$0xff]  ;;  %v2643_v60 = vpop.xlane.xlu0 %2642 }
 0x393   : > { %14086 = vst [vmem:[#allocation44_spill] sm:$0xff] %v10887_v13  ;;  %v10899_v12 = vadd.f32 %v7833_v47, %v10308_v38  ;;  %v14089_v8 = vld [vmem:[#allocation141_spill] sm:$0xff]  ;;  %7246 = vpow2.f32 %v3329_v31  ;;  %v2973_v41 = vsub.f32 %v14090_v39, %v2643_v60  ;;  %v2974_v43 = vsub.f32 %v14091_v1, %v2643_v60  ;;  %4717 = vmatprep.mubr.f32.mxu0 %v4095_v5  ;;  %v10906_v45 = vpop.f32.mrb[232].mxu1  ;;  %v14093_v39 = vld [vmem:[#allocation148_spill] sm:$0xff] }
 0x394   : > { %14087 = vst [vmem:[#allocation77_spill] sm:$0xff] %v10893_v14  ;;  %v4094_v54 = vmul.f32 %v7227_v28, %v14089_v8  ;;  %v3781_v19 = vadd.f32 %v10887_v13, %v10880_v48  ;;  %v7233_v42 = vpop.eup %7232  ;;  %7248 = vpow2.f32 %v3331_v7  ;;  %2750 = vmax.xlane.f32.xlu0 %v2749_v46  ;;  %v10910_v28 = vpop.f32.mrb[233].mxu1  ;;  %v7834_v7 = vld [vmem:[%s13039_s5 + $0x1a0] sm:$0xff]  ;;  %v14097_v8 = vld [vmem:[#allocation147_spill] sm:$0xff]  ;;  %v14099_v48 = vld [vmem:[#allocation156_spill] sm:$0xff] }
 0x395   : > { %14088 = vst [vmem:[#allocation143_spill] sm:$0xff] %v10899_v12  ;;  %v10908_v38 = vpop.eup %7234  ;;  %v3333_v47 = vmul.f32 1.442695, %v2973_v41  ;;  %v3335_v21 = vmul.f32 1.442695, %v2974_v43  ;;  %v4098_v31 = vmul.f32 %v7233_v42, %v14093_v39  ;;  %v2752_v5 = vmax.f32 %v10893_v14, %v10899_v12  ;;  %v7835_v43 = vld [vmem:[%s13039_s5 + $0x1a8] sm:$0xff] }
 0x396   : > { %4718 = vmatmul.mubr.f32.gmra.mrb[80].mxu0 %v4094_v54  ;;  %14092 = vst [vmem:[#allocation78_spill] sm:$0xff] %v10908_v38  ;;  %3782 = vadd.xlane.f32.xlu1 %v3781_v19  ;;  %v10913_v1 = vpop.eup %7236  ;;  %v10921_v60 = vadd.f32 %v7834_v7, %v10324_v11  ;;  %v10927_v41 = vadd.f32 %v7835_v43, %v10326_v18  ;;  %v2646_v46 = vpop.xlane.xlu0 %2645  ;;  %v14098_v19 = vld [vmem:[#allocation155_spill] sm:$0xff] }
 0x397   : > { %14094 = vst [vmem:[#allocation145_spill] sm:$0xff] %v10913_v1  ;;  %v4097_v54 = vmul.f32 %v7233_v42, %v14097_v8  ;;  %7250 = vpow2.f32 %v3333_v47  ;;  %v2975_v39 = vsub.f32 %v14098_v19, %v2646_v46  ;;  %v2976_v13 = vsub.f32 %v14099_v48, %v2646_v46  ;;  %4722 = vmatprep.mubr.f32.mxu0 %v4098_v31  ;;  %v10934_v7 = vpop.f32.mrb[234].mxu1  ;;  %v14101_v47 = vld [vmem:[#allocation150_spill] sm:$0xff] }
 0x398   : > { %14095 = vst [vmem:[#allocation47_spill] sm:$0xff] %v10921_v60  ;;  %14096 = vst [vmem:[#allocation58_spill] sm:$0xff] %v10927_v41  ;;  %v3784_v12 = vadd.f32 %v10913_v1, %v10908_v38  ;;  %v7239_v11 = vpop.eup %7238  ;;  %7252 = vpow2.f32 %v3335_v21  ;;  %2753 = vmax.xlane.f32.xlu0 %v2752_v5  ;;  %v10938_v42 = vpop.f32.mrb[235].mxu1  ;;  %v2755_v31 = vmax.f32 %v10921_v60, %v10927_v41  ;;  %v7836_v21 = vld [vmem:[%s13039_s5 + $0x1b0] sm:$0xff]  ;;  %v14107_v38 = vld [vmem:[#allocation26_spill] sm:$0xff] }
 0x399   : > { %v10936_v14 = vpop.eup %7240  ;;  %v3337_v18 = vmul.f32 1.442695, %v2975_v39  ;;  %v3339_v43 = vmul.f32 1.442695, %v2976_v13  ;;  %v4101_v8 = vmul.f32 %v7239_v11, %v14101_v47  ;;  %v10949_v46 = vadd.f32 %v7836_v21, %v10338_v25  ;;  %v7837_v13 = vld [vmem:[%s13039_s5 + $0x1b8] sm:$0xff]  ;;  %v14106_v39 = vld [vmem:[#allocation158_spill] sm:$0xff] }
 0x39a   : > { %4723 = vmatmul.mubr.f32.gmra.mrb[82].mxu0 %v4097_v54  ;;  %14100 = vst [vmem:[#allocation59_spill] sm:$0xff] %v10936_v14  ;;  %3785 = vadd.xlane.f32.xlu1 %v3784_v12  ;;  %v10941_v48 = vpop.eup %7242  ;;  %v10955_v12 = vadd.f32 %v7837_v13, %v10340_v27  ;;  %v2649_v5 = vpop.xlane.xlu0 %2648  ;;  %v14105_v54 = vld [vmem:[#allocation149_spill] sm:$0xff] }
 0x39b   : > { %14102 = vst [vmem:[#allocation46_spill] sm:$0xff] %v10941_v48  ;;  %14103 = vst [vmem:[#allocation27_spill] sm:$0xff] %v10949_v46  ;;  %v4100_v19 = vmul.f32 %v7239_v11, %v14105_v54  ;;  %7254 = vpow2.f32 %v3337_v18  ;;  %v2977_v47 = vsub.f32 %v14106_v39, %v2649_v5  ;;  %v2978_v1 = vsub.f32 %v14107_v38, %v2649_v5  ;;  %v7245_v25 = vpop.eup %7244  ;;  %v10962_v21 = vpop.f32.mrb[236].mxu1  ;;  %v14111_v18 = vld [vmem:[#allocation154_spill] sm:$0xff]  ;;  %v14116_v39 = vld [vmem:[#allocation153_spill] sm:$0xff] }
 0x39c   : > { %14104 = vst [vmem:[#allocation37_spill] sm:$0xff] %v10955_v12  ;;  %v3787_v41 = vadd.f32 %v10941_v48, %v10936_v14  ;;  %4727 = vmatprep.mubr.f32.mxu0 %v4101_v8  ;;  %7256 = vpow2.f32 %v3339_v43  ;;  %14108 = vst [vmem:[#allocation115_spill] sm:$0xff] %v10962_v21  ;;  %2756 = vmax.xlane.f32.xlu0 %v2755_v31  ;;  %v10966_v11 = vpop.f32.mrb[237].mxu1  ;;  %v4104_v54 = vmul.f32 %v7245_v25, %v14111_v18  ;;  %v7838_v43 = vld [vmem:[%s13039_s5 + $0x1c0] sm:$0xff]  ;;  %v14118_v48 = vld [vmem:[#allocation72_spill] sm:$0xff] }
 0x39d   : > { %v10964_v60 = vpop.eup %7246  ;;  %v3341_v27 = vmul.f32 1.442695, %v2977_v47  ;;  %v3343_v13 = vmul.f32 1.442695, %v2978_v1  ;;  %14110 = vst [vmem:[#allocation20_spill] sm:$0xff] %v10966_v11  ;;  %v2758_v8 = vmax.f32 %v10949_v46, %v10955_v12  ;;  %v10977_v5 = vadd.f32 %v7838_v43, %v10352_v32  ;;  %v7839_v1 = vld [vmem:[%s13039_s5 + $0x1c8] sm:$0xff] }
 0x39e   : > { %4728 = vmatmul.mubr.f32.gmra.mrb[84].mxu0 %v4100_v19  ;;  %14109 = vst [vmem:[#allocation50_spill] sm:$0xff] %v10964_v60  ;;  %3788 = vadd.xlane.f32.xlu1 %v3787_v41  ;;  %v10969_v38 = vpop.eup %7248  ;;  %v14114_v41 = vld [vmem:[#allocation171_spill] sm:$0xff]  ;;  %v2652_v19 = vpop.xlane.xlu0 %2651  ;;  %v4103_v47 = vmul.f32 %v7245_v25, %v14116_v39  ;;  %v14117_v18 = vld [vmem:[#allocation66_spill] sm:$0xff]  ;;  %v14127_v39 = vld [vmem:[#allocation69_spill] sm:$0xff] }
 0x39f   : > { %14112 = vst [vmem:[#allocation17_spill] sm:$0xff] %v10969_v38  ;;  %14113 = vst [vmem:[#allocation120_spill] sm:$0xff] %v10977_v5  ;;  %v10983_v31 = vadd.f32 %v7839_v1, %v14114_v41  ;;  %7258 = vpow2.f32 %v3341_v27  ;;  %v2979_v14 = vsub.f32 %v14117_v18, %v2652_v19  ;;  %v2980_v12 = vsub.f32 %v14118_v48, %v2652_v19  ;;  %v3723_v32 = vpop.xlane.xlu1 %3722  ;;  %v10990_v43 = vpop.f32.mrb[238].mxu1  ;;  %v14128_v18 = vld [vmem:[#allocation75_spill] sm:$0xff]  ;;  %v14150_v21 = vld [vmem:[#allocation24_spill] sm:$0xff] }
 0x3a0   : > { %v3790_v46 = vadd.f32 %v10969_v38, %v10964_v60  ;;  %4732 = vmatprep.mubr.f32.mxu0 %v4104_v54  ;;  %7260 = vpow2.f32 %v3343_v13  ;;  %14119 = vst [vmem:[#allocation53_spill] sm:$0xff] %v10990_v43  ;;  %2759 = vmax.xlane.f32.xlu0 %v2758_v8  ;;  %v10994_v25 = vpop.f32.mrb[239].mxu1  ;;  %v7840_v13 = vld [vmem:[%s13039_s5 + $0x1d0] sm:$0xff] }
 0x3a1   : > { %14115 = vst [vmem:[#allocation51_spill] sm:$0xff] %v10983_v31  ;;  %v10992_v29 = vpop.eup %7250  ;;  %v3345_v1 = vmul.f32 1.442695, %v2979_v14  ;;  %v3347_v41 = vmul.f32 1.442695, %v2980_v12  ;;  %7262 = vrcp.f32 %v3723_v32  ;;  %14121 = vst [vmem:[#allocation125_spill] sm:$0xff] %v10994_v25  ;;  %v2761_v48 = vmax.f32 %v10977_v5, %v10983_v31 }
 0x3a2   : > { %4733 = vmatmul.mubr.f32.gmra.mrb[86].mxu0 %v4103_v47  ;;  %14120 = vst [vmem:[#allocation16_spill] sm:$0xff] %v10992_v29  ;;  %3791 = vadd.xlane.f32.xlu1 %v3790_v46  ;;  %v10996_v27 = vpop.eup %7252  ;;  %v14123_v54 = vld [vmem:[#allocation172_spill] sm:$0xff]  ;;  %v7841_v14 = vld [vmem:[%s13039_s5 + $0x1d8] sm:$0xff]  ;;  %v2655_v8 = vpop.xlane.xlu0 %2654 }
 0x3a3   : > { %14122 = vst [vmem:[#allocation55_spill] sm:$0xff] %v10996_v27  ;;  %v11004_v19 = vadd.f32 %v7840_v13, %v14123_v54  ;;  %v14125_v46 = vld [vmem:[#allocation173_spill] sm:$0xff]  ;;  %7264 = vpow2.f32 %v3345_v1  ;;  %v2981_v47 = vsub.f32 %v14127_v39, %v2655_v8  ;;  %v2982_v32 = vsub.f32 %v14128_v18, %v2655_v8  ;;  %v11016_v38 = vpop.f32.mrb[240].mxu1  ;;  %v7842_v8 = vld [vmem:[%s13039_s5 + $0x1e0] sm:$0xff] }
 0x3a4   : > { %v11010_v12 = vadd.f32 %v7841_v14, %v14125_v46  ;;  %v3793_v60 = vadd.f32 %v10996_v27, %v10992_v29  ;;  %7266 = vpow2.f32 %v3347_v41  ;;  %14129 = vst [vmem:[#allocation130_spill] sm:$0xff] %v11016_v38  ;;  %2762 = vmax.xlane.f32.xlu0 %v2761_v48  ;;  %v11020_v14 = vpop.f32.mrb[241].mxu1  ;;  %v14133_v41 = vld [vmem:[#allocation174_spill] sm:$0xff]  ;;  %v14138_v27 = vld [vmem:[#allocation87_spill] sm:$0xff] }
 0x3a5   : > { %14124 = vst [vmem:[#allocation134_spill] sm:$0xff] %v11004_v19  ;;  %v11018_v13 = vpop.eup %7254  ;;  %v3349_v54 = vmul.f32 1.442695, %v2981_v47  ;;  %v3351_v31 = vmul.f32 1.442695, %v2982_v32  ;;  %14131 = vst [vmem:[#allocation140_spill] sm:$0xff] %v11020_v14  ;;  %v11030_v39 = vadd.f32 %v7842_v8, %v14133_v41 }
 0x3a6   : > { %14126 = vst [vmem:[#allocation19_spill] sm:$0xff] %v11010_v12  ;;  %14130 = vst [vmem:[#allocation138_spill] sm:$0xff] %v11018_v13  ;;  %3794 = vadd.xlane.f32.xlu1 %v3793_v60  ;;  %v11022_v46 = vpop.eup %7256  ;;  %v2764_v1 = vmax.f32 %v11004_v19, %v11010_v12  ;;  %v7843_v47 = vld [vmem:[%s13039_s5 + $0x1e8] sm:$0xff]  ;;  %v2658_v18 = vpop.xlane.xlu0 %2657  ;;  %v14137_v32 = vld [vmem:[#allocation85_spill] sm:$0xff] }
 0x3a7   : > { %14132 = vst [vmem:[#allocation18_spill] sm:$0xff] %v11022_v46  ;;  %14134 = vst [vmem:[#allocation144_spill] sm:$0xff] %v11030_v39  ;;  %v14135_v60 = vld [vmem:[#allocation175_spill] sm:$0xff]  ;;  %7268 = vpow2.f32 %v3349_v54  ;;  %v2983_v29 = vsub.f32 %v14137_v32, %v2658_v18  ;;  %v2984_v12 = vsub.f32 %v14138_v27, %v2658_v18  ;;  %v3726_v19 = vpop.xlane.xlu1 %3725  ;;  %v3796_v5 = vadd.f32 %v11022_v46, %v11018_v13  ;;  %v11042_v8 = vpop.f32.mrb[242].mxu1  ;;  %v5635_v41 = vld [vmem:[%s13037_s3] sm:$0xff] }
 0x3a8   : > { %v11036_v48 = vadd.f32 %v7843_v47, %v14135_v60  ;;  %7270 = vpow2.f32 %v3351_v31  ;;  %14139 = vst [vmem:[#allocation56_spill] sm:$0xff] %v11042_v8  ;;  %v5636_v47 = vld [vmem:[%s13037_s3 + $0x8] sm:$0xff]  ;;  %2765 = vmax.xlane.f32.xlu0 %v2764_v1  ;;  %v11052_v27 = vpop.f32.mrb[243].mxu1  ;;  %v7844_v13 = vld [vmem:[%s13039_s5 + $0x1f0] sm:$0xff]  ;;  %v14147_v14 = vld [vmem:[#allocation74_spill] sm:$0xff] }
 0x3a9   : > { %v11050_v54 = vpop.eup %7258  ;;  %v3353_v60 = vmul.f32 1.442695, %v2983_v29  ;;  %v3355_v32 = vmul.f32 1.442695, %v2984_v12  ;;  %7272 = vrcp.f32 %v3726_v19  ;;  %14141 = vst [vmem:[#allocation82_spill] sm:$0xff] %v11052_v27  ;;  %v14143_v46 = vld [vmem:[#allocation107_spill] sm:$0xff]  ;;  %v6882_v1 = vpack.c.bf16 %v5636_v47, %v5635_v41 }
 0x3aa   : > { %14136 = vst [vmem:[#allocation146_spill] sm:$0xff] %v11036_v48  ;;  %14140 = vst [vmem:[#allocation135_spill] sm:$0xff] %v11050_v54  ;;  %3797 = vadd.xlane.f32.xlu1 %v3796_v5  ;;  %v11054_v31 = vpop.eup %7260  ;;  %v2767_v18 = vmax.f32 %v11030_v39, %v11036_v48  ;;  %v11062_v8 = vadd.f32 %v7844_v13, %v14143_v46  ;;  %v7845_v29 = vld [vmem:[%s13039_s5 + $0x1f8] sm:$0xff]  ;;  %v14145_v5 = vld [vmem:[#allocation28_spill] sm:$0xff]  ;;  %v2661_v12 = vpop.xlane.xlu0 %2660 }
 0x3ab   : > { %14142 = vst [vmem:[#allocation83_spill] sm:$0xff] %v11054_v31  ;;  %v11068_v19 = vadd.f32 %v7845_v29, %v14145_v5  ;;  %v7263_v27 = vpop.eup %7262  ;;  %7274 = vpow2.f32 %v3353_v60  ;;  %v2985_v48 = vsub.f32 %v14147_v14, %v2661_v12  ;;  %v14148_v39 = vld [vmem:[#allocation80_spill] sm:$0xff]  ;;  %v3729_v25 = vpop.xlane.xlu1 %3728  ;;  %v3799_v13 = vadd.f32 %v11054_v31, %v11050_v54  ;;  %v14149_v46 = vld [vmem:[#allocation25_spill] sm:$0xff]  ;;  %6890 = vmatprep.subr.bf16.mxu1 %v6882_v1 }
 0x3ac   : > { %14144 = vst [vmem:[#allocation136_spill] sm:$0xff] %v11062_v8  ;;  %v2986_v38 = vsub.f32 %v14148_v39, %v2661_v12  ;;  %7276 = vpow2.f32 %v3355_v32  ;;  %v4107_v43 = vmul.f32 %v7263_v27, %v14149_v46  ;;  %v11075_v11 = vpop.f32.mrb[244].mxu1  ;;  %v4106_v29 = vmul.f32 %v7263_v27, %v14150_v21  ;;  %6883 = vmatprep.subr.bf16.mxu0 %v6882_v1  ;;  %v7846_v21 = vld [vmem:[%s13039_s5] sm:$0xff]  ;;  %v14153_v27 = vld [vmem:[#allocation128_spill] sm:$0xff]  ;;  %v14157_v12 = vld [vmem:[#allocation5_spill] sm:$0xff] }
 0x3ad   : > { %14146 = vst [vmem:[#allocation57_spill] sm:$0xff] %v11068_v19  ;;  %v11078_v41 = vpop.eup %7264  ;;  %v3357_v47 = vmul.f32 1.442695, %v2985_v48  ;;  %7278 = vrcp.f32 %v3729_v25  ;;  %2768 = vmax.xlane.f32.xlu0 %v2767_v18  ;;  %v11080_v14 = vpop.f32.mrb[245].mxu1  ;;  %v2770_v32 = vmax.f32 %v11062_v8, %v11068_v19  ;;  %v11090_v5 = vadd.f32 %v7846_v21, %v14153_v27  ;;  %v14155_v25 = vld [vmem:[#allocation12_spill] sm:$0xff]  ;;  %6892 = vmatpush3.bf16.msra.mxu1 %v6882_v1  ;;  %v14158_v46 = vld [vmem:[#allocation33_spill] sm:$0xff] }
 0x3ae   : > { %14151 = vst [vmem:[#allocation84_spill] sm:$0xff] %v11078_v41  ;;  %v3359_v60 = vmul.f32 1.442695, %v2986_v38  ;;  %3800 = vadd.xlane.f32.xlu1 %v3799_v13  ;;  %v11082_v39 = vpop.eup %7266  ;;  %v7847_v38 = vld [vmem:[%s13039_s5 + $0x8] sm:$0xff]  ;;  %4737 = vmatprep.mubr.f32.mxu0 %v4107_v43  ;;  %v2664_v18 = vpop.xlane.xlu0 %2663 }
 0x3af   : > { %14152 = vst [vmem:[#allocation151_spill] sm:$0xff] %v11082_v39  ;;  %14154 = vst [vmem:[#allocation142_spill] sm:$0xff] %v11090_v5  ;;  %v11096_v48 = vadd.f32 %v7847_v38, %v14155_v25  ;;  %7280 = vpow2.f32 %v3357_v47  ;;  %v2987_v13 = vsub.f32 %v14157_v12, %v2664_v18  ;;  %v2988_v54 = vsub.f32 %v14158_v46, %v2664_v18  ;;  %v3732_v31 = vpop.xlane.xlu1 %3731  ;;  %v11102_v27 = vpop.f32.mrb[246].mxu1  ;;  %v14163_v12 = vld [vmem:[#allocation161_spill] sm:$0xff]  ;;  %v14164_v46 = vld [vmem:[#allocation162_spill] sm:$0xff] }
 0x3b0   : > { %4738 = vmatmul.mubr.f32.gmra.mrb[88].mxu0 %v4106_v29  ;;  %v3802_v21 = vadd.f32 %v11082_v39, %v11078_v41  ;;  %7282 = vpow2.f32 %v3359_v60  ;;  %v11106_v47 = vpop.f32.mrb[247].mxu1  ;;  %v7848_v60 = vld [vmem:[%s13039_s5 + $0x10] sm:$0xff] }
 0x3b1   : > { %14156 = vst [vmem:[#allocation141_spill] sm:$0xff] %v11096_v48  ;;  %6885 = vmatpush3.bf16.msra.mxu0 %v6882_v1  ;;  %v11104_v19 = vpop.eup %7268  ;;  %v3361_v38 = vmul.f32 1.442695, %v2987_v13  ;;  %v3363_v43 = vmul.f32 1.442695, %v2988_v54  ;;  %7284 = vrcp.f32 %v3732_v31  ;;  %2771 = vmax.xlane.f32.xlu0 %v2770_v32  ;;  %v2773_v29 = vmax.f32 %v11090_v5, %v11096_v48  ;;  %v7849_v54 = vld [vmem:[%s13039_s5 + $0x18] sm:$0xff] }
 0x3b2   : > { %14159 = vst [vmem:[#allocation22_spill] sm:$0xff] %v11104_v19  ;;  %3803 = vadd.xlane.f32.xlu1 %v3802_v21  ;;  %v11108_v25 = vpop.eup %7270  ;;  %v11116_v1 = vadd.f32 %v7848_v60, %v10430_v44  ;;  %v11122_v31 = vadd.f32 %v7849_v54, %v10434_v37  ;;  %v2667_v32 = vpop.xlane.xlu0 %2666  ;;  %v14165_v44 = vld [vmem:[#allocation7_spill] sm:$0xff]  ;;  %v14166_v48 = vld [vmem:[#allocation8_spill] sm:$0xff] }
 0x3b3   : > { %14160 = vst [vmem:[#allocation23_spill] sm:$0xff] %v11108_v25  ;;  %v7273_v18 = vpop.eup %7272  ;;  %7286 = vpow2.f32 %v3361_v38  ;;  %v2989_v13 = vsub.f32 %v14163_v12, %v2667_v32  ;;  %v2990_v21 = vsub.f32 %v14164_v46, %v2667_v32  ;;  %v3805_v41 = vadd.f32 %v11108_v25, %v11104_v19  ;;  %v11129_v39 = vpop.f32.mrb[248].mxu1 }
 0x3b4   : > { %14161 = vst [vmem:[#allocation148_spill] sm:$0xff] %v11116_v1  ;;  %14162 = vst [vmem:[#allocation147_spill] sm:$0xff] %v11122_v31  ;;  %7288 = vpow2.f32 %v3363_v43  ;;  %v4110_v60 = vmul.f32 %v7273_v18, %v14165_v44  ;;  %v4109_v5 = vmul.f32 %v7273_v18, %v14166_v48  ;;  %v11134_v38 = vpop.f32.mrb[249].mxu1  ;;  %v2776_v32 = vmax.f32 %v11116_v1, %v11122_v31  ;;  %v7850_v43 = vld [vmem:[%s13039_s5 + $0x20] sm:$0xff]  ;;  %v7851_v48 = vld [vmem:[%s13039_s5 + $0x28] sm:$0xff] }
 0x3b5   : > { %v11132_v8 = vpop.eup %7274  ;;  %v3365_v37 = vmul.f32 1.442695, %v2989_v13  ;;  %v3367_v54 = vmul.f32 1.442695, %v2990_v21  ;;  %2774 = vmax.xlane.f32.xlu0 %v2773_v29  ;;  %14168 = vst [vmem:[#allocation156_spill] sm:$0xff] %v11134_v38  ;;  %v11144_v46 = vadd.f32 %v7850_v43, %v10449_v50  ;;  %v14172_v13 = vld [vmem:[#allocation163_spill] sm:$0xff] }
 0x3b6   : > { %14167 = vst [vmem:[#allocation155_spill] sm:$0xff] %v11132_v8  ;;  %3806 = vadd.xlane.f32.xlu1 %v3805_v41  ;;  %v11136_v12 = vpop.eup %7276  ;;  %v11150_v41 = vadd.f32 %v7851_v48, %v10451_v4  ;;  %4742 = vmatprep.mubr.f32.mxu0 %v4110_v60  ;;  %v2670_v29 = vpop.xlane.xlu0 %2669  ;;  %v14173_v44 = vld [vmem:[#allocation164_spill] sm:$0xff]  ;;  %v14174_v43 = vld [vmem:[#allocation91_spill] sm:$0xff] }
 0x3b7   : > { %14169 = vst [vmem:[#allocation150_spill] sm:$0xff] %v11136_v12  ;;  %14170 = vst [vmem:[#allocation149_spill] sm:$0xff] %v11144_v46  ;;  %v7279_v18 = vpop.eup %7278  ;;  %7290 = vpow2.f32 %v3365_v37  ;;  %v2991_v21 = vsub.f32 %v14172_v13, %v2670_v29  ;;  %v2992_v19 = vsub.f32 %v14173_v44, %v2670_v29  ;;  %4743 = vmatmul.mubr.f32.gmra.mrb[90].mxu0 %v4109_v5  ;;  %v11157_v31 = vpop.f32.mrb[250].mxu1  ;;  %v14175_v1 = vld [vmem:[#allocation31_spill] sm:$0xff] }
 0x3b8   : > { %14171 = vst [vmem:[#allocation158_spill] sm:$0xff] %v11150_v41  ;;  %v3808_v50 = vadd.f32 %v11136_v12, %v11132_v8  ;;  %7292 = vpow2.f32 %v3367_v54  ;;  %v4113_v25 = vmul.f32 %v7279_v18, %v14174_v43  ;;  %v4112_v4 = vmul.f32 %v7279_v18, %v14175_v1  ;;  %v11162_v37 = vpop.f32.mrb[251].mxu1  ;;  %v7852_v54 = vld [vmem:[%s13039_s5 + $0x30] sm:$0xff] }
 0x3b9   : > { %v11160_v48 = vpop.eup %7280  ;;  %v3369_v60 = vmul.f32 1.442695, %v2991_v21  ;;  %v3371_v38 = vmul.f32 1.442695, %v2992_v19  ;;  %2777 = vmax.xlane.f32.xlu0 %v2776_v32  ;;  %v2779_v5 = vmax.f32 %v11144_v46, %v11150_v41  ;;  %v11172_v13 = vadd.f32 %v7852_v54, %v10467_v58  ;;  %v7853_v19 = vld [vmem:[%s13039_s5 + $0x38] sm:$0xff]  ;;  %v14180_v54 = vld [vmem:[#allocation160_spill] sm:$0xff] }
 0x3ba   : > { %14176 = vst [vmem:[#allocation26_spill] sm:$0xff] %v11160_v48  ;;  %3809 = vadd.xlane.f32.xlu1 %v3808_v50  ;;  %v11164_v29 = vpop.eup %7282  ;;  %v11178_v1 = vadd.f32 %v7853_v19, %v10471_v34  ;;  %4747 = vmatprep.mubr.f32.mxu0 %v4113_v25  ;;  %v2673_v32 = vpop.xlane.xlu0 %2672  ;;  %v14178_v21 = vld [vmem:[#allocation165_spill] sm:$0xff]  ;;  %v14179_v50 = vld [vmem:[#allocation166_spill] sm:$0xff]  ;;  %v14181_v41 = vld [vmem:[#allocation159_spill] sm:$0xff] }
 0x3bb   : > { %14177 = vst [vmem:[#allocation154_spill] sm:$0xff] %v11164_v29  ;;  %v7285_v18 = vpop.eup %7284  ;;  %7294 = vpow2.f32 %v3369_v60  ;;  %v2993_v44 = vsub.f32 %v14178_v21, %v2673_v32  ;;  %v2994_v43 = vsub.f32 %v14179_v50, %v2673_v32  ;;  %4748 = vmatmul.mubr.f32.gmra.mrb[92].mxu0 %v4112_v4  ;;  %v3811_v58 = vadd.f32 %v11164_v29, %v11160_v48  ;;  %v11185_v12 = vpop.f32.mrb[252].mxu1 }
 0x3bc   : > { %7296 = vpow2.f32 %v3371_v38  ;;  %v4116_v8 = vmul.f32 %v7285_v18, %v14180_v54  ;;  %v4115_v34 = vmul.f32 %v7285_v18, %v14181_v41  ;;  %v11190_v60 = vpop.f32.mrb[253].mxu1  ;;  %v2782_v4 = vmax.f32 %v11172_v13, %v11178_v1  ;;  %v7854_v38 = vld [vmem:[%s13039_s5 + $0x40] sm:$0xff]  ;;  %v7855_v41 = vld [vmem:[%s13039_s5 + $0x48] sm:$0xff] }
 0x3bd   : > { %v11188_v19 = vpop.eup %7286  ;;  %v3373_v25 = vmul.f32 1.442695, %v2993_v44  ;;  %v3375_v46 = vmul.f32 1.442695, %v2994_v43  ;;  %2780 = vmax.xlane.f32.xlu0 %v2779_v5  ;;  %v11200_v21 = vadd.f32 %v7854_v38, %v10491_v56  ;;  %v11206_v5 = vadd.f32 %v7855_v41, %v10495_v49  ;;  %v14184_v44 = vld [vmem:[#allocation167_spill] sm:$0xff]  ;;  %v14185_v43 = vld [vmem:[#allocation168_spill] sm:$0xff] }
 0x3be   : > { %14182 = vst [vmem:[#allocation171_spill] sm:$0xff] %v11188_v19  ;;  %3812 = vadd.xlane.f32.xlu1 %v3811_v58  ;;  %v11192_v32 = vpop.eup %7288  ;;  %4752 = vmatprep.mubr.f32.mxu0 %v4116_v8  ;;  %v2676_v18 = vpop.xlane.xlu0 %2675  ;;  %v7857_v41 = vld [vmem:[%s13039_s5 + $0x58] sm:$0xff] }
 0x3bf   : > { %14183 = vst [vmem:[#allocation153_spill] sm:$0xff] %v11192_v32  ;;  %7298 = vpow2.f32 %v3373_v25  ;;  %v2995_v50 = vsub.f32 %v14184_v44, %v2676_v18  ;;  %v2996_v58 = vsub.f32 %v14185_v43, %v2676_v18  ;;  %4753 = vmatmul.mubr.f32.gmra.mrb[94].mxu0 %v4115_v34  ;;  %v3814_v54 = vadd.f32 %v11192_v32, %v11188_v19  ;;  %v11212_v56 = vpop.f32.mrb[254].mxu1  ;;  %v7856_v34 = vld [vmem:[%s13039_s5 + $0x50] sm:$0xff]  ;;  %v14188_v44 = vld [vmem:[#allocation95_spill] sm:$0xff]  ;;  %v14189_v43 = vld [vmem:[#allocation97_spill] sm:$0xff] }
 0x3c0   : > { %7300 = vpow2.f32 %v3375_v46  ;;  %v11216_v49 = vpop.f32.mrb[255].mxu1  ;;  %v2785_v25 = vmax.f32 %v11200_v21, %v11206_v5  ;;  %v11226_v46 = vadd.f32 %v7856_v34, %v10515_v0 }
 0x3c1   : > { %v11214_v38 = vpop.eup %7290  ;;  %v3377_v48 = vmul.f32 1.442695, %v2995_v50  ;;  %v3379_v29 = vmul.f32 1.442695, %v2996_v58  ;;  %2783 = vmax.xlane.f32.xlu0 %v2782_v4  ;;  %v11232_v4 = vadd.f32 %v7857_v41, %v10519_v6 }
 0x3c2   : > { %14186 = vst [vmem:[#allocation66_spill] sm:$0xff] %v11214_v38  ;;  %3815 = vadd.xlane.f32.xlu1 %v3814_v54  ;;  %v11218_v8 = vpop.eup %7292  ;;  %v2679_v18 = vpop.xlane.xlu0 %2678 }
 0x3c3   : > { %14187 = vst [vmem:[#allocation72_spill] sm:$0xff] %v11218_v8  ;;  %7302 = vpow2.f32 %v3377_v48  ;;  %v2997_v50 = vsub.f32 %v14188_v44, %v2679_v18  ;;  %v2998_v58 = vsub.f32 %v14189_v43, %v2679_v18  ;;  %v3817_v54 = vadd.f32 %v11218_v8, %v11214_v38  ;;  %v7858_v48 = vld [vmem:[%s13039_s5 + $0x60] sm:$0xff]  ;;  %v14192_v44 = vld [vmem:[#allocation169_spill] sm:$0xff] }
 0x3c4   : > { %7304 = vpow2.f32 %v3379_v29  ;;  %v2788_v6 = vmax.f32 %v11226_v46, %v11232_v4  ;;  %v11248_v41 = vadd.f32 %v7858_v48, %v10539_v55  ;;  %v7859_v29 = vld [vmem:[%s13039_s5 + $0x68] sm:$0xff]  ;;  %v14193_v43 = vld [vmem:[#allocation170_spill] sm:$0xff] }
 0x3c5   : > { %v11238_v19 = vpop.eup %7294  ;;  %v3381_v0 = vmul.f32 1.442695, %v2997_v50  ;;  %v3383_v34 = vmul.f32 1.442695, %v2998_v58  ;;  %2786 = vmax.xlane.f32.xlu0 %v2785_v25  ;;  %v11254_v18 = vadd.f32 %v7859_v29, %v10543_v52 }
 0x3c6   : > { %14190 = vst [vmem:[#allocation172_spill] sm:$0xff] %v11238_v19  ;;  %3818 = vadd.xlane.f32.xlu1 %v3817_v54  ;;  %v11240_v32 = vpop.eup %7296  ;;  %v2682_v25 = vpop.xlane.xlu0 %2681 }
 0x3c7   : > { %14191 = vst [vmem:[#allocation173_spill] sm:$0xff] %v11240_v32  ;;  %7306 = vpow2.f32 %v3381_v0  ;;  %v2999_v50 = vsub.f32 %v14192_v44, %v2682_v25  ;;  %v3000_v58 = vsub.f32 %v14193_v43, %v2682_v25  ;;  %v3820_v54 = vadd.f32 %v11240_v32, %v11238_v19  ;;  %v7860_v0 = vld [vmem:[%s13039_s5 + $0x70] sm:$0xff]  ;;  %v14196_v44 = vld [vmem:[#allocation102_spill] sm:$0xff] }
 0x3c8   : > { %7308 = vpow2.f32 %v3383_v34  ;;  %v2791_v52 = vmax.f32 %v11248_v41, %v11254_v18  ;;  %v11270_v29 = vadd.f32 %v7860_v0, %v10563_v63  ;;  %v7861_v34 = vld [vmem:[%s13039_s5 + $0x78] sm:$0xff]  ;;  %v14197_v43 = vld [vmem:[#allocation104_spill] sm:$0xff] }
 0x3c9   : > { %v11260_v38 = vpop.eup %7298  ;;  %v3385_v55 = vmul.f32 1.442695, %v2999_v50  ;;  %v3387_v48 = vmul.f32 1.442695, %v3000_v58  ;;  %2789 = vmax.xlane.f32.xlu0 %v2788_v6  ;;  %v11276_v25 = vadd.f32 %v7861_v34, %v10567_v2 }
 0x3ca   : > { %14194 = vst [vmem:[#allocation69_spill] sm:$0xff] %v11260_v38  ;;  %3821 = vadd.xlane.f32.xlu1 %v3820_v54  ;;  %v11262_v8 = vpop.eup %7300  ;;  %v2685_v6 = vpop.xlane.xlu0 %2684 }
 0x3cb   : > { %14195 = vst [vmem:[#allocation75_spill] sm:$0xff] %v11262_v8  ;;  %7310 = vpow2.f32 %v3385_v55  ;;  %v3001_v50 = vsub.f32 %v14196_v44, %v2685_v6  ;;  %v3002_v58 = vsub.f32 %v14197_v43, %v2685_v6  ;;  %v3823_v54 = vadd.f32 %v11262_v8, %v11260_v38  ;;  %v7862_v55 = vld [vmem:[%s13039_s5 + $0x80] sm:$0xff] }
 0x3cc   : > { %7312 = vpow2.f32 %v3387_v48  ;;  %v2794_v2 = vmax.f32 %v11270_v29, %v11276_v25  ;;  %v11292_v34 = vadd.f32 %v7862_v55, %v10587_v3  ;;  %v7863_v48 = vld [vmem:[%s13039_s5 + $0x88] sm:$0xff]  ;;  %v14200_v44 = vld [vmem:[#allocation10_spill] sm:$0xff] }
 0x3cd   : > { %v11282_v19 = vpop.eup %7302  ;;  %v3389_v63 = vmul.f32 1.442695, %v3001_v50  ;;  %v3391_v0 = vmul.f32 1.442695, %v3002_v58  ;;  %2792 = vmax.xlane.f32.xlu0 %v2791_v52  ;;  %v11298_v6 = vadd.f32 %v7863_v48, %v10591_v53  ;;  %v14201_v43 = vld [vmem:[#allocation106_spill] sm:$0xff] }
 0x3ce   : > { %14198 = vst [vmem:[#allocation174_spill] sm:$0xff] %v11282_v19  ;;  %3824 = vadd.xlane.f32.xlu1 %v3823_v54  ;;  %v11284_v32 = vpop.eup %7304  ;;  %v2688_v52 = vpop.xlane.xlu0 %2687 }
 0x3cf   : > { %14199 = vst [vmem:[#allocation175_spill] sm:$0xff] %v11284_v32  ;;  %7314 = vpow2.f32 %v3389_v63  ;;  %v3003_v50 = vsub.f32 %v14200_v44, %v2688_v52  ;;  %v3004_v58 = vsub.f32 %v14201_v43, %v2688_v52  ;;  %v3826_v54 = vadd.f32 %v11284_v32, %v11282_v19  ;;  %v7864_v63 = vld [vmem:[%s13039_s5 + $0x90] sm:$0xff]  ;;  %v14204_v44 = vld [vmem:[#allocation13_spill] sm:$0xff] }
 0x3d0   : > { %7316 = vpow2.f32 %v3391_v0  ;;  %v2797_v53 = vmax.f32 %v11292_v34, %v11298_v6  ;;  %v11314_v48 = vadd.f32 %v7864_v63, %v10611_v59  ;;  %v7865_v0 = vld [vmem:[%s13039_s5 + $0x98] sm:$0xff]  ;;  %v14205_v43 = vld [vmem:[#allocation124_spill] sm:$0xff] }
 0x3d1   : > { %v11304_v38 = vpop.eup %7306  ;;  %v3393_v3 = vmul.f32 1.442695, %v3003_v50  ;;  %v3395_v55 = vmul.f32 1.442695, %v3004_v58  ;;  %2795 = vmax.xlane.f32.xlu0 %v2794_v2  ;;  %v11320_v52 = vadd.f32 %v7865_v0, %v10615_v33 }
 0x3d2   : > { %14202 = vst [vmem:[#allocation85_spill] sm:$0xff] %v11304_v38  ;;  %3827 = vadd.xlane.f32.xlu1 %v3826_v54  ;;  %v11306_v8 = vpop.eup %7308  ;;  %v2691_v2 = vpop.xlane.xlu0 %2690 }
 0x3d3   : > { %14203 = vst [vmem:[#allocation87_spill] sm:$0xff] %v11306_v8  ;;  %7318 = vpow2.f32 %v3393_v3  ;;  %v3005_v50 = vsub.f32 %v14204_v44, %v2691_v2  ;;  %v3006_v58 = vsub.f32 %v14205_v43, %v2691_v2  ;;  %v3829_v54 = vadd.f32 %v11306_v8, %v11304_v38  ;;  %v7866_v3 = vld [vmem:[%s13039_s5 + $0xa0] sm:$0xff] }
 0x3d4   : > { %7320 = vpow2.f32 %v3395_v55  ;;  %v2800_v33 = vmax.f32 %v11314_v48, %v11320_v52  ;;  %v11336_v0 = vadd.f32 %v7866_v3, %v10635_v35  ;;  %v7867_v55 = vld [vmem:[%s13039_s5 + $0xa8] sm:$0xff] }
 0x3d5   : > { %v11326_v19 = vpop.eup %7310  ;;  %v3397_v59 = vmul.f32 1.442695, %v3005_v50  ;;  %v3399_v63 = vmul.f32 1.442695, %v3006_v58  ;;  %2798 = vmax.xlane.f32.xlu0 %v2797_v53  ;;  %v11342_v2 = vadd.f32 %v7867_v55, %v10639_v30  ;;  %v14210_v50 = vld [vmem:[#allocation36_spill] sm:$0xff] }
 0x3d6   : > { %14206 = vst [vmem:[#allocation107_spill] sm:$0xff] %v11326_v19  ;;  %3830 = vadd.xlane.f32.xlu1 %v3829_v54  ;;  %v11328_v32 = vpop.eup %7312  ;;  %14208 = vst [vmem:[#allocation74_spill] sm:$0xff] %v11336_v0  ;;  %v2694_v53 = vpop.xlane.xlu0 %2693 }
 0x3d7   : > { %14207 = vst [vmem:[#allocation28_spill] sm:$0xff] %v11328_v32  ;;  %14209 = vst [vmem:[#allocation80_spill] sm:$0xff] %v11342_v2  ;;  %7322 = vpow2.f32 %v3397_v59  ;;  %v3007_v44 = vsub.f32 %v10404_v16, %v2694_v53  ;;  %v3008_v43 = vsub.f32 %v14210_v50, %v2694_v53  ;;  %v3832_v58 = vadd.f32 %v11328_v32, %v11326_v19  ;;  %v7868_v16 = vld [vmem:[%s13039_s5 + $0xb0] sm:$0xff]  ;;  %v14213_v59 = vld [vmem:[#allocation131_spill] sm:$0xff] }
 0x3d8   : > { %7324 = vpow2.f32 %v3399_v63  ;;  %v2803_v30 = vmax.f32 %v11336_v0, %v11342_v2  ;;  %v11358_v55 = vadd.f32 %v7868_v16, %v14213_v59  ;;  %v7869_v63 = vld [vmem:[%s13039_s5 + $0xb8] sm:$0xff]  ;;  %v14214_v53 = vld [vmem:[#allocation35_spill] sm:$0xff] }
 0x3d9   : > { %v11348_v54 = vpop.eup %7314  ;;  %v3401_v35 = vmul.f32 1.442695, %v3007_v44  ;;  %v3403_v3 = vmul.f32 1.442695, %v3008_v43  ;;  %2801 = vmax.xlane.f32.xlu0 %v2800_v33  ;;  %v11364_v44 = vadd.f32 %v7869_v63, %v14214_v53  ;;  %v14215_v50 = vld [vmem:[#allocation129_spill] sm:$0xff]  ;;  %v7871_v53 = vld [vmem:[%s13039_s5 + $0xc8] sm:$0xff] }
 0x3da   : > { %14211 = vst [vmem:[#allocation25_spill] sm:$0xff] %v11348_v54  ;;  %3833 = vadd.xlane.f32.xlu1 %v3832_v58  ;;  %v11350_v38 = vpop.eup %7316  ;;  %v2697_v33 = vpop.xlane.xlu0 %2696  ;;  %v14216_v58 = vld [vmem:[#allocation109_spill] sm:$0xff] }
 0x3db   : > { %14212 = vst [vmem:[#allocation24_spill] sm:$0xff] %v11350_v38  ;;  %7326 = vpow2.f32 %v3401_v35  ;;  %v3009_v43 = vsub.f32 %v14215_v50, %v2697_v33  ;;  %v3010_v19 = vsub.f32 %v14216_v58, %v2697_v33  ;;  %v3835_v32 = vadd.f32 %v11350_v38, %v11348_v54  ;;  %v7870_v35 = vld [vmem:[%s13039_s5 + $0xc0] sm:$0xff] }
 0x3dc   : > { %7328 = vpow2.f32 %v3403_v3  ;;  %v11378_v63 = vadd.f32 %v7870_v35, %v10683_v40  ;;  %v14219_v3 = vld [vmem:[#allocation101_spill] sm:$0xff]  ;;  %v14223_v58 = vld [vmem:[#allocation98_spill] sm:$0xff] }
 0x3dd   : > { %v11370_v8 = vpop.eup %7318  ;;  %v3405_v16 = vmul.f32 1.442695, %v3009_v43  ;;  %v3407_v59 = vmul.f32 1.442695, %v3010_v19  ;;  %2804 = vmax.xlane.f32.xlu0 %v2803_v30  ;;  %v11384_v33 = vadd.f32 %v7871_v53, %v14219_v3  ;;  %v11386_v19 = vpop.f32.mrb[32].mxu0  ;;  %v14222_v30 = vld [vmem:[#allocation96_spill] sm:$0xff] }
 0x3de   : > { %14217 = vst [vmem:[#allocation128_spill] sm:$0xff] %v11370_v8  ;;  %3836 = vadd.xlane.f32.xlu1 %v3835_v32  ;;  %v11372_v2 = vpop.eup %7320  ;;  %v2700_v50 = vpop.xlane.xlu0 %2699  ;;  %14221 = vst [vmem:[#allocation33_spill] sm:$0xff] %v11386_v19  ;;  %v2806_v32 = vmax.f32 %v11358_v55, %v11364_v44 }
 0x3df   : > { %14218 = vst [vmem:[#allocation12_spill] sm:$0xff] %v11372_v2  ;;  %14220 = vst [vmem:[#allocation5_spill] sm:$0xff] %v11384_v33  ;;  %7330 = vpow2.f32 %v3405_v16  ;;  %v3011_v43 = vsub.f32 %v14222_v30, %v2700_v50  ;;  %v3012_v54 = vsub.f32 %v14223_v58, %v2700_v50  ;;  %v4601_v40 = vpop.f32.mrb[33].mxu0  ;;  %v3838_v35 = vadd.f32 %v11372_v2, %v11370_v8  ;;  %v7872_v16 = vld [vmem:[%s13039_s5 + $0xd0] sm:$0xff] }
 0x3e0   : > { %7332 = vpow2.f32 %v3407_v59  ;;  %v2809_v19 = vmax.f32 %v11378_v63, %v11384_v33  ;;  %v11404_v50 = vadd.f32 %v7872_v16, %v10711_v61  ;;  %v7873_v59 = vld [vmem:[%s13039_s5 + $0xd8] sm:$0xff] }
 0x3e1   : > { %v11394_v38 = vpop.eup %7322  ;;  %v3409_v53 = vmul.f32 1.442695, %v3011_v43  ;;  %v3411_v3 = vmul.f32 1.442695, %v3012_v54  ;;  %2807 = vmax.xlane.f32.xlu0 %v2806_v32  ;;  %v11410_v30 = vadd.f32 %v7873_v59, %v10715_v51  ;;  %v3735_v54 = vpop.xlane.xlu1 %3734  ;;  %v14226_v43 = vld [vmem:[#allocation86_spill] sm:$0xff]  ;;  %v14227_v40 = vld [vmem:[#allocation29_spill] sm:$0xff] }
 0x3e2   : > { %14224 = vst [vmem:[#allocation161_spill] sm:$0xff] %v11394_v38  ;;  %v11396_v0 = vpop.eup %7324  ;;  %3839 = vadd.xlane.f32.xlu1 %v3838_v35  ;;  %v2703_v32 = vpop.xlane.xlu0 %2702 }
 0x3e3   : > { %14225 = vst [vmem:[#allocation162_spill] sm:$0xff] %v11396_v0  ;;  %7334 = vpow2.f32 %v3409_v53  ;;  %v3013_v58 = vsub.f32 %v14226_v43, %v2703_v32  ;;  %v3014_v8 = vsub.f32 %v14227_v40, %v2703_v32  ;;  %v11414_v2 = vpop.f32.mrb[34].mxu0  ;;  %v3841_v61 = vadd.f32 %v11396_v0, %v11394_v38  ;;  %v7874_v32 = vld [vmem:[%s13039_s5 + $0xe0] sm:$0xff] }
 0x3e4   : > { %14228 = vst [vmem:[#allocation7_spill] sm:$0xff] %v11414_v2  ;;  %7336 = vpow2.f32 %v3411_v3  ;;  %v4606_v16 = vpop.f32.mrb[35].mxu0  ;;  %v2812_v53 = vmax.f32 %v11404_v50, %v11410_v30  ;;  %v11428_v43 = vadd.f32 %v7874_v32, %v10745_v23  ;;  %v7875_v3 = vld [vmem:[%s13039_s5 + $0xe8] sm:$0xff] }
 0x3e5   : > { %v11418_v33 = vpop.eup %7326  ;;  %7338 = vrcp.f32 %v3735_v54  ;;  %v3413_v51 = vmul.f32 1.442695, %v3013_v58  ;;  %v3415_v59 = vmul.f32 1.442695, %v3014_v8  ;;  %2810 = vmax.xlane.f32.xlu0 %v2809_v19  ;;  %v11434_v54 = vadd.f32 %v7875_v3, %v10755_v15  ;;  %v3738_v8 = vpop.xlane.xlu1 %3737  ;;  %v14232_v58 = vld [vmem:[#allocation21_spill] sm:$0xff]  ;;  %v14233_v16 = vld [vmem:[#allocation111_spill] sm:$0xff] }
 0x3e6   : > { %14229 = vst [vmem:[#allocation8_spill] sm:$0xff] %v11418_v33  ;;  %v11420_v35 = vpop.eup %7328  ;;  %3842 = vadd.xlane.f32.xlu1 %v3841_v61  ;;  %v2706_v19 = vpop.xlane.xlu0 %2705 }
 0x3e7   : > { %14230 = vst [vmem:[#allocation163_spill] sm:$0xff] %v11420_v35  ;;  %14231 = vst [vmem:[#allocation164_spill] sm:$0xff] %v11434_v54  ;;  %7340 = vpow2.f32 %v3413_v51  ;;  %v3015_v40 = vsub.f32 %v14232_v58, %v2706_v19  ;;  %v3016_v2 = vsub.f32 %v14233_v16, %v2706_v19  ;;  %v11438_v38 = vpop.f32.mrb[36].mxu0  ;;  %v3844_v23 = vadd.f32 %v11420_v35, %v11418_v33  ;;  %v7876_v19 = vld [vmem:[%s13039_s5 + $0xf0] sm:$0xff] }
 0x3e8   : > { %14234 = vst [vmem:[#allocation91_spill] sm:$0xff] %v11438_v38  ;;  %7342 = vpow2.f32 %v3415_v59  ;;  %v4611_v32 = vpop.f32.mrb[37].mxu0  ;;  %v2815_v51 = vmax.f32 %v11428_v43, %v11434_v54  ;;  %v11452_v58 = vadd.f32 %v7876_v19, %v10767_v62  ;;  %v7877_v59 = vld [vmem:[%s13039_s5 + $0xf8] sm:$0xff] }
 0x3e9   : > { %v11442_v0 = vpop.eup %7330  ;;  %7344 = vrcp.f32 %v3738_v8  ;;  %v3417_v15 = vmul.f32 1.442695, %v3015_v40  ;;  %v3419_v3 = vmul.f32 1.442695, %v3016_v2  ;;  %2813 = vmax.xlane.f32.xlu0 %v2812_v53  ;;  %v11458_v8 = vadd.f32 %v7877_v59, %v10773_v24  ;;  %v3741_v2 = vpop.xlane.xlu1 %3740  ;;  %v14239_v40 = vld [vmem:[#allocation92_spill] sm:$0xff]  ;;  %v14240_v32 = vld [vmem:[#allocation90_spill] sm:$0xff] }
 0x3ea   : > { %14235 = vst [vmem:[#allocation31_spill] sm:$0xff] %v11442_v0  ;;  %v11444_v61 = vpop.eup %7332  ;;  %14237 = vst [vmem:[#allocation166_spill] sm:$0xff] %v11452_v58  ;;  %3845 = vadd.xlane.f32.xlu1 %v3844_v23  ;;  %v2709_v53 = vpop.xlane.xlu0 %2708 }
 0x3eb   : > { %14236 = vst [vmem:[#allocation165_spill] sm:$0xff] %v11444_v61  ;;  %14238 = vst [vmem:[#allocation160_spill] sm:$0xff] %v11458_v8  ;;  %7346 = vpow2.f32 %v3417_v15  ;;  %v3017_v16 = vsub.f32 %v14239_v40, %v2709_v53  ;;  %v3018_v38 = vsub.f32 %v14240_v32, %v2709_v53  ;;  %v11462_v33 = vpop.f32.mrb[38].mxu0  ;;  %v3847_v62 = vadd.f32 %v11444_v61, %v11442_v0  ;;  %v7878_v53 = vld [vmem:[%s13039_s5 + $0x100] sm:$0xff]  ;;  %v14244_v32 = vld [vmem:[#allocation113_spill] sm:$0xff] }
 0x3ec   : > { %14241 = vst [vmem:[#allocation159_spill] sm:$0xff] %v11462_v33  ;;  %7348 = vpow2.f32 %v3419_v3  ;;  %v4616_v19 = vpop.f32.mrb[39].mxu0  ;;  %v2818_v15 = vmax.f32 %v11452_v58, %v11458_v8  ;;  %v11476_v40 = vadd.f32 %v7878_v53, %v10801_v36  ;;  %v7879_v3 = vld [vmem:[%s13039_s5 + $0x108] sm:$0xff]  ;;  %v14247_v8 = vld [vmem:[#allocation48_spill] sm:$0xff] }
 0x3ed   : > { %v11466_v35 = vpop.eup %7334  ;;  %7350 = vrcp.f32 %v3741_v2  ;;  %v3421_v24 = vmul.f32 1.442695, %v3017_v16  ;;  %v3423_v59 = vmul.f32 1.442695, %v3018_v38  ;;  %2816 = vmax.xlane.f32.xlu0 %v2815_v51  ;;  %v11482_v2 = vadd.f32 %v7879_v3, %v10811_v10  ;;  %v3744_v38 = vpop.xlane.xlu1 %3743  ;;  %v14245_v33 = vld [vmem:[#allocation103_spill] sm:$0xff] }
 0x3ee   : > { %14242 = vst [vmem:[#allocation167_spill] sm:$0xff] %v11466_v35  ;;  %v11468_v23 = vpop.eup %7336  ;;  %3848 = vadd.xlane.f32.xlu1 %v3847_v62  ;;  %v2712_v51 = vpop.xlane.xlu0 %2711  ;;  %v14246_v53 = vld [vmem:[#allocation15_spill] sm:$0xff] }
 0x3ef   : > { %14243 = vst [vmem:[#allocation168_spill] sm:$0xff] %v11468_v23  ;;  %v7339_v16 = vpop.eup %7338  ;;  %7352 = vpow2.f32 %v3421_v24  ;;  %v3019_v19 = vsub.f32 %v14244_v32, %v2712_v51  ;;  %v3020_v0 = vsub.f32 %v14245_v33, %v2712_v51  ;;  %v3850_v36 = vadd.f32 %v11468_v23, %v11466_v35  ;;  %v7880_v33 = vld [vmem:[%s13039_s5 + $0x110] sm:$0xff]  ;;  %v14253_v23 = vld [vmem:[#allocation99_spill] sm:$0xff] }
 0x3f0   : > { %7354 = vpow2.f32 %v3423_v59  ;;  %v4119_v61 = vmul.f32 %v7339_v16, %v14246_v53  ;;  %v4118_v58 = vmul.f32 %v7339_v16, %v14247_v8  ;;  %v2821_v24 = vmax.f32 %v11476_v40, %v11482_v2  ;;  %v7881_v8 = vld [vmem:[%s13039_s5 + $0x118] sm:$0xff]  ;;  %v14250_v16 = vld [vmem:[#allocation116_spill] sm:$0xff] }
 0x3f1   : > { %v11490_v54 = vpop.eup %7340  ;;  %7356 = vrcp.f32 %v3744_v38  ;;  %v3425_v10 = vmul.f32 1.442695, %v3019_v19  ;;  %v3427_v62 = vmul.f32 1.442695, %v3020_v0  ;;  %2819 = vmax.xlane.f32.xlu0 %v2818_v15  ;;  %v11500_v59 = vadd.f32 %v7880_v33, %v10822_v20  ;;  %v3747_v0 = vpop.xlane.xlu1 %3746  ;;  %v14251_v19 = vld [vmem:[#allocation118_spill] sm:$0xff]  ;;  %v14252_v33 = vld [vmem:[#allocation100_spill] sm:$0xff] }
 0x3f2   : > { %14248 = vst [vmem:[#allocation95_spill] sm:$0xff] %v11490_v54  ;;  %v11492_v3 = vpop.eup %7342  ;;  %v11506_v38 = vadd.f32 %v7881_v8, %v10828_v17  ;;  %4757 = vmatprep.mubr.f32.mxu0 %v4119_v61  ;;  %3851 = vadd.xlane.f32.xlu1 %v3850_v36  ;;  %v2715_v15 = vpop.xlane.xlu0 %2714 }
 0x3f3   : > { %14249 = vst [vmem:[#allocation97_spill] sm:$0xff] %v11492_v3  ;;  %v7345_v51 = vpop.eup %7344  ;;  %7358 = vpow2.f32 %v3425_v10  ;;  %4758 = vmatmul.mubr.f32.gmra.mrb[96].mxu0 %v4118_v58  ;;  %v3021_v32 = vsub.f32 %v14250_v16, %v2715_v15  ;;  %v3022_v53 = vsub.f32 %v14251_v19, %v2715_v15  ;;  %v3853_v20 = vadd.f32 %v11492_v3, %v11490_v54  ;;  %v7882_v15 = vld [vmem:[%s13039_s5 + $0x120] sm:$0xff] }
 0x3f4   : > { %7360 = vpow2.f32 %v3427_v62  ;;  %v4122_v35 = vmul.f32 %v7345_v51, %v14252_v33  ;;  %v4121_v17 = vmul.f32 %v7345_v51, %v14253_v23  ;;  %v2824_v58 = vmax.f32 %v11500_v59, %v11506_v38  ;;  %v7883_v23 = vld [vmem:[%s13039_s5 + $0x128] sm:$0xff]  ;;  %v14259_v3 = vld [vmem:[#allocation14_spill] sm:$0xff] }
 0x3f5   : > { %v11514_v8 = vpop.eup %7346  ;;  %7362 = vrcp.f32 %v3747_v0  ;;  %v3429_v61 = vmul.f32 1.442695, %v3021_v32  ;;  %v3431_v36 = vmul.f32 1.442695, %v3022_v53  ;;  %2822 = vmax.xlane.f32.xlu0 %v2821_v24  ;;  %v11524_v62 = vadd.f32 %v7882_v15, %v10856_v26  ;;  %v3750_v24 = vpop.xlane.xlu1 %3749  ;;  %v14256_v32 = vld [vmem:[#allocation61_spill] sm:$0xff] }
 0x3f6   : > { %14254 = vst [vmem:[#allocation169_spill] sm:$0xff] %v11514_v8  ;;  %v11516_v10 = vpop.eup %7348  ;;  %v11530_v0 = vadd.f32 %v7883_v23, %v10866_v57  ;;  %4762 = vmatprep.mubr.f32.mxu0 %v4122_v35  ;;  %3854 = vadd.xlane.f32.xlu1 %v3853_v20  ;;  %v2718_v51 = vpop.xlane.xlu0 %2717  ;;  %v14257_v53 = vld [vmem:[#allocation89_spill] sm:$0xff] }
 0x3f7   : > { %14255 = vst [vmem:[#allocation170_spill] sm:$0xff] %v11516_v10  ;;  %v7351_v16 = vpop.eup %7350  ;;  %7364 = vpow2.f32 %v3429_v61  ;;  %4763 = vmatmul.mubr.f32.gmra.mrb[98].mxu0 %v4121_v17  ;;  %v3023_v19 = vsub.f32 %v14256_v32, %v2718_v51  ;;  %v3024_v33 = vsub.f32 %v14257_v53, %v2718_v51  ;;  %v3856_v26 = vadd.f32 %v11516_v10, %v11514_v8  ;;  %v14258_v15 = vld [vmem:[#allocation81_spill] sm:$0xff]  ;;  %v7884_v51 = vld [vmem:[%s13039_s5 + $0x130] sm:$0xff] }
 0x3f8   : > { %7366 = vpow2.f32 %v3431_v36  ;;  %v4125_v54 = vmul.f32 %v7351_v16, %v14258_v15  ;;  %v4124_v57 = vmul.f32 %v7351_v16, %v14259_v3  ;;  %v2827_v17 = vmax.f32 %v11524_v62, %v11530_v0  ;;  %v7885_v3 = vld [vmem:[%s13039_s5 + $0x138] sm:$0xff] }
 0x3f9   : > { %v11538_v23 = vpop.eup %7352  ;;  %7368 = vrcp.f32 %v3750_v24  ;;  %v3433_v35 = vmul.f32 1.442695, %v3023_v19  ;;  %v3435_v20 = vmul.f32 1.442695, %v3024_v33  ;;  %2825 = vmax.xlane.f32.xlu0 %v2824_v58  ;;  %v11548_v36 = vadd.f32 %v7884_v51, %v10878_v22  ;;  %v3753_v58 = vpop.xlane.xlu1 %3752  ;;  %v14262_v19 = vld [vmem:[#allocation93_spill] sm:$0xff]  ;;  %v14263_v33 = vld [vmem:[#allocation62_spill] sm:$0xff] }
 0x3fa   : > { %14260 = vst [vmem:[#allocation102_spill] sm:$0xff] %v11538_v23  ;;  %v11540_v61 = vpop.eup %7354  ;;  %v11554_v24 = vadd.f32 %v7885_v3, %v10884_v9  ;;  %4767 = vmatprep.mubr.f32.mxu0 %v4125_v54  ;;  %3857 = vadd.xlane.f32.xlu1 %v3856_v26  ;;  %v2721_v16 = vpop.xlane.xlu0 %2720  ;;  %v14264_v51 = vld [vmem:[#allocation9_spill] sm:$0xff] }
 0x3fb   : > { %14261 = vst [vmem:[#allocation104_spill] sm:$0xff] %v11540_v61  ;;  %v7357_v32 = vpop.eup %7356  ;;  %7370 = vpow2.f32 %v3433_v35  ;;  %4768 = vmatmul.mubr.f32.gmra.mrb[100].mxu0 %v4124_v57  ;;  %v3025_v53 = vsub.f32 %v14262_v19, %v2721_v16  ;;  %v3026_v15 = vsub.f32 %v14263_v33, %v2721_v16  ;;  %v3859_v22 = vadd.f32 %v11540_v61, %v11538_v23  ;;  %v14265_v10 = vld [vmem:[#allocation105_spill] sm:$0xff]  ;;  %v7886_v16 = vld [vmem:[%s13039_s5 + $0x140] sm:$0xff] }
 0x3fc   : > { %7372 = vpow2.f32 %v3435_v20  ;;  %v4128_v8 = vmul.f32 %v7357_v32, %v14264_v51  ;;  %v4127_v9 = vmul.f32 %v7357_v32, %v14265_v10  ;;  %v2830_v57 = vmax.f32 %v11548_v36, %v11554_v24  ;;  %v7887_v10 = vld [vmem:[%s13039_s5 + $0x148] sm:$0xff]  ;;  %v14271_v61 = vld [vmem:[#allocation30_spill] sm:$0xff] }
 0x3fd   : > { %v11562_v3 = vpop.eup %7358  ;;  %7374 = vrcp.f32 %v3753_v58  ;;  %v3437_v54 = vmul.f32 1.442695, %v3025_v53  ;;  %v3439_v26 = vmul.f32 1.442695, %v3026_v15  ;;  %2828 = vmax.xlane.f32.xlu0 %v2827_v17  ;;  %v11572_v20 = vadd.f32 %v7886_v16, %v10906_v45  ;;  %v3756_v17 = vpop.xlane.xlu1 %3755  ;;  %v14268_v53 = vld [vmem:[#allocation126_spill] sm:$0xff]  ;;  %v14269_v15 = vld [vmem:[#allocation127_spill] sm:$0xff] }
 0x3fe   : > { %14266 = vst [vmem:[#allocation10_spill] sm:$0xff] %v11562_v3  ;;  %v11564_v35 = vpop.eup %7360  ;;  %v11578_v58 = vadd.f32 %v7887_v10, %v10910_v28  ;;  %4772 = vmatprep.mubr.f32.mxu0 %v4128_v8  ;;  %3860 = vadd.xlane.f32.xlu1 %v3859_v22  ;;  %v2724_v32 = vpop.xlane.xlu0 %2723  ;;  %v14270_v16 = vld [vmem:[#allocation60_spill] sm:$0xff] }
 0x3ff   : > { %14267 = vst [vmem:[#allocation106_spill] sm:$0xff] %v11564_v35  ;;  %v7363_v19 = vpop.eup %7362  ;;  %7376 = vpow2.f32 %v3437_v54  ;;  %4773 = vmatmul.mubr.f32.gmra.mrb[102].mxu0 %v4127_v9  ;;  %v3027_v33 = vsub.f32 %v14268_v53, %v2724_v32  ;;  %v3028_v51 = vsub.f32 %v14269_v15, %v2724_v32  ;;  %v3862_v45 = vadd.f32 %v11564_v35, %v11562_v3  ;;  %v7888_v32 = vld [vmem:[%s13039_s5 + $0x150] sm:$0xff]  ;;  %v14279_v35 = vld [vmem:[#allocation121_spill] sm:$0xff] }
 0x400   : > { %7378 = vpow2.f32 %v3439_v26  ;;  %v4131_v23 = vmul.f32 %v7363_v19, %v14270_v16  ;;  %v4130_v28 = vmul.f32 %v7363_v19, %v14271_v61  ;;  %v2833_v9 = vmax.f32 %v11572_v20, %v11578_v58  ;;  %v7889_v61 = vld [vmem:[%s13039_s5 + $0x158] sm:$0xff] }
 0x401   : > { %v11586_v10 = vpop.eup %7364  ;;  %7380 = vrcp.f32 %v3756_v17  ;;  %v3441_v8 = vmul.f32 1.442695, %v3027_v33  ;;  %v3443_v22 = vmul.f32 1.442695, %v3028_v51  ;;  %2831 = vmax.xlane.f32.xlu0 %v2830_v57  ;;  %v11596_v26 = vadd.f32 %v7888_v32, %v10934_v7  ;;  %v3759_v57 = vpop.xlane.xlu1 %3758  ;;  %v14276_v33 = vld [vmem:[#allocation110_spill] sm:$0xff]  ;;  %v14277_v51 = vld [vmem:[#allocation32_spill] sm:$0xff] }
 0x402   : > { %14272 = vst [vmem:[#allocation13_spill] sm:$0xff] %v11586_v10  ;;  %v11588_v54 = vpop.eup %7366  ;;  %v11602_v17 = vadd.f32 %v7889_v61, %v10938_v42  ;;  %4777 = vmatprep.mubr.f32.mxu0 %v4131_v23  ;;  %3863 = vadd.xlane.f32.xlu1 %v3862_v45  ;;  %v2727_v19 = vpop.xlane.xlu0 %2726  ;;  %v14278_v32 = vld [vmem:[#allocation123_spill] sm:$0xff] }
 0x403   : > { %14273 = vst [vmem:[#allocation124_spill] sm:$0xff] %v11588_v54  ;;  %14274 = vst [vmem:[#allocation36_spill] sm:$0xff] %v11596_v26  ;;  %v7369_v53 = vpop.eup %7368  ;;  %7382 = vpow2.f32 %v3441_v8  ;;  %4778 = vmatmul.mubr.f32.gmra.mrb[104].mxu0 %v4130_v28  ;;  %v3029_v15 = vsub.f32 %v14276_v33, %v2727_v19  ;;  %v3030_v16 = vsub.f32 %v14277_v51, %v2727_v19  ;;  %v7890_v19 = vld [vmem:[%s13039_s5 + $0x160] sm:$0xff] }
 0x404   : > { %14275 = vst [vmem:[#allocation131_spill] sm:$0xff] %v11602_v17  ;;  %v3865_v7 = vadd.f32 %v11588_v54, %v11586_v10  ;;  %7384 = vpow2.f32 %v3443_v22  ;;  %v4134_v3 = vmul.f32 %v7369_v53, %v14278_v32  ;;  %v4133_v42 = vmul.f32 %v7369_v53, %v14279_v35  ;;  %v14282_v22 = vld [vmem:[#allocation115_spill] sm:$0xff]  ;;  %v14287_v10 = vld [vmem:[#allocation34_spill] sm:$0xff] }
 0x405   : > { %v11610_v61 = vpop.eup %7370  ;;  %7386 = vrcp.f32 %v3759_v57  ;;  %v3445_v23 = vmul.f32 1.442695, %v3029_v15  ;;  %v3447_v45 = vmul.f32 1.442695, %v3030_v16  ;;  %2834 = vmax.xlane.f32.xlu0 %v2833_v9  ;;  %v2836_v28 = vmax.f32 %v11596_v26, %v11602_v17  ;;  %v7891_v35 = vld [vmem:[%s13039_s5 + $0x168] sm:$0xff]  ;;  %v14284_v57 = vld [vmem:[#allocation20_spill] sm:$0xff] }
 0x406   : > { %14280 = vst [vmem:[#allocation35_spill] sm:$0xff] %v11610_v61  ;;  %v11612_v8 = vpop.eup %7372  ;;  %v11620_v33 = vadd.f32 %v7890_v19, %v14282_v22  ;;  %v11626_v53 = vadd.f32 %v7891_v35, %v14284_v57  ;;  %4782 = vmatprep.mubr.f32.mxu0 %v4134_v3  ;;  %3866 = vadd.xlane.f32.xlu1 %v3865_v7  ;;  %v2730_v15 = vpop.xlane.xlu0 %2729  ;;  %v14286_v16 = vld [vmem:[#allocation65_spill] sm:$0xff]  ;;  %v14288_v22 = vld [vmem:[#allocation88_spill] sm:$0xff]  ;;  %v14289_v26 = vld [vmem:[#allocation63_spill] sm:$0xff] }
 0x407   : > { %14281 = vst [vmem:[#allocation129_spill] sm:$0xff] %v11612_v8  ;;  %v3762_v9 = vpop.xlane.xlu1 %3761  ;;  %v7375_v51 = vpop.eup %7374  ;;  %7388 = vpow2.f32 %v3445_v23  ;;  %4783 = vmatmul.mubr.f32.gmra.mrb[106].mxu0 %v4133_v42  ;;  %v3031_v32 = vsub.f32 %v14286_v16, %v2730_v15  ;;  %v3032_v54 = vsub.f32 %v14287_v10, %v2730_v15  ;;  %v3868_v19 = vadd.f32 %v11612_v8, %v11610_v61  ;;  %v7892_v10 = vld [vmem:[%s13039_s5 + $0x170] sm:$0xff]  ;;  %v14297_v61 = vld [vmem:[#allocation11_spill] sm:$0xff] }
 0x408   : > { %14283 = vst [vmem:[#allocation109_spill] sm:$0xff] %v11620_v33  ;;  %14285 = vst [vmem:[#allocation101_spill] sm:$0xff] %v11626_v53  ;;  %7390 = vpow2.f32 %v3447_v45  ;;  %v4137_v17 = vmul.f32 %v7375_v51, %v14288_v22  ;;  %v4136_v35 = vmul.f32 %v7375_v51, %v14289_v26  ;;  %v2839_v42 = vmax.f32 %v11620_v33, %v11626_v53  ;;  %v14292_v45 = vld [vmem:[#allocation53_spill] sm:$0xff]  ;;  %v14299_v33 = vld [vmem:[#allocation94_spill] sm:$0xff] }
 0x409   : > { %v11634_v57 = vpop.eup %7376  ;;  %7392 = vrcp.f32 %v3762_v9  ;;  %v3449_v3 = vmul.f32 1.442695, %v3031_v32  ;;  %v3451_v7 = vmul.f32 1.442695, %v3032_v54  ;;  %2837 = vmax.xlane.f32.xlu0 %v2836_v28  ;;  %v11644_v15 = vadd.f32 %v7892_v10, %v14292_v45  ;;  %v7893_v26 = vld [vmem:[%s13039_s5 + $0x178] sm:$0xff]  ;;  %v14296_v32 = vld [vmem:[#allocation114_spill] sm:$0xff] }
 0x40a   : > { %14290 = vst [vmem:[#allocation96_spill] sm:$0xff] %v11634_v57  ;;  %v11636_v23 = vpop.eup %7378  ;;  %v14294_v9 = vld [vmem:[#allocation125_spill] sm:$0xff]  ;;  %4787 = vmatprep.mubr.f32.mxu0 %v4137_v17  ;;  %3869 = vadd.xlane.f32.xlu1 %v3868_v19  ;;  %v2733_v28 = vpop.xlane.xlu0 %2732  ;;  %v14298_v45 = vld [vmem:[#allocation108_spill] sm:$0xff] }
 0x40b   : > { %14291 = vst [vmem:[#allocation98_spill] sm:$0xff] %v11636_v23  ;;  %14293 = vst [vmem:[#allocation86_spill] sm:$0xff] %v11644_v15  ;;  %v11650_v51 = vadd.f32 %v7893_v26, %v14294_v9  ;;  %v3765_v54 = vpop.xlane.xlu1 %3764  ;;  %v7381_v16 = vpop.eup %7380  ;;  %7394 = vpow2.f32 %v3449_v3  ;;  %4788 = vmatmul.mubr.f32.gmra.mrb[108].mxu0 %v4136_v35  ;;  %v3033_v22 = vsub.f32 %v14296_v32, %v2733_v28 }
 0x40c   : > { %v3034_v8 = vsub.f32 %v14297_v61, %v2733_v28  ;;  %v3871_v10 = vadd.f32 %v11636_v23, %v11634_v57  ;;  %7396 = vpow2.f32 %v3451_v7  ;;  %v4140_v53 = vmul.f32 %v7381_v16, %v14298_v45  ;;  %v7894_v61 = vld [vmem:[%s13039_s5 + $0x180] sm:$0xff] }
 0x40d   : > { %14295 = vst [vmem:[#allocation29_spill] sm:$0xff] %v11650_v51  ;;  %v4139_v26 = vmul.f32 %v7381_v16, %v14299_v33  ;;  %v11658_v9 = vpop.eup %7382  ;;  %7398 = vrcp.f32 %v3765_v54  ;;  %v3453_v17 = vmul.f32 1.442695, %v3033_v22  ;;  %2840 = vmax.xlane.f32.xlu0 %v2839_v42  ;;  %v2842_v35 = vmax.f32 %v11644_v15, %v11650_v51  ;;  %v14302_v7 = vld [vmem:[#allocation130_spill] sm:$0xff]  ;;  %v7895_v33 = vld [vmem:[%s13039_s5 + $0x188] sm:$0xff]  ;;  %v14304_v54 = vld [vmem:[#allocation140_spill] sm:$0xff] }
 0x40e   : > { %14300 = vst [vmem:[#allocation21_spill] sm:$0xff] %v11658_v9  ;;  %v3455_v19 = vmul.f32 1.442695, %v3034_v8  ;;  %v11660_v3 = vpop.eup %7384  ;;  %v11668_v28 = vadd.f32 %v7894_v61, %v14302_v7  ;;  %v11674_v16 = vadd.f32 %v7895_v33, %v14304_v54  ;;  %4792 = vmatprep.mubr.f32.mxu0 %v4140_v53  ;;  %3872 = vadd.xlane.f32.xlu1 %v3871_v10  ;;  %v2736_v42 = vpop.xlane.xlu0 %2735  ;;  %v14306_v22 = vld [vmem:[#allocation119_spill] sm:$0xff]  ;;  %v14307_v57 = vld [vmem:[#allocation38_spill] sm:$0xff]  ;;  %v14308_v7 = vld [vmem:[#allocation64_spill] sm:$0xff] }
 0x40f   : > { %14301 = vst [vmem:[#allocation111_spill] sm:$0xff] %v11660_v3  ;;  %v3768_v8 = vpop.xlane.xlu1 %3767  ;;  %v7387_v32 = vpop.eup %7386  ;;  %7400 = vpow2.f32 %v3453_v17  ;;  %4793 = vmatmul.mubr.f32.gmra.mrb[110].mxu0 %v4139_v26  ;;  %v3035_v45 = vsub.f32 %v14306_v22, %v2736_v42  ;;  %v3036_v23 = vsub.f32 %v14307_v57, %v2736_v42  ;;  %v3874_v61 = vadd.f32 %v11660_v3, %v11658_v9  ;;  %v14309_v15 = vld [vmem:[#allocation132_spill] sm:$0xff]  ;;  %v14315_v9 = vld [vmem:[#allocation41_spill] sm:$0xff] }
 0x410   : > { %14303 = vst [vmem:[#allocation92_spill] sm:$0xff] %v11668_v28  ;;  %14305 = vst [vmem:[#allocation90_spill] sm:$0xff] %v11674_v16  ;;  %7402 = vpow2.f32 %v3455_v19  ;;  %v4143_v51 = vmul.f32 %v7387_v32, %v14308_v7  ;;  %v4142_v33 = vmul.f32 %v7387_v32, %v14309_v15  ;;  %v2845_v26 = vmax.f32 %v11668_v28, %v11674_v16  ;;  %v7896_v57 = vld [vmem:[%s13039_s5 + $0x190] sm:$0xff]  ;;  %v7897_v15 = vld [vmem:[%s13039_s5 + $0x198] sm:$0xff] }
 0x411   : > { %v11682_v54 = vpop.eup %7388  ;;  %7404 = vrcp.f32 %v3768_v8  ;;  %v3457_v53 = vmul.f32 1.442695, %v3035_v45  ;;  %v3459_v10 = vmul.f32 1.442695, %v3036_v23  ;;  %2843 = vmax.xlane.f32.xlu0 %v2842_v35  ;;  %v14312_v19 = vld [vmem:[#allocation56_spill] sm:$0xff]  ;;  %v14313_v8 = vld [vmem:[#allocation82_spill] sm:$0xff] }
 0x412   : > { %14310 = vst [vmem:[#allocation113_spill] sm:$0xff] %v11682_v54  ;;  %v11684_v17 = vpop.eup %7390  ;;  %v11692_v42 = vadd.f32 %v7896_v57, %v14312_v19  ;;  %v11698_v32 = vadd.f32 %v7897_v15, %v14313_v8  ;;  %4797 = vmatprep.mubr.f32.mxu0 %v4143_v51  ;;  %3875 = vadd.xlane.f32.xlu1 %v3874_v61  ;;  %v2739_v35 = vpop.xlane.xlu0 %2738  ;;  %v14314_v45 = vld [vmem:[#allocation152_spill] sm:$0xff]  ;;  %v14317_v28 = vld [vmem:[#allocation49_spill] sm:$0xff] }
 0x413   : > { %14311 = vst [vmem:[#allocation103_spill] sm:$0xff] %v11684_v17  ;;  %v3771_v23 = vpop.xlane.xlu1 %3770  ;;  %v7393_v22 = vpop.eup %7392  ;;  %7406 = vpow2.f32 %v3457_v53  ;;  %4798 = vmatmul.mubr.f32.gmra.mrb[112].mxu0 %v4142_v33  ;;  %v3037_v7 = vsub.f32 %v14314_v45, %v2739_v35  ;;  %v3038_v3 = vsub.f32 %v14315_v9, %v2739_v35  ;;  %v3877_v57 = vadd.f32 %v11684_v17, %v11682_v54  ;;  %v14316_v19 = vld [vmem:[#allocation112_spill] sm:$0xff]  ;;  %v7898_v9 = vld [vmem:[%s13039_s5 + $0x1a0] sm:$0xff]  ;;  %v14323_v54 = vld [vmem:[#allocation117_spill] sm:$0xff] }
 0x414   : > { %7408 = vpow2.f32 %v3459_v10  ;;  %v4146_v16 = vmul.f32 %v7393_v22, %v14316_v19  ;;  %v4145_v15 = vmul.f32 %v7393_v22, %v14317_v28  ;;  %v2848_v33 = vmax.f32 %v11692_v42, %v11698_v32  ;;  %v7899_v28 = vld [vmem:[%s13039_s5 + $0x1a8] sm:$0xff]  ;;  %v14320_v22 = vld [vmem:[#allocation70_spill] sm:$0xff] }
 0x415   : > { %v11706_v8 = vpop.eup %7394  ;;  %7410 = vrcp.f32 %v3771_v23  ;;  %v3461_v51 = vmul.f32 1.442695, %v3037_v7  ;;  %v3463_v61 = vmul.f32 1.442695, %v3038_v3  ;;  %2846 = vmax.xlane.f32.xlu0 %v2845_v26  ;;  %v11716_v10 = vadd.f32 %v7898_v9, %v11075_v11  ;;  %v14321_v7 = vld [vmem:[#allocation54_spill] sm:$0xff]  ;;  %v11726_v11 = vpop.f32.mrb[40].mxu0 }
 0x416   : > { %14318 = vst [vmem:[#allocation15_spill] sm:$0xff] %v11706_v8  ;;  %v11708_v53 = vpop.eup %7396  ;;  %v11722_v23 = vadd.f32 %v7899_v28, %v11080_v14  ;;  %4802 = vmatprep.mubr.f32.mxu0 %v4146_v16  ;;  %3878 = vadd.xlane.f32.xlu1 %v3877_v57  ;;  %v2742_v26 = vpop.xlane.xlu0 %2741  ;;  %14322 = vst [vmem:[#allocation116_spill] sm:$0xff] %v11726_v11  ;;  %v14324_v28 = vld [vmem:[#allocation39_spill] sm:$0xff] }
 0x417   : > { %14319 = vst [vmem:[#allocation48_spill] sm:$0xff] %v11708_v53  ;;  %v3774_v3 = vpop.xlane.xlu1 %3773  ;;  %v7399_v35 = vpop.eup %7398  ;;  %7412 = vpow2.f32 %v3461_v51  ;;  %4803 = vmatmul.mubr.f32.gmra.mrb[114].mxu0 %v4145_v15  ;;  %v3039_v45 = vsub.f32 %v14320_v22, %v2742_v26  ;;  %v3040_v19 = vsub.f32 %v14321_v7, %v2742_v26  ;;  %v3880_v9 = vadd.f32 %v11708_v53, %v11706_v8  ;;  %v14331_v8 = vld [vmem:[#allocation122_spill] sm:$0xff] }
 0x418   : > { %7414 = vpow2.f32 %v3463_v61  ;;  %v4149_v14 = vmul.f32 %v7399_v35, %v14323_v54  ;;  %v4148_v16 = vmul.f32 %v7399_v35, %v14324_v28  ;;  %v4621_v57 = vpop.f32.mrb[41].mxu0  ;;  %v2851_v26 = vmax.f32 %v11716_v10, %v11722_v23  ;;  %v7900_v61 = vld [vmem:[%s13039_s5 + $0x1b0] sm:$0xff]  ;;  %v7901_v35 = vld [vmem:[%s13039_s5 + $0x1b8] sm:$0xff] }
 0x419   : > { %v11732_v17 = vpop.eup %7400  ;;  %7416 = vrcp.f32 %v3774_v3  ;;  %v3465_v51 = vmul.f32 1.442695, %v3039_v45  ;;  %v3467_v15 = vmul.f32 1.442695, %v3040_v19  ;;  %2849 = vmax.xlane.f32.xlu0 %v2848_v33  ;;  %v11742_v54 = vadd.f32 %v7900_v61, %v11102_v27  ;;  %v14328_v19 = vld [vmem:[#allocation71_spill] sm:$0xff]  ;;  %v11752_v27 = vpop.f32.mrb[42].mxu0 }
 0x41a   : > { %14325 = vst [vmem:[#allocation118_spill] sm:$0xff] %v11732_v17  ;;  %v11734_v22 = vpop.eup %7402  ;;  %v11748_v3 = vadd.f32 %v7901_v35, %v11106_v47  ;;  %4807 = vmatprep.mubr.f32.mxu0 %v4149_v14  ;;  %3881 = vadd.xlane.f32.xlu1 %v3880_v9  ;;  %v2745_v45 = vpop.xlane.xlu0 %2744  ;;  %v14329_v57 = vld [vmem:[#allocation43_spill] sm:$0xff]  ;;  %14330 = vst [vmem:[#allocation61_spill] sm:$0xff] %v11752_v27  ;;  %v14332_v35 = vld [vmem:[#allocation52_spill] sm:$0xff] }
 0x41b   : > { %14326 = vst [vmem:[#allocation100_spill] sm:$0xff] %v11734_v22  ;;  %v3777_v33 = vpop.xlane.xlu1 %3776  ;;  %v7405_v7 = vpop.eup %7404  ;;  %7418 = vpow2.f32 %v3465_v51  ;;  %4808 = vmatmul.mubr.f32.gmra.mrb[116].mxu0 %v4148_v16  ;;  %v3041_v28 = vsub.f32 %v14328_v19, %v2745_v45  ;;  %v3042_v11 = vsub.f32 %v14329_v57, %v2745_v45  ;;  %v3883_v61 = vadd.f32 %v11734_v22, %v11732_v17  ;;  %v14337_v27 = vld [vmem:[#allocation137_spill] sm:$0xff]  ;;  %v14339_v22 = vld [vmem:[#allocation40_spill] sm:$0xff] }
 0x41c   : > { %14327 = vst [vmem:[#allocation99_spill] sm:$0xff] %v11748_v3  ;;  %7420 = vpow2.f32 %v3467_v15  ;;  %v4152_v47 = vmul.f32 %v7405_v7, %v14331_v8  ;;  %v4151_v14 = vmul.f32 %v7405_v7, %v14332_v35  ;;  %v4626_v9 = vpop.f32.mrb[43].mxu0  ;;  %v2854_v45 = vmax.f32 %v11742_v54, %v11748_v3  ;;  %v7902_v15 = vld [vmem:[%s13039_s5 + $0x1c0] sm:$0xff]  ;;  %v7903_v7 = vld [vmem:[%s13039_s5 + $0x1c8] sm:$0xff] }
 0x41d   : > { %v11758_v53 = vpop.eup %7406  ;;  %7422 = vrcp.f32 %v3777_v33  ;;  %v3469_v51 = vmul.f32 1.442695, %v3041_v28  ;;  %v3471_v16 = vmul.f32 1.442695, %v3042_v11  ;;  %2852 = vmax.xlane.f32.xlu0 %v2851_v26  ;;  %v11768_v8 = vadd.f32 %v7902_v15, %v11129_v39  ;;  %v14335_v33 = vld [vmem:[#allocation156_spill] sm:$0xff]  ;;  %v14336_v35 = vld [vmem:[#allocation67_spill] sm:$0xff] }
 0x41e   : > { %14333 = vst [vmem:[#allocation89_spill] sm:$0xff] %v11758_v53  ;;  %v11760_v19 = vpop.eup %7408  ;;  %v11774_v28 = vadd.f32 %v7903_v7, %v14335_v33  ;;  %4812 = vmatprep.mubr.f32.mxu0 %v4152_v47  ;;  %3884 = vadd.xlane.f32.xlu1 %v3883_v61  ;;  %v2748_v26 = vpop.xlane.xlu0 %2747  ;;  %v14340_v33 = vld [vmem:[#allocation68_spill] sm:$0xff] }
 0x41f   : > { %14334 = vst [vmem:[#allocation81_spill] sm:$0xff] %v11760_v19  ;;  %v3780_v11 = vpop.xlane.xlu1 %3779  ;;  %v7411_v57 = vpop.eup %7410  ;;  %7424 = vpow2.f32 %v3469_v51  ;;  %4813 = vmatmul.mubr.f32.gmra.mrb[118].mxu0 %v4151_v14  ;;  %v3043_v9 = vsub.f32 %v14336_v35, %v2748_v26  ;;  %v3044_v17 = vsub.f32 %v14337_v27, %v2748_v26  ;;  %v3886_v15 = vadd.f32 %v11760_v19, %v11758_v53  ;;  %v7905_v26 = vld [vmem:[%s13039_s5 + $0x1d8] sm:$0xff] }
 0x420   : > { %v11778_v39 = vpop.f32.mrb[44].mxu0  ;;  %7426 = vpow2.f32 %v3471_v16  ;;  %v4155_v7 = vmul.f32 %v7411_v57, %v14339_v22  ;;  %v4154_v47 = vmul.f32 %v7411_v57, %v14340_v33  ;;  %v2857_v27 = vmax.f32 %v11768_v8, %v11774_v28  ;;  %v7904_v16 = vld [vmem:[%s13039_s5 + $0x1d0] sm:$0xff]  ;;  %v14346_v53 = vld [vmem:[#allocation73_spill] sm:$0xff] }
 0x421   : > { %14338 = vst [vmem:[#allocation14_spill] sm:$0xff] %v11778_v39  ;;  %v4631_v61 = vpop.f32.mrb[45].mxu0  ;;  %v11784_v3 = vpop.eup %7412  ;;  %7428 = vrcp.f32 %v3780_v11  ;;  %v3473_v51 = vmul.f32 1.442695, %v3043_v9  ;;  %v3475_v14 = vmul.f32 1.442695, %v3044_v17  ;;  %2855 = vmax.xlane.f32.xlu0 %v2854_v45  ;;  %v11794_v22 = vadd.f32 %v7904_v16, %v11157_v31 }
 0x422   : > { %14341 = vst [vmem:[#allocation93_spill] sm:$0xff] %v11784_v3  ;;  %v11786_v35 = vpop.eup %7414  ;;  %v11800_v11 = vadd.f32 %v7905_v26, %v11162_v37  ;;  %4817 = vmatprep.mubr.f32.mxu0 %v4155_v7  ;;  %3887 = vadd.xlane.f32.xlu1 %v3886_v15  ;;  %v2751_v45 = vpop.xlane.xlu0 %2750  ;;  %v14343_v9 = vld [vmem:[#allocation157_spill] sm:$0xff] }
 0x423   : > { %14342 = vst [vmem:[#allocation62_spill] sm:$0xff] %v11786_v35  ;;  %v3783_v17 = vpop.xlane.xlu1 %3782  ;;  %v7417_v57 = vpop.eup %7416  ;;  %7430 = vpow2.f32 %v3473_v51  ;;  %4818 = vmatmul.mubr.f32.gmra.mrb[120].mxu0 %v4154_v47  ;;  %v3045_v33 = vsub.f32 %v14343_v9, %v2751_v45  ;;  %v14344_v61 = vld [vmem:[#allocation45_spill] sm:$0xff]  ;;  %v3889_v16 = vadd.f32 %v11786_v35, %v11784_v3  ;;  %v14353_v3 = vld [vmem:[#allocation42_spill] sm:$0xff] }
 0x424   : > { %v3046_v39 = vsub.f32 %v14344_v61, %v2751_v45  ;;  %v11804_v31 = vpop.f32.mrb[46].mxu0  ;;  %7432 = vpow2.f32 %v3475_v14  ;;  %v4158_v37 = vmul.f32 %v7417_v57, %v14346_v53  ;;  %v14347_v26 = vld [vmem:[#allocation133_spill] sm:$0xff]  ;;  %v2860_v45 = vmax.f32 %v11794_v22, %v11800_v11  ;;  %v7906_v14 = vld [vmem:[%s13039_s5 + $0x1e0] sm:$0xff] }
 0x425   : > { %14345 = vst [vmem:[#allocation9_spill] sm:$0xff] %v11804_v31  ;;  %v4157_v7 = vmul.f32 %v7417_v57, %v14347_v26  ;;  %v4636_v15 = vpop.f32.mrb[47].mxu0  ;;  %v11810_v19 = vpop.eup %7418  ;;  %7434 = vrcp.f32 %v3783_v17  ;;  %v3477_v51 = vmul.f32 1.442695, %v3045_v33  ;;  %2858 = vmax.xlane.f32.xlu0 %v2857_v27  ;;  %v11820_v53 = vadd.f32 %v7906_v14, %v11185_v12  ;;  %v7907_v57 = vld [vmem:[%s13039_s5 + $0x1e8] sm:$0xff]  ;;  %v14350_v61 = vld [vmem:[#allocation77_spill] sm:$0xff] }
 0x426   : > { %14348 = vst [vmem:[#allocation105_spill] sm:$0xff] %v11810_v19  ;;  %v3479_v47 = vmul.f32 1.442695, %v3046_v39  ;;  %v11812_v9 = vpop.eup %7420  ;;  %v11826_v17 = vadd.f32 %v7907_v57, %v11190_v60  ;;  %4822 = vmatprep.mubr.f32.mxu0 %v4158_v37  ;;  %3890 = vadd.xlane.f32.xlu1 %v3889_v16  ;;  %v2754_v27 = vpop.xlane.xlu0 %2753  ;;  %v14351_v15 = vld [vmem:[#allocation143_spill] sm:$0xff]  ;;  %v14354_v57 = vld [vmem:[#allocation6_spill] sm:$0xff] }
 0x427   : > { %14349 = vst [vmem:[#allocation126_spill] sm:$0xff] %v11812_v9  ;;  %v3786_v39 = vpop.xlane.xlu1 %3785  ;;  %v7423_v33 = vpop.eup %7422  ;;  %7436 = vpow2.f32 %v3477_v51  ;;  %4823 = vmatmul.mubr.f32.gmra.mrb[122].mxu0 %v4157_v7  ;;  %v3047_v26 = vsub.f32 %v14350_v61, %v2754_v27  ;;  %v3048_v31 = vsub.f32 %v14351_v15, %v2754_v27  ;;  %v3892_v14 = vadd.f32 %v11812_v9, %v11810_v19  ;;  %v14357_v15 = vld [vmem:[#allocation47_spill] sm:$0xff]  ;;  %v14360_v19 = vld [vmem:[#allocation76_spill] sm:$0xff] }
 0x428   : > { %v11830_v12 = vpop.f32.mrb[48].mxu0  ;;  %7438 = vpow2.f32 %v3479_v47  ;;  %v4161_v60 = vmul.f32 %v7423_v33, %v14353_v3  ;;  %v4160_v37 = vmul.f32 %v7423_v33, %v14354_v57  ;;  %v2863_v27 = vmax.f32 %v11820_v53, %v11826_v17  ;;  %v7908_v47 = vld [vmem:[%s13039_s5 + $0x1f0] sm:$0xff]  ;;  %v7909_v33 = vld [vmem:[%s13039_s5 + $0x1f8] sm:$0xff] }
 0x429   : > { %14352 = vst [vmem:[#allocation127_spill] sm:$0xff] %v11830_v12  ;;  %v4641_v16 = vpop.f32.mrb[49].mxu0  ;;  %v11836_v35 = vpop.eup %7424  ;;  %7440 = vrcp.f32 %v3786_v39  ;;  %v3481_v51 = vmul.f32 1.442695, %v3047_v26  ;;  %v3483_v7 = vmul.f32 1.442695, %v3048_v31  ;;  %2861 = vmax.xlane.f32.xlu0 %v2860_v45  ;;  %v11846_v3 = vadd.f32 %v7908_v47, %v11212_v56 }
 0x42a   : > { %14355 = vst [vmem:[#allocation60_spill] sm:$0xff] %v11836_v35  ;;  %v11838_v61 = vpop.eup %7426  ;;  %v11852_v39 = vadd.f32 %v7909_v33, %v11216_v49  ;;  %4827 = vmatprep.mubr.f32.mxu0 %v4161_v60  ;;  %3893 = vadd.xlane.f32.xlu1 %v3892_v14  ;;  %v2757_v45 = vpop.xlane.xlu0 %2756  ;;  %v14358_v16 = vld [vmem:[#allocation58_spill] sm:$0xff]  ;;  %v14361_v33 = vld [vmem:[#allocation139_spill] sm:$0xff] }
 0x42b   : > { %14356 = vst [vmem:[#allocation30_spill] sm:$0xff] %v11838_v61  ;;  %v3789_v31 = vpop.xlane.xlu1 %3788  ;;  %v7429_v26 = vpop.eup %7428  ;;  %7442 = vpow2.f32 %v3481_v51  ;;  %4828 = vmatmul.mubr.f32.gmra.mrb[124].mxu0 %v4160_v37  ;;  %v3049_v57 = vsub.f32 %v14357_v15, %v2757_v45  ;;  %v3050_v12 = vsub.f32 %v14358_v16, %v2757_v45  ;;  %v3895_v47 = vadd.f32 %v11838_v61, %v11836_v35  ;;  %v14368_v35 = vld [vmem:[#allocation79_spill] sm:$0xff] }
 0x42c   : > { %v11856_v56 = vpop.f32.mrb[50].mxu0  ;;  %7444 = vpow2.f32 %v3483_v7  ;;  %v4164_v49 = vmul.f32 %v7429_v26, %v14360_v19  ;;  %v4163_v60 = vmul.f32 %v7429_v26, %v14361_v33  ;;  %v2866_v45 = vmax.f32 %v11846_v3, %v11852_v39  ;;  %v14364_v19 = vld [vmem:[#allocation27_spill] sm:$0xff]  ;;  %v14365_v33 = vld [vmem:[#allocation37_spill] sm:$0xff] }
 0x42d   : > { %14359 = vst [vmem:[#allocation110_spill] sm:$0xff] %v11856_v56  ;;  %v4646_v14 = vpop.f32.mrb[51].mxu0  ;;  %v11862_v9 = vpop.eup %7430  ;;  %7446 = vrcp.f32 %v3789_v31  ;;  %v3485_v51 = vmul.f32 1.442695, %v3049_v57  ;;  %v3487_v37 = vmul.f32 1.442695, %v3050_v12  ;;  %2864 = vmax.xlane.f32.xlu0 %v2863_v27 }
 0x42e   : > { %14362 = vst [vmem:[#allocation32_spill] sm:$0xff] %v11862_v9  ;;  %v11864_v15 = vpop.eup %7432  ;;  %4832 = vmatprep.mubr.f32.mxu0 %v4164_v49  ;;  %3896 = vadd.xlane.f32.xlu1 %v3895_v47  ;;  %v2760_v7 = vpop.xlane.xlu0 %2759  ;;  %v14367_v27 = vld [vmem:[#allocation44_spill] sm:$0xff] }
 0x42f   : > { %14363 = vst [vmem:[#allocation123_spill] sm:$0xff] %v11864_v15  ;;  %v3792_v16 = vpop.xlane.xlu1 %3791  ;;  %v7435_v56 = vpop.eup %7434  ;;  %7448 = vpow2.f32 %v3485_v51  ;;  %4833 = vmatmul.mubr.f32.gmra.mrb[126].mxu0 %v4163_v60  ;;  %v3051_v26 = vsub.f32 %v14364_v19, %v2760_v7  ;;  %v3052_v14 = vsub.f32 %v14365_v33, %v2760_v7  ;;  %v3898_v12 = vadd.f32 %v11864_v15, %v11862_v9  ;;  %v14372_v9 = vld [vmem:[#allocation51_spill] sm:$0xff] }
 0x430   : > { %v11870_v31 = vpop.f32.mrb[52].mxu0  ;;  %7450 = vpow2.f32 %v3487_v37  ;;  %v4167_v57 = vmul.f32 %v7435_v56, %v14367_v27  ;;  %v4166_v49 = vmul.f32 %v7435_v56, %v14368_v35  ;;  %v14371_v37 = vld [vmem:[#allocation120_spill] sm:$0xff] }
 0x431   : > { %14366 = vst [vmem:[#allocation121_spill] sm:$0xff] %v11870_v31  ;;  %v4651_v47 = vpop.f32.mrb[53].mxu0  ;;  %v11876_v61 = vpop.eup %7436  ;;  %7452 = vrcp.f32 %v3792_v16  ;;  %v3489_v51 = vmul.f32 1.442695, %v3051_v26  ;;  %v3491_v60 = vmul.f32 1.442695, %v3052_v14  ;;  %2867 = vmax.xlane.f32.xlu0 %v2866_v45 }
 0x432   : > { %14369 = vst [vmem:[#allocation115_spill] sm:$0xff] %v11876_v61  ;;  %v11878_v19 = vpop.eup %7438  ;;  %4837 = vmatprep.mubr.f32.mxu0 %v4167_v57  ;;  %3899 = vadd.xlane.f32.xlu1 %v3898_v12  ;;  %v2763_v33 = vpop.xlane.xlu0 %2762  ;;  %v14374_v45 = vld [vmem:[#allocation145_spill] sm:$0xff]  ;;  %v14375_v14 = vld [vmem:[#allocation78_spill] sm:$0xff] }
 0x433   : > { %14370 = vst [vmem:[#allocation20_spill] sm:$0xff] %v11878_v19  ;;  %v3795_v7 = vpop.xlane.xlu1 %3794  ;;  %v7441_v31 = vpop.eup %7440  ;;  %7454 = vpow2.f32 %v3489_v51  ;;  %4838 = vmatmul.mubr.f32.gmra.mrb[128].mxu0 %v4166_v49  ;;  %v3053_v27 = vsub.f32 %v14371_v37, %v2763_v33  ;;  %v3054_v35 = vsub.f32 %v14372_v9, %v2763_v33  ;;  %v3901_v16 = vadd.f32 %v11878_v19, %v11876_v61 }
 0x434   : > { %v11882_v56 = vpop.f32.mrb[54].mxu0  ;;  %7456 = vpow2.f32 %v3491_v60  ;;  %v4170_v26 = vmul.f32 %v7441_v31, %v14374_v45  ;;  %v4169_v57 = vmul.f32 %v7441_v31, %v14375_v14  ;;  %v14378_v60 = vld [vmem:[#allocation134_spill] sm:$0xff]  ;;  %v14379_v45 = vld [vmem:[#allocation19_spill] sm:$0xff] }
 0x435   : > { %14373 = vst [vmem:[#allocation65_spill] sm:$0xff] %v11882_v56  ;;  %v4656_v12 = vpop.f32.mrb[55].mxu0  ;;  %v11888_v47 = vpop.eup %7442  ;;  %7458 = vrcp.f32 %v3795_v7  ;;  %v3493_v51 = vmul.f32 1.442695, %v3053_v27  ;;  %v3495_v49 = vmul.f32 1.442695, %v3054_v35 }
 0x436   : > { %14376 = vst [vmem:[#allocation34_spill] sm:$0xff] %v11888_v47  ;;  %v11890_v15 = vpop.eup %7444  ;;  %4842 = vmatprep.mubr.f32.mxu0 %v4170_v26  ;;  %3902 = vadd.xlane.f32.xlu1 %v3901_v16  ;;  %v2766_v33 = vpop.xlane.xlu0 %2765  ;;  %v14381_v27 = vld [vmem:[#allocation46_spill] sm:$0xff]  ;;  %v14382_v14 = vld [vmem:[#allocation59_spill] sm:$0xff] }
 0x437   : > { %14377 = vst [vmem:[#allocation88_spill] sm:$0xff] %v11890_v15  ;;  %v3798_v9 = vpop.xlane.xlu1 %3797  ;;  %v7447_v37 = vpop.eup %7446  ;;  %7460 = vpow2.f32 %v3493_v51  ;;  %4843 = vmatmul.mubr.f32.gmra.mrb[130].mxu0 %v4169_v57  ;;  %v3055_v56 = vsub.f32 %v14378_v60, %v2766_v33  ;;  %v3056_v61 = vsub.f32 %v14379_v45, %v2766_v33  ;;  %v3904_v7 = vadd.f32 %v11890_v15, %v11888_v47 }
 0x438   : > { %v11894_v31 = vpop.f32.mrb[56].mxu0  ;;  %7462 = vpow2.f32 %v3495_v49  ;;  %v4173_v35 = vmul.f32 %v7447_v37, %v14381_v27  ;;  %v4172_v26 = vmul.f32 %v7447_v37, %v14382_v14  ;;  %v14385_v49 = vld [vmem:[#allocation144_spill] sm:$0xff]  ;;  %v14386_v27 = vld [vmem:[#allocation146_spill] sm:$0xff] }
 0x439   : > { %14380 = vst [vmem:[#allocation63_spill] sm:$0xff] %v11894_v31  ;;  %v4661_v16 = vpop.f32.mrb[57].mxu0  ;;  %v11900_v12 = vpop.eup %7448  ;;  %7464 = vrcp.f32 %v3798_v9  ;;  %v3497_v51 = vmul.f32 1.442695, %v3055_v56  ;;  %v3499_v57 = vmul.f32 1.442695, %v3056_v61 }
 0x43a   : > { %14383 = vst [vmem:[#allocation53_spill] sm:$0xff] %v11900_v12  ;;  %v11902_v19 = vpop.eup %7450  ;;  %4847 = vmatprep.mubr.f32.mxu0 %v4173_v35  ;;  %3905 = vadd.xlane.f32.xlu1 %v3904_v7  ;;  %v2769_v60 = vpop.xlane.xlu0 %2768  ;;  %v14388_v61 = vld [vmem:[#allocation17_spill] sm:$0xff]  ;;  %v14389_v14 = vld [vmem:[#allocation50_spill] sm:$0xff] }
 0x43b   : > { %14384 = vst [vmem:[#allocation125_spill] sm:$0xff] %v11902_v19  ;;  %v3801_v33 = vpop.xlane.xlu1 %3800  ;;  %v7453_v45 = vpop.eup %7452  ;;  %7466 = vpow2.f32 %v3497_v51  ;;  %4848 = vmatmul.mubr.f32.gmra.mrb[132].mxu0 %v4172_v26  ;;  %v3057_v31 = vsub.f32 %v14385_v49, %v2769_v60  ;;  %v3058_v47 = vsub.f32 %v14386_v27, %v2769_v60  ;;  %v3907_v9 = vadd.f32 %v11902_v19, %v11900_v12 }
 0x43c   : > { %v11906_v37 = vpop.f32.mrb[58].mxu0  ;;  %7468 = vpow2.f32 %v3499_v57  ;;  %v4176_v56 = vmul.f32 %v7453_v45, %v14388_v61  ;;  %v4175_v35 = vmul.f32 %v7453_v45, %v14389_v14  ;;  %v14392_v57 = vld [vmem:[#allocation136_spill] sm:$0xff]  ;;  %v14393_v61 = vld [vmem:[#allocation57_spill] sm:$0xff] }
 0x43d   : > { %14387 = vst [vmem:[#allocation114_spill] sm:$0xff] %v11906_v37  ;;  %v4666_v7 = vpop.f32.mrb[59].mxu0  ;;  %v11912_v16 = vpop.eup %7454  ;;  %7470 = vrcp.f32 %v3801_v33  ;;  %v3501_v51 = vmul.f32 1.442695, %v3057_v31  ;;  %v3503_v26 = vmul.f32 1.442695, %v3058_v47 }
 0x43e   : > { %14390 = vst [vmem:[#allocation11_spill] sm:$0xff] %v11912_v16  ;;  %v11914_v15 = vpop.eup %7456  ;;  %4852 = vmatprep.mubr.f32.mxu0 %v4176_v56  ;;  %3908 = vadd.xlane.f32.xlu1 %v3907_v9  ;;  %v2772_v49 = vpop.xlane.xlu0 %2771  ;;  %v14395_v47 = vld [vmem:[#allocation55_spill] sm:$0xff]  ;;  %v14396_v14 = vld [vmem:[#allocation16_spill] sm:$0xff] }
 0x43f   : > { %14391 = vst [vmem:[#allocation108_spill] sm:$0xff] %v11914_v15  ;;  %v3804_v60 = vpop.xlane.xlu1 %3803  ;;  %v7459_v27 = vpop.eup %7458  ;;  %7472 = vpow2.f32 %v3501_v51  ;;  %4853 = vmatmul.mubr.f32.gmra.mrb[134].mxu0 %v4175_v35  ;;  %v3059_v37 = vsub.f32 %v14392_v57, %v2772_v49  ;;  %v3060_v12 = vsub.f32 %v14393_v61, %v2772_v49  ;;  %v3910_v33 = vadd.f32 %v11914_v15, %v11912_v16 }
 0x440   : > { %v11918_v45 = vpop.f32.mrb[60].mxu0  ;;  %7474 = vpow2.f32 %v3503_v26  ;;  %v4179_v31 = vmul.f32 %v7459_v27, %v14395_v47  ;;  %v4178_v56 = vmul.f32 %v7459_v27, %v14396_v14  ;;  %v14399_v26 = vld [vmem:[#allocation142_spill] sm:$0xff]  ;;  %v14400_v47 = vld [vmem:[#allocation141_spill] sm:$0xff] }
 0x441   : > { %14394 = vst [vmem:[#allocation94_spill] sm:$0xff] %v11918_v45  ;;  %v4671_v9 = vpop.f32.mrb[61].mxu0  ;;  %v11924_v7 = vpop.eup %7460  ;;  %7476 = vrcp.f32 %v3804_v60  ;;  %v3505_v51 = vmul.f32 1.442695, %v3059_v37  ;;  %v3507_v35 = vmul.f32 1.442695, %v3060_v12 }
 0x442   : > { %14397 = vst [vmem:[#allocation130_spill] sm:$0xff] %v11924_v7  ;;  %v11926_v19 = vpop.eup %7462  ;;  %4857 = vmatprep.mubr.f32.mxu0 %v4179_v31  ;;  %3911 = vadd.xlane.f32.xlu1 %v3910_v33  ;;  %v2775_v57 = vpop.xlane.xlu0 %2774  ;;  %v14402_v12 = vld [vmem:[#allocation18_spill] sm:$0xff] }
 0x443   : > { %14398 = vst [vmem:[#allocation140_spill] sm:$0xff] %v11926_v19  ;;  %v3807_v49 = vpop.xlane.xlu1 %3806  ;;  %v7465_v61 = vpop.eup %7464  ;;  %7478 = vpow2.f32 %v3505_v51  ;;  %4858 = vmatmul.mubr.f32.gmra.mrb[136].mxu0 %v4178_v56  ;;  %v3061_v45 = vsub.f32 %v14399_v26, %v2775_v57  ;;  %v3062_v16 = vsub.f32 %v14400_v47, %v2775_v57  ;;  %v3913_v60 = vadd.f32 %v11926_v19, %v11924_v7  ;;  %v14403_v14 = vld [vmem:[#allocation138_spill] sm:$0xff] }
 0x444   : > { %v11930_v27 = vpop.f32.mrb[62].mxu0  ;;  %7480 = vpow2.f32 %v3507_v35  ;;  %v4182_v37 = vmul.f32 %v7465_v61, %v14402_v12  ;;  %v4181_v31 = vmul.f32 %v7465_v61, %v14403_v14  ;;  %v14406_v35 = vld [vmem:[#allocation148_spill] sm:$0xff]  ;;  %v14407_v12 = vld [vmem:[#allocation147_spill] sm:$0xff] }
 0x445   : > { %14401 = vst [vmem:[#allocation119_spill] sm:$0xff] %v11930_v27  ;;  %v4676_v33 = vpop.f32.mrb[63].mxu0  ;;  %v11936_v9 = vpop.eup %7466  ;;  %7482 = vrcp.f32 %v3807_v49  ;;  %v3509_v51 = vmul.f32 1.442695, %v3061_v45  ;;  %v3511_v56 = vmul.f32 1.442695, %v3062_v16 }
 0x446   : > { %14404 = vst [vmem:[#allocation38_spill] sm:$0xff] %v11936_v9  ;;  %v11938_v15 = vpop.eup %7468  ;;  %4862 = vmatprep.mubr.f32.mxu0 %v4182_v37  ;;  %3914 = vadd.xlane.f32.xlu1 %v3913_v60  ;;  %v2778_v26 = vpop.xlane.xlu0 %2777  ;;  %v14409_v16 = vld [vmem:[#allocation83_spill] sm:$0xff] }
 0x447   : > { %14405 = vst [vmem:[#allocation64_spill] sm:$0xff] %v11938_v15  ;;  %v3810_v57 = vpop.xlane.xlu1 %3809  ;;  %v7471_v47 = vpop.eup %7470  ;;  %7484 = vpow2.f32 %v3509_v51  ;;  %4863 = vmatmul.mubr.f32.gmra.mrb[138].mxu0 %v4181_v31  ;;  %v3063_v27 = vsub.f32 %v14406_v35, %v2778_v26  ;;  %v3064_v7 = vsub.f32 %v14407_v12, %v2778_v26  ;;  %v3916_v49 = vadd.f32 %v11938_v15, %v11936_v9  ;;  %v14410_v14 = vld [vmem:[#allocation135_spill] sm:$0xff] }
 0x448   : > { %v11942_v61 = vpop.f32.mrb[64].mxu0  ;;  %7486 = vpow2.f32 %v3511_v56  ;;  %v4185_v45 = vmul.f32 %v7471_v47, %v14409_v16  ;;  %v4184_v37 = vmul.f32 %v7471_v47, %v14410_v14  ;;  %v14411_v56 = vld [vmem:[#allocation149_spill] sm:$0xff]  ;;  %v14412_v16 = vld [vmem:[#allocation158_spill] sm:$0xff]  ;;  %v14415_v14 = vld [vmem:[#allocation84_spill] sm:$0xff] }
 0x449   : > { %14408 = vst [vmem:[#allocation132_spill] sm:$0xff] %v11942_v61  ;;  %v4681_v60 = vpop.f32.mrb[65].mxu0  ;;  %v11948_v33 = vpop.eup %7472  ;;  %7488 = vrcp.f32 %v3810_v57  ;;  %v3513_v51 = vmul.f32 1.442695, %v3063_v27  ;;  %v3515_v31 = vmul.f32 1.442695, %v3064_v7 }
 0x44a   : > { %v11950_v19 = vpop.eup %7474  ;;  %4867 = vmatprep.mubr.f32.mxu0 %v4185_v45  ;;  %3917 = vadd.xlane.f32.xlu1 %v3916_v49  ;;  %v2781_v35 = vpop.xlane.xlu0 %2780  ;;  %v14414_v7 = vld [vmem:[#allocation151_spill] sm:$0xff] }
 0x44b   : > { %v3813_v26 = vpop.xlane.xlu1 %3812  ;;  %v7477_v12 = vpop.eup %7476  ;;  %7490 = vpow2.f32 %v3513_v51  ;;  %4868 = vmatmul.mubr.f32.gmra.mrb[140].mxu0 %v4184_v37  ;;  %v3065_v61 = vsub.f32 %v14411_v56, %v2781_v35  ;;  %v3066_v9 = vsub.f32 %v14412_v16, %v2781_v35  ;;  %v3919_v57 = vadd.f32 %v11950_v19, %v11948_v33 }
 0x44c   : > { %v11954_v47 = vpop.f32.mrb[66].mxu0  ;;  %7492 = vpow2.f32 %v3515_v31  ;;  %v4188_v27 = vmul.f32 %v7477_v12, %v14414_v7  ;;  %v4187_v45 = vmul.f32 %v7477_v12, %v14415_v14  ;;  %v14418_v14 = vld [vmem:[#allocation22_spill] sm:$0xff] }
 0x44d   : > { %14413 = vst [vmem:[#allocation56_spill] sm:$0xff] %v11954_v47  ;;  %v4686_v49 = vpop.f32.mrb[67].mxu0  ;;  %v11960_v60 = vpop.eup %7478  ;;  %7494 = vrcp.f32 %v3813_v26  ;;  %v3517_v51 = vmul.f32 1.442695, %v3065_v61  ;;  %v3519_v37 = vmul.f32 1.442695, %v3066_v9 }
 0x44e   : > { %v11962_v15 = vpop.eup %7480  ;;  %4872 = vmatprep.mubr.f32.mxu0 %v4188_v27  ;;  %3920 = vadd.xlane.f32.xlu1 %v3919_v57  ;;  %v2784_v56 = vpop.xlane.xlu0 %2783  ;;  %v14417_v9 = vld [vmem:[#allocation23_spill] sm:$0xff] }
 0x44f   : > { %v3816_v35 = vpop.xlane.xlu1 %3815  ;;  %v7483_v16 = vpop.eup %7482  ;;  %7496 = vpow2.f32 %v3517_v51  ;;  %4873 = vmatmul.mubr.f32.gmra.mrb[142].mxu0 %v4187_v45  ;;  %v3067_v31 = vsub.f32 %v11172_v13, %v2784_v56  ;;  %v3068_v7 = vsub.f32 %v11178_v1, %v2784_v56  ;;  %v3922_v26 = vadd.f32 %v11962_v15, %v11960_v60 }
 0x450   : > { %v11966_v12 = vpop.f32.mrb[68].mxu0  ;;  %7498 = vpow2.f32 %v3519_v37  ;;  %v4191_v61 = vmul.f32 %v7483_v16, %v14417_v9  ;;  %v4190_v27 = vmul.f32 %v7483_v16, %v14418_v14  ;;  %v14421_v14 = vld [vmem:[#allocation155_spill] sm:$0xff] }
 0x451   : > { %14416 = vst [vmem:[#allocation82_spill] sm:$0xff] %v11966_v12  ;;  %v4691_v57 = vpop.f32.mrb[69].mxu0  ;;  %v11972_v49 = vpop.eup %7484  ;;  %7500 = vrcp.f32 %v3816_v35  ;;  %v3521_v51 = vmul.f32 1.442695, %v3067_v31  ;;  %v3523_v45 = vmul.f32 1.442695, %v3068_v7 }
 0x452   : > { %v11974_v47 = vpop.eup %7486  ;;  %4877 = vmatprep.mubr.f32.mxu0 %v4191_v61  ;;  %3923 = vadd.xlane.f32.xlu1 %v3922_v26  ;;  %v2787_v1 = vpop.xlane.xlu0 %2786  ;;  %v14420_v31 = vld [vmem:[#allocation150_spill] sm:$0xff] }
 0x453   : > { %v3819_v13 = vpop.xlane.xlu1 %3818  ;;  %v7489_v56 = vpop.eup %7488  ;;  %7502 = vpow2.f32 %v3521_v51  ;;  %4878 = vmatmul.mubr.f32.gmra.mrb[144].mxu0 %v4190_v27  ;;  %v3069_v37 = vsub.f32 %v11200_v21, %v2787_v1  ;;  %v3070_v9 = vsub.f32 %v11206_v5, %v2787_v1  ;;  %v3925_v35 = vadd.f32 %v11974_v47, %v11972_v49 }
 0x454   : > { %v11978_v16 = vpop.f32.mrb[70].mxu0  ;;  %7504 = vpow2.f32 %v3523_v45  ;;  %v4194_v7 = vmul.f32 %v7489_v56, %v14420_v31  ;;  %v4193_v61 = vmul.f32 %v7489_v56, %v14421_v14  ;;  %v14424_v14 = vld [vmem:[#allocation26_spill] sm:$0xff] }
 0x455   : > { %14419 = vst [vmem:[#allocation152_spill] sm:$0xff] %v11978_v16  ;;  %v4696_v26 = vpop.f32.mrb[71].mxu0  ;;  %v11984_v57 = vpop.eup %7490  ;;  %7506 = vrcp.f32 %v3819_v13  ;;  %v3525_v51 = vmul.f32 1.442695, %v3069_v37  ;;  %v3527_v27 = vmul.f32 1.442695, %v3070_v9 }
 0x456   : > { %v11986_v12 = vpop.eup %7492  ;;  %4882 = vmatprep.mubr.f32.mxu0 %v4194_v7  ;;  %3926 = vadd.xlane.f32.xlu1 %v3925_v35  ;;  %v2790_v5 = vpop.xlane.xlu0 %2789  ;;  %v14423_v37 = vld [vmem:[#allocation154_spill] sm:$0xff] }
 0x457   : > { %v3822_v21 = vpop.xlane.xlu1 %3821  ;;  %v7495_v1 = vpop.eup %7494  ;;  %7508 = vpow2.f32 %v3525_v51  ;;  %4883 = vmatmul.mubr.f32.gmra.mrb[146].mxu0 %v4193_v61  ;;  %v3071_v45 = vsub.f32 %v11226_v46, %v2790_v5  ;;  %v3072_v31 = vsub.f32 %v11232_v4, %v2790_v5  ;;  %v3928_v13 = vadd.f32 %v11986_v12, %v11984_v57 }
 0x458   : > { %v11990_v56 = vpop.f32.mrb[72].mxu0  ;;  %7510 = vpow2.f32 %v3527_v27  ;;  %v4197_v9 = vmul.f32 %v7495_v1, %v14423_v37  ;;  %v4196_v7 = vmul.f32 %v7495_v1, %v14424_v14  ;;  %v14427_v14 = vld [vmem:[#allocation171_spill] sm:$0xff] }
 0x459   : > { %14422 = vst [vmem:[#allocation41_spill] sm:$0xff] %v11990_v56  ;;  %v4701_v35 = vpop.f32.mrb[73].mxu0  ;;  %v11996_v26 = vpop.eup %7496  ;;  %7512 = vrcp.f32 %v3822_v21  ;;  %v3529_v51 = vmul.f32 1.442695, %v3071_v45  ;;  %v3531_v61 = vmul.f32 1.442695, %v3072_v31 }
 0x45a   : > { %v11998_v16 = vpop.eup %7498  ;;  %4887 = vmatprep.mubr.f32.mxu0 %v4197_v9  ;;  %3929 = vadd.xlane.f32.xlu1 %v3928_v13  ;;  %v2793_v4 = vpop.xlane.xlu0 %2792  ;;  %v14426_v45 = vld [vmem:[#allocation153_spill] sm:$0xff] }
 0x45b   : > { %v3825_v46 = vpop.xlane.xlu1 %3824  ;;  %v7501_v5 = vpop.eup %7500  ;;  %7514 = vpow2.f32 %v3529_v51  ;;  %4888 = vmatmul.mubr.f32.gmra.mrb[148].mxu0 %v4196_v7  ;;  %v3073_v27 = vsub.f32 %v11248_v41, %v2793_v4  ;;  %v3074_v37 = vsub.f32 %v11254_v18, %v2793_v4  ;;  %v3931_v21 = vadd.f32 %v11998_v16, %v11996_v26 }
 0x45c   : > { %v12002_v1 = vpop.f32.mrb[74].mxu0  ;;  %7516 = vpow2.f32 %v3531_v61  ;;  %v4200_v31 = vmul.f32 %v7501_v5, %v14426_v45  ;;  %v4199_v9 = vmul.f32 %v7501_v5, %v14427_v14 }
 0x45d   : > { %14425 = vst [vmem:[#allocation112_spill] sm:$0xff] %v12002_v1  ;;  %v4706_v13 = vpop.f32.mrb[75].mxu0  ;;  %v12008_v35 = vpop.eup %7502  ;;  %7518 = vrcp.f32 %v3825_v46  ;;  %v3533_v51 = vmul.f32 1.442695, %v3073_v27  ;;  %v3535_v7 = vmul.f32 1.442695, %v3074_v37 }
 0x45e   : > { %v12010_v56 = vpop.eup %7504  ;;  %4892 = vmatprep.mubr.f32.mxu0 %v4200_v31  ;;  %3932 = vadd.xlane.f32.xlu1 %v3931_v21  ;;  %v2796_v18 = vpop.xlane.xlu0 %2795  ;;  %v14429_v46 = vld [vmem:[#allocation72_spill] sm:$0xff]  ;;  %v14430_v37 = vld [vmem:[#allocation66_spill] sm:$0xff] }
 0x45f   : > { %v3828_v41 = vpop.xlane.xlu1 %3827  ;;  %v7507_v4 = vpop.eup %7506  ;;  %7520 = vpow2.f32 %v3533_v51  ;;  %4893 = vmatmul.mubr.f32.gmra.mrb[150].mxu0 %v4199_v9  ;;  %v3075_v61 = vsub.f32 %v11270_v29, %v2796_v18  ;;  %v3076_v45 = vsub.f32 %v11276_v25, %v2796_v18  ;;  %v3934_v5 = vadd.f32 %v12010_v56, %v12008_v35 }
 0x460   : > { %v12016_v14 = vpop.f32.mrb[76].mxu0  ;;  %7522 = vpow2.f32 %v3535_v7  ;;  %v4203_v27 = vmul.f32 %v7507_v4, %v14429_v46  ;;  %v4202_v31 = vmul.f32 %v7507_v4, %v14430_v37 }
 0x461   : > { %14428 = vst [vmem:[#allocation49_spill] sm:$0xff] %v12016_v14  ;;  %v4711_v21 = vpop.f32.mrb[77].mxu0  ;;  %v12020_v13 = vpop.eup %7508  ;;  %7524 = vrcp.f32 %v3828_v41  ;;  %v3537_v51 = vmul.f32 1.442695, %v3075_v61  ;;  %v3539_v9 = vmul.f32 1.442695, %v3076_v45 }
 0x462   : > { %v12022_v1 = vpop.eup %7510  ;;  %4897 = vmatprep.mubr.f32.mxu0 %v4203_v27  ;;  %3935 = vadd.xlane.f32.xlu1 %v3934_v5  ;;  %v2799_v25 = vpop.xlane.xlu0 %2798  ;;  %v14432_v41 = vld [vmem:[#allocation173_spill] sm:$0xff]  ;;  %v14433_v45 = vld [vmem:[#allocation172_spill] sm:$0xff] }
 0x463   : > { %v3831_v29 = vpop.xlane.xlu1 %3830  ;;  %v7513_v18 = vpop.eup %7512  ;;  %7526 = vpow2.f32 %v3537_v51  ;;  %4898 = vmatmul.mubr.f32.gmra.mrb[152].mxu0 %v4202_v31  ;;  %v3077_v7 = vsub.f32 %v11292_v34, %v2799_v25  ;;  %v3078_v46 = vsub.f32 %v11298_v6, %v2799_v25  ;;  %v3937_v4 = vadd.f32 %v12022_v1, %v12020_v13 }
 0x464   : > { %v12028_v37 = vpop.f32.mrb[78].mxu0  ;;  %7528 = vpow2.f32 %v3539_v9  ;;  %v4206_v61 = vmul.f32 %v7513_v18, %v14432_v41  ;;  %v4205_v27 = vmul.f32 %v7513_v18, %v14433_v45 }
 0x465   : > { %14431 = vst [vmem:[#allocation70_spill] sm:$0xff] %v12028_v37  ;;  %v4716_v5 = vpop.f32.mrb[79].mxu0  ;;  %v12032_v21 = vpop.eup %7514  ;;  %7530 = vrcp.f32 %v3831_v29  ;;  %v3541_v51 = vmul.f32 1.442695, %v3077_v7  ;;  %v3543_v31 = vmul.f32 1.442695, %v3078_v46 }
 0x466   : > { %14434 = vst [vmem:[#allocation54_spill] sm:$0xff] %v12032_v21  ;;  %v12034_v14 = vpop.eup %7516  ;;  %4902 = vmatprep.mubr.f32.mxu0 %v4206_v61  ;;  %3938 = vadd.xlane.f32.xlu1 %v3937_v4  ;;  %v2802_v6 = vpop.xlane.xlu0 %2801  ;;  %v14437_v29 = vld [vmem:[#allocation75_spill] sm:$0xff]  ;;  %v14438_v46 = vld [vmem:[#allocation69_spill] sm:$0xff] }
 0x467   : > { %14435 = vst [vmem:[#allocation117_spill] sm:$0xff] %v12034_v14  ;;  %v3834_v34 = vpop.xlane.xlu1 %3833  ;;  %v7519_v25 = vpop.eup %7518  ;;  %7532 = vpow2.f32 %v3541_v51  ;;  %4903 = vmatmul.mubr.f32.gmra.mrb[154].mxu0 %v4205_v27  ;;  %v3079_v9 = vsub.f32 %v11314_v48, %v2802_v6  ;;  %v3080_v41 = vsub.f32 %v11320_v52, %v2802_v6  ;;  %v3940_v18 = vadd.f32 %v12034_v14, %v12032_v21 }
 0x468   : > { %7534 = vpow2.f32 %v3543_v31  ;;  %v4209_v7 = vmul.f32 %v7519_v25, %v14437_v29  ;;  %v4208_v61 = vmul.f32 %v7519_v25, %v14438_v46  ;;  %v14439_v31 = vld [vmem:[#allocation74_spill] sm:$0xff]  ;;  %v14440_v29 = vld [vmem:[#allocation80_spill] sm:$0xff] }
 0x469   : > { %v12040_v45 = vpop.f32.mrb[80].mxu0  ;;  %v12044_v5 = vpop.eup %7520  ;;  %7536 = vrcp.f32 %v3834_v34  ;;  %v3545_v51 = vmul.f32 1.442695, %v3079_v9  ;;  %v3547_v27 = vmul.f32 1.442695, %v3080_v41  ;;  %v14442_v34 = vld [vmem:[#allocation175_spill] sm:$0xff] }
 0x46a   : > { %14436 = vst [vmem:[#allocation39_spill] sm:$0xff] %v12040_v45  ;;  %v4721_v4 = vpop.f32.mrb[81].mxu0  ;;  %v12046_v37 = vpop.eup %7522  ;;  %4907 = vmatprep.mubr.f32.mxu0 %v4209_v7  ;;  %3941 = vadd.xlane.f32.xlu1 %v3940_v18  ;;  %v14443_v41 = vld [vmem:[#allocation174_spill] sm:$0xff] }
 0x46b   : > { %v3837_v48 = vpop.xlane.xlu1 %3836  ;;  %v2805_v52 = vpop.xlane.xlu0 %2804  ;;  %7538 = vpow2.f32 %v3545_v51  ;;  %4908 = vmatmul.mubr.f32.gmra.mrb[156].mxu0 %v4208_v61  ;;  %v3943_v25 = vadd.f32 %v12046_v37, %v12044_v5 }
 0x46c   : > { %v7525_v6 = vpop.eup %7524  ;;  %v3081_v45 = vsub.f32 %v14439_v31, %v2805_v52  ;;  %v3082_v21 = vsub.f32 %v14440_v29, %v2805_v52  ;;  %7540 = vpow2.f32 %v3547_v27 }
 0x46d   : > { %v12052_v46 = vpop.f32.mrb[82].mxu0  ;;  %v4212_v9 = vmul.f32 %v7525_v6, %v14442_v34  ;;  %v4211_v7 = vmul.f32 %v7525_v6, %v14443_v41  ;;  %v12056_v4 = vpop.eup %7526  ;;  %7542 = vrcp.f32 %v3837_v48  ;;  %v14447_v48 = vld [vmem:[#allocation85_spill] sm:$0xff] }
 0x46e   : > { %14441 = vst [vmem:[#allocation71_spill] sm:$0xff] %v12052_v46  ;;  %v4726_v18 = vpop.f32.mrb[83].mxu0  ;;  %14444 = vst [vmem:[#allocation43_spill] sm:$0xff] %v12056_v4  ;;  %v3549_v51 = vmul.f32 1.442695, %v3081_v45  ;;  %v12058_v14 = vpop.eup %7528  ;;  %3944 = vadd.xlane.f32.xlu1 %v3943_v25 }
 0x46f   : > { %v3551_v61 = vmul.f32 1.442695, %v3082_v21  ;;  %4912 = vmatprep.mubr.f32.mxu0 %v4212_v9  ;;  %v2808_v52 = vpop.xlane.xlu0 %2807  ;;  %v7531_v31 = vpop.eup %7530  ;;  %v3946_v6 = vadd.f32 %v12058_v14, %v12056_v4  ;;  %v14446_v21 = vld [vmem:[#allocation87_spill] sm:$0xff] }
 0x470   : > { %7544 = vpow2.f32 %v3549_v51  ;;  %4913 = vmatmul.mubr.f32.gmra.mrb[158].mxu0 %v4211_v7  ;;  %v3840_v29 = vpop.xlane.xlu1 %3839  ;;  %v3083_v27 = vsub.f32 %v11358_v55, %v2808_v52  ;;  %v3084_v34 = vsub.f32 %v11364_v44, %v2808_v52  ;;  %v4215_v45 = vmul.f32 %v7531_v31, %v14446_v21  ;;  %v14448_v21 = vld [vmem:[#allocation5_spill] sm:$0xff] }
 0x471   : > { %v12064_v41 = vpop.f32.mrb[84].mxu0  ;;  %7546 = vpow2.f32 %v3551_v61  ;;  %v4214_v9 = vmul.f32 %v7531_v31, %v14447_v48  ;;  %v12068_v18 = vpop.eup %7532 }
 0x472   : > { %14445 = vst [vmem:[#allocation122_spill] sm:$0xff] %v12064_v41  ;;  %v4731_v25 = vpop.f32.mrb[85].mxu0  ;;  %7548 = vrcp.f32 %v3840_v29  ;;  %v3553_v7 = vmul.f32 1.442695, %v3083_v27  ;;  %v3555_v51 = vmul.f32 1.442695, %v3084_v34  ;;  %v12070_v46 = vpop.eup %7534  ;;  %4917 = vmatprep.mubr.f32.mxu0 %v4215_v45  ;;  %3947 = vadd.xlane.f32.xlu1 %v3946_v6 }
 0x473   : > { %v2811_v55 = vpop.xlane.xlu0 %2810  ;;  %v7537_v44 = vpop.eup %7536  ;;  %v3949_v31 = vadd.f32 %v12070_v46, %v12068_v18  ;;  %v14450_v29 = vld [vmem:[#allocation28_spill] sm:$0xff]  ;;  %v14451_v34 = vld [vmem:[#allocation107_spill] sm:$0xff] }
 0x474   : > { %7550 = vpow2.f32 %v3553_v7  ;;  %4918 = vmatmul.mubr.f32.gmra.mrb[160].mxu0 %v4214_v9  ;;  %v3843_v52 = vpop.xlane.xlu1 %3842  ;;  %v3085_v61 = vsub.f32 %v11378_v63, %v2811_v55  ;;  %v3086_v41 = vsub.f32 %v14448_v21, %v2811_v55  ;;  %v4218_v27 = vmul.f32 %v7537_v44, %v14450_v29 }
 0x475   : > { %v12076_v48 = vpop.f32.mrb[86].mxu0  ;;  %7552 = vpow2.f32 %v3555_v51  ;;  %v4217_v45 = vmul.f32 %v7537_v44, %v14451_v34  ;;  %v12080_v25 = vpop.eup %7538 }
 0x476   : > { %14449 = vst [vmem:[#allocation52_spill] sm:$0xff] %v12076_v48  ;;  %v4736_v6 = vpop.f32.mrb[87].mxu0  ;;  %7554 = vrcp.f32 %v3843_v52  ;;  %v3557_v9 = vmul.f32 1.442695, %v3085_v61  ;;  %v3559_v7 = vmul.f32 1.442695, %v3086_v41  ;;  %v12082_v4 = vpop.eup %7540  ;;  %4922 = vmatprep.mubr.f32.mxu0 %v4218_v27  ;;  %3950 = vadd.xlane.f32.xlu1 %v3949_v31 }
 0x477   : > { %v2814_v63 = vpop.xlane.xlu0 %2813  ;;  %v7543_v55 = vpop.eup %7542  ;;  %v3952_v44 = vadd.f32 %v12082_v4, %v12080_v25  ;;  %v14452_v52 = vld [vmem:[#allocation24_spill] sm:$0xff]  ;;  %v14453_v41 = vld [vmem:[#allocation25_spill] sm:$0xff] }
 0x478   : > { %7556 = vpow2.f32 %v3557_v9  ;;  %4923 = vmatmul.mubr.f32.gmra.mrb[162].mxu0 %v4217_v45  ;;  %v3846_v21 = vpop.xlane.xlu1 %3845  ;;  %v3087_v51 = vsub.f32 %v11404_v50, %v2814_v63  ;;  %v3088_v29 = vsub.f32 %v11410_v30, %v2814_v63  ;;  %v4221_v61 = vmul.f32 %v7543_v55, %v14452_v52  ;;  %v14456_v63 = vld [vmem:[#allocation164_spill] sm:$0xff] }
 0x479   : > { %7558 = vpow2.f32 %v3559_v7  ;;  %v4220_v34 = vmul.f32 %v7543_v55, %v14453_v41 }
 0x47a   : > { %v12090_v6 = vpop.eup %7544  ;;  %7560 = vrcp.f32 %v3846_v21  ;;  %v3561_v31 = vmul.f32 1.442695, %v3087_v51  ;;  %v3563_v27 = vmul.f32 1.442695, %v3088_v29  ;;  %4927 = vmatprep.mubr.f32.mxu0 %v4221_v61  ;;  %3953 = vadd.xlane.f32.xlu1 %v3952_v44  ;;  %v14457_v21 = vld [vmem:[#allocation12_spill] sm:$0xff] }
 0x47b   : > { %14454 = vst [vmem:[#allocation156_spill] sm:$0xff] %v12090_v6  ;;  %v12092_v9 = vpop.eup %7546  ;;  %v2817_v50 = vpop.xlane.xlu0 %2816  ;;  %v14458_v29 = vld [vmem:[#allocation128_spill] sm:$0xff] }
 0x47c   : > { %14455 = vst [vmem:[#allocation67_spill] sm:$0xff] %v12092_v9  ;;  %v7549_v45 = vpop.eup %7548  ;;  %7562 = vpow2.f32 %v3561_v31  ;;  %4928 = vmatmul.mubr.f32.gmra.mrb[164].mxu0 %v4220_v34  ;;  %v3849_v30 = vpop.xlane.xlu1 %3848  ;;  %v3089_v7 = vsub.f32 %v11428_v43, %v2817_v50  ;;  %v3090_v52 = vsub.f32 %v14456_v63, %v2817_v50  ;;  %v3955_v55 = vadd.f32 %v12092_v9, %v12090_v6  ;;  %v14459_v63 = vld [vmem:[#allocation166_spill] sm:$0xff]  ;;  %v14460_v6 = vld [vmem:[#allocation160_spill] sm:$0xff] }
 0x47d   : > { %7564 = vpow2.f32 %v3563_v27  ;;  %v4224_v51 = vmul.f32 %v7549_v45, %v14457_v21  ;;  %v4223_v41 = vmul.f32 %v7549_v45, %v14458_v29 }
 0x47e   : > { %v12100_v48 = vpop.eup %7550  ;;  %7566 = vrcp.f32 %v3849_v30  ;;  %v3565_v44 = vmul.f32 1.442695, %v3089_v7  ;;  %v3567_v61 = vmul.f32 1.442695, %v3090_v52  ;;  %3956 = vadd.xlane.f32.xlu0 %v3955_v55  ;;  %v14461_v30 = vld [vmem:[#allocation162_spill] sm:$0xff]  ;;  %v14462_v52 = vld [vmem:[#allocation161_spill] sm:$0xff] }
 0x47f   : > { %v12102_v34 = vpop.eup %7552  ;;  %4932 = vmatprep.mubr.f32.mxu0 %v4224_v51  ;;  %v2820_v43 = vpop.xlane.xlu0 %2819 }
 0x480   : > { %v7555_v31 = vpop.eup %7554  ;;  %7568 = vpow2.f32 %v3565_v44  ;;  %4933 = vmatmul.mubr.f32.gmra.mrb[166].mxu0 %v4223_v41  ;;  %v3852_v50 = vpop.xlane.xlu1 %3851  ;;  %v3091_v27 = vsub.f32 %v14459_v63, %v2820_v43  ;;  %v3092_v21 = vsub.f32 %v14460_v6, %v2820_v43  ;;  %v3958_v45 = vadd.f32 %v12102_v34, %v12100_v48 }
 0x481   : > { %7570 = vpow2.f32 %v3567_v61  ;;  %v4227_v7 = vmul.f32 %v7555_v31, %v14461_v30  ;;  %v4226_v55 = vmul.f32 %v7555_v31, %v14462_v52 }
 0x482   : > { %v12110_v29 = vpop.eup %7556  ;;  %7572 = vrcp.f32 %v3852_v50  ;;  %v3569_v51 = vmul.f32 1.442695, %v3091_v27  ;;  %v3571_v9 = vmul.f32 1.442695, %v3092_v21  ;;  %3959 = vadd.xlane.f32.xlu1 %v3958_v45  ;;  %v14464_v50 = vld [vmem:[#allocation163_spill] sm:$0xff]  ;;  %v14465_v21 = vld [vmem:[#allocation8_spill] sm:$0xff] }
 0x483   : > { %v12112_v41 = vpop.eup %7558  ;;  %4937 = vmatprep.mubr.f32.mxu0 %v4227_v7  ;;  %v12114_v44 = vpop.f32.mrb[88].mxu0 }
 0x484   : > { %14463 = vst [vmem:[#allocation137_spill] sm:$0xff] %v12114_v44  ;;  %v2823_v6 = vpop.xlane.xlu0 %2822  ;;  %v7561_v43 = vpop.eup %7560  ;;  %7574 = vpow2.f32 %v3569_v51  ;;  %4938 = vmatmul.mubr.f32.gmra.mrb[168].mxu0 %v4226_v55  ;;  %v3961_v7 = vadd.f32 %v12112_v41, %v12110_v29 }
 0x485   : > { %v3855_v61 = vpop.xlane.xlu1 %3854  ;;  %v3093_v63 = vsub.f32 %v11476_v40, %v2823_v6  ;;  %v3094_v31 = vsub.f32 %v11482_v2, %v2823_v6  ;;  %v4741_v30 = vpop.f32.mrb[89].mxu0  ;;  %7576 = vpow2.f32 %v3571_v9  ;;  %v4230_v27 = vmul.f32 %v7561_v43, %v14464_v50 }
 0x486   : > { %v4229_v45 = vmul.f32 %v7561_v43, %v14465_v21  ;;  %v12122_v52 = vpop.eup %7562  ;;  %7578 = vrcp.f32 %v3855_v61  ;;  %3962 = vadd.xlane.f32.xlu0 %v3961_v7  ;;  %v14466_v61 = vld [vmem:[#allocation165_spill] sm:$0xff] }
 0x487   : > { %v3573_v44 = vmul.f32 1.442695, %v3093_v63  ;;  %v3575_v51 = vmul.f32 1.442695, %v3094_v31  ;;  %v12124_v55 = vpop.eup %7564  ;;  %4942 = vmatprep.mubr.f32.mxu0 %v4230_v27  ;;  %v14467_v31 = vld [vmem:[#allocation31_spill] sm:$0xff] }
 0x488   : > { %v2826_v40 = vpop.xlane.xlu0 %2825  ;;  %v7567_v2 = vpop.eup %7566  ;;  %4943 = vmatmul.mubr.f32.gmra.mrb[170].mxu0 %v4229_v45  ;;  %v3964_v30 = vadd.f32 %v12124_v55, %v12122_v52 }
 0x489   : > { %7580 = vpow2.f32 %v3573_v44  ;;  %v3858_v9 = vpop.xlane.xlu1 %3857  ;;  %v3095_v6 = vsub.f32 %v11500_v59, %v2826_v40  ;;  %v3096_v43 = vsub.f32 %v11506_v38, %v2826_v40  ;;  %v4233_v63 = vmul.f32 %v7567_v2, %v14466_v61 }
 0x48a   : > { %7582 = vpow2.f32 %v3575_v51  ;;  %v4232_v50 = vmul.f32 %v7567_v2, %v14467_v31  ;;  %v12132_v21 = vpop.eup %7568  ;;  %3965 = vadd.xlane.f32.xlu1 %v3964_v30  ;;  %v12136_v59 = vpop.f32.mrb[90].mxu0 }
 0x48b   : > { %7584 = vrcp.f32 %v3858_v9  ;;  %v3577_v27 = vmul.f32 1.442695, %v3095_v6  ;;  %v3579_v7 = vmul.f32 1.442695, %v3096_v43  ;;  %v12134_v44 = vpop.eup %7570  ;;  %4947 = vmatprep.mubr.f32.mxu0 %v4233_v63  ;;  %14468 = vst [vmem:[#allocation40_spill] sm:$0xff] %v12136_v59  ;;  %v4746_v61 = vpop.f32.mrb[91].mxu0 }
 0x48c   : > { %v2829_v38 = vpop.xlane.xlu0 %2828  ;;  %v7573_v45 = vpop.eup %7572  ;;  %4948 = vmatmul.mubr.f32.gmra.mrb[172].mxu0 %v4232_v50  ;;  %v14469_v9 = vld [vmem:[#allocation168_spill] sm:$0xff]  ;;  %v14470_v43 = vld [vmem:[#allocation167_spill] sm:$0xff]  ;;  %v3967_v63 = vadd.f32 %v12134_v44, %v12132_v21 }
 0x48d   : > { %7586 = vpow2.f32 %v3577_v27  ;;  %v3861_v51 = vpop.xlane.xlu1 %3860  ;;  %v3097_v40 = vsub.f32 %v11524_v62, %v2829_v38  ;;  %v3098_v2 = vsub.f32 %v11530_v0, %v2829_v38  ;;  %v4236_v6 = vmul.f32 %v7573_v45, %v14469_v9 }
 0x48e   : > { %7588 = vpow2.f32 %v3579_v7  ;;  %v4235_v30 = vmul.f32 %v7573_v45, %v14470_v43  ;;  %v12144_v31 = vpop.eup %7574  ;;  %3968 = vadd.xlane.f32.xlu0 %v3967_v63  ;;  %v12148_v62 = vpop.f32.mrb[92].mxu0 }
 0x48f   : > { %7590 = vrcp.f32 %v3861_v51  ;;  %v3581_v59 = vmul.f32 1.442695, %v3097_v40  ;;  %v3583_v27 = vmul.f32 1.442695, %v3098_v2  ;;  %v12146_v50 = vpop.eup %7576  ;;  %4952 = vmatprep.mubr.f32.mxu0 %v4236_v6  ;;  %14471 = vst [vmem:[#allocation68_spill] sm:$0xff] %v12148_v62  ;;  %v4751_v9 = vpop.f32.mrb[93].mxu0 }
 0x490   : > { %v2832_v0 = vpop.xlane.xlu0 %2831  ;;  %v7579_v7 = vpop.eup %7578  ;;  %4953 = vmatmul.mubr.f32.gmra.mrb[174].mxu0 %v4235_v30  ;;  %v14472_v51 = vld [vmem:[#allocation97_spill] sm:$0xff]  ;;  %v14473_v2 = vld [vmem:[#allocation95_spill] sm:$0xff]  ;;  %v3970_v6 = vadd.f32 %v12146_v50, %v12144_v31 }
 0x491   : > { %7592 = vpow2.f32 %v3581_v59  ;;  %v3864_v38 = vpop.xlane.xlu1 %3863  ;;  %v3099_v45 = vsub.f32 %v11548_v36, %v2832_v0  ;;  %v3100_v61 = vsub.f32 %v11554_v24, %v2832_v0  ;;  %v4239_v40 = vmul.f32 %v7579_v7, %v14472_v51 }
 0x492   : > { %7594 = vpow2.f32 %v3583_v27  ;;  %v4238_v43 = vmul.f32 %v7579_v7, %v14473_v2  ;;  %3971 = vadd.xlane.f32.xlu1 %v3970_v6  ;;  %v12160_v36 = vpop.f32.mrb[94].mxu0 }
 0x493   : > { %v12156_v63 = vpop.eup %7580  ;;  %7596 = vrcp.f32 %v3864_v38  ;;  %v3585_v62 = vmul.f32 1.442695, %v3099_v45  ;;  %v3587_v59 = vmul.f32 1.442695, %v3100_v61  ;;  %4957 = vmatprep.mubr.f32.mxu0 %v4239_v40  ;;  %14476 = vst [vmem:[#allocation73_spill] sm:$0xff] %v12160_v36  ;;  %v4756_v51 = vpop.f32.mrb[95].mxu0 }
 0x494   : > { %14474 = vst [vmem:[#allocation157_spill] sm:$0xff] %v12156_v63  ;;  %v12158_v30 = vpop.eup %7582  ;;  %v2835_v24 = vpop.xlane.xlu0 %2834  ;;  %4958 = vmatmul.mubr.f32.gmra.mrb[176].mxu0 %v4238_v43  ;;  %v14477_v38 = vld [vmem:[#allocation170_spill] sm:$0xff]  ;;  %v14478_v61 = vld [vmem:[#allocation169_spill] sm:$0xff] }
 0x495   : > { %14475 = vst [vmem:[#allocation45_spill] sm:$0xff] %v12158_v30  ;;  %v7585_v27 = vpop.eup %7584  ;;  %7598 = vpow2.f32 %v3585_v62  ;;  %v3867_v0 = vpop.xlane.xlu1 %3866  ;;  %v3101_v7 = vsub.f32 %v11572_v20, %v2835_v24  ;;  %v3102_v9 = vsub.f32 %v11578_v58, %v2835_v24  ;;  %v3973_v40 = vadd.f32 %v12158_v30, %v12156_v63  ;;  %v14481_v24 = vld [vmem:[#allocation36_spill] sm:$0xff] }
 0x496   : > { %7600 = vpow2.f32 %v3587_v59  ;;  %v4242_v45 = vmul.f32 %v7585_v27, %v14477_v38  ;;  %v4241_v2 = vmul.f32 %v7585_v27, %v14478_v61  ;;  %v14482_v27 = vld [vmem:[#allocation131_spill] sm:$0xff] }
 0x497   : > { %v12168_v6 = vpop.eup %7586  ;;  %7602 = vrcp.f32 %v3867_v0  ;;  %v3589_v36 = vmul.f32 1.442695, %v3101_v7  ;;  %v3591_v62 = vmul.f32 1.442695, %v3102_v9  ;;  %3974 = vadd.xlane.f32.xlu0 %v3973_v40  ;;  %v14483_v0 = vld [vmem:[#allocation104_spill] sm:$0xff]  ;;  %v14484_v9 = vld [vmem:[#allocation102_spill] sm:$0xff] }
 0x498   : > { %14479 = vst [vmem:[#allocation133_spill] sm:$0xff] %v12168_v6  ;;  %v12170_v43 = vpop.eup %7588  ;;  %4962 = vmatprep.mubr.f32.mxu0 %v4242_v45  ;;  %v2838_v20 = vpop.xlane.xlu0 %2837 }
 0x499   : > { %14480 = vst [vmem:[#allocation77_spill] sm:$0xff] %v12170_v43  ;;  %v7591_v58 = vpop.eup %7590  ;;  %7604 = vpow2.f32 %v3589_v36  ;;  %4963 = vmatmul.mubr.f32.gmra.mrb[178].mxu0 %v4241_v2  ;;  %v3870_v59 = vpop.xlane.xlu1 %3869  ;;  %v3103_v51 = vsub.f32 %v14481_v24, %v2838_v20  ;;  %v3104_v38 = vsub.f32 %v14482_v27, %v2838_v20  ;;  %v3976_v61 = vadd.f32 %v12170_v43, %v12168_v6  ;;  %v14487_v27 = vld [vmem:[#allocation109_spill] sm:$0xff] }
 0x49a   : > { %7606 = vpow2.f32 %v3591_v62  ;;  %v4245_v7 = vmul.f32 %v7591_v58, %v14483_v0  ;;  %v4244_v30 = vmul.f32 %v7591_v58, %v14484_v9  ;;  %v14488_v6 = vld [vmem:[#allocation101_spill] sm:$0xff] }
 0x49b   : > { %v12178_v63 = vpop.eup %7592  ;;  %7608 = vrcp.f32 %v3870_v59  ;;  %v3593_v45 = vmul.f32 1.442695, %v3103_v51  ;;  %v3595_v40 = vmul.f32 1.442695, %v3104_v38  ;;  %3977 = vadd.xlane.f32.xlu1 %v3976_v61  ;;  %v14489_v59 = vld [vmem:[#allocation106_spill] sm:$0xff] }
 0x49c   : > { %14485 = vst [vmem:[#allocation143_spill] sm:$0xff] %v12178_v63  ;;  %v12180_v36 = vpop.eup %7594  ;;  %4967 = vmatprep.mubr.f32.mxu0 %v4245_v7  ;;  %v2841_v2 = vpop.xlane.xlu0 %2840  ;;  %v14490_v38 = vld [vmem:[#allocation10_spill] sm:$0xff] }
 0x49d   : > { %14486 = vst [vmem:[#allocation42_spill] sm:$0xff] %v12180_v36  ;;  %v7597_v24 = vpop.eup %7596  ;;  %7610 = vpow2.f32 %v3593_v45  ;;  %4968 = vmatmul.mubr.f32.gmra.mrb[180].mxu0 %v4244_v30  ;;  %v3873_v20 = vpop.xlane.xlu1 %3872  ;;  %v3105_v62 = vsub.f32 %v14487_v27, %v2841_v2  ;;  %v3106_v0 = vsub.f32 %v14488_v6, %v2841_v2  ;;  %v3979_v58 = vadd.f32 %v12180_v36, %v12178_v63  ;;  %v14493_v2 = vld [vmem:[#allocation86_spill] sm:$0xff]  ;;  %v14494_v63 = vld [vmem:[#allocation29_spill] sm:$0xff] }
 0x49e   : > { %7612 = vpow2.f32 %v3595_v40  ;;  %v4248_v51 = vmul.f32 %v7597_v24, %v14489_v59  ;;  %v4247_v61 = vmul.f32 %v7597_v24, %v14490_v38 }
 0x49f   : > { %v12188_v9 = vpop.eup %7598  ;;  %7614 = vrcp.f32 %v3873_v20  ;;  %v3597_v7 = vmul.f32 1.442695, %v3105_v62  ;;  %v3599_v43 = vmul.f32 1.442695, %v3106_v0  ;;  %3980 = vadd.xlane.f32.xlu0 %v3979_v58  ;;  %v14495_v20 = vld [vmem:[#allocation124_spill] sm:$0xff]  ;;  %v14496_v0 = vld [vmem:[#allocation13_spill] sm:$0xff] }
 0x4a0   : > { %14491 = vst [vmem:[#allocation6_spill] sm:$0xff] %v12188_v9  ;;  %v12190_v30 = vpop.eup %7600  ;;  %4972 = vmatprep.mubr.f32.mxu0 %v4248_v51  ;;  %v2844_v45 = vpop.xlane.xlu0 %2843 }
 0x4a1   : > { %14492 = vst [vmem:[#allocation47_spill] sm:$0xff] %v12190_v30  ;;  %v7603_v27 = vpop.eup %7602  ;;  %7616 = vpow2.f32 %v3597_v7  ;;  %4973 = vmatmul.mubr.f32.gmra.mrb[182].mxu0 %v4247_v61  ;;  %v3876_v6 = vpop.xlane.xlu1 %3875  ;;  %v3107_v40 = vsub.f32 %v14493_v2, %v2844_v45  ;;  %v3108_v59 = vsub.f32 %v14494_v63, %v2844_v45  ;;  %v3982_v24 = vadd.f32 %v12190_v30, %v12188_v9  ;;  %v14497_v45 = vld [vmem:[#allocation92_spill] sm:$0xff]  ;;  %v14498_v9 = vld [vmem:[#allocation90_spill] sm:$0xff] }
 0x4a2   : > { %7618 = vpow2.f32 %v3599_v43  ;;  %v4251_v62 = vmul.f32 %v7603_v27, %v14495_v20  ;;  %v4250_v58 = vmul.f32 %v7603_v27, %v14496_v0 }
 0x4a3   : > { %v12198_v38 = vpop.eup %7604  ;;  %7620 = vrcp.f32 %v3876_v6  ;;  %v3601_v51 = vmul.f32 1.442695, %v3107_v40  ;;  %v3603_v36 = vmul.f32 1.442695, %v3108_v59  ;;  %3983 = vadd.xlane.f32.xlu1 %v3982_v24  ;;  %v14499_v6 = vld [vmem:[#allocation129_spill] sm:$0xff]  ;;  %v14500_v59 = vld [vmem:[#allocation35_spill] sm:$0xff] }
 0x4a4   : > { %v12200_v61 = vpop.eup %7606  ;;  %4977 = vmatprep.mubr.f32.mxu0 %v4251_v62  ;;  %v2847_v7 = vpop.xlane.xlu0 %2846 }
 0x4a5   : > { %v7609_v2 = vpop.eup %7608  ;;  %7622 = vpow2.f32 %v3601_v51  ;;  %4978 = vmatmul.mubr.f32.gmra.mrb[184].mxu0 %v4250_v58  ;;  %v3879_v63 = vpop.xlane.xlu1 %3878  ;;  %v3109_v43 = vsub.f32 %v14497_v45, %v2847_v7  ;;  %v3110_v20 = vsub.f32 %v14498_v9, %v2847_v7  ;;  %v3985_v27 = vadd.f32 %v12200_v61, %v12198_v38 }
 0x4a6   : > { %7624 = vpow2.f32 %v3603_v36  ;;  %v4254_v40 = vmul.f32 %v7609_v2, %v14499_v6  ;;  %v4253_v24 = vmul.f32 %v7609_v2, %v14500_v59 }
 0x4a7   : > { %v12208_v0 = vpop.eup %7610  ;;  %7626 = vrcp.f32 %v3879_v63  ;;  %v3605_v62 = vmul.f32 1.442695, %v3109_v43  ;;  %v3607_v30 = vmul.f32 1.442695, %v3110_v20  ;;  %3986 = vadd.xlane.f32.xlu0 %v3985_v27  ;;  %v14501_v63 = vld [vmem:[#allocation98_spill] sm:$0xff]  ;;  %v14502_v20 = vld [vmem:[#allocation96_spill] sm:$0xff] }
 0x4a8   : > { %v12210_v58 = vpop.eup %7612  ;;  %4982 = vmatprep.mubr.f32.mxu0 %v4254_v40  ;;  %v2850_v51 = vpop.xlane.xlu0 %2849 }
 0x4a9   : > { %v7615_v45 = vpop.eup %7614  ;;  %7628 = vpow2.f32 %v3605_v62  ;;  %4983 = vmatmul.mubr.f32.gmra.mrb[186].mxu0 %v4253_v24  ;;  %v3882_v9 = vpop.xlane.xlu1 %3881  ;;  %v3111_v36 = vsub.f32 %v11692_v42, %v2850_v51  ;;  %v3112_v7 = vsub.f32 %v11698_v32, %v2850_v51  ;;  %v3988_v2 = vadd.f32 %v12210_v58, %v12208_v0 }
 0x4aa   : > { %7630 = vpow2.f32 %v3607_v30  ;;  %v4257_v43 = vmul.f32 %v7615_v45, %v14501_v63  ;;  %v4256_v27 = vmul.f32 %v7615_v45, %v14502_v20 }
 0x4ab   : > { %v12218_v6 = vpop.eup %7616  ;;  %7632 = vrcp.f32 %v3882_v9  ;;  %v3609_v40 = vmul.f32 1.442695, %v3111_v36  ;;  %v3611_v59 = vmul.f32 1.442695, %v3112_v7  ;;  %3989 = vadd.xlane.f32.xlu1 %v3988_v2  ;;  %v14503_v9 = vld [vmem:[#allocation111_spill] sm:$0xff]  ;;  %v14504_v7 = vld [vmem:[#allocation21_spill] sm:$0xff] }
 0x4ac   : > { %v12220_v24 = vpop.eup %7618  ;;  %4987 = vmatprep.mubr.f32.mxu0 %v4257_v43  ;;  %v2853_v42 = vpop.xlane.xlu0 %2852 }
 0x4ad   : > { %v7621_v62 = vpop.eup %7620  ;;  %7634 = vpow2.f32 %v3609_v40  ;;  %4988 = vmatmul.mubr.f32.gmra.mrb[188].mxu0 %v4256_v27  ;;  %v3885_v32 = vpop.xlane.xlu1 %3884  ;;  %v3113_v30 = vsub.f32 %v11716_v10, %v2853_v42  ;;  %v3114_v51 = vsub.f32 %v11722_v23, %v2853_v42  ;;  %v3991_v45 = vadd.f32 %v12220_v24, %v12218_v6  ;;  %v14507_v42 = vld [vmem:[#allocation99_spill] sm:$0xff] }
 0x4ae   : > { %7636 = vpow2.f32 %v3611_v59  ;;  %v4260_v36 = vmul.f32 %v7621_v62, %v14503_v9  ;;  %v4259_v2 = vmul.f32 %v7621_v62, %v14504_v7 }
 0x4af   : > { %v12228_v63 = vpop.eup %7622  ;;  %7638 = vrcp.f32 %v3885_v32  ;;  %v3613_v43 = vmul.f32 1.442695, %v3113_v30  ;;  %v3615_v20 = vmul.f32 1.442695, %v3114_v51  ;;  %3992 = vadd.xlane.f32.xlu0 %v3991_v45  ;;  %v5637_v32 = vld [vmem:[%s13037_s3 + $0x10] sm:$0xff]  ;;  %v5638_v30 = vld [vmem:[%s13037_s3 + $0x18] sm:$0xff] }
 0x4b0   : > { %14505 = vst [vmem:[#allocation58_spill] sm:$0xff] %v12228_v63  ;;  %v12230_v27 = vpop.eup %7624  ;;  %4992 = vmatprep.mubr.f32.mxu0 %v4260_v36  ;;  %v2856_v10 = vpop.xlane.xlu0 %2855  ;;  %v14508_v51 = vld [vmem:[#allocation103_spill] sm:$0xff]  ;;  %v14509_v36 = vld [vmem:[#allocation113_spill] sm:$0xff] }
 0x4b1   : > { %14506 = vst [vmem:[#allocation76_spill] sm:$0xff] %v12230_v27  ;;  %v7627_v40 = vpop.eup %7626  ;;  %7640 = vpow2.f32 %v3613_v43  ;;  %4993 = vmatmul.mubr.f32.gmra.mrb[190].mxu0 %v4259_v2  ;;  %v3888_v23 = vpop.xlane.xlu1 %3887  ;;  %v3115_v59 = vsub.f32 %v11742_v54, %v2856_v10  ;;  %v3116_v9 = vsub.f32 %v14507_v42, %v2856_v10  ;;  %v3994_v62 = vadd.f32 %v12230_v27, %v12228_v63 }
 0x4b2   : > { %7642 = vpow2.f32 %v3615_v20  ;;  %v4263_v45 = vmul.f32 %v7627_v40, %v14508_v51  ;;  %v4262_v7 = vmul.f32 %v7627_v40, %v14509_v36  ;;  %v6886_v2 = vpack.c.bf16 %v5638_v30, %v5637_v32 }
 0x4b3   : > { %v12244_v54 = vpop.eup %7628  ;;  %7644 = vrcp.f32 %v3888_v23  ;;  %v3617_v43 = vmul.f32 1.442695, %v3115_v59  ;;  %v3619_v10 = vmul.f32 1.442695, %v3116_v9  ;;  %3995 = vadd.xlane.f32.xlu1 %v3994_v62  ;;  %v14510_v23 = vld [vmem:[#allocation48_spill] sm:$0xff]  ;;  %v14511_v9 = vld [vmem:[#allocation15_spill] sm:$0xff] }
 0x4b4   : > { %v12246_v42 = vpop.eup %7630  ;;  %4997 = vmatprep.mubr.f32.mxu0 %v4263_v45  ;;  %v2859_v63 = vpop.xlane.xlu0 %2858  ;;  %6891 = vmatprep.subr.bf16.mxu1 %v6886_v2 }
 0x4b5   : > { %v7633_v27 = vpop.eup %7632  ;;  %7646 = vpow2.f32 %v3617_v43  ;;  %4998 = vmatmul.mubr.f32.gmra.mrb[192].mxu0 %v4262_v7  ;;  %v3891_v20 = vpop.xlane.xlu1 %3890  ;;  %v3117_v51 = vsub.f32 %v11768_v8, %v2859_v63  ;;  %v3118_v40 = vsub.f32 %v11774_v28, %v2859_v63  ;;  %v3997_v32 = vadd.f32 %v12246_v42, %v12244_v54  ;;  %6893 = vmatpush3.bf16.msra.mxu1 %v6886_v2 }
 0x4b6   : > { %7648 = vpow2.f32 %v3619_v10  ;;  %v4266_v59 = vmul.f32 %v7633_v27, %v14510_v23  ;;  %v4265_v62 = vmul.f32 %v7633_v27, %v14511_v9  ;;  %6887 = vmatprep.subr.bf16.mxu0 %v6886_v2 }
 0x4b7   : > { %v12254_v30 = vpop.eup %7634  ;;  %7650 = vrcp.f32 %v3891_v20  ;;  %v3621_v45 = vmul.f32 1.442695, %v3117_v51  ;;  %v3623_v36 = vmul.f32 1.442695, %v3118_v40  ;;  %3998 = vadd.xlane.f32.xlu0 %v3997_v32  ;;  %6889 = vmatpush3.bf16.msra.mxu0 %v6886_v2  ;;  %v14514_v20 = vld [vmem:[#allocation100_spill] sm:$0xff]  ;;  %v14515_v40 = vld [vmem:[#allocation118_spill] sm:$0xff] }
 0x4b8   : > { %14512 = vst [vmem:[#allocation139_spill] sm:$0xff] %v12254_v30  ;;  %v12256_v8 = vpop.eup %7636  ;;  %5002 = vmatprep.mubr.f32.mxu0 %v4266_v59  ;;  %v2862_v28 = vpop.xlane.xlu0 %2861 }
 0x4b9   : > { %14513 = vst [vmem:[#allocation27_spill] sm:$0xff] %v12256_v8  ;;  %v7639_v63 = vpop.eup %7638  ;;  %7652 = vpow2.f32 %v3621_v45  ;;  %5003 = vmatmul.mubr.f32.gmra.mrb[194].mxu0 %v4265_v62  ;;  %v3894_v7 = vpop.xlane.xlu1 %3893  ;;  %v3119_v43 = vsub.f32 %v11794_v22, %v2862_v28  ;;  %v3120_v27 = vsub.f32 %v11800_v11, %v2862_v28  ;;  %v4000_v10 = vadd.f32 %v12256_v8, %v12254_v30  ;;  %v14546_v30 = vld [vmem:[#allocation159_spill] sm:$0xff] }
 0x4ba   : > { %7654 = vpow2.f32 %v3623_v36  ;;  %v4269_v51 = vmul.f32 %v7639_v63, %v14514_v20  ;;  %v4268_v2 = vmul.f32 %v7639_v63, %v14515_v40  ;;  %v14518_v63 = vld [vmem:[#allocation81_spill] sm:$0xff] }
 0x4bb   : > { %v12264_v32 = vpop.eup %7640  ;;  %7656 = vrcp.f32 %v3894_v7  ;;  %v3625_v23 = vmul.f32 1.442695, %v3119_v43  ;;  %v3627_v59 = vmul.f32 1.442695, %v3120_v27  ;;  %4001 = vadd.xlane.f32.xlu1 %v4000_v10  ;;  %v14519_v43 = vld [vmem:[#allocation89_spill] sm:$0xff] }
 0x4bc   : > { %14516 = vst [vmem:[#allocation37_spill] sm:$0xff] %v12264_v32  ;;  %v12266_v9 = vpop.eup %7642  ;;  %5007 = vmatprep.mubr.f32.mxu0 %v4269_v51  ;;  %v2865_v22 = vpop.xlane.xlu0 %2864 }
 0x4bd   : > { %14517 = vst [vmem:[#allocation44_spill] sm:$0xff] %v12266_v9  ;;  %v7645_v62 = vpop.eup %7644  ;;  %7658 = vpow2.f32 %v3625_v23  ;;  %5008 = vmatmul.mubr.f32.gmra.mrb[196].mxu0 %v4268_v2  ;;  %v3897_v11 = vpop.xlane.xlu1 %3896  ;;  %v3121_v45 = vsub.f32 %v11820_v53, %v2865_v22  ;;  %v3122_v36 = vsub.f32 %v11826_v17, %v2865_v22  ;;  %v4003_v28 = vadd.f32 %v12266_v9, %v12264_v32 }
 0x4be   : > { %7660 = vpow2.f32 %v3627_v59  ;;  %v4272_v7 = vmul.f32 %v7645_v62, %v14518_v63  ;;  %v4271_v27 = vmul.f32 %v7645_v62, %v14519_v43  ;;  %v14522_v62 = vld [vmem:[#allocation62_spill] sm:$0xff]  ;;  %v14525_v63 = vld [vmem:[#allocation4_spill] sm:$0xff] }
 0x4bf   : > { %v12274_v10 = vpop.eup %7646  ;;  %7662 = vrcp.f32 %v3897_v11  ;;  %v3629_v20 = vmul.f32 1.442695, %v3121_v45  ;;  %v3631_v51 = vmul.f32 1.442695, %v3122_v36  ;;  %4004 = vadd.xlane.f32.xlu0 %v4003_v28  ;;  %v14523_v45 = vld [vmem:[#allocation93_spill] sm:$0xff] }
 0x4c0   : > { %14520 = vst [vmem:[#allocation79_spill] sm:$0xff] %v12274_v10  ;;  %v12276_v40 = vpop.eup %7648  ;;  %5012 = vmatprep.mubr.f32.mxu0 %v4272_v7  ;;  %v2868_v53 = vpop.xlane.xlu0 %2867  ;;  %v14526_v7 = vld [vmem:[#allocation2_spill] sm:$0xff] }
 0x4c1   : > { %14521 = vst [vmem:[#allocation120_spill] sm:$0xff] %v12276_v40  ;;  %v7651_v2 = vpop.eup %7650  ;;  %7664 = vpow2.f32 %v3629_v20  ;;  %5013 = vmatmul.mubr.f32.gmra.mrb[198].mxu0 %v4271_v27  ;;  %v3900_v17 = vpop.xlane.xlu1 %3899  ;;  %v3123_v23 = vsub.f32 %v11846_v3, %v2868_v53  ;;  %v3124_v59 = vsub.f32 %v11852_v39, %v2868_v53  ;;  %v4006_v22 = vadd.f32 %v12276_v40, %v12274_v10  ;;  %v14528_v53 = vld [vmem:[#allocation3_spill] sm:$0xff]  ;;  %v14532_v10 = vld [vmem:[#allocation33_spill] sm:$0xff] }
 0x4c2   : > { %7666 = vpow2.f32 %v3631_v51  ;;  %v4275_v11 = vmul.f32 %v7651_v2, %v14522_v62  ;;  %v4274_v36 = vmul.f32 %v7651_v2, %v14523_v45  ;;  %v12288_v43 = vrot.slane %v14526_v7, %v14525_v63  ;;  %v14529_v45 = vld [vmem:[#allocation126_spill] sm:$0xff] }
 0x4c3   : > { %v12284_v28 = vpop.eup %7652  ;;  %7668 = vrcp.f32 %v3900_v17  ;;  %v3633_v27 = vmul.f32 1.442695, %v3123_v23  ;;  %v3635_v20 = vmul.f32 1.442695, %v3124_v59  ;;  %4007 = vadd.xlane.f32.xlu1 %v4006_v22  ;;  %v12294_v2 = vrot.slane %v14528_v53, %v14525_v63  ;;  %v14530_v23 = vld [vmem:[#allocation105_spill] sm:$0xff] }
 0x4c4   : > { %14524 = vst [vmem:[#allocation51_spill] sm:$0xff] %v12284_v28  ;;  %v12290_v3 = vpop.eup %7654  ;;  %5017 = vmatprep.mubr.f32.mxu0 %v4275_v11  ;;  %v5283_v11 = vmul.f32 %v12288_v43, %v14532_v10 }
 0x4c5   : > { %14527 = vst [vmem:[#allocation145_spill] sm:$0xff] %v12290_v3  ;;  %v7657_v39 = vpop.eup %7656  ;;  %7670 = vpow2.f32 %v3633_v27  ;;  %5018 = vmatmul.mubr.f32.gmra.mrb[200].mxu0 %v4274_v36  ;;  %v3903_v51 = vpop.xlane.xlu1 %3902  ;;  %v4009_v62 = vadd.f32 %v12290_v3, %v12284_v28  ;;  %v14535_v3 = vld [vmem:[#allocation60_spill] sm:$0xff] }
 0x4c6   : > { %7672 = vpow2.f32 %v3635_v20  ;;  %v4278_v17 = vmul.f32 %v7657_v39, %v14529_v45  ;;  %v4277_v59 = vmul.f32 %v7657_v39, %v14530_v23  ;;  %v4759_v27 = vpop.f32.mrb[96].mxu0  ;;  %v14534_v45 = vld [vmem:[#allocation30_spill] sm:$0xff] }
 0x4c7   : > { %v12300_v22 = vpop.eup %7658  ;;  %7674 = vrcp.f32 %v3903_v51  ;;  %4010 = vadd.xlane.f32.xlu0 %v4009_v62  ;;  %v5315_v40 = vmul.f32 %v12294_v2, %v4759_v27  ;;  %v4761_v28 = vpop.f32.mrb[97].mxu0  ;;  %v14537_v62 = vld [vmem:[#allocation7_spill] sm:$0xff] }
 0x4c8   : > { %14531 = vst [vmem:[#allocation78_spill] sm:$0xff] %v12300_v22  ;;  %v12304_v36 = vpop.eup %7660  ;;  %5022 = vmatprep.mubr.f32.mxu0 %v4278_v17  ;;  %v5284_v32 = vmul.f32 %v12288_v43, %v14537_v62  ;;  %v5411_v17 = vsel %vm345_vm0, %v5283_v11, 0.0  ;;  %v14539_v11 = vld [vmem:[#allocation123_spill] sm:$0xff] }
 0x4c9   : > { %14533 = vst [vmem:[#allocation134_spill] sm:$0xff] %v12304_v36  ;;  %v7663_v53 = vpop.eup %7662  ;;  %5023 = vmatmul.mubr.f32.gmra.mrb[202].mxu0 %v4277_v59  ;;  %v3906_v20 = vpop.xlane.xlu1 %3905  ;;  %v4012_v39 = vadd.f32 %v12304_v36, %v12300_v22  ;;  %v5412_v27 = vsel %vm345_vm0, %v5315_v40, 0.0  ;;  %v14540_v40 = vld [vmem:[#allocation32_spill] sm:$0xff] }
 0x4ca   : > { %7676 = vrcp.f32 %v3906_v20  ;;  %v4281_v23 = vmul.f32 %v7663_v53, %v14534_v45  ;;  %v4280_v10 = vmul.f32 %v7663_v53, %v14535_v3  ;;  %v12319_v59 = vadd.f32 %v5412_v27, %v5411_v17  ;;  %v4764_v22 = vpop.f32.mrb[98].mxu0  ;;  %v14542_v17 = vld [vmem:[#allocation91_spill] sm:$0xff] }
 0x4cb   : > { %v12311_v51 = vpop.eup %7664  ;;  %4013 = vadd.xlane.f32.xlu1 %v4012_v39  ;;  %v5316_v45 = vmul.f32 %v12294_v2, %v4764_v22  ;;  %v4766_v3 = vpop.f32.mrb[99].mxu0  ;;  %v5285_v27 = vmul.f32 %v12288_v43, %v14542_v17 }
 0x4cc   : > { %14536 = vst [vmem:[#allocation19_spill] sm:$0xff] %v12311_v51  ;;  %v12317_v28 = vpop.eup %7666  ;;  %5027 = vmatprep.mubr.f32.mxu0 %v4281_v23  ;;  %v5418_v23 = vsel %vm345_vm0, %v5284_v32, 0.0  ;;  %v14544_v32 = vld [vmem:[#allocation20_spill] sm:$0xff] }
 0x4cd   : > { %14538 = vst [vmem:[#allocation46_spill] sm:$0xff] %v12317_v28  ;;  %v7669_v20 = vpop.eup %7668  ;;  %5028 = vmatmul.mubr.f32.gmra.mrb[204].mxu0 %v4280_v10  ;;  %v3909_v53 = vpop.xlane.xlu1 %3908  ;;  %v4015_v62 = vadd.f32 %v12317_v28, %v12311_v51  ;;  %v5419_v22 = vsel %vm345_vm0, %v5316_v45, 0.0  ;;  %v14545_v45 = vld [vmem:[#allocation115_spill] sm:$0xff] }
 0x4ce   : > { %7678 = vrcp.f32 %v3909_v53  ;;  %v4284_v36 = vmul.f32 %v7669_v20, %v14539_v11  ;;  %v4283_v39 = vmul.f32 %v7669_v20, %v14540_v40  ;;  %v12334_v3 = vadd.f32 %v5419_v22, %v5418_v23  ;;  %v4769_v51 = vpop.f32.mrb[100].mxu0 }
 0x4cf   : > { %v12326_v9 = vpop.eup %7670  ;;  %4016 = vadd.xlane.f32.xlu0 %v4015_v62  ;;  %v5317_v11 = vmul.f32 %v12294_v2, %v4769_v51  ;;  %v4771_v20 = vpop.f32.mrb[101].mxu0  ;;  %v5286_v23 = vmul.f32 %v12288_v43, %v14546_v30  ;;  %v5425_v22 = vsel %vm345_vm0, %v5285_v27, 0.0  ;;  %v14549_v30 = vld [vmem:[#allocation116_spill] sm:$0xff] }
 0x4d0   : > { %14541 = vst [vmem:[#allocation59_spill] sm:$0xff] %v12326_v9  ;;  %v12332_v10 = vpop.eup %7672  ;;  %5032 = vmatprep.mubr.f32.mxu0 %v4284_v36  ;;  %v5287_v27 = vmul.f32 %v12288_v43, %v14549_v30  ;;  %v14553_v30 = vld [vmem:[#allocation61_spill] sm:$0xff] }
 0x4d1   : > { %14543 = vst [vmem:[#allocation144_spill] sm:$0xff] %v12332_v10  ;;  %v7675_v53 = vpop.eup %7674  ;;  %5033 = vmatmul.mubr.f32.gmra.mrb[206].mxu0 %v4283_v39  ;;  %v3912_v40 = vpop.xlane.xlu1 %3911  ;;  %v4018_v17 = vadd.f32 %v12332_v10, %v12326_v9  ;;  %v5426_v36 = vsel %vm345_vm0, %v5317_v11, 0.0  ;;  %v14547_v10 = vld [vmem:[#allocation88_spill] sm:$0xff]  ;;  %v5432_v11 = vsel %vm345_vm0, %v5286_v23, 0.0  ;;  %v5288_v23 = vmul.f32 %v12288_v43, %v14553_v30  ;;  %v14557_v30 = vld [vmem:[#allocation14_spill] sm:$0xff] }
 0x4d2   : > { %7680 = vrcp.f32 %v3912_v40  ;;  %v4287_v28 = vmul.f32 %v7675_v53, %v14544_v32  ;;  %v4286_v62 = vmul.f32 %v7675_v53, %v14545_v45  ;;  %v12345_v20 = vadd.f32 %v5426_v36, %v5425_v22  ;;  %v4774_v39 = vpop.f32.mrb[102].mxu0  ;;  %v14548_v45 = vld [vmem:[#allocation34_spill] sm:$0xff] }
 0x4d3   : > { %4019 = vadd.xlane.f32.xlu1 %v4018_v17  ;;  %v5318_v9 = vmul.f32 %v12294_v2, %v4774_v39  ;;  %v4776_v40 = vpop.f32.mrb[103].mxu0 }
 0x4d4   : > { %v7677_v51 = vpop.eup %7676  ;;  %5037 = vmatprep.mubr.f32.mxu0 %v4287_v28  ;;  %v14551_v40 = vld [vmem:[#allocation125_spill] sm:$0xff] }
 0x4d5   : > { %5038 = vmatmul.mubr.f32.gmra.mrb[208].mxu0 %v4286_v62  ;;  %v3915_v32 = vpop.xlane.xlu1 %3914  ;;  %v4290_v53 = vmul.f32 %v7677_v51, %v14547_v10  ;;  %v4289_v8 = vmul.f32 %v7677_v51, %v14548_v45  ;;  %v5433_v17 = vsel %vm345_vm0, %v5318_v9, 0.0  ;;  %v5439_v9 = vsel %vm345_vm0, %v5287_v27, 0.0 }
 0x4d6   : > { %7682 = vrcp.f32 %v3915_v32  ;;  %v12354_v28 = vadd.f32 %v5433_v17, %v5432_v11  ;;  %v4779_v36 = vpop.f32.mrb[104].mxu0  ;;  %v14552_v32 = vld [vmem:[#allocation53_spill] sm:$0xff]  ;;  %v5289_v27 = vmul.f32 %v12288_v43, %v14557_v30 }
 0x4d7   : > { %5042 = vmatprep.mubr.f32.mxu0 %v4290_v53  ;;  %v5319_v62 = vmul.f32 %v12294_v2, %v4779_v36  ;;  %v4781_v39 = vpop.f32.mrb[105].mxu0  ;;  %v14561_v30 = vld [vmem:[#allocation9_spill] sm:$0xff] }
 0x4d8   : > { %v7679_v22 = vpop.eup %7678  ;;  %14550 = vst [vmem:[#allocation146_spill] sm:$0xff] %v12354_v28  ;;  %v14555_v28 = vld [vmem:[#allocation108_spill] sm:$0xff] }
 0x4d9   : > { %5043 = vmatmul.mubr.f32.gmra.mrb[210].mxu0 %v4289_v8  ;;  %v3918_v10 = vpop.xlane.xlu1 %3917  ;;  %v4293_v51 = vmul.f32 %v7679_v22, %v14551_v40  ;;  %v4292_v45 = vmul.f32 %v7679_v22, %v14552_v32  ;;  %v5440_v53 = vsel %vm345_vm0, %v5319_v62, 0.0  ;;  %v5446_v62 = vsel %vm345_vm0, %v5288_v23, 0.0 }
 0x4da   : > { %7684 = vrcp.f32 %v3918_v10  ;;  %v12363_v17 = vadd.f32 %v5440_v53, %v5439_v9  ;;  %v4784_v36 = vpop.f32.mrb[106].mxu0  ;;  %v14556_v10 = vld [vmem:[#allocation11_spill] sm:$0xff]  ;;  %v5290_v23 = vmul.f32 %v12288_v43, %v14561_v30 }
 0x4db   : > { %5047 = vmatprep.mubr.f32.mxu0 %v4293_v51  ;;  %v5320_v8 = vmul.f32 %v12294_v2, %v4784_v36  ;;  %v4786_v39 = vpop.f32.mrb[107].mxu0 }
 0x4dc   : > { %v7681_v11 = vpop.eup %7680  ;;  %14554 = vst [vmem:[#allocation17_spill] sm:$0xff] %v12363_v17  ;;  %v14559_v17 = vld [vmem:[#allocation140_spill] sm:$0xff]  ;;  %v5460_v30 = vsel %vm345_vm0, %v5290_v23, 0.0 }
 0x4dd   : > { %5048 = vmatmul.mubr.f32.gmra.mrb[212].mxu0 %v4292_v45  ;;  %v3921_v40 = vpop.xlane.xlu1 %3920  ;;  %v4296_v22 = vmul.f32 %v7681_v11, %v14555_v28  ;;  %v4295_v32 = vmul.f32 %v7681_v11, %v14556_v10  ;;  %v5447_v51 = vsel %vm345_vm0, %v5320_v8, 0.0  ;;  %v5453_v8 = vsel %vm345_vm0, %v5289_v27, 0.0  ;;  %v14564_v27 = vld [vmem:[#allocation127_spill] sm:$0xff] }
 0x4de   : > { %7686 = vrcp.f32 %v3921_v40  ;;  %v12372_v53 = vadd.f32 %v5447_v51, %v5446_v62  ;;  %v4789_v36 = vpop.f32.mrb[108].mxu0  ;;  %v14560_v40 = vld [vmem:[#allocation130_spill] sm:$0xff] }
 0x4df   : > { %5052 = vmatprep.mubr.f32.mxu0 %v4296_v22  ;;  %v5321_v45 = vmul.f32 %v12294_v2, %v4789_v36  ;;  %v4791_v39 = vpop.f32.mrb[109].mxu0 }
 0x4e0   : > { %v7683_v9 = vpop.eup %7682  ;;  %14558 = vst [vmem:[#allocation50_spill] sm:$0xff] %v12372_v53  ;;  %v14562_v53 = vld [vmem:[#allocation64_spill] sm:$0xff] }
 0x4e1   : > { %5053 = vmatmul.mubr.f32.gmra.mrb[214].mxu0 %v4295_v32  ;;  %v3924_v28 = vpop.xlane.xlu1 %3923  ;;  %v4299_v11 = vmul.f32 %v7683_v9, %v14559_v17  ;;  %v4298_v10 = vmul.f32 %v7683_v9, %v14560_v40  ;;  %v5454_v22 = vsel %vm345_vm0, %v5321_v45, 0.0  ;;  %v5291_v45 = vmul.f32 %v12288_v43, %v14564_v27 }
 0x4e2   : > { %7688 = vrcp.f32 %v3924_v28  ;;  %v12381_v51 = vadd.f32 %v5454_v22, %v5453_v8  ;;  %v4794_v36 = vpop.f32.mrb[110].mxu0  ;;  %v14563_v28 = vld [vmem:[#allocation38_spill] sm:$0xff] }
 0x4e3   : > { %5057 = vmatprep.mubr.f32.mxu0 %v4299_v11  ;;  %v5322_v32 = vmul.f32 %v12294_v2, %v4794_v36  ;;  %v4796_v39 = vpop.f32.mrb[111].mxu0  ;;  %v5467_v23 = vsel %vm345_vm0, %v5291_v45, 0.0 }
 0x4e4   : > { %v7685_v62 = vpop.eup %7684 }
 0x4e5   : > { %5058 = vmatmul.mubr.f32.gmra.mrb[216].mxu0 %v4298_v10  ;;  %v3927_v17 = vpop.xlane.xlu1 %3926  ;;  %v4302_v9 = vmul.f32 %v7685_v62, %v14562_v53  ;;  %v4301_v40 = vmul.f32 %v7685_v62, %v14563_v28  ;;  %v5461_v11 = vsel %vm345_vm0, %v5322_v32, 0.0  ;;  %v14565_v28 = vld [vmem:[#allocation110_spill] sm:$0xff] }
 0x4e6   : > { %7690 = vrcp.f32 %v3927_v17  ;;  %v12390_v22 = vadd.f32 %v5461_v11, %v5460_v30  ;;  %v4799_v36 = vpop.f32.mrb[112].mxu0  ;;  %v5292_v32 = vmul.f32 %v12288_v43, %v14565_v28 }
 0x4e7   : > { %5062 = vmatprep.mubr.f32.mxu0 %v4302_v9  ;;  %v5323_v10 = vmul.f32 %v12294_v2, %v4799_v36  ;;  %v4801_v39 = vpop.f32.mrb[113].mxu0 }
 0x4e8   : > { %v7687_v8 = vpop.eup %7686  ;;  %v5474_v45 = vsel %vm345_vm0, %v5292_v32, 0.0  ;;  %v14566_v39 = vld [vmem:[#allocation121_spill] sm:$0xff] }
 0x4e9   : > { %5063 = vmatmul.mubr.f32.gmra.mrb[218].mxu0 %v4301_v40  ;;  %v3930_v53 = vpop.xlane.xlu1 %3929  ;;  %v4305_v62 = vmul.f32 %v7687_v8, %v11950_v19  ;;  %v4304_v17 = vmul.f32 %v7687_v8, %v11948_v33  ;;  %v5468_v9 = vsel %vm345_vm0, %v5323_v10, 0.0  ;;  %v5293_v10 = vmul.f32 %v12288_v43, %v14566_v39 }
 0x4ea   : > { %7692 = vrcp.f32 %v3930_v53  ;;  %v12399_v27 = vadd.f32 %v5468_v9, %v5467_v23  ;;  %v4804_v11 = vpop.f32.mrb[114].mxu0 }
 0x4eb   : > { %5067 = vmatprep.mubr.f32.mxu0 %v4305_v62  ;;  %v5324_v40 = vmul.f32 %v12294_v2, %v4804_v11  ;;  %v4806_v36 = vpop.f32.mrb[115].mxu0  ;;  %v5481_v32 = vsel %vm345_vm0, %v5293_v10, 0.0  ;;  %v14567_v11 = vld [vmem:[#allocation65_spill] sm:$0xff] }
 0x4ec   : > { %v7689_v30 = vpop.eup %7688 }
 0x4ed   : > { %5068 = vmatmul.mubr.f32.gmra.mrb[220].mxu0 %v4304_v17  ;;  %v3933_v19 = vpop.xlane.xlu1 %3932  ;;  %v4308_v33 = vmul.f32 %v7689_v30, %v11962_v15  ;;  %v4307_v8 = vmul.f32 %v7689_v30, %v11960_v60  ;;  %v5475_v53 = vsel %vm345_vm0, %v5324_v40, 0.0  ;;  %v5294_v40 = vmul.f32 %v12288_v43, %v14567_v11 }
 0x4ee   : > { %7694 = vrcp.f32 %v3933_v19  ;;  %v12408_v23 = vadd.f32 %v5475_v53, %v5474_v45  ;;  %v4809_v28 = vpop.f32.mrb[116].mxu0 }
 0x4ef   : > { %5072 = vmatprep.mubr.f32.mxu0 %v4308_v33  ;;  %v5325_v17 = vmul.f32 %v12294_v2, %v4809_v28  ;;  %v4811_v9 = vpop.f32.mrb[117].mxu0  ;;  %v5488_v10 = vsel %vm345_vm0, %v5294_v40, 0.0 }
 0x4f0   : > { %v7691_v62 = vpop.eup %7690 }
 0x4f1   : > { %5073 = vmatmul.mubr.f32.gmra.mrb[222].mxu0 %v4307_v8  ;;  %v3936_v15 = vpop.xlane.xlu1 %3935  ;;  %v4311_v60 = vmul.f32 %v7691_v62, %v11974_v47  ;;  %v4310_v30 = vmul.f32 %v7691_v62, %v11972_v49  ;;  %v5482_v36 = vsel %vm345_vm0, %v5325_v17, 0.0  ;;  %v14568_v62 = vld [vmem:[#allocation63_spill] sm:$0xff] }
 0x4f2   : > { %7696 = vrcp.f32 %v3936_v15  ;;  %v12417_v33 = vadd.f32 %v5482_v36, %v5481_v32  ;;  %v4814_v45 = vpop.f32.mrb[118].mxu0  ;;  %v5295_v28 = vmul.f32 %v12288_v43, %v14568_v62  ;;  %v14569_v36 = vld [vmem:[#allocation114_spill] sm:$0xff] }
 0x4f3   : > { %5077 = vmatprep.mubr.f32.mxu0 %v4311_v60  ;;  %v5326_v8 = vmul.f32 %v12294_v2, %v4814_v45  ;;  %v4816_v39 = vpop.f32.mrb[119].mxu0 }
 0x4f4   : > { %v7693_v19 = vpop.eup %7692  ;;  %v5495_v40 = vsel %vm345_vm0, %v5295_v28, 0.0  ;;  %v14570_v28 = vld [vmem:[#allocation94_spill] sm:$0xff] }
 0x4f5   : > { %5078 = vmatmul.mubr.f32.gmra.mrb[224].mxu0 %v4310_v30  ;;  %v3939_v47 = vpop.xlane.xlu1 %3938  ;;  %v4314_v49 = vmul.f32 %v7693_v19, %v11986_v12  ;;  %v4313_v53 = vmul.f32 %v7693_v19, %v11984_v57  ;;  %v5489_v17 = vsel %vm345_vm0, %v5326_v8, 0.0  ;;  %v5296_v19 = vmul.f32 %v12288_v43, %v14569_v36  ;;  %v14571_v36 = vld [vmem:[#allocation119_spill] sm:$0xff] }
 0x4f6   : > { %7698 = vrcp.f32 %v3939_v47  ;;  %v12426_v15 = vadd.f32 %v5489_v17, %v5488_v10  ;;  %v4819_v60 = vpop.f32.mrb[120].mxu0  ;;  %v5297_v17 = vmul.f32 %v12288_v43, %v14570_v28 }
 0x4f7   : > { %5082 = vmatprep.mubr.f32.mxu0 %v4314_v49  ;;  %v5327_v30 = vmul.f32 %v12294_v2, %v4819_v60  ;;  %v4821_v32 = vpop.f32.mrb[121].mxu0  ;;  %v5502_v62 = vsel %vm345_vm0, %v5296_v19, 0.0  ;;  %v5298_v19 = vmul.f32 %v12288_v43, %v14571_v36 }
 0x4f8   : > { %v7695_v9 = vpop.eup %7694 }
 0x4f9   : > { %5083 = vmatmul.mubr.f32.gmra.mrb[226].mxu0 %v4313_v53  ;;  %v3942_v12 = vpop.xlane.xlu1 %3941  ;;  %v4317_v57 = vmul.f32 %v7695_v9, %v11998_v16  ;;  %v4316_v11 = vmul.f32 %v7695_v9, %v11996_v26  ;;  %v5496_v45 = vsel %vm345_vm0, %v5327_v30, 0.0  ;;  %v5516_v28 = vsel %vm345_vm0, %v5298_v19, 0.0 }
 0x4fa   : > { %7700 = vrcp.f32 %v3942_v12  ;;  %v12435_v39 = vadd.f32 %v5496_v45, %v5495_v40  ;;  %v4824_v47 = vpop.f32.mrb[122].mxu0  ;;  %v5509_v40 = vsel %vm345_vm0, %v5297_v17, 0.0  ;;  %v14574_v17 = vld [vmem:[#allocation132_spill] sm:$0xff] }
 0x4fb   : > { %5087 = vmatprep.mubr.f32.mxu0 %v4317_v57  ;;  %v5328_v49 = vmul.f32 %v12294_v2, %v4824_v47  ;;  %v4826_v53 = vpop.f32.mrb[123].mxu0 }
 0x4fc   : > { %v7697_v8 = vpop.eup %7696 }
 0x4fd   : > { %5088 = vmatmul.mubr.f32.gmra.mrb[228].mxu0 %v4316_v11  ;;  %v3945_v16 = vpop.xlane.xlu1 %3944  ;;  %v4320_v26 = vmul.f32 %v7697_v8, %v12010_v56  ;;  %v4319_v10 = vmul.f32 %v7697_v8, %v12008_v35  ;;  %v5503_v9 = vsel %vm345_vm0, %v5328_v49, 0.0 }
 0x4fe   : > { %7702 = vrcp.f32 %v3945_v16  ;;  %v12444_v30 = vadd.f32 %v5503_v9, %v5502_v62  ;;  %v4829_v32 = vpop.f32.mrb[124].mxu0  ;;  %v5299_v9 = vmul.f32 %v12288_v43, %v14574_v17  ;;  %v14577_v17 = vld [vmem:[#allocation82_spill] sm:$0xff] }
 0x4ff   : > { %5092 = vmatprep.mubr.f32.mxu0 %v4320_v26  ;;  %v5329_v12 = vmul.f32 %v12294_v2, %v4829_v32  ;;  %v4831_v57 = vpop.f32.mrb[125].mxu0  ;;  %v14572_v26 = vld [vmem:[#allocation117_spill] sm:$0xff] }
 0x500   : > { %v7699_v60 = vpop.eup %7698  ;;  %v5523_v19 = vsel %vm345_vm0, %v5299_v9, 0.0  ;;  %v5301_v9 = vmul.f32 %v12288_v43, %v14577_v17 }
 0x501   : > { %5093 = vmatmul.mubr.f32.gmra.mrb[230].mxu0 %v4319_v10  ;;  %v3948_v56 = vpop.xlane.xlu1 %3947  ;;  %v4323_v35 = vmul.f32 %v7699_v60, %v12022_v1  ;;  %v4322_v11 = vmul.f32 %v7699_v60, %v12020_v13  ;;  %v5510_v45 = vsel %vm345_vm0, %v5329_v12, 0.0  ;;  %v14573_v10 = vld [vmem:[#allocation54_spill] sm:$0xff] }
 0x502   : > { %7704 = vrcp.f32 %v3948_v56  ;;  %v12453_v47 = vadd.f32 %v5510_v45, %v5509_v40  ;;  %v4834_v49 = vpop.f32.mrb[126].mxu0  ;;  %v14575_v45 = vld [vmem:[#allocation56_spill] sm:$0xff] }
 0x503   : > { %5097 = vmatprep.mubr.f32.mxu0 %v4323_v35  ;;  %v5330_v53 = vmul.f32 %v12294_v2, %v4834_v49  ;;  %v4836_v16 = vpop.f32.mrb[127].mxu0 }
 0x504   : > { %v7701_v8 = vpop.eup %7700 }
 0x505   : > { %5098 = vmatmul.mubr.f32.gmra.mrb[232].mxu0 %v4322_v11  ;;  %v3951_v1 = vpop.xlane.xlu1 %3950  ;;  %v4326_v13 = vmul.f32 %v7701_v8, %v14572_v26  ;;  %v4325_v62 = vmul.f32 %v7701_v8, %v14573_v10  ;;  %v5517_v60 = vsel %vm345_vm0, %v5330_v53, 0.0  ;;  %v5300_v8 = vmul.f32 %v12288_v43, %v14575_v45  ;;  %v14578_v45 = vld [vmem:[#allocation152_spill] sm:$0xff] }
 0x506   : > { %7706 = vrcp.f32 %v3951_v1  ;;  %v12462_v12 = vadd.f32 %v5517_v60, %v5516_v28  ;;  %v4839_v57 = vpop.f32.mrb[128].mxu0 }
 0x507   : > { %5102 = vmatprep.mubr.f32.mxu0 %v4326_v13  ;;  %v5331_v56 = vmul.f32 %v12294_v2, %v4839_v57  ;;  %v4841_v35 = vpop.f32.mrb[129].mxu0  ;;  %v5530_v28 = vsel %vm345_vm0, %v5300_v8, 0.0  ;;  %v5302_v8 = vmul.f32 %v12288_v43, %v14578_v45  ;;  %v14582_v45 = vld [vmem:[#allocation112_spill] sm:$0xff] }
 0x508   : > { %v7703_v32 = vpop.eup %7702 }
 0x509   : > { %5103 = vmatmul.mubr.f32.gmra.mrb[234].mxu0 %v4325_v62  ;;  %v3954_v11 = vpop.xlane.xlu1 %3953  ;;  %v4329_v40 = vmul.f32 %v7703_v32, %v12046_v37  ;;  %v4328_v36 = vmul.f32 %v7703_v32, %v12044_v5  ;;  %v5524_v49 = vsel %vm345_vm0, %v5331_v56, 0.0  ;;  %v14576_v5 = vld [vmem:[#allocation43_spill] sm:$0xff] }
 0x50a   : > { %7708 = vrcp.f32 %v3954_v11  ;;  %v12471_v16 = vadd.f32 %v5524_v49, %v5523_v19  ;;  %v4844_v1 = vpop.f32.mrb[130].mxu0  ;;  %v5537_v19 = vsel %vm345_vm0, %v5301_v9, 0.0 }
 0x50b   : > { %5107 = vmatprep.mubr.f32.mxu0 %v4329_v40  ;;  %v3957_v26 = vpop.xlane.xlu0 %3956  ;;  %v5332_v13 = vmul.f32 %v12294_v2, %v4844_v1  ;;  %v4846_v10 = vpop.f32.mrb[131].mxu0 }
 0x50c   : > { %v7705_v53 = vpop.eup %7704  ;;  %7710 = vrcp.f32 %v3957_v26 }
 0x50d   : > { %5108 = vmatmul.mubr.f32.gmra.mrb[236].mxu0 %v4328_v36  ;;  %v4332_v37 = vmul.f32 %v7705_v53, %v12058_v14  ;;  %v4331_v62 = vmul.f32 %v7705_v53, %v14576_v5  ;;  %v5531_v60 = vsel %vm345_vm0, %v5332_v13, 0.0 }
 0x50e   : > { %v12480_v57 = vadd.f32 %v5531_v60, %v5530_v28  ;;  %v4849_v56 = vpop.f32.mrb[132].mxu0  ;;  %v14579_v28 = vld [vmem:[#allocation41_spill] sm:$0xff] }
 0x50f   : > { %5112 = vmatprep.mubr.f32.mxu0 %v4332_v37  ;;  %v3960_v35 = vpop.xlane.xlu1 %3959  ;;  %v5333_v11 = vmul.f32 %v12294_v2, %v4849_v56  ;;  %v4851_v40 = vpop.f32.mrb[133].mxu0  ;;  %v5303_v17 = vmul.f32 %v12288_v43, %v14579_v28 }
 0x510   : > { %v7707_v32 = vpop.eup %7706  ;;  %7712 = vrcp.f32 %v3960_v35  ;;  %v14580_v35 = vld [vmem:[#allocation67_spill] sm:$0xff] }
 0x511   : > { %5113 = vmatmul.mubr.f32.gmra.mrb[238].mxu0 %v4331_v62  ;;  %v4335_v14 = vmul.f32 %v7707_v32, %v12070_v46  ;;  %v4334_v36 = vmul.f32 %v7707_v32, %v12068_v18  ;;  %v5538_v49 = vsel %vm345_vm0, %v5333_v11, 0.0  ;;  %v5544_v62 = vsel %vm345_vm0, %v5302_v8, 0.0 }
 0x512   : > { %v12489_v1 = vadd.f32 %v5538_v49, %v5537_v19  ;;  %v4854_v26 = vpop.f32.mrb[134].mxu0  ;;  %v5551_v19 = vsel %vm345_vm0, %v5303_v17, 0.0  ;;  %v5304_v8 = vmul.f32 %v12288_v43, %v14582_v45 }
 0x513   : > { %5117 = vmatprep.mubr.f32.mxu0 %v4335_v14  ;;  %v5334_v13 = vmul.f32 %v12294_v2, %v4854_v26  ;;  %v4856_v10 = vpop.f32.mrb[135].mxu0  ;;  %v3963_v37 = vpop.xlane.xlu0 %3962 }
 0x514   : > { %v7709_v53 = vpop.eup %7708  ;;  %7714 = vrcp.f32 %v3963_v37 }
 0x515   : > { %5118 = vmatmul.mubr.f32.gmra.mrb[240].mxu0 %v4334_v36  ;;  %v4338_v46 = vmul.f32 %v7709_v53, %v12082_v4  ;;  %v4337_v18 = vmul.f32 %v7709_v53, %v12080_v25  ;;  %v5545_v9 = vsel %vm345_vm0, %v5334_v13, 0.0  ;;  %v14581_v25 = vld [vmem:[#allocation156_spill] sm:$0xff] }
 0x516   : > { %v7711_v5 = vpop.eup %7710  ;;  %v12498_v60 = vadd.f32 %v5545_v9, %v5544_v62  ;;  %v4859_v32 = vpop.f32.mrb[136].mxu0  ;;  %v14583_v62 = vld [vmem:[#allocation49_spill] sm:$0xff] }
 0x517   : > { %5122 = vmatprep.mubr.f32.mxu0 %v4338_v46  ;;  %v3966_v56 = vpop.xlane.xlu1 %3965  ;;  %v4341_v11 = vmul.f32 %v7711_v5, %v14580_v35  ;;  %v5335_v4 = vmul.f32 %v12294_v2, %v4859_v32  ;;  %v4861_v40 = vpop.f32.mrb[137].mxu0  ;;  %v4340_v14 = vmul.f32 %v7711_v5, %v14581_v25  ;;  %v5558_v5 = vsel %vm345_vm0, %v5304_v8, 0.0 }
 0x518   : > { %7716 = vrcp.f32 %v3966_v56  ;;  %v5305_v28 = vmul.f32 %v12288_v43, %v14583_v62 }
 0x519   : > { %5123 = vmatmul.mubr.f32.gmra.mrb[242].mxu0 %v4337_v18  ;;  %v5552_v49 = vsel %vm345_vm0, %v5335_v4, 0.0 }
 0x51a   : > { %5127 = vmatprep.mubr.f32.mxu0 %v4341_v11  ;;  %v7713_v36 = vpop.eup %7712  ;;  %v12507_v53 = vadd.f32 %v5552_v49, %v5551_v19  ;;  %v4864_v26 = vpop.f32.mrb[138].mxu0  ;;  %v5565_v25 = vsel %vm345_vm0, %v5305_v28, 0.0 }
 0x51b   : > { %v4344_v13 = vmul.f32 %v7713_v36, %v12102_v34  ;;  %v5336_v10 = vmul.f32 %v12294_v2, %v4864_v26  ;;  %v4866_v37 = vpop.f32.mrb[139].mxu0  ;;  %v3969_v46 = vpop.xlane.xlu0 %3968  ;;  %v4343_v18 = vmul.f32 %v7713_v36, %v12100_v48 }
 0x51c   : > { %7718 = vrcp.f32 %v3969_v46  ;;  %v14585_v37 = vld [vmem:[#allocation39_spill] sm:$0xff] }
 0x51d   : > { %5128 = vmatmul.mubr.f32.gmra.mrb[244].mxu0 %v4340_v14  ;;  %v5559_v17 = vsel %vm345_vm0, %v5336_v10, 0.0  ;;  %v14584_v14 = vld [vmem:[#allocation70_spill] sm:$0xff]  ;;  %v5307_v46 = vmul.f32 %v12288_v43, %v14585_v37 }
 0x51e   : > { %5132 = vmatprep.mubr.f32.mxu0 %v4344_v13  ;;  %v7715_v9 = vpop.eup %7714  ;;  %v12516_v32 = vadd.f32 %v5559_v17, %v5558_v5  ;;  %v4869_v34 = vpop.f32.mrb[140].mxu0  ;;  %v5306_v36 = vmul.f32 %v12288_v43, %v14584_v14 }
 0x51f   : > { %v5337_v56 = vmul.f32 %v12294_v2, %v4869_v34  ;;  %v4871_v35 = vpop.f32.mrb[141].mxu0  ;;  %v3972_v11 = vpop.xlane.xlu1 %3971  ;;  %v4347_v48 = vmul.f32 %v7715_v9, %v12112_v41  ;;  %v4346_v4 = vmul.f32 %v7715_v9, %v12110_v29 }
 0x520   : > { %7720 = vrcp.f32 %v3972_v11  ;;  %v5572_v10 = vsel %vm345_vm0, %v5306_v36, 0.0  ;;  %v14586_v35 = vld [vmem:[#allocation71_spill] sm:$0xff] }
 0x521   : > { %5133 = vmatmul.mubr.f32.gmra.mrb[246].mxu0 %v4343_v18  ;;  %v5566_v19 = vsel %vm345_vm0, %v5337_v56, 0.0  ;;  %v5579_v56 = vsel %vm345_vm0, %v5307_v46, 0.0  ;;  %v5308_v11 = vmul.f32 %v12288_v43, %v14586_v35  ;;  %v14588_v46 = vld [vmem:[#allocation157_spill] sm:$0xff] }
 0x522   : > { %v7717_v40 = vpop.eup %7716  ;;  %5137 = vmatprep.mubr.f32.mxu0 %v4347_v48  ;;  %v12525_v45 = vadd.f32 %v5566_v19, %v5565_v25  ;;  %v4874_v8 = vpop.f32.mrb[142].mxu0 }
 0x523   : > { %v4350_v49 = vmul.f32 %v7717_v40, %v12124_v55  ;;  %v5338_v26 = vmul.f32 %v12294_v2, %v4874_v8  ;;  %v4876_v41 = vpop.f32.mrb[143].mxu0  ;;  %v4349_v13 = vmul.f32 %v7717_v40, %v12122_v52  ;;  %v5586_v8 = vsel %vm345_vm0, %v5308_v11, 0.0 }
 0x524   : > { %v3975_v29 = vpop.xlane.xlu0 %3974 }
 0x525   : > { %5138 = vmatmul.mubr.f32.gmra.mrb[248].mxu0 %v4346_v4  ;;  %7722 = vrcp.f32 %v3975_v29  ;;  %v5573_v18 = vsel %vm345_vm0, %v5338_v26, 0.0 }
 0x526   : > { %5142 = vmatprep.mubr.f32.mxu0 %v4350_v49  ;;  %v7719_v5 = vpop.eup %7718  ;;  %v12534_v62 = vadd.f32 %v5573_v18, %v5572_v10  ;;  %v4879_v55 = vpop.f32.mrb[144].mxu0  ;;  %v14587_v49 = vld [vmem:[#allocation122_spill] sm:$0xff] }
 0x527   : > { %v5339_v17 = vmul.f32 %v12294_v2, %v4879_v55  ;;  %v4881_v9 = vpop.f32.mrb[145].mxu0  ;;  %v4353_v52 = vmul.f32 %v7719_v5, %v12134_v44  ;;  %v4352_v34 = vmul.f32 %v7719_v5, %v12132_v21  ;;  %v5309_v26 = vmul.f32 %v12288_v43, %v14587_v49 }
 0x528   : > { %v3978_v28 = vpop.xlane.xlu1 %3977  ;;  %v14590_v9 = vld [vmem:[#allocation52_spill] sm:$0xff] }
 0x529   : > { %5143 = vmatmul.mubr.f32.gmra.mrb[250].mxu0 %v4349_v13  ;;  %7724 = vrcp.f32 %v3978_v28  ;;  %v5580_v48 = vsel %vm345_vm0, %v5339_v17, 0.0  ;;  %v5593_v17 = vsel %vm345_vm0, %v5309_v26, 0.0 }
 0x52a   : > { %5147 = vmatprep.mubr.f32.mxu0 %v4353_v52  ;;  %v7721_v4 = vpop.eup %7720  ;;  %v12543_v40 = vadd.f32 %v5580_v48, %v5579_v56  ;;  %v4884_v25 = vpop.f32.mrb[146].mxu0  ;;  %v5310_v52 = vmul.f32 %v12288_v43, %v14590_v9  ;;  %v14591_v48 = vld [vmem:[#allocation77_spill] sm:$0xff] }
 0x52b   : > { %v5340_v36 = vmul.f32 %v12294_v2, %v4884_v25  ;;  %v4886_v19 = vpop.f32.mrb[147].mxu0  ;;  %v4356_v21 = vmul.f32 %v7721_v4, %v12146_v50  ;;  %v4355_v44 = vmul.f32 %v7721_v4, %v12144_v31  ;;  %v14589_v31 = vld [vmem:[#allocation45_spill] sm:$0xff] }
 0x52c   : > { %v3981_v14 = vpop.xlane.xlu0 %3980  ;;  %v14592_v25 = vld [vmem:[#allocation133_spill] sm:$0xff] }
 0x52d   : > { %5148 = vmatmul.mubr.f32.gmra.mrb[252].mxu0 %v4352_v34  ;;  %7726 = vrcp.f32 %v3981_v14  ;;  %v5587_v41 = vsel %vm345_vm0, %v5340_v36, 0.0 }
 0x52e   : > { %5152 = vmatprep.mubr.f32.mxu0 %v4356_v21  ;;  %v12552_v13 = vadd.f32 %v5587_v41, %v5586_v8  ;;  %v4889_v10 = vpop.f32.mrb[148].mxu0  ;;  %v14593_v8 = vld [vmem:[#allocation137_spill] sm:$0xff] }
 0x52f   : > { %v7723_v29 = vpop.eup %7722  ;;  %v5341_v5 = vmul.f32 %v12294_v2, %v4889_v10  ;;  %v4891_v50 = vpop.f32.mrb[149].mxu0  ;;  %v5311_v49 = vmul.f32 %v12288_v43, %v14593_v8  ;;  %v14599_v8 = vld [vmem:[#allocation68_spill] sm:$0xff] }
 0x530   : > { %v3984_v37 = vpop.xlane.xlu1 %3983  ;;  %v4358_v18 = vmul.f32 %v7723_v29, %v14588_v46  ;;  %v4359_v55 = vmul.f32 %v7723_v29, %v14589_v31 }
 0x531   : > { %5153 = vmatmul.mubr.f32.gmra.mrb[254].mxu0 %v4355_v44  ;;  %7728 = vrcp.f32 %v3984_v37  ;;  %v5594_v34 = vsel %vm345_vm0, %v5341_v5, 0.0  ;;  %v5600_v44 = vsel %vm345_vm0, %v5310_v52, 0.0  ;;  %v14594_v37 = vld [vmem:[#allocation42_spill] sm:$0xff]  ;;  %v14595_v5 = vld [vmem:[#allocation143_spill] sm:$0xff] }
 0x532   : > { %5157 = vmatprep.mubr.f32.mxu0 %v4359_v55  ;;  %v12561_v56 = vadd.f32 %v5594_v34, %v5593_v17  ;;  %v4894_v35 = vpop.f32.mrb[150].mxu0  ;;  %v14596_v17 = vld [vmem:[#allocation40_spill] sm:$0xff] }
 0x533   : > { %v7725_v28 = vpop.eup %7724  ;;  %v5342_v36 = vmul.f32 %v12294_v2, %v4894_v35  ;;  %v4896_v19 = vpop.f32.mrb[151].mxu0  ;;  %v5312_v9 = vmul.f32 %v12288_v43, %v14596_v17  ;;  %v14600_v17 = vld [vmem:[#allocation73_spill] sm:$0xff] }
 0x534   : > { %v3987_v11 = vpop.xlane.xlu0 %3986  ;;  %v4362_v4 = vmul.f32 %v7725_v28, %v14591_v48  ;;  %v4361_v14 = vmul.f32 %v7725_v28, %v14592_v25  ;;  %v5607_v28 = vsel %vm345_vm0, %v5311_v49, 0.0  ;;  %v14597_v48 = vld [vmem:[#allocation47_spill] sm:$0xff]  ;;  %v14598_v25 = vld [vmem:[#allocation6_spill] sm:$0xff]  ;;  %v5313_v49 = vmul.f32 %v12288_v43, %v14599_v8 }
 0x535   : > { %5158 = vmatmul.mubr.f32.gmra.mrb[0].mxu0 %v4358_v18  ;;  %7730 = vrcp.f32 %v3987_v11  ;;  %v5601_v26 = vsel %vm345_vm0, %v5342_v36, 0.0 }
 0x536   : > { %5162 = vmatprep.mubr.f32.mxu0 %v4362_v4  ;;  %v12570_v41 = vadd.f32 %v5601_v26, %v5600_v44  ;;  %v4899_v29 = vpop.f32.mrb[152].mxu0  ;;  %v5614_v44 = vsel %vm345_vm0, %v5312_v9, 0.0  ;;  %v5314_v9 = vmul.f32 %v12288_v43, %v14600_v17 }
 0x537   : > { %v7727_v21 = vpop.eup %7726  ;;  %v5343_v18 = vmul.f32 %v12294_v2, %v4899_v29  ;;  %v4901_v31 = vpop.f32.mrb[153].mxu0 }
 0x538   : > { %v3990_v10 = vpop.xlane.xlu1 %3989  ;;  %v4365_v46 = vmul.f32 %v7727_v21, %v14594_v37  ;;  %v4364_v50 = vmul.f32 %v7727_v21, %v14595_v5  ;;  %v5261_v5 = vcombine.high %v14526_v7, %v14526_v7 }
 0x539   : > { %5163 = vmatmul.mubr.f32.gmra.mrb[2].mxu0 %v4361_v14  ;;  %7732 = vrcp.f32 %v3990_v10  ;;  %v5608_v52 = vsel %vm345_vm0, %v5343_v18, 0.0 }
 0x53a   : > { %5167 = vmatprep.mubr.f32.mxu0 %v4365_v46  ;;  %v12579_v34 = vadd.f32 %v5608_v52, %v5607_v28  ;;  %v4904_v35 = vpop.f32.mrb[154].mxu0  ;;  %v5621_v28 = vsel %vm345_vm0, %v5313_v49, 0.0 }
 0x53b   : > { %v7729_v55 = vpop.eup %7728  ;;  %v5344_v14 = vmul.f32 %v12294_v2, %v4904_v35  ;;  %v4906_v19 = vpop.f32.mrb[155].mxu0 }
 0x53c   : > { %v3993_v11 = vpop.xlane.xlu0 %3992  ;;  %v4368_v4 = vmul.f32 %v7729_v55, %v14597_v48  ;;  %v4367_v36 = vmul.f32 %v7729_v55, %v14598_v25  ;;  %v12605_v25 = vrot.slane %v5261_v5, %v14525_v63  ;;  %v14601_v5 = vld [vmem:[#allocation76_spill] sm:$0xff] }
 0x53d   : > { %5168 = vmatmul.mubr.f32.gmra.mrb[4].mxu0 %v4364_v50  ;;  %7734 = vrcp.f32 %v3993_v11  ;;  %v5615_v26 = vsel %vm345_vm0, %v5344_v14, 0.0 }
 0x53e   : > { %5172 = vmatprep.mubr.f32.mxu0 %v4368_v4  ;;  %v12588_v29 = vadd.f32 %v5615_v26, %v5614_v44  ;;  %v4909_v10 = vpop.f32.mrb[156].mxu0 }
 0x53f   : > { %v7731_v21 = vpop.eup %7730  ;;  %v5345_v18 = vmul.f32 %v12294_v2, %v4909_v10  ;;  %v4911_v31 = vpop.f32.mrb[157].mxu0 }
 0x540   : > { %v3996_v37 = vpop.xlane.xlu1 %3995  ;;  %v4371_v46 = vmul.f32 %v7731_v21, %v12200_v61  ;;  %v4370_v50 = vmul.f32 %v7731_v21, %v12198_v38 }
 0x541   : > { %5173 = vmatmul.mubr.f32.gmra.mrb[6].mxu0 %v4367_v36  ;;  %7736 = vrcp.f32 %v3996_v37  ;;  %v5622_v52 = vsel %vm345_vm0, %v5345_v18, 0.0  ;;  %v5628_v36 = vsel %vm345_vm0, %v5314_v9, 0.0  ;;  %v14602_v18 = vld [vmem:[#allocation58_spill] sm:$0xff] }
 0x542   : > { %5177 = vmatprep.mubr.f32.mxu0 %v4371_v46  ;;  %v12599_v61 = vadd.f32 %v5622_v52, %v5621_v28 }
 0x543   : > { %v7733_v55 = vpop.eup %7732  ;;  %v4914_v35 = vpop.f32.mrb[158].mxu0 }
 0x544   : > { %v3999_v7 = vpop.xlane.xlu0 %3998  ;;  %v4374_v38 = vmul.f32 %v7733_v55, %v12210_v58  ;;  %v4373_v11 = vmul.f32 %v7733_v55, %v12208_v0  ;;  %v5346_v48 = vmul.f32 %v12294_v2, %v4914_v35  ;;  %v4916_v4 = vpop.f32.mrb[159].mxu0 }
 0x545   : > { %5178 = vmatmul.mubr.f32.gmra.mrb[8].mxu0 %v4370_v50  ;;  %7738 = vrcp.f32 %v3999_v7 }
 0x546   : > { %5182 = vmatprep.mubr.f32.mxu0 %v4374_v38  ;;  %v5629_v14 = vsel %vm345_vm0, %v5346_v48, 0.0 }
 0x547   : > { %v7735_v43 = vpop.eup %7734  ;;  %v12609_v19 = vadd.f32 %v5629_v14, %v5628_v36  ;;  %v4919_v21 = vpop.f32.mrb[160].mxu0  ;;  %v14603_v36 = vld [vmem:[#allocation27_spill] sm:$0xff] }
 0x548   : > { %v4002_v58 = vpop.xlane.xlu1 %4001  ;;  %v4377_v0 = vmul.f32 %v7735_v43, %v12220_v24  ;;  %v4376_v2 = vmul.f32 %v7735_v43, %v12218_v6  ;;  %v5347_v44 = vmul.f32 %v12605_v25, %v4919_v21  ;;  %v4921_v8 = vpop.f32.mrb[161].mxu0  ;;  %v14604_v21 = vld [vmem:[#allocation139_spill] sm:$0xff] }
 0x549   : > { %5183 = vmatmul.mubr.f32.gmra.mrb[10].mxu0 %v4373_v11  ;;  %7740 = vrcp.f32 %v4002_v58 }
 0x54a   : > { %5187 = vmatprep.mubr.f32.mxu0 %v4377_v0  ;;  %v5414_v26 = vsel %vm345_vm0, %v5347_v44, 0.0  ;;  %v14605_v44 = vld [vmem:[#allocation146_spill] sm:$0xff] }
 0x54b   : > { %v7737_v49 = vpop.eup %7736  ;;  %v12616_v10 = vadd.f32 %v5414_v26, %v12319_v59  ;;  %v4924_v37 = vpop.f32.mrb[162].mxu0  ;;  %v14606_v26 = vld [vmem:[#allocation44_spill] sm:$0xff] }
 0x54c   : > { %v4005_v46 = vpop.xlane.xlu0 %4004  ;;  %v4380_v50 = vmul.f32 %v7737_v49, %v14601_v5  ;;  %v4379_v24 = vmul.f32 %v7737_v49, %v14602_v18  ;;  %v5348_v6 = vmul.f32 %v12605_v25, %v4924_v37  ;;  %v4926_v31 = vpop.f32.mrb[163].mxu0 }
 0x54d   : > { %5188 = vmatmul.mubr.f32.gmra.mrb[12].mxu0 %v4376_v2  ;;  %7742 = vrcp.f32 %v4005_v46  ;;  %v14607_v46 = vld [vmem:[#allocation37_spill] sm:$0xff] }
 0x54e   : > { %5192 = vmatprep.mubr.f32.mxu0 %v4380_v50  ;;  %v5421_v28 = vsel %vm345_vm0, %v5348_v6, 0.0  ;;  %v14608_v31 = vld [vmem:[#allocation17_spill] sm:$0xff] }
 0x54f   : > { %v7739_v55 = vpop.eup %7738  ;;  %v12623_v17 = vadd.f32 %v5421_v28, %v12334_v3  ;;  %v4929_v59 = vpop.f32.mrb[164].mxu0 }
 0x550   : > { %v4008_v9 = vpop.xlane.xlu1 %4007  ;;  %v4383_v52 = vmul.f32 %v7739_v55, %v12246_v42  ;;  %v4382_v35 = vmul.f32 %v7739_v55, %v12244_v54  ;;  %v5349_v7 = vmul.f32 %v12605_v25, %v4929_v59  ;;  %v4931_v38 = vpop.f32.mrb[165].mxu0 }
 0x551   : > { %5193 = vmatmul.mubr.f32.gmra.mrb[14].mxu0 %v4379_v24  ;;  %7744 = vrcp.f32 %v4008_v9  ;;  %v14609_v9 = vld [vmem:[#allocation120_spill] sm:$0xff] }
 0x552   : > { %5197 = vmatprep.mubr.f32.mxu0 %v4383_v52  ;;  %v5428_v48 = vsel %vm345_vm0, %v5349_v7, 0.0 }
 0x553   : > { %v7741_v11 = vpop.eup %7740  ;;  %v12630_v4 = vadd.f32 %v5428_v48, %v12345_v20  ;;  %v4934_v3 = vpop.f32.mrb[166].mxu0 }
 0x554   : > { %v4011_v43 = vpop.xlane.xlu0 %4010  ;;  %v4386_v14 = vmul.f32 %v7741_v11, %v14603_v36  ;;  %v4385_v42 = vmul.f32 %v7741_v11, %v14604_v21  ;;  %v5350_v54 = vmul.f32 %v12605_v25, %v4934_v3  ;;  %v4936_v58 = vpop.f32.mrb[167].mxu0 }
 0x555   : > { %5198 = vmatmul.mubr.f32.gmra.mrb[16].mxu0 %v4382_v35  ;;  %7746 = vrcp.f32 %v4011_v43  ;;  %v14610_v35 = vld [vmem:[#allocation79_spill] sm:$0xff]  ;;  %v14611_v43 = vld [vmem:[#allocation50_spill] sm:$0xff] }
 0x556   : > { %5202 = vmatprep.mubr.f32.mxu0 %v4386_v14  ;;  %v5435_v2 = vsel %vm345_vm0, %v5350_v54, 0.0  ;;  %v14613_v58 = vld [vmem:[#allocation51_spill] sm:$0xff] }
 0x557   : > { %v7743_v0 = vpop.eup %7742  ;;  %v12637_v8 = vadd.f32 %v5435_v2, %v14605_v44  ;;  %v4939_v20 = vpop.f32.mrb[168].mxu0 }
 0x558   : > { %v4014_v49 = vpop.xlane.xlu1 %4013  ;;  %v4389_v37 = vmul.f32 %v7743_v0, %v14606_v26  ;;  %v4388_v5 = vmul.f32 %v7743_v0, %v14607_v46  ;;  %v5351_v50 = vmul.f32 %v12605_v25, %v4939_v20  ;;  %v4941_v18 = vpop.f32.mrb[169].mxu0  ;;  %v14614_v46 = vld [vmem:[#allocation134_spill] sm:$0xff] }
 0x559   : > { %5203 = vmatmul.mubr.f32.gmra.mrb[18].mxu0 %v4385_v42  ;;  %7748 = vrcp.f32 %v4014_v49  ;;  %v14612_v42 = vld [vmem:[#allocation145_spill] sm:$0xff] }
 0x55a   : > { %5207 = vmatprep.mubr.f32.mxu0 %v4389_v37  ;;  %v5442_v6 = vsel %vm345_vm0, %v5351_v50, 0.0  ;;  %v14615_v50 = vld [vmem:[#allocation78_spill] sm:$0xff] }
 0x55b   : > { %v7745_v24 = vpop.eup %7744  ;;  %v12644_v55 = vadd.f32 %v5442_v6, %v14608_v31  ;;  %v4944_v28 = vpop.f32.mrb[170].mxu0 }
 0x55c   : > { %v4017_v59 = vpop.xlane.xlu0 %4016  ;;  %v4392_v52 = vmul.f32 %v7745_v24, %v14609_v9  ;;  %v4391_v7 = vmul.f32 %v7745_v24, %v14610_v35  ;;  %v5352_v38 = vmul.f32 %v12605_v25, %v4944_v28  ;;  %v4946_v11 = vpop.f32.mrb[171].mxu0  ;;  %v14617_v35 = vld [vmem:[#allocation19_spill] sm:$0xff] }
 0x55d   : > { %5208 = vmatmul.mubr.f32.gmra.mrb[20].mxu0 %v4388_v5  ;;  %7750 = vrcp.f32 %v4017_v59 }
 0x55e   : > { %5212 = vmatprep.mubr.f32.mxu0 %v4392_v52  ;;  %v5449_v3 = vsel %vm345_vm0, %v5352_v38, 0.0  ;;  %v14616_v52 = vld [vmem:[#allocation46_spill] sm:$0xff] }
 0x55f   : > { %v7747_v48 = vpop.eup %7746  ;;  %v12651_v36 = vadd.f32 %v5449_v3, %v14611_v43  ;;  %v4949_v14 = vpop.f32.mrb[172].mxu0 }
 0x560   : > { %v4020_v21 = vpop.xlane.xlu1 %4019  ;;  %v4395_v54 = vmul.f32 %v7747_v48, %v14612_v42  ;;  %v4394_v0 = vmul.f32 %v7747_v48, %v14613_v58  ;;  %v5353_v2 = vmul.f32 %v12605_v25, %v4949_v14  ;;  %v4951_v44 = vpop.f32.mrb[173].mxu0  ;;  %v14619_v42 = vld [vmem:[#allocation59_spill] sm:$0xff] }
 0x561   : > { %5213 = vmatmul.mubr.f32.gmra.mrb[22].mxu0 %v4391_v7  ;;  %7752 = vrcp.f32 %v4020_v21  ;;  %v14618_v21 = vld [vmem:[#allocation144_spill] sm:$0xff] }
 0x562   : > { %5217 = vmatprep.mubr.f32.mxu0 %v4395_v54  ;;  %v5456_v49 = vsel %vm345_vm0, %v5353_v2, 0.0 }
 0x563   : > { %v7749_v20 = vpop.eup %7748  ;;  %v12658_v26 = vadd.f32 %v5456_v49, %v12381_v51  ;;  %v4954_v37 = vpop.f32.mrb[174].mxu0 }
 0x564   : > { %v4398_v5 = vmul.f32 %v7749_v20, %v14614_v46  ;;  %v4397_v18 = vmul.f32 %v7749_v20, %v14615_v50  ;;  %v5354_v24 = vmul.f32 %v12605_v25, %v4954_v37  ;;  %v4956_v6 = vpop.f32.mrb[175].mxu0 }
 0x565   : > { %5218 = vmatmul.mubr.f32.gmra.mrb[24].mxu0 %v4394_v0 }
 0x566   : > { %5222 = vmatprep.mubr.f32.mxu0 %v4398_v5  ;;  %v5463_v28 = vsel %vm345_vm0, %v5354_v24, 0.0 }
 0x567   : > { %v7751_v31 = vpop.eup %7750  ;;  %v12665_v59 = vadd.f32 %v5463_v28, %v12390_v22  ;;  %v4959_v9 = vpop.f32.mrb[176].mxu0 }
 0x568   : > { %v4401_v51 = vmul.f32 %v7751_v31, %v14616_v52  ;;  %v4400_v7 = vmul.f32 %v7751_v31, %v14617_v35  ;;  %v5355_v38 = vmul.f32 %v12605_v25, %v4959_v9  ;;  %v4961_v11 = vpop.f32.mrb[177].mxu0 }
 0x569   : > { %5223 = vmatmul.mubr.f32.gmra.mrb[26].mxu0 %v4397_v18 }
 0x56a   : > { %5227 = vmatprep.mubr.f32.mxu0 %v4401_v51  ;;  %v5470_v3 = vsel %vm345_vm0, %v5355_v38, 0.0 }
 0x56b   : > { %v7753_v48 = vpop.eup %7752  ;;  %v12672_v43 = vadd.f32 %v5470_v3, %v12399_v27 }
 0x56c   : > { %v4964_v14 = vpop.f32.mrb[178].mxu0  ;;  %v4404_v22 = vmul.f32 %v7753_v48, %v14618_v21  ;;  %v4403_v54 = vmul.f32 %v7753_v48, %v14619_v42 }
 0x56d   : > { %v5356_v58 = vmul.f32 %v12605_v25, %v4964_v14  ;;  %v4966_v0 = vpop.f32.mrb[179].mxu0  ;;  %5228 = vmatmul.mubr.f32.gmra.mrb[28].mxu0 %v4400_v7 }
 0x56e   : > { %5232 = vmatprep.mubr.f32.mxu0 %v4404_v22 }
 0x56f   : > { %v5477_v2 = vsel %vm345_vm0, %v5356_v58, 0.0 }
 0x570   : > { %v12679_v44 = vadd.f32 %v5477_v2, %v12408_v23  ;;  %v4969_v20 = vpop.f32.mrb[180].mxu0 }
 0x571   : > { %v5357_v49 = vmul.f32 %v12605_v25, %v4969_v20  ;;  %v4971_v27 = vpop.f32.mrb[181].mxu0  ;;  %5233 = vmatmul.mubr.f32.gmra.mrb[30].mxu0 %v4403_v54 }
 0x573   : > { %v5484_v37 = vsel %vm345_vm0, %v5357_v49, 0.0 }
 0x574   : > { %v12684_v46 = vadd.f32 %v5484_v37, %v12417_v33  ;;  %v4974_v5 = vpop.f32.mrb[182].mxu0 }
 0x575   : > { %v5358_v50 = vmul.f32 %v12605_v25, %v4974_v5  ;;  %v4976_v18 = vpop.f32.mrb[183].mxu0 }
 0x577   : > { %v5491_v24 = vsel %vm345_vm0, %v5358_v50, 0.0 }
 0x578   : > { %v12689_v6 = vadd.f32 %v5491_v24, %v12426_v15  ;;  %v4979_v23 = vpop.f32.mrb[184].mxu0 }
 0x579   : > { %v5359_v31 = vmul.f32 %v12605_v25, %v4979_v23  ;;  %v4981_v28 = vpop.f32.mrb[185].mxu0 }
 0x57b   : > { %v5498_v9 = vsel %vm345_vm0, %v5359_v31, 0.0 }
 0x57c   : > { %v12694_v52 = vadd.f32 %v5498_v9, %v12435_v39  ;;  %v4984_v33 = vpop.f32.mrb[186].mxu0 }
 0x57d   : > { %v5360_v51 = vmul.f32 %v12605_v25, %v4984_v33  ;;  %v4986_v35 = vpop.f32.mrb[187].mxu0 }
 0x57f   : > { %v5505_v7 = vsel %vm345_vm0, %v5360_v51, 0.0 }
 0x580   : > { %v12699_v38 = vadd.f32 %v5505_v7, %v12444_v30  ;;  %v4989_v15 = vpop.f32.mrb[188].mxu0 }
 0x581   : > { %v5361_v11 = vmul.f32 %v12605_v25, %v4989_v15  ;;  %v4991_v48 = vpop.f32.mrb[189].mxu0 }
 0x583   : > { %v5512_v3 = vsel %vm345_vm0, %v5361_v11, 0.0 }
 0x584   : > { %v12704_v14 = vadd.f32 %v5512_v3, %v12453_v47  ;;  %v4994_v39 = vpop.f32.mrb[190].mxu0 }
 0x585   : > { %v5362_v21 = vmul.f32 %v12605_v25, %v4994_v39  ;;  %v4996_v22 = vpop.f32.mrb[191].mxu0 }
 0x587   : > { %v5519_v42 = vsel %vm345_vm0, %v5362_v21, 0.0 }
 0x588   : > { %v12709_v54 = vadd.f32 %v5519_v42, %v12462_v12  ;;  %v4999_v30 = vpop.f32.mrb[192].mxu0 }
 0x589   : > { %v5363_v58 = vmul.f32 %v12605_v25, %v4999_v30  ;;  %v5001_v0 = vpop.f32.mrb[193].mxu0 }
 0x58b   : > { %v5526_v2 = vsel %vm345_vm0, %v5363_v58, 0.0 }
 0x58c   : > { %v12714_v20 = vadd.f32 %v5526_v2, %v12471_v16  ;;  %v5004_v47 = vpop.f32.mrb[194].mxu0 }
 0x58d   : > { %v5364_v49 = vmul.f32 %v12605_v25, %v5004_v47  ;;  %v5006_v27 = vpop.f32.mrb[195].mxu0 }
 0x58f   : > { %v5533_v37 = vsel %vm345_vm0, %v5364_v49, 0.0 }
 0x590   : > { %v12719_v5 = vadd.f32 %v5533_v37, %v12480_v57  ;;  %v5009_v12 = vpop.f32.mrb[196].mxu0 }
 0x591   : > { %v5365_v50 = vmul.f32 %v12605_v25, %v5009_v12  ;;  %v5011_v18 = vpop.f32.mrb[197].mxu0 }
 0x593   : > { %v5540_v24 = vsel %vm345_vm0, %v5365_v50, 0.0 }
 0x594   : > { %v12724_v23 = vadd.f32 %v5540_v24, %v12489_v1  ;;  %v5014_v16 = vpop.f32.mrb[198].mxu0 }
 0x595   : > { %v5366_v31 = vmul.f32 %v12605_v25, %v5014_v16  ;;  %v5016_v28 = vpop.f32.mrb[199].mxu0 }
 0x597   : > { %v5547_v9 = vsel %vm345_vm0, %v5366_v31, 0.0 }
 0x598   : > { %v12729_v33 = vadd.f32 %v5547_v9, %v12498_v60  ;;  %v5019_v57 = vpop.f32.mrb[200].mxu0 }
 0x599   : > { %v5367_v51 = vmul.f32 %v12605_v25, %v5019_v57  ;;  %v5021_v35 = vpop.f32.mrb[201].mxu0 }
 0x59b   : > { %v5554_v7 = vsel %vm345_vm0, %v5367_v51, 0.0 }
 0x59c   : > { %v12734_v15 = vadd.f32 %v5554_v7, %v12507_v53  ;;  %v5024_v1 = vpop.f32.mrb[202].mxu0 }
 0x59d   : > { %v5368_v11 = vmul.f32 %v12605_v25, %v5024_v1  ;;  %v5026_v48 = vpop.f32.mrb[203].mxu0 }
 0x59f   : > { %v5561_v3 = vsel %vm345_vm0, %v5368_v11, 0.0 }
 0x5a0   : > { %v12739_v39 = vadd.f32 %v5561_v3, %v12516_v32  ;;  %v5029_v60 = vpop.f32.mrb[204].mxu0 }
 0x5a1   : > { %v5369_v21 = vmul.f32 %v12605_v25, %v5029_v60  ;;  %v5031_v22 = vpop.f32.mrb[205].mxu0 }
 0x5a3   : > { %v5568_v42 = vsel %vm345_vm0, %v5369_v21, 0.0 }
 0x5a4   : > { %v12744_v30 = vadd.f32 %v5568_v42, %v12525_v45  ;;  %v5034_v53 = vpop.f32.mrb[206].mxu0 }
 0x5a5   : > { %v5370_v58 = vmul.f32 %v12605_v25, %v5034_v53  ;;  %v5036_v0 = vpop.f32.mrb[207].mxu0 }
 0x5a7   : > { %v5575_v2 = vsel %vm345_vm0, %v5370_v58, 0.0 }
 0x5a8   : > { %v12749_v47 = vadd.f32 %v5575_v2, %v12534_v62  ;;  %v5039_v32 = vpop.f32.mrb[208].mxu0  ;;  %v14620_v2 = vld [vmem:[#allocation3_spill] sm:$0xff] }
 0x5a9   : > { %v5371_v49 = vmul.f32 %v12605_v25, %v5039_v32  ;;  %v5041_v27 = vpop.f32.mrb[209].mxu0  ;;  %v5262_v32 = vcombine.high %v14620_v2, %v14620_v2 }
 0x5ab   : > { %v5582_v37 = vsel %vm345_vm0, %v5371_v49, 0.0 }
 0x5ac   : > { %v12754_v12 = vadd.f32 %v5582_v37, %v12543_v40  ;;  %v5044_v45 = vpop.f32.mrb[210].mxu0 }
 0x5ad   : > { %v5372_v50 = vmul.f32 %v12605_v25, %v5044_v45  ;;  %v5046_v18 = vpop.f32.mrb[211].mxu0 }
 0x5af   : > { %v5589_v24 = vsel %vm345_vm0, %v5372_v50, 0.0  ;;  %v12790_v50 = vrot.slane %v5262_v32, %v14525_v63 }
 0x5b0   : > { %v12759_v16 = vadd.f32 %v5589_v24, %v12552_v13  ;;  %v5049_v62 = vpop.f32.mrb[212].mxu0 }
 0x5b1   : > { %v5373_v31 = vmul.f32 %v12605_v25, %v5049_v62  ;;  %v5051_v28 = vpop.f32.mrb[213].mxu0 }
 0x5b3   : > { %v5596_v9 = vsel %vm345_vm0, %v5373_v31, 0.0 }
 0x5b4   : > { %v12764_v57 = vadd.f32 %v5596_v9, %v12561_v56  ;;  %v5054_v40 = vpop.f32.mrb[214].mxu0 }
 0x5b5   : > { %v5374_v51 = vmul.f32 %v12605_v25, %v5054_v40  ;;  %v5056_v35 = vpop.f32.mrb[215].mxu0 }
 0x5b7   : > { %v5603_v7 = vsel %vm345_vm0, %v5374_v51, 0.0 }
 0x5b8   : > { %v12769_v1 = vadd.f32 %v5603_v7, %v12570_v41  ;;  %v5059_v13 = vpop.f32.mrb[216].mxu0 }
 0x5b9   : > { %v5375_v11 = vmul.f32 %v12605_v25, %v5059_v13  ;;  %v5061_v48 = vpop.f32.mrb[217].mxu0 }
 0x5bb   : > { %v5610_v3 = vsel %vm345_vm0, %v5375_v11, 0.0 }
 0x5bc   : > { %v12774_v60 = vadd.f32 %v5610_v3, %v12579_v34  ;;  %v5064_v56 = vpop.f32.mrb[218].mxu0 }
 0x5bd   : > { %v5376_v21 = vmul.f32 %v12605_v25, %v5064_v56  ;;  %v5066_v22 = vpop.f32.mrb[219].mxu0 }
 0x5bf   : > { %v5617_v42 = vsel %vm345_vm0, %v5376_v21, 0.0 }
 0x5c0   : > { %v12779_v53 = vadd.f32 %v5617_v42, %v12588_v29  ;;  %v5069_v41 = vpop.f32.mrb[220].mxu0 }
 0x5c1   : > { %v5377_v58 = vmul.f32 %v12605_v25, %v5069_v41  ;;  %v5071_v0 = vpop.f32.mrb[221].mxu0 }
 0x5c3   : > { %v5624_v49 = vsel %vm345_vm0, %v5377_v58, 0.0 }
 0x5c4   : > { %v12786_v34 = vadd.f32 %v5624_v49, %v12599_v61  ;;  %v5074_v27 = vpop.f32.mrb[222].mxu0 }
 0x5c5   : > { %v5378_v37 = vmul.f32 %v12605_v25, %v5074_v27  ;;  %v5076_v45 = vpop.f32.mrb[223].mxu0 }
 0x5c7   : > { %v5631_v29 = vsel %vm345_vm0, %v5378_v37, 0.0 }
 0x5c8   : > { %v12794_v18 = vadd.f32 %v5631_v29, %v12609_v19  ;;  %v5079_v24 = vpop.f32.mrb[224].mxu0 }
 0x5c9   : > { %v5379_v62 = vmul.f32 %v12790_v50, %v5079_v24  ;;  %v5081_v31 = vpop.f32.mrb[225].mxu0 }
 0x5cb   : > { %v5416_v28 = vsel %vm345_vm0, %v5379_v62, 0.0 }
 0x5cc   : > { %v5417_v61 = vadd.f32 %v5416_v28, %v12616_v10  ;;  %v5084_v9 = vpop.f32.mrb[226].mxu0 }
 0x5cd   : > { %v5380_v25 = vmul.f32 %v12790_v50, %v5084_v9  ;;  %v5086_v40 = vpop.f32.mrb[227].mxu0 }
 0x5ce   : > { %6730 = vmatprep.mubr.msk.f32.mxu0 %vm345_vm0, %v5417_v61 }
 0x5cf   : > { %v5423_v63 = vsel %vm345_vm0, %v5380_v25, 0.0 }
 0x5d0   : > { %v5424_v51 = vadd.f32 %v5423_v63, %v12623_v17  ;;  %v5089_v19 = vpop.f32.mrb[228].mxu0 }
 0x5d1   : > { %v5381_v35 = vmul.f32 %v12790_v50, %v5089_v19  ;;  %v5091_v7 = vpop.f32.mrb[229].mxu0 }
 0x5d2   : > { %6731 = vmatmul.mubr.msk.f32.vlgmr.msra.gmra.mrb[32].mxu0 %vm345_vm0, %v5424_v51 }
 0x5d3   : > { %v5430_v13 = vsel %vm345_vm0, %v5381_v35, 0.0 }
 0x5d4   : > { %v5431_v10 = vadd.f32 %v5430_v13, %v12630_v4  ;;  %v5094_v11 = vpop.f32.mrb[230].mxu0 }
 0x5d5   : > { %v5382_v48 = vmul.f32 %v12790_v50, %v5094_v11  ;;  %v5096_v3 = vpop.f32.mrb[231].mxu0 }
 0x5d6   : > { %6733 = vmatprep.mubr.msk.f32.mxu0 %vm345_vm0, %v5431_v10 }
 0x5d7   : > { %v5437_v56 = vsel %vm345_vm0, %v5382_v48, 0.0 }
 0x5d8   : > { %v5438_v17 = vadd.f32 %v5437_v56, %v12637_v8  ;;  %v5099_v21 = vpop.f32.mrb[232].mxu0 }
 0x5d9   : > { %v5383_v22 = vmul.f32 %v12790_v50, %v5099_v21  ;;  %v5101_v42 = vpop.f32.mrb[233].mxu0 }
 0x5da   : > { %6734 = vmatmul.mubr.msk.f32.gmra.mrb[34].mxu0 %vm345_vm0, %v5438_v17 }
 0x5db   : > { %v5444_v41 = vsel %vm345_vm0, %v5383_v22, 0.0 }
 0x5dc   : > { %v5445_v4 = vadd.f32 %v5444_v41, %v12644_v55  ;;  %v5104_v58 = vpop.f32.mrb[234].mxu0 }
 0x5dd   : > { %v5384_v0 = vmul.f32 %v12790_v50, %v5104_v58  ;;  %v5106_v2 = vpop.f32.mrb[235].mxu0 }
 0x5de   : > { %6736 = vmatprep.mubr.msk.f32.mxu0 %vm345_vm0, %v5445_v4 }
 0x5df   : > { %v5451_v32 = vsel %vm345_vm0, %v5384_v0, 0.0 }
 0x5e0   : > { %v5452_v8 = vadd.f32 %v5451_v32, %v12651_v36  ;;  %v5109_v49 = vpop.f32.mrb[236].mxu0 }
 0x5e1   : > { %v5385_v27 = vmul.f32 %v12790_v50, %v5109_v49  ;;  %v5111_v37 = vpop.f32.mrb[237].mxu0 }
 0x5e2   : > { %6737 = vmatmul.mubr.msk.f32.gmra.mrb[36].mxu0 %vm345_vm0, %v5452_v8 }
 0x5e3   : > { %v5458_v45 = vsel %vm345_vm0, %v5385_v27, 0.0 }
 0x5e4   : > { %v5459_v55 = vadd.f32 %v5458_v45, %v12658_v26  ;;  %v5114_v29 = vpop.f32.mrb[238].mxu0 }
 0x5e5   : > { %v5386_v24 = vmul.f32 %v12790_v50, %v5114_v29  ;;  %v5116_v62 = vpop.f32.mrb[239].mxu0 }
 0x5e6   : > { %6739 = vmatprep.mubr.msk.f32.mxu0 %vm345_vm0, %v5459_v55 }
 0x5e7   : > { %v5465_v31 = vsel %vm345_vm0, %v5386_v24, 0.0 }
 0x5e8   : > { %v5466_v36 = vadd.f32 %v5465_v31, %v12665_v59  ;;  %v5119_v28 = vpop.f32.mrb[240].mxu0 }
 0x5e9   : > { %v5387_v61 = vmul.f32 %v12790_v50, %v5119_v28  ;;  %v5121_v9 = vpop.f32.mrb[241].mxu0 }
 0x5ea   : > { %6740 = vmatmul.mubr.msk.f32.gmra.mrb[38].mxu0 %vm345_vm0, %v5466_v36 }
 0x5eb   : > { %v5472_v25 = vsel %vm345_vm0, %v5387_v61, 0.0 }
 0x5ec   : > { %v5473_v26 = vadd.f32 %v5472_v25, %v12672_v43  ;;  %v5124_v40 = vpop.f32.mrb[242].mxu0 }
 0x5ed   : > { %v5388_v63 = vmul.f32 %v12790_v50, %v5124_v40  ;;  %v5126_v51 = vpop.f32.mrb[243].mxu0 }
 0x5ee   : > { %6742 = vmatprep.mubr.msk.f32.mxu0 %vm345_vm0, %v5473_v26 }
 0x5ef   : > { %v5479_v19 = vsel %vm345_vm0, %v5388_v63, 0.0 }
 0x5f0   : > { %v5480_v59 = vadd.f32 %v5479_v19, %v12679_v44  ;;  %v5129_v35 = vpop.f32.mrb[244].mxu0 }
 0x5f1   : > { %v5389_v7 = vmul.f32 %v12790_v50, %v5129_v35  ;;  %v5131_v13 = vpop.f32.mrb[245].mxu0 }
 0x5f2   : > { %6743 = vmatmul.mubr.msk.f32.gmra.mrb[40].mxu0 %vm345_vm0, %v5480_v59 }
 0x5f3   : > { %v5486_v10 = vsel %vm345_vm0, %v5389_v7, 0.0 }
 0x5f4   : > { %v5487_v43 = vadd.f32 %v5486_v10, %v12684_v46  ;;  %v5134_v11 = vpop.f32.mrb[246].mxu0 }
 0x5f5   : > { %v5390_v48 = vmul.f32 %v12790_v50, %v5134_v11  ;;  %v5136_v3 = vpop.f32.mrb[247].mxu0 }
 0x5f6   : > { %6745 = vmatprep.mubr.msk.f32.mxu0 %vm345_vm0, %v5487_v43 }
 0x5f7   : > { %v5493_v56 = vsel %vm345_vm0, %v5390_v48, 0.0 }
 0x5f8   : > { %v5494_v44 = vadd.f32 %v5493_v56, %v12689_v6  ;;  %v5139_v17 = vpop.f32.mrb[248].mxu0 }
 0x5f9   : > { %v5391_v21 = vmul.f32 %v12790_v50, %v5139_v17  ;;  %v5141_v22 = vpop.f32.mrb[249].mxu0 }
 0x5fa   : > { %6746 = vmatmul.mubr.msk.f32.gmra.mrb[42].mxu0 %vm345_vm0, %v5494_v44 }
 0x5fb   : > { %v5500_v42 = vsel %vm345_vm0, %v5391_v21, 0.0 }
 0x5fc   : > { %v5501_v46 = vadd.f32 %v5500_v42, %v12694_v52  ;;  %v5144_v41 = vpop.f32.mrb[250].mxu0 }
 0x5fd   : > { %v5392_v4 = vmul.f32 %v12790_v50, %v5144_v41  ;;  %v5146_v58 = vpop.f32.mrb[251].mxu0 }
 0x5fe   : > { %6748 = vmatprep.mubr.msk.f32.mxu0 %vm345_vm0, %v5501_v46 }
 0x5ff   : > { %v5507_v0 = vsel %vm345_vm0, %v5392_v4, 0.0 }
 0x600   : > { %v5508_v6 = vadd.f32 %v5507_v0, %v12699_v38  ;;  %v5149_v2 = vpop.f32.mrb[252].mxu0 }
 0x601   : > { %v5393_v32 = vmul.f32 %v12790_v50, %v5149_v2  ;;  %v5151_v8 = vpop.f32.mrb[253].mxu0 }
 0x602   : > { %6749 = vmatmul.mubr.msk.f32.gmra.mrb[44].mxu0 %vm345_vm0, %v5508_v6 }
 0x603   : > { %v5514_v49 = vsel %vm345_vm0, %v5393_v32, 0.0 }
 0x604   : > { %v5515_v52 = vadd.f32 %v5514_v49, %v12704_v14  ;;  %v5154_v27 = vpop.f32.mrb[254].mxu0 }
 0x605   : > { %v5394_v37 = vmul.f32 %v12790_v50, %v5154_v27  ;;  %v5156_v45 = vpop.f32.mrb[255].mxu0 }
 0x606   : > { %6751 = vmatprep.mubr.msk.f32.mxu1 %vm345_vm0, %v5515_v52 }
 0x607   : > { %v5521_v55 = vsel %vm345_vm0, %v5394_v37, 0.0 }
 0x608   : > { %v5522_v38 = vadd.f32 %v5521_v55, %v12709_v54  ;;  %v5159_v29 = vpop.f32.mrb[0].mxu0 }
 0x609   : > { %v5395_v24 = vmul.f32 %v12790_v50, %v5159_v29  ;;  %v5161_v62 = vpop.f32.mrb[1].mxu0 }
 0x60a   : > { %6752 = vmatmul.mubr.msk.f32.vlgmr.msra.gmra.mrb[0].mxu1 %vm345_vm0, %v5522_v38 }
 0x60b   : > { %v5528_v31 = vsel %vm345_vm0, %v5395_v24, 0.0 }
 0x60c   : > { %v5529_v14 = vadd.f32 %v5528_v31, %v12714_v20  ;;  %v5164_v36 = vpop.f32.mrb[2].mxu0 }
 0x60d   : > { %v5396_v28 = vmul.f32 %v12790_v50, %v5164_v36  ;;  %v5166_v61 = vpop.f32.mrb[3].mxu0 }
 0x60e   : > { %6754 = vmatprep.mubr.msk.f32.mxu1 %vm345_vm0, %v5529_v14 }
 0x60f   : > { %v5535_v9 = vsel %vm345_vm0, %v5396_v28, 0.0 }
 0x610   : > { %v5536_v54 = vadd.f32 %v5535_v9, %v12719_v5  ;;  %v5169_v25 = vpop.f32.mrb[4].mxu0 }
 0x611   : > { %v5397_v26 = vmul.f32 %v12790_v50, %v5169_v25  ;;  %v5171_v40 = vpop.f32.mrb[5].mxu0 }
 0x612   : > { %6755 = vmatmul.mubr.msk.f32.gmra.mrb[2].mxu1 %vm345_vm0, %v5536_v54 }
 0x613   : > { %v5542_v63 = vsel %vm345_vm0, %v5397_v26, 0.0 }
 0x614   : > { %v5543_v20 = vadd.f32 %v5542_v63, %v12724_v23  ;;  %v5174_v51 = vpop.f32.mrb[6].mxu0 }
 0x615   : > { %v5398_v19 = vmul.f32 %v12790_v50, %v5174_v51  ;;  %v5176_v59 = vpop.f32.mrb[7].mxu0 }
 0x616   : > { %6757 = vmatprep.mubr.msk.f32.mxu1 %vm345_vm0, %v5543_v20 }
 0x617   : > { %v5549_v35 = vsel %vm345_vm0, %v5398_v19, 0.0 }
 0x618   : > { %v5550_v5 = vadd.f32 %v5549_v35, %v12729_v33  ;;  %v5179_v7 = vpop.f32.mrb[8].mxu0 }
 0x619   : > { %v5399_v13 = vmul.f32 %v12790_v50, %v5179_v7  ;;  %v5181_v10 = vpop.f32.mrb[9].mxu0 }
 0x61a   : > { %6758 = vmatmul.mubr.msk.f32.gmra.mrb[4].mxu1 %vm345_vm0, %v5550_v5  ;;  %v12927_v5 = vld [vmem:[%s13038_s4] ss:$0 sm:$0xff] }
 0x61b   : > { %v5556_v43 = vsel %vm345_vm0, %v5399_v13, 0.0 }
 0x61c   : > { %v5557_v23 = vadd.f32 %v5556_v43, %v12734_v15  ;;  %v5184_v11 = vpop.f32.mrb[10].mxu0 }
 0x61d   : > { %v5400_v48 = vmul.f32 %v12790_v50, %v5184_v11  ;;  %v5186_v3 = vpop.f32.mrb[11].mxu0 }
 0x61e   : > { %6760 = vmatprep.mubr.msk.f32.mxu1 %vm345_vm0, %v5557_v23 }
 0x61f   : > { %v5563_v56 = vsel %vm345_vm0, %v5400_v48, 0.0 }
 0x620   : > { %v5564_v33 = vadd.f32 %v5563_v56, %v12739_v39  ;;  %v5189_v44 = vpop.f32.mrb[12].mxu0 }
 0x621   : > { %v5401_v17 = vmul.f32 %v12790_v50, %v5189_v44  ;;  %v5191_v21 = vpop.f32.mrb[13].mxu0 }
 0x622   : > { %6761 = vmatmul.mubr.msk.f32.gmra.mrb[6].mxu1 %vm345_vm0, %v5564_v33 }
 0x623   : > { %v5570_v22 = vsel %vm345_vm0, %v5401_v17, 0.0 }
 0x624   : > { %v5571_v15 = vadd.f32 %v5570_v22, %v12744_v30  ;;  %v5194_v42 = vpop.f32.mrb[14].mxu0 }
 0x625   : > { %v5402_v46 = vmul.f32 %v12790_v50, %v5194_v42  ;;  %v5196_v41 = vpop.f32.mrb[15].mxu0 }
 0x626   : > { %6763 = vmatprep.mubr.msk.f32.mxu1 %vm345_vm0, %v5571_v15 }
 0x627   : > { %v5577_v4 = vsel %vm345_vm0, %v5402_v46, 0.0 }
 0x628   : > { %v5578_v39 = vadd.f32 %v5577_v4, %v12749_v47  ;;  %v5199_v58 = vpop.f32.mrb[16].mxu0 }
 0x629   : > { %v5403_v0 = vmul.f32 %v12790_v50, %v5199_v58  ;;  %v5201_v6 = vpop.f32.mrb[17].mxu0 }
 0x62a   : > { %6764 = vmatmul.mubr.msk.f32.gmra.mrb[8].mxu1 %vm345_vm0, %v5578_v39 }
 0x62b   : > { %v5584_v2 = vsel %vm345_vm0, %v5403_v0, 0.0 }
 0x62c   : > { %v5585_v30 = vadd.f32 %v5584_v2, %v12754_v12  ;;  %v5204_v32 = vpop.f32.mrb[18].mxu0 }
 0x62d   : > { %v5404_v8 = vmul.f32 %v12790_v50, %v5204_v32  ;;  %v5206_v49 = vpop.f32.mrb[19].mxu0 }
 0x62e   : > { %6766 = vmatprep.mubr.msk.f32.mxu1 %vm345_vm0, %v5585_v30 }
 0x62f   : > { %v5591_v52 = vsel %vm345_vm0, %v5404_v8, 0.0 }
 0x630   : > { %v5592_v47 = vadd.f32 %v5591_v52, %v12759_v16  ;;  %v5209_v27 = vpop.f32.mrb[20].mxu0 }
 0x631   : > { %v5405_v37 = vmul.f32 %v12790_v50, %v5209_v27  ;;  %v5211_v45 = vpop.f32.mrb[21].mxu0 }
 0x632   : > { %6767 = vmatmul.mubr.msk.f32.gmra.mrb[10].mxu1 %vm345_vm0, %v5592_v47 }
 0x633   : > { %v5598_v55 = vsel %vm345_vm0, %v5405_v37, 0.0 }
 0x634   : > { %v5599_v12 = vadd.f32 %v5598_v55, %v12764_v57  ;;  %v5214_v38 = vpop.f32.mrb[22].mxu0 }
 0x635   : > { %v5406_v29 = vmul.f32 %v12790_v50, %v5214_v38  ;;  %v5216_v24 = vpop.f32.mrb[23].mxu0 }
 0x636   : > { %6769 = vmatprep.mubr.msk.f32.mxu1 %vm345_vm0, %v5599_v12 }
 0x637   : > { %v5605_v62 = vsel %vm345_vm0, %v5406_v29, 0.0 }
 0x638   : > { %v5606_v16 = vadd.f32 %v5605_v62, %v12769_v1  ;;  %v5219_v31 = vpop.f32.mrb[24].mxu0 }
 0x639   : > { %v5407_v14 = vmul.f32 %v12790_v50, %v5219_v31  ;;  %v5221_v36 = vpop.f32.mrb[25].mxu0 }
 0x63a   : > { %6770 = vmatmul.mubr.msk.f32.gmra.mrb[12].mxu1 %vm345_vm0, %v5606_v16 }
 0x63b   : > { %v5612_v28 = vsel %vm345_vm0, %v5407_v14, 0.0 }
 0x63c   : > { %v5613_v57 = vadd.f32 %v5612_v28, %v12774_v60  ;;  %v5224_v61 = vpop.f32.mrb[26].mxu0 }
 0x63d   : > { %v5408_v9 = vmul.f32 %v12790_v50, %v5224_v61  ;;  %v5226_v54 = vpop.f32.mrb[27].mxu0 }
 0x63e   : > { %6772 = vmatprep.mubr.msk.f32.mxu1 %vm345_vm0, %v5613_v57 }
 0x63f   : > { %v5619_v25 = vsel %vm345_vm0, %v5408_v9, 0.0 }
 0x640   : > { %v5620_v1 = vadd.f32 %v5619_v25, %v12779_v53  ;;  %v5229_v26 = vpop.f32.mrb[28].mxu0 }
 0x641   : > { %v5409_v40 = vmul.f32 %v12790_v50, %v5229_v26  ;;  %v5231_v63 = vpop.f32.mrb[29].mxu0 }
 0x642   : > { %6773 = vmatmul.mubr.msk.f32.gmra.mrb[14].mxu1 %vm345_vm0, %v5620_v1 }
 0x643   : > { %v5626_v20 = vsel %vm345_vm0, %v5409_v40, 0.0 }
 0x644   : > { %v5627_v60 = vadd.f32 %v5626_v20, %v12786_v34  ;;  %v5234_v51 = vpop.f32.mrb[30].mxu0 }
 0x645   : > { %v5410_v19 = vmul.f32 %v12790_v50, %v5234_v51  ;;  %v5236_v59 = vpop.f32.mrb[31].mxu0 }
 0x646   : > { %6775 = vmatprep.mubr.msk.f32.mxu1 %vm345_vm0, %v5627_v60 }
 0x647   : > { %v5633_v35 = vsel %vm345_vm0, %v5410_v19, 0.0 }
 0x648   : > { %v5634_v53 = vadd.f32 %v5633_v35, %v12794_v18 }
 0x64a   : > { %6776 = vmatmul.mubr.msk.f32.gmra.mrb[16].mxu1 %vm345_vm0, %v5634_v53 }
 0x6a5   : > { %v6732_v34 = vpop.f32.mrb[32].mxu0 }
 0x6a6   : > { %v5814_v50 = vadd.f32 %v6732_v34, %v12927_v5  ;;  %v5808_v18 = vpop.f32.mrb[33].mxu0 }
 0x6a7   : > { %v5809_v7 = vadd.f32 %v12927_v5, %v5808_v18 }
 0x6a8   : > { %5968 = vst.msk [vmem:[%s12933_s11 + $0x8] sm:$0xff] %vm345_vm0, %v5814_v50 }
 0x6a9   : > { %5967 = vst.msk [vmem:[%s12933_s11] sm:$0xff] %vm345_vm0, %v5809_v7 }
 0x6ad   : > { %v6735_v13 = vpop.f32.mrb[34].mxu0 }
 0x6ae   : > { %v5824_v10 = vadd.f32 %v6735_v13, %v12927_v5  ;;  %v5818_v43 = vpop.f32.mrb[35].mxu0 }
 0x6af   : > { %v5819_v23 = vadd.f32 %v12927_v5, %v5818_v43 }
 0x6b0   : > { %5970 = vst.msk [vmem:[%s12933_s11 + $0x18] sm:$0xff] %vm345_vm0, %v5824_v10 }
 0x6b1   : > { %5969 = vst.msk [vmem:[%s12933_s11 + $0x10] sm:$0xff] %vm345_vm0, %v5819_v23 }
 0x6b5   : > { %v6738_v11 = vpop.f32.mrb[36].mxu0 }
 0x6b6   : > { %v5834_v48 = vadd.f32 %v6738_v11, %v12927_v5  ;;  %v5828_v3 = vpop.f32.mrb[37].mxu0 }
 0x6b7   : > { %v5829_v56 = vadd.f32 %v12927_v5, %v5828_v3 }
 0x6b8   : > { %5972 = vst.msk [vmem:[%s12933_s11 + $0x28] sm:$0xff] %vm345_vm0, %v5834_v48 }
 0x6b9   : > { %5971 = vst.msk [vmem:[%s12933_s11 + $0x20] sm:$0xff] %vm345_vm0, %v5829_v56 }
 0x6bd   : > { %v6741_v33 = vpop.f32.mrb[38].mxu0 }
 0x6be   : > { %v5844_v44 = vadd.f32 %v6741_v33, %v12927_v5  ;;  %v5838_v17 = vpop.f32.mrb[39].mxu0 }
 0x6bf   : > { %v5839_v21 = vadd.f32 %v12927_v5, %v5838_v17 }
 0x6c0   : > { %5974 = vst.msk [vmem:[%s12933_s11 + $0x38] sm:$0xff] %vm345_vm0, %v5844_v44 }
 0x6c1   : > { %5973 = vst.msk [vmem:[%s12933_s11 + $0x30] sm:$0xff] %vm345_vm0, %v5839_v21 }
 0x6c5   : > { %v6744_v22 = vpop.f32.mrb[40].mxu0 }
 0x6c6   : > { %v5854_v15 = vadd.f32 %v6744_v22, %v12927_v5  ;;  %v5848_v42 = vpop.f32.mrb[41].mxu0 }
 0x6c7   : > { %v5849_v46 = vadd.f32 %v12927_v5, %v5848_v42 }
 0x6c8   : > { %5976 = vst.msk [vmem:[%s12933_s11 + $0x48] sm:$0xff] %vm345_vm0, %v5854_v15 }
 0x6c9   : > { %5975 = vst.msk [vmem:[%s12933_s11 + $0x40] sm:$0xff] %vm345_vm0, %v5849_v46 }
 0x6cd   : > { %v6747_v41 = vpop.f32.mrb[42].mxu0 }
 0x6ce   : > { %v5864_v4 = vadd.f32 %v6747_v41, %v12927_v5  ;;  %v5858_v39 = vpop.f32.mrb[43].mxu0 }
 0x6cf   : > { %v5859_v58 = vadd.f32 %v12927_v5, %v5858_v39 }
 0x6d0   : > { %5978 = vst.msk [vmem:[%s12933_s11 + $0x58] sm:$0xff] %vm345_vm0, %v5864_v4 }
 0x6d1   : > { %5977 = vst.msk [vmem:[%s12933_s11 + $0x50] sm:$0xff] %vm345_vm0, %v5859_v58 }
 0x6d5   : > { %v6750_v0 = vpop.f32.mrb[44].mxu0 }
 0x6d6   : > { %v5874_v6 = vadd.f32 %v6750_v0, %v12927_v5  ;;  %v5868_v2 = vpop.f32.mrb[45].mxu0 }
 0x6d7   : > { %v5869_v30 = vadd.f32 %v12927_v5, %v5868_v2 }
 0x6d8   : > { %5980 = vst.msk [vmem:[%s12933_s11 + $0x68] sm:$0xff] %vm345_vm0, %v5874_v6 }
 0x6d9   : > { %5979 = vst.msk [vmem:[%s12933_s11 + $0x60] sm:$0xff] %vm345_vm0, %v5869_v30 }
 0x6dd   : > { %v6753_v32 = vpop.f32.mrb[0].mxu1 }
 0x6de   : > { %v5884_v8 = vadd.f32 %v6753_v32, %v12927_v5  ;;  %v5878_v49 = vpop.f32.mrb[1].mxu1 }
 0x6df   : > { %v5879_v52 = vadd.f32 %v12927_v5, %v5878_v49 }
 0x6e0   : > { %5982 = vst.msk [vmem:[%s12933_s11 + $0x78] sm:$0xff] %vm345_vm0, %v5884_v8 }
 0x6e1   : > { %5981 = vst.msk [vmem:[%s12933_s11 + $0x70] sm:$0xff] %vm345_vm0, %v5879_v52 }
 0x6e5   : > { %v6756_v47 = vpop.f32.mrb[2].mxu1 }
 0x6e6   : > { %v5894_v27 = vadd.f32 %v6756_v47, %v12927_v5  ;;  %v5888_v37 = vpop.f32.mrb[3].mxu1 }
 0x6e7   : > { %v5889_v45 = vadd.f32 %v12927_v5, %v5888_v37 }
 0x6e8   : > { %5984 = vst.msk [vmem:[%s12933_s11 + $0x88] sm:$0xff] %vm345_vm0, %v5894_v27 }
 0x6e9   : > { %5983 = vst.msk [vmem:[%s12933_s11 + $0x80] sm:$0xff] %vm345_vm0, %v5889_v45 }
 0x6ed   : > { %v6759_v55 = vpop.f32.mrb[4].mxu1 }
 0x6ee   : > { %v5904_v12 = vadd.f32 %v6759_v55, %v12927_v5  ;;  %v5898_v38 = vpop.f32.mrb[5].mxu1 }
 0x6ef   : > { %v5899_v29 = vadd.f32 %v12927_v5, %v5898_v38 }
 0x6f0   : > { %5986 = vst.msk [vmem:[%s12933_s11 + $0x98] sm:$0xff] %vm345_vm0, %v5904_v12 }
 0x6f1   : > { %5985 = vst.msk [vmem:[%s12933_s11 + $0x90] sm:$0xff] %vm345_vm0, %v5899_v29 }
 0x6f5   : > { %v6762_v24 = vpop.f32.mrb[6].mxu1 }
 0x6f6   : > { %v5914_v62 = vadd.f32 %v6762_v24, %v12927_v5  ;;  %v5908_v16 = vpop.f32.mrb[7].mxu1 }
 0x6f7   : > { %v5909_v31 = vadd.f32 %v12927_v5, %v5908_v16 }
 0x6f8   : > { %5988 = vst.msk [vmem:[%s12933_s11 + $0xa8] sm:$0xff] %vm345_vm0, %v5914_v62 }
 0x6f9   : > { %5987 = vst.msk [vmem:[%s12933_s11 + $0xa0] sm:$0xff] %vm345_vm0, %v5909_v31 }
 0x6fd   : > { %v6765_v14 = vpop.f32.mrb[8].mxu1 }
 0x6fe   : > { %v5924_v36 = vadd.f32 %v6765_v14, %v12927_v5  ;;  %v5918_v28 = vpop.f32.mrb[9].mxu1 }
 0x6ff   : > { %v5919_v57 = vadd.f32 %v12927_v5, %v5918_v28 }
 0x700   : > { %5990 = vst.msk [vmem:[%s12933_s11 + $0xb8] sm:$0xff] %vm345_vm0, %v5924_v36 }
 0x701   : > { %5989 = vst.msk [vmem:[%s12933_s11 + $0xb0] sm:$0xff] %vm345_vm0, %v5919_v57 }
 0x705   : > { %v6768_v61 = vpop.f32.mrb[10].mxu1 }
 0x706   : > { %v5934_v9 = vadd.f32 %v6768_v61, %v12927_v5  ;;  %v5928_v54 = vpop.f32.mrb[11].mxu1 }
 0x707   : > { %v5929_v25 = vadd.f32 %v12927_v5, %v5928_v54 }
 0x708   : > { %5992 = vst.msk [vmem:[%s12933_s11 + $0xc8] sm:$0xff] %vm345_vm0, %v5934_v9 }
 0x709   : > { %5991 = vst.msk [vmem:[%s12933_s11 + $0xc0] sm:$0xff] %vm345_vm0, %v5929_v25 }
 0x70d   : > { %v6771_v1 = vpop.f32.mrb[12].mxu1 }
 0x70e   : > { %v5944_v26 = vadd.f32 %v6771_v1, %v12927_v5  ;;  %v5938_v40 = vpop.f32.mrb[13].mxu1 }
 0x70f   : > { %v5939_v63 = vadd.f32 %v12927_v5, %v5938_v40 }
 0x710   : > { %5994 = vst.msk [vmem:[%s12933_s11 + $0xd8] sm:$0xff] %vm345_vm0, %v5944_v26 }
 0x711   : > { %5993 = vst.msk [vmem:[%s12933_s11 + $0xd0] sm:$0xff] %vm345_vm0, %v5939_v63 }
 0x715   : > { %v6774_v20 = vpop.f32.mrb[14].mxu1 }
 0x716   : > { %v5954_v60 = vadd.f32 %v6774_v20, %v12927_v5  ;;  %v5948_v51 = vpop.f32.mrb[15].mxu1 }
 0x717   : > { %v5949_v19 = vadd.f32 %v12927_v5, %v5948_v51 }
 0x718   : > { %5996 = vst.msk [vmem:[%s12933_s11 + $0xe8] sm:$0xff] %vm345_vm0, %v5954_v60 }
 0x719   : > { %5995 = vst.msk [vmem:[%s12933_s11 + $0xe0] sm:$0xff] %vm345_vm0, %v5949_v19 }
 0x71d   : > { %v6777_v59 = vpop.f32.mrb[16].mxu1 }
 0x71e   : > { %v5964_v35 = vadd.f32 %v6777_v59, %v12927_v5  ;;  %v5958_v53 = vpop.f32.mrb[17].mxu1 }
 0x71f   : > { %v5959_v34 = vadd.f32 %v12927_v5, %v5958_v53 }
 0x720   : > { %5998 = vst.msk [vmem:[%s12933_s11 + $0xf8] sm:$0xff] %vm345_vm0, %v5964_v35 }
 0x721   : > { %5997 = vst.msk [vmem:[%s12933_s11 + $0xf0] sm:$0xff] %vm345_vm0, %v5959_v34 }
 0x722 PF: > { %s16_s21 = sadd.s32 1, %s7916_s21  }
 0x723   : > { %p13_p4 = scmp.ge.s32.totalorder %s16_s21, 4  }
 0x725   :  { %15 = sbr.rel (!%p13_p4) target bundleno = 1 (0x1), region = 77 }

</bundles_post_ra>
